<compile_context>
chip_gen: v6e
topology: v6e:2x2x1
jax: 0.10.0
libtpu: 0.0.40
codegen_flags: <defaults>
</compile_context>

<pallas_src>
import functools

import jax
import jax.numpy as jnp
import numpy as np
from jax.experimental import pallas as pl
from jax.experimental.pallas import tpu as pltpu


# ------------------------------ fused kernel ------------------------------- #

def _phn_kernel(audio_ref, w_in_ref, b_in_ref,
                wd_ref, bd_ref, wrs_ref, brs_ref,
                w_skip_ref, b_skip_ref, w_final_ref, b_final_ref,
                out_ref,
                xpad_ref,
                *, n_blocks, n_layers, max_dil, rc, gc, sc):
    T = out_ref.shape[0]
    half = gc // 2

    # Zero the causal halo (rows [0, max_dil)) once per batch element.  It is
    # never overwritten, so every dilated read below sees zeros for t < d.
    # Must be unconditional: the batch axis is "parallel" (megacore), so a
    # program_id(0)==0 guard would not execute on every core.
    xpad_ref[0:max_dil, :] = jnp.zeros((max_dil, rc), jnp.float32)

    # input_linear: Conv1d1x1(1 -> rc) on a 1-channel input == broadcast FMA
    # on the VPU (no MXU needed).
    x = audio_ref[...] * w_in_ref[...] + b_in_ref[...]            # (T, rc) f32
    skip = jnp.zeros((T, sc), jnp.float32)

    # 4 blocks x 10 layers, fully unrolled: static dilations, static slices,
    # VMEM-resident weights indexed with static [bi, j].
    for bi in range(n_blocks):
        for j in range(n_layers):
            d = 1 << j
            # Write-through so the shifted halo read sees the current stream;
            # `x` itself stays a live f32 value (no re-load each layer).
            xpad_ref[max_dil:max_dil + T, :] = x
            x_prev = xpad_ref[max_dil - d:max_dil - d + T, :]      # x[t-d] (0 for t<d)

            # K=64 fused causal dilated conv (k=2): one bf16 MXU pass.
            xcat = jnp.concatenate([x_prev, x], axis=-1).astype(jnp.bfloat16)
            h = (jnp.dot(xcat, wd_ref[bi, j],
                         preferred_element_type=jnp.float32) + bd_ref[bi, j])

            # Gated activation with ONE EUP tanh:
            #   tanh(a) * sigmoid(u) == tanh(a) * (0.5 * tanh(u/2) + 0.5)
            # (the u/2 scale is folded into the gate columns at pack time).
            # Gating math kept f32 (no bf16 VALU on v5e).
            t = jnp.tanh(h)
            z = t[:, :half] * (0.5 * t[:, half:] + 0.5)

            # Fused [skip | residual] 1x1 projection: one matmul, skip columns
            # first so the split lands on the 128-lane boundary.
            rs = (jnp.dot(z.astype(jnp.bfloat16), wrs_ref[bi, j],
                          preferred_element_type=jnp.float32) + brs_ref[bi, j])
            skip = skip + rs[:, :sc]
            x = x + rs[:, sc:]

    # tails: relu(skip @ w_skip + b_skip) @ w_final + b_final
    s = jnp.dot(skip.astype(jnp.bfloat16), w_skip_ref[...],
                preferred_element_type=jnp.float32) + b_skip_ref[...]
    s = jnp.maximum(s, 0.0)
    out_ref[...] = (jnp.dot(s.astype(jnp.bfloat16), w_final_ref[...],
                            preferred_element_type=jnp.float32)
                    + b_final_ref[...]).astype(out_ref.dtype)


# ------------------------------ model wrapper ------------------------------ #

def _vmem_limit_bytes():
    # Budget against the detected chip: leave ~24 MiB headroom for Mosaic
    # internal scratch / pipeline buffers (v7x: 64 MiB physical), cap at
    # 100 MiB on 128 MiB parts (v5e/v6e) so long sequences stay T-resident.
    try:
        phys = pltpu.get_tpu_info().vmem_capacity_bytes
    except Exception:
        phys = 64 * 1024 * 1024
    return int(min(max(phys - 24 * 1024 * 1024, 16 * 1024 * 1024),
                   100 * 1024 * 1024))


class PHNModelPallas:
    def __init__(self, gate_channels=64, residual_channels=32,
                 skip_channels=128, end_channels=64, vocab_size=16,
                 key=jax.random.PRNGKey(0)):
        self.gate_channels = gate_channels
        self.residual_channels = residual_channels
        self.skip_channels = skip_channels
        self.end_channels = end_channels
        self.vocab_size = vocab_size
        self.blocks = [10, 10, 10, 10]

        rc, gc, sc, ec = residual_channels, gate_channels, skip_channels, end_channels
        half = gc // 2

        def init(k, shape, fan_in):
            return (0.5 / jnp.sqrt(jnp.float32(fan_in))
                    ) * jax.random.normal(k, shape, dtype=jnp.float32)

        cnt = 0

        def nk():
            nonlocal cnt
            cnt += 1
            return jax.random.fold_in(key, cnt)

        # input_linear: Conv1d1x1(1 -> rc)
        self.w_in = init(nk(), (1, rc), 1)
        self.b_in = init(nk(), (1, rc), 1)

        # raw per-layer wavenet params (used by the pure-JAX f32 reference)
        self.raw_block_params = []
        for n_layers in self.blocks:
            layers = []
            for _ in range(n_layers):
                wd = init(nk(), (2 * rc, gc), 2 * rc)   # dilated conv k=2: [prev|cur]
                bd = jnp.zeros((1, gc), jnp.float32)
                wr = init(nk(), (half, rc), half)       # residual 1x1
                br = jnp.zeros((1, rc), jnp.float32)
                ws = init(nk(), (half, sc), half)       # skip 1x1
                bs = jnp.zeros((1, sc), jnp.float32)
                layers.append((wd, bd, wr, br, ws, bs))
            self.raw_block_params.append(layers)

        # tails
        self.w_skip = init(nk(), (sc, ec), sc)
        self.b_skip = jnp.zeros((1, ec), jnp.float32)
        self.w_final = init(nk(), (ec, vocab_size), ec)
        self.b_final = jnp.zeros((1, vocab_size), jnp.float32)

        # ---- pack kernel-side weights -------------------------------------
        # * fold the sigmoid->tanh 0.5 pre-scale into the gate columns
        # * fuse skip+residual projections as [skip | res]
        # * cast matmul weights to bf16 (biases stay f32)
        gate_scale = jnp.concatenate(
            [jnp.ones((half,), jnp.float32), 0.5 * jnp.ones((half,), jnp.float32)])
        wd_l, bd_l, wrs_l, brs_l = [], [], [], []
        for layers in self.raw_block_params:
            l_wd, l_bd, l_wrs, l_brs = [], [], [], []
            for (wd, bd, wr, br, ws, bs) in layers:
                l_wd.append(wd * gate_scale[None, :])
                l_bd.append(bd * gate_scale[None, :])
                l_wrs.append(jnp.concatenate([ws, wr], axis=1))
                l_brs.append(jnp.concatenate([bs, br], axis=1))
            wd_l.append(jnp.stack(l_wd))
            bd_l.append(jnp.stack(l_bd))
            wrs_l.append(jnp.stack(l_wrs))
            brs_l.append(jnp.stack(l_brs))
        self.wd = jnp.stack(wd_l).astype(jnp.bfloat16)     # (nb, nl, 2rc, gc)
        self.bd = jnp.stack(bd_l)                          # (nb, nl, 1,  gc) f32
        self.wrs = jnp.stack(wrs_l).astype(jnp.bfloat16)   # (nb, nl, gc//2, sc+rc)
        self.brs = jnp.stack(brs_l)                        # (nb, nl, 1,     sc+rc) f32
        self.w_skip_bf = self.w_skip.astype(jnp.bfloat16)
        self.w_final_bf = self.w_final.astype(jnp.bfloat16)

        self._vmem_limit = _vmem_limit_bytes()

    # fused forward
    def __call__(self, audio):
        # audio: (B, 1, T) -- PyTorch NCW convention.
        B, _, T = audio.shape
        rc, gc, sc = self.residual_channels, self.gate_channels, self.skip_channels
        ec, V = self.end_channels, self.vocab_size
        nb = len(self.blocks)
        nl = self.blocks[0]
        max_dil = 1 << (nl - 1)                       # 512

        x = jnp.transpose(audio, (0, 2, 1)).astype(jnp.float32)    # (B, T, 1)

        kernel = functools.partial(_phn_kernel, n_blocks=nb, n_layers=nl,
                                   max_dil=max_dil, rc=rc, gc=gc, sc=sc)

        def full(shape):
            # small weights: whole-array block, constant index_map -> loaded
            # into VMEM once and resident for the entire grid.
            return pl.BlockSpec(shape, lambda b, _n=len(shape): (0,) * _n)

        out = pl.pallas_call(
            kernel,
            out_shape=jax.ShapeDtypeStruct((B, T, V), jnp.float32),
            grid_spec=pltpu.PrefetchScalarGridSpec(
                num_scalar_prefetch=0,
                grid=(B,),
                in_specs=[
                    pl.BlockSpec((None, T, 1), lambda b: (b, 0, 0)),   # audio
                    full((1, rc)), full((1, rc)),                      # input_linear
                    full((nb, nl, 2 * rc, gc)),                        # wd (k=2, [prev|cur])
                    full((nb, nl, 1, gc)),                             # bd
                    full((nb, nl, gc // 2, sc + rc)),                  # w_[skip|res]
                    full((nb, nl, 1, sc + rc)),                        # b_[skip|res]
                    full((sc, ec)), full((1, ec)),                     # skip_layer
                    full((ec, V)), full((1, V)),                       # final_layer
                ],
                out_specs=pl.BlockSpec((None, T, V), lambda b: (b, 0, 0)),
                scratch_shapes=[
                    pltpu.VMEM((max_dil + T, rc), jnp.float32),        # zero halo + x
                ],
            ),
            compiler_params=pltpu.CompilerParams(
                dimension_semantics=("parallel",),
                vmem_limit_bytes=self._vmem_limit,
            ),
        )(x, self.w_in, self.b_in,
          self.wd, self.bd, self.wrs, self.brs,
          self.w_skip_bf, self.b_skip, self.w_final_bf, self.b_final)

        return jnp.transpose(out, (0, 2, 1))                     # (B, vocab, T)

    # pure-JAX f32 reference (same math, un-fused) for correctness checking
    def reference(self, audio):
        B, _, T = audio.shape
        sc, half = self.skip_channels, self.gate_channels // 2
        x = jnp.transpose(audio, (0, 2, 1)).astype(jnp.float32)   # (B, T, 1)
        x = x * self.w_in + self.b_in                             # input_linear
        skip = jnp.zeros((B, T, sc), jnp.float32)
        for layers in self.raw_block_params:
            for j, (wd, bd, wr, br, ws, bs) in enumerate(layers):
                d = 2 ** j
                x_prev = jnp.pad(x, ((0, 0), (d, 0), (0, 0)))[:, :T, :]
                h = jnp.concatenate([x_prev, x], axis=-1) @ wd + bd
                z = jnp.tanh(h[..., :half]) * jax.nn.sigmoid(h[..., half:])
                x = x + z @ wr + br
                skip = skip + z @ ws + bs
        out = jax.nn.relu(skip @ self.w_skip + self.b_skip)
        out = out @ self.w_final + self.b_final
        return jnp.transpose(out, (0, 2, 1))


# ---------------------------------- main ----------------------------------- #

if __name__ == "__main__":
    key = jax.random.PRNGKey(0)
    model = PHNModelPallas(gate_channels=64, residual_channels=32,
                           skip_channels=128, end_channels=64, vocab_size=16,
                           key=key)
    B, T = 2, 16
    audio = jax.random.normal(jax.random.fold_in(key, 999), (B, 1, T),
                              dtype=jnp.float32)
    fwd = jax.jit(model.__call__)
    out = fwd(audio)
    jax.block_until_ready(out)
    assert out.shape == (B, model.vocab_size, T)
    assert bool(jnp.all(jnp.isfinite(out)))
    ref = model.reference(audio)
    # Looser tolerance than the old all-f32 kernel: matmul operands/weights are
    # bf16 (MXU fast path); accumulation, biases and gating stay f32.
    np.testing.assert_allclose(np.asarray(out), np.asarray(ref),
                               atol=5e-2, rtol=5e-2)
    print("KERNEL_OK")
</pallas_src>

<mosaic_0001>
module attributes {stable_mosaic.version = 11 : i64} {
  func.func @_phn_kernel(%arg0: i32, %arg1: memref<1x16x1xf32, #tpu.memory_space<vmem>>, %arg2: memref<1x32xf32, #tpu.memory_space<vmem>>, %arg3: memref<1x32xf32, #tpu.memory_space<vmem>>, %arg4: memref<4x10x64x64xbf16, #tpu.memory_space<vmem>>, %arg5: memref<4x10x1x64xf32, #tpu.memory_space<vmem>>, %arg6: memref<4x10x32x160xbf16, #tpu.memory_space<vmem>>, %arg7: memref<4x10x1x160xf32, #tpu.memory_space<vmem>>, %arg8: memref<128x64xbf16, #tpu.memory_space<vmem>>, %arg9: memref<1x64xf32, #tpu.memory_space<vmem>>, %arg10: memref<64x16xbf16, #tpu.memory_space<vmem>>, %arg11: memref<1x16xf32, #tpu.memory_space<vmem>>, %arg12: memref<1x16x16xf32, #tpu.memory_space<vmem>>, %arg13: memref<528x32xf32, #tpu.memory_space<vmem>>) attributes {dimension_semantics = [#tpu.dimension_semantics<parallel>], iteration_bounds = array<i64: 2>, scalar_prefetch = 0 : i64, scratch_operands = 1 : i64, tpu.core_type = #tpu.core_type<tc>, window_params = [{transform_indices = @transform_0, window_bounds = array<i64: 1, 16, 1>}, {pipeline_mode = #tpu.pipeline_mode<synchronous>, transform_indices = @transform_1, window_bounds = array<i64: 1, 32>}, {pipeline_mode = #tpu.pipeline_mode<synchronous>, transform_indices = @transform_2, window_bounds = array<i64: 1, 32>}, {pipeline_mode = #tpu.pipeline_mode<synchronous>, transform_indices = @transform_3, window_bounds = array<i64: 4, 10, 64, 64>}, {pipeline_mode = #tpu.pipeline_mode<synchronous>, transform_indices = @transform_4, window_bounds = array<i64: 4, 10, 1, 64>}, {pipeline_mode = #tpu.pipeline_mode<synchronous>, transform_indices = @transform_5, window_bounds = array<i64: 4, 10, 32, 160>}, {pipeline_mode = #tpu.pipeline_mode<synchronous>, transform_indices = @transform_6, window_bounds = array<i64: 4, 10, 1, 160>}, {pipeline_mode = #tpu.pipeline_mode<synchronous>, transform_indices = @transform_7, window_bounds = array<i64: 128, 64>}, {pipeline_mode = #tpu.pipeline_mode<synchronous>, transform_indices = @transform_8, window_bounds = array<i64: 1, 64>}, {pipeline_mode = #tpu.pipeline_mode<synchronous>, transform_indices = @transform_9, window_bounds = array<i64: 64, 16>}, {pipeline_mode = #tpu.pipeline_mode<synchronous>, transform_indices = @transform_10, window_bounds = array<i64: 1, 16>}, {transform_indices = @transform_11, window_bounds = array<i64: 1, 16, 16>}]} {
    %cst = arith.constant 0.000000e+00 : f32
    %0 = vector.broadcast %cst : f32 to vector<512x32xf32>
    %c0 = arith.constant 0 : index
    %c0_0 = arith.constant 0 : index
    %1 = vector.load %arg13[%c0, %c0_0] : memref<528x32xf32, #tpu.memory_space<vmem>>, vector<512x32xf32>
    tpu.vector_store %arg13[%c0, %c0_0], %0 {strides = array<i32>} : memref<528x32xf32, #tpu.memory_space<vmem>>, vector<512x32xf32>,
    %c0_1 = arith.constant 0 : index
    %c0_2 = arith.constant 0 : index
    %c0_3 = arith.constant 0 : index
    %2 = vector.load %arg1[%c0_1, %c0_2, %c0_3] : memref<1x16x1xf32, #tpu.memory_space<vmem>>, vector<1x16x1xf32>
    %3 = vector.shape_cast %2 : vector<1x16x1xf32> to vector<16x1xf32>
    %c0_4 = arith.constant 0 : index
    %c0_5 = arith.constant 0 : index
    %4 = vector.load %arg2[%c0_4, %c0_5] : memref<1x32xf32, #tpu.memory_space<vmem>>, vector<1x32xf32>
    %5 = vector.broadcast %3 : vector<16x1xf32> to vector<16x32xf32>
    %6 = vector.broadcast %4 : vector<1x32xf32> to vector<16x32xf32>
    %7 = arith.mulf %5, %6 : vector<16x32xf32>
    %c0_6 = arith.constant 0 : index
    %c0_7 = arith.constant 0 : index
    %8 = vector.load %arg3[%c0_6, %c0_7] : memref<1x32xf32, #tpu.memory_space<vmem>>, vector<1x32xf32>
    %9 = vector.broadcast %8 : vector<1x32xf32> to vector<16x32xf32>
    %10 = arith.addf %7, %9 : vector<16x32xf32>
    %cst_8 = arith.constant 0.000000e+00 : f32
    %11 = vector.broadcast %cst_8 : f32 to vector<16x128xf32>
    %c512 = arith.constant 512 : index
    %c0_9 = arith.constant 0 : index
    %12 = vector.load %arg13[%c512, %c0_9] : memref<528x32xf32, #tpu.memory_space<vmem>>, vector<16x32xf32>
    tpu.vector_store %arg13[%c512, %c0_9], %10 {strides = array<i32>} : memref<528x32xf32, #tpu.memory_space<vmem>>, vector<16x32xf32>,
    %c511 = arith.constant 511 : index
    %c0_10 = arith.constant 0 : index
    %13 = vector.load %arg13[%c511, %c0_10] : memref<528x32xf32, #tpu.memory_space<vmem>>, vector<16x32xf32>
    %14 = tpu.concatenate %13, %10 in 1 : vector<16x32xf32>, vector<16x32xf32> -> vector<16x64xf32>
    %15 = arith.truncf %14 : vector<16x64xf32> to vector<16x64xbf16>
    %c0_11 = arith.constant 0 : index
    %c0_12 = arith.constant 0 : index
    %c0_13 = arith.constant 0 : index
    %c0_14 = arith.constant 0 : index
    %16 = vector.load %arg4[%c0_11, %c0_12, %c0_13, %c0_14] : memref<4x10x64x64xbf16, #tpu.memory_space<vmem>>, vector<1x1x64x64xbf16>
    %17 = vector.shape_cast %16 : vector<1x1x64x64xbf16> to vector<64x64xbf16>
    %cst_15 = arith.constant dense<0.000000e+00> : vector<16x64xf32>
    %18 = tpu.matmul %15, %17, %cst_15 {dimension_numbers = #tpu.dot_dimension_numbers<[1], [0], [0], [1], [0, 0, 1, 1], [], []>} : vector<16x64xbf16>, vector<64x64xbf16>, vector<16x64xf32> -> vector<16x64xf32>
    %c0_16 = arith.constant 0 : index
    %c0_17 = arith.constant 0 : index
    %c0_18 = arith.constant 0 : index
    %c0_19 = arith.constant 0 : index
    %19 = vector.load %arg5[%c0_16, %c0_17, %c0_18, %c0_19] : memref<4x10x1x64xf32, #tpu.memory_space<vmem>>, vector<1x1x1x64xf32>
    %20 = vector.shape_cast %19 : vector<1x1x1x64xf32> to vector<1x64xf32>
    %21 = vector.broadcast %20 : vector<1x64xf32> to vector<16x64xf32>
    %22 = arith.addf %18, %21 : vector<16x64xf32>
    %23 = math.tanh %22 : vector<16x64xf32>
    %24 = vector.extract_strided_slice %23 {offsets = [0, 0], sizes = [16, 32], strides = [1, 1]} : vector<16x64xf32> to vector<16x32xf32>
    %25 = vector.extract_strided_slice %23 {offsets = [0, 32], sizes = [16, 32], strides = [1, 1]} : vector<16x64xf32> to vector<16x32xf32>
    %cst_20 = arith.constant 5.000000e-01 : f32
    %26 = vector.broadcast %cst_20 : f32 to vector<16x32xf32>
    %27 = arith.mulf %26, %25 : vector<16x32xf32>
    %cst_21 = arith.constant 5.000000e-01 : f32
    %28 = vector.broadcast %cst_21 : f32 to vector<16x32xf32>
    %29 = arith.addf %27, %28 : vector<16x32xf32>
    %30 = arith.mulf %24, %29 : vector<16x32xf32>
    %31 = arith.truncf %30 : vector<16x32xf32> to vector<16x32xbf16>
    %c0_22 = arith.constant 0 : index
    %c0_23 = arith.constant 0 : index
    %c0_24 = arith.constant 0 : index
    %c0_25 = arith.constant 0 : index
    %32 = vector.load %arg6[%c0_22, %c0_23, %c0_24, %c0_25] : memref<4x10x32x160xbf16, #tpu.memory_space<vmem>>, vector<1x1x32x160xbf16>
    %33 = vector.shape_cast %32 : vector<1x1x32x160xbf16> to vector<32x160xbf16>
    %cst_26 = arith.constant dense<0.000000e+00> : vector<16x160xf32>
    %34 = tpu.matmul %31, %33, %cst_26 {dimension_numbers = #tpu.dot_dimension_numbers<[1], [0], [0], [1], [0, 0, 1, 1], [], []>} : vector<16x32xbf16>, vector<32x160xbf16>, vector<16x160xf32> -> vector<16x160xf32>
    %c0_27 = arith.constant 0 : index
    %c0_28 = arith.constant 0 : index
    %c0_29 = arith.constant 0 : index
    %c0_30 = arith.constant 0 : index
    %35 = vector.load %arg7[%c0_27, %c0_28, %c0_29, %c0_30] : memref<4x10x1x160xf32, #tpu.memory_space<vmem>>, vector<1x1x1x160xf32>
    %36 = vector.shape_cast %35 : vector<1x1x1x160xf32> to vector<1x160xf32>
    %37 = vector.broadcast %36 : vector<1x160xf32> to vector<16x160xf32>
    %38 = arith.addf %34, %37 : vector<16x160xf32>
    %39 = vector.extract_strided_slice %38 {offsets = [0, 0], sizes = [16, 128], strides = [1, 1]} : vector<16x160xf32> to vector<16x128xf32>
    %40 = arith.addf %11, %39 : vector<16x128xf32>
    %41 = vector.extract_strided_slice %38 {offsets = [0, 128], sizes = [16, 32], strides = [1, 1]} : vector<16x160xf32> to vector<16x32xf32>
    %42 = arith.addf %10, %41 : vector<16x32xf32>
    %c512_31 = arith.constant 512 : index
    %c0_32 = arith.constant 0 : index
    %43 = vector.load %arg13[%c512_31, %c0_32] : memref<528x32xf32, #tpu.memory_space<vmem>>, vector<16x32xf32>
    tpu.vector_store %arg13[%c512_31, %c0_32], %42 {strides = array<i32>} : memref<528x32xf32, #tpu.memory_space<vmem>>, vector<16x32xf32>,
    %c510 = arith.constant 510 : index
    %c0_33 = arith.constant 0 : index
    %44 = vector.load %arg13[%c510, %c0_33] : memref<528x32xf32, #tpu.memory_space<vmem>>, vector<16x32xf32>
    %45 = tpu.concatenate %44, %42 in 1 : vector<16x32xf32>, vector<16x32xf32> -> vector<16x64xf32>
    %46 = arith.truncf %45 : vector<16x64xf32> to vector<16x64xbf16>
    %c0_34 = arith.constant 0 : index
    %c1 = arith.constant 1 : index
    %c0_35 = arith.constant 0 : index
    %c0_36 = arith.constant 0 : index
    %47 = vector.load %arg4[%c0_34, %c1, %c0_35, %c0_36] : memref<4x10x64x64xbf16, #tpu.memory_space<vmem>>, vector<1x1x64x64xbf16>
    %48 = vector.shape_cast %47 : vector<1x1x64x64xbf16> to vector<64x64xbf16>
    %cst_37 = arith.constant dense<0.000000e+00> : vector<16x64xf32>
    %49 = tpu.matmul %46, %48, %cst_37 {dimension_numbers = #tpu.dot_dimension_numbers<[1], [0], [0], [1], [0, 0, 1, 1], [], []>} : vector<16x64xbf16>, vector<64x64xbf16>, vector<16x64xf32> -> vector<16x64xf32>
    %c0_38 = arith.constant 0 : index
    %c1_39 = arith.constant 1 : index
    %c0_40 = arith.constant 0 : index
    %c0_41 = arith.constant 0 : index
    %50 = vector.load %arg5[%c0_38, %c1_39, %c0_40, %c0_41] : memref<4x10x1x64xf32, #tpu.memory_space<vmem>>, vector<1x1x1x64xf32>
    %51 = vector.shape_cast %50 : vector<1x1x1x64xf32> to vector<1x64xf32>
    %52 = vector.broadcast %51 : vector<1x64xf32> to vector<16x64xf32>
    %53 = arith.addf %49, %52 : vector<16x64xf32>
    %54 = math.tanh %53 : vector<16x64xf32>
    %55 = vector.extract_strided_slice %54 {offsets = [0, 0], sizes = [16, 32], strides = [1, 1]} : vector<16x64xf32> to vector<16x32xf32>
    %56 = vector.extract_strided_slice %54 {offsets = [0, 32], sizes = [16, 32], strides = [1, 1]} : vector<16x64xf32> to vector<16x32xf32>
    %cst_42 = arith.constant 5.000000e-01 : f32
    %57 = vector.broadcast %cst_42 : f32 to vector<16x32xf32>
    %58 = arith.mulf %57, %56 : vector<16x32xf32>
    %cst_43 = arith.constant 5.000000e-01 : f32
    %59 = vector.broadcast %cst_43 : f32 to vector<16x32xf32>
    %60 = arith.addf %58, %59 : vector<16x32xf32>
    %61 = arith.mulf %55, %60 : vector<16x32xf32>
    %62 = arith.truncf %61 : vector<16x32xf32> to vector<16x32xbf16>
    %c0_44 = arith.constant 0 : index
    %c1_45 = arith.constant 1 : index
    %c0_46 = arith.constant 0 : index
    %c0_47 = arith.constant 0 : index
    %63 = vector.load %arg6[%c0_44, %c1_45, %c0_46, %c0_47] : memref<4x10x32x160xbf16, #tpu.memory_space<vmem>>, vector<1x1x32x160xbf16>
    %64 = vector.shape_cast %63 : vector<1x1x32x160xbf16> to vector<32x160xbf16>
    %cst_48 = arith.constant dense<0.000000e+00> : vector<16x160xf32>
    %65 = tpu.matmul %62, %64, %cst_48 {dimension_numbers = #tpu.dot_dimension_numbers<[1], [0], [0], [1], [0, 0, 1, 1], [], []>} : vector<16x32xbf16>, vector<32x160xbf16>, vector<16x160xf32> -> vector<16x160xf32>
    %c0_49 = arith.constant 0 : index
    %c1_50 = arith.constant 1 : index
    %c0_51 = arith.constant 0 : index
    %c0_52 = arith.constant 0 : index
    %66 = vector.load %arg7[%c0_49, %c1_50, %c0_51, %c0_52] : memref<4x10x1x160xf32, #tpu.memory_space<vmem>>, vector<1x1x1x160xf32>
    %67 = vector.shape_cast %66 : vector<1x1x1x160xf32> to vector<1x160xf32>
    %68 = vector.broadcast %67 : vector<1x160xf32> to vector<16x160xf32>
    %69 = arith.addf %65, %68 : vector<16x160xf32>
    %70 = vector.extract_strided_slice %69 {offsets = [0, 0], sizes = [16, 128], strides = [1, 1]} : vector<16x160xf32> to vector<16x128xf32>
    %71 = arith.addf %40, %70 : vector<16x128xf32>
    %72 = vector.extract_strided_slice %69 {offsets = [0, 128], sizes = [16, 32], strides = [1, 1]} : vector<16x160xf32> to vector<16x32xf32>
    %73 = arith.addf %42, %72 : vector<16x32xf32>
    %c512_53 = arith.constant 512 : index
    %c0_54 = arith.constant 0 : index
    %74 = vector.load %arg13[%c512_53, %c0_54] : memref<528x32xf32, #tpu.memory_space<vmem>>, vector<16x32xf32>
    tpu.vector_store %arg13[%c512_53, %c0_54], %73 {strides = array<i32>} : memref<528x32xf32, #tpu.memory_space<vmem>>, vector<16x32xf32>,
    %c508 = arith.constant 508 : index
    %c0_55 = arith.constant 0 : index
    %75 = vector.load %arg13[%c508, %c0_55] : memref<528x32xf32, #tpu.memory_space<vmem>>, vector<16x32xf32>
    %76 = tpu.concatenate %75, %73 in 1 : vector<16x32xf32>, vector<16x32xf32> -> vector<16x64xf32>
    %77 = arith.truncf %76 : vector<16x64xf32> to vector<16x64xbf16>
    %c0_56 = arith.constant 0 : index
    %c2 = arith.constant 2 : index
    %c0_57 = arith.constant 0 : index
    %c0_58 = arith.constant 0 : index
    %78 = vector.load %arg4[%c0_56, %c2, %c0_57, %c0_58] : memref<4x10x64x64xbf16, #tpu.memory_space<vmem>>, vector<1x1x64x64xbf16>
    %79 = vector.shape_cast %78 : vector<1x1x64x64xbf16> to vector<64x64xbf16>
    %cst_59 = arith.constant dense<0.000000e+00> : vector<16x64xf32>
    %80 = tpu.matmul %77, %79, %cst_59 {dimension_numbers = #tpu.dot_dimension_numbers<[1], [0], [0], [1], [0, 0, 1, 1], [], []>} : vector<16x64xbf16>, vector<64x64xbf16>, vector<16x64xf32> -> vector<16x64xf32>
    %c0_60 = arith.constant 0 : index
    %c2_61 = arith.constant 2 : index
    %c0_62 = arith.constant 0 : index
    %c0_63 = arith.constant 0 : index
    %81 = vector.load %arg5[%c0_60, %c2_61, %c0_62, %c0_63] : memref<4x10x1x64xf32, #tpu.memory_space<vmem>>, vector<1x1x1x64xf32>
    %82 = vector.shape_cast %81 : vector<1x1x1x64xf32> to vector<1x64xf32>
    %83 = vector.broadcast %82 : vector<1x64xf32> to vector<16x64xf32>
    %84 = arith.addf %80, %83 : vector<16x64xf32>
    %85 = math.tanh %84 : vector<16x64xf32>
    %86 = vector.extract_strided_slice %85 {offsets = [0, 0], sizes = [16, 32], strides = [1, 1]} : vector<16x64xf32> to vector<16x32xf32>
    %87 = vector.extract_strided_slice %85 {offsets = [0, 32], sizes = [16, 32], strides = [1, 1]} : vector<16x64xf32> to vector<16x32xf32>
    %cst_64 = arith.constant 5.000000e-01 : f32
    %88 = vector.broadcast %cst_64 : f32 to vector<16x32xf32>
    %89 = arith.mulf %88, %87 : vector<16x32xf32>
    %cst_65 = arith.constant 5.000000e-01 : f32
    %90 = vector.broadcast %cst_65 : f32 to vector<16x32xf32>
    %91 = arith.addf %89, %90 : vector<16x32xf32>
    %92 = arith.mulf %86, %91 : vector<16x32xf32>
    %93 = arith.truncf %92 : vector<16x32xf32> to vector<16x32xbf16>
    %c0_66 = arith.constant 0 : index
    %c2_67 = arith.constant 2 : index
    %c0_68 = arith.constant 0 : index
    %c0_69 = arith.constant 0 : index
    %94 = vector.load %arg6[%c0_66, %c2_67, %c0_68, %c0_69] : memref<4x10x32x160xbf16, #tpu.memory_space<vmem>>, vector<1x1x32x160xbf16>
    %95 = vector.shape_cast %94 : vector<1x1x32x160xbf16> to vector<32x160xbf16>
    %cst_70 = arith.constant dense<0.000000e+00> : vector<16x160xf32>
    %96 = tpu.matmul %93, %95, %cst_70 {dimension_numbers = #tpu.dot_dimension_numbers<[1], [0], [0], [1], [0, 0, 1, 1], [], []>} : vector<16x32xbf16>, vector<32x160xbf16>, vector<16x160xf32> -> vector<16x160xf32>
    %c0_71 = arith.constant 0 : index
    %c2_72 = arith.constant 2 : index
    %c0_73 = arith.constant 0 : index
    %c0_74 = arith.constant 0 : index
    %97 = vector.load %arg7[%c0_71, %c2_72, %c0_73, %c0_74] : memref<4x10x1x160xf32, #tpu.memory_space<vmem>>, vector<1x1x1x160xf32>
    %98 = vector.shape_cast %97 : vector<1x1x1x160xf32> to vector<1x160xf32>
    %99 = vector.broadcast %98 : vector<1x160xf32> to vector<16x160xf32>
    %100 = arith.addf %96, %99 : vector<16x160xf32>
    %101 = vector.extract_strided_slice %100 {offsets = [0, 0], sizes = [16, 128], strides = [1, 1]} : vector<16x160xf32> to vector<16x128xf32>
    %102 = arith.addf %71, %101 : vector<16x128xf32>
    %103 = vector.extract_strided_slice %100 {offsets = [0, 128], sizes = [16, 32], strides = [1, 1]} : vector<16x160xf32> to vector<16x32xf32>
    %104 = arith.addf %73, %103 : vector<16x32xf32>
    %c512_75 = arith.constant 512 : index
    %c0_76 = arith.constant 0 : index
    %105 = vector.load %arg13[%c512_75, %c0_76] : memref<528x32xf32, #tpu.memory_space<vmem>>, vector<16x32xf32>
    tpu.vector_store %arg13[%c512_75, %c0_76], %104 {strides = array<i32>} : memref<528x32xf32, #tpu.memory_space<vmem>>, vector<16x32xf32>,
    %c504 = arith.constant 504 : index
    %c0_77 = arith.constant 0 : index
    %106 = vector.load %arg13[%c504, %c0_77] : memref<528x32xf32, #tpu.memory_space<vmem>>, vector<16x32xf32>
    %107 = tpu.concatenate %106, %104 in 1 : vector<16x32xf32>, vector<16x32xf32> -> vector<16x64xf32>
    %108 = arith.truncf %107 : vector<16x64xf32> to vector<16x64xbf16>
    %c0_78 = arith.constant 0 : index
    %c3 = arith.constant 3 : index
    %c0_79 = arith.constant 0 : index
    %c0_80 = arith.constant 0 : index
    %109 = vector.load %arg4[%c0_78, %c3, %c0_79, %c0_80] : memref<4x10x64x64xbf16, #tpu.memory_space<vmem>>, vector<1x1x64x64xbf16>
    %110 = vector.shape_cast %109 : vector<1x1x64x64xbf16> to vector<64x64xbf16>
    %cst_81 = arith.constant dense<0.000000e+00> : vector<16x64xf32>
    %111 = tpu.matmul %108, %110, %cst_81 {dimension_numbers = #tpu.dot_dimension_numbers<[1], [0], [0], [1], [0, 0, 1, 1], [], []>} : vector<16x64xbf16>, vector<64x64xbf16>, vector<16x64xf32> -> vector<16x64xf32>
    %c0_82 = arith.constant 0 : index
    %c3_83 = arith.constant 3 : index
    %c0_84 = arith.constant 0 : index
    %c0_85 = arith.constant 0 : index
    %112 = vector.load %arg5[%c0_82, %c3_83, %c0_84, %c0_85] : memref<4x10x1x64xf32, #tpu.memory_space<vmem>>, vector<1x1x1x64xf32>
    %113 = vector.shape_cast %112 : vector<1x1x1x64xf32> to vector<1x64xf32>
    %114 = vector.broadcast %113 : vector<1x64xf32> to vector<16x64xf32>
    %115 = arith.addf %111, %114 : vector<16x64xf32>
    %116 = math.tanh %115 : vector<16x64xf32>
    %117 = vector.extract_strided_slice %116 {offsets = [0, 0], sizes = [16, 32], strides = [1, 1]} : vector<16x64xf32> to vector<16x32xf32>
    %118 = vector.extract_strided_slice %116 {offsets = [0, 32], sizes = [16, 32], strides = [1, 1]} : vector<16x64xf32> to vector<16x32xf32>
    %cst_86 = arith.constant 5.000000e-01 : f32
    %119 = vector.broadcast %cst_86 : f32 to vector<16x32xf32>
    %120 = arith.mulf %119, %118 : vector<16x32xf32>
    %cst_87 = arith.constant 5.000000e-01 : f32
    %121 = vector.broadcast %cst_87 : f32 to vector<16x32xf32>
    %122 = arith.addf %120, %121 : vector<16x32xf32>
    %123 = arith.mulf %117, %122 : vector<16x32xf32>
    %124 = arith.truncf %123 : vector<16x32xf32> to vector<16x32xbf16>
    %c0_88 = arith.constant 0 : index
    %c3_89 = arith.constant 3 : index
    %c0_90 = arith.constant 0 : index
    %c0_91 = arith.constant 0 : index
    %125 = vector.load %arg6[%c0_88, %c3_89, %c0_90, %c0_91] : memref<4x10x32x160xbf16, #tpu.memory_space<vmem>>, vector<1x1x32x160xbf16>
    %126 = vector.shape_cast %125 : vector<1x1x32x160xbf16> to vector<32x160xbf16>
    %cst_92 = arith.constant dense<0.000000e+00> : vector<16x160xf32>
    %127 = tpu.matmul %124, %126, %cst_92 {dimension_numbers = #tpu.dot_dimension_numbers<[1], [0], [0], [1], [0, 0, 1, 1], [], []>} : vector<16x32xbf16>, vector<32x160xbf16>, vector<16x160xf32> -> vector<16x160xf32>
    %c0_93 = arith.constant 0 : index
    %c3_94 = arith.constant 3 : index
    %c0_95 = arith.constant 0 : index
    %c0_96 = arith.constant 0 : index
    %128 = vector.load %arg7[%c0_93, %c3_94, %c0_95, %c0_96] : memref<4x10x1x160xf32, #tpu.memory_space<vmem>>, vector<1x1x1x160xf32>
    %129 = vector.shape_cast %128 : vector<1x1x1x160xf32> to vector<1x160xf32>
    %130 = vector.broadcast %129 : vector<1x160xf32> to vector<16x160xf32>
    %131 = arith.addf %127, %130 : vector<16x160xf32>
    %132 = vector.extract_strided_slice %131 {offsets = [0, 0], sizes = [16, 128], strides = [1, 1]} : vector<16x160xf32> to vector<16x128xf32>
    %133 = arith.addf %102, %132 : vector<16x128xf32>
    %134 = vector.extract_strided_slice %131 {offsets = [0, 128], sizes = [16, 32], strides = [1, 1]} : vector<16x160xf32> to vector<16x32xf32>
    %135 = arith.addf %104, %134 : vector<16x32xf32>
    %c512_97 = arith.constant 512 : index
    %c0_98 = arith.constant 0 : index
    %136 = vector.load %arg13[%c512_97, %c0_98] : memref<528x32xf32, #tpu.memory_space<vmem>>, vector<16x32xf32>
    tpu.vector_store %arg13[%c512_97, %c0_98], %135 {strides = array<i32>} : memref<528x32xf32, #tpu.memory_space<vmem>>, vector<16x32xf32>,
    %c496 = arith.constant 496 : index
    %c0_99 = arith.constant 0 : index
    %137 = vector.load %arg13[%c496, %c0_99] : memref<528x32xf32, #tpu.memory_space<vmem>>, vector<16x32xf32>
    %138 = tpu.concatenate %137, %135 in 1 : vector<16x32xf32>, vector<16x32xf32> -> vector<16x64xf32>
    %139 = arith.truncf %138 : vector<16x64xf32> to vector<16x64xbf16>
    %c0_100 = arith.constant 0 : index
    %c4 = arith.constant 4 : index
    %c0_101 = arith.constant 0 : index
    %c0_102 = arith.constant 0 : index
    %140 = vector.load %arg4[%c0_100, %c4, %c0_101, %c0_102] : memref<4x10x64x64xbf16, #tpu.memory_space<vmem>>, vector<1x1x64x64xbf16>
    %141 = vector.shape_cast %140 : vector<1x1x64x64xbf16> to vector<64x64xbf16>
    %cst_103 = arith.constant dense<0.000000e+00> : vector<16x64xf32>
    %142 = tpu.matmul %139, %141, %cst_103 {dimension_numbers = #tpu.dot_dimension_numbers<[1], [0], [0], [1], [0, 0, 1, 1], [], []>} : vector<16x64xbf16>, vector<64x64xbf16>, vector<16x64xf32> -> vector<16x64xf32>
    %c0_104 = arith.constant 0 : index
    %c4_105 = arith.constant 4 : index
    %c0_106 = arith.constant 0 : index
    %c0_107 = arith.constant 0 : index
    %143 = vector.load %arg5[%c0_104, %c4_105, %c0_106, %c0_107] : memref<4x10x1x64xf32, #tpu.memory_space<vmem>>, vector<1x1x1x64xf32>
    %144 = vector.shape_cast %143 : vector<1x1x1x64xf32> to vector<1x64xf32>
    %145 = vector.broadcast %144 : vector<1x64xf32> to vector<16x64xf32>
    %146 = arith.addf %142, %145 : vector<16x64xf32>
    %147 = math.tanh %146 : vector<16x64xf32>
    %148 = vector.extract_strided_slice %147 {offsets = [0, 0], sizes = [16, 32], strides = [1, 1]} : vector<16x64xf32> to vector<16x32xf32>
    %149 = vector.extract_strided_slice %147 {offsets = [0, 32], sizes = [16, 32], strides = [1, 1]} : vector<16x64xf32> to vector<16x32xf32>
    %cst_108 = arith.constant 5.000000e-01 : f32
    %150 = vector.broadcast %cst_108 : f32 to vector<16x32xf32>
    %151 = arith.mulf %150, %149 : vector<16x32xf32>
    %cst_109 = arith.constant 5.000000e-01 : f32
    %152 = vector.broadcast %cst_109 : f32 to vector<16x32xf32>
    %153 = arith.addf %151, %152 : vector<16x32xf32>
    %154 = arith.mulf %148, %153 : vector<16x32xf32>
    %155 = arith.truncf %154 : vector<16x32xf32> to vector<16x32xbf16>
    %c0_110 = arith.constant 0 : index
    %c4_111 = arith.constant 4 : index
    %c0_112 = arith.constant 0 : index
    %c0_113 = arith.constant 0 : index
    %156 = vector.load %arg6[%c0_110, %c4_111, %c0_112, %c0_113] : memref<4x10x32x160xbf16, #tpu.memory_space<vmem>>, vector<1x1x32x160xbf16>
    %157 = vector.shape_cast %156 : vector<1x1x32x160xbf16> to vector<32x160xbf16>
    %cst_114 = arith.constant dense<0.000000e+00> : vector<16x160xf32>
    %158 = tpu.matmul %155, %157, %cst_114 {dimension_numbers = #tpu.dot_dimension_numbers<[1], [0], [0], [1], [0, 0, 1, 1], [], []>} : vector<16x32xbf16>, vector<32x160xbf16>, vector<16x160xf32> -> vector<16x160xf32>
    %c0_115 = arith.constant 0 : index
    %c4_116 = arith.constant 4 : index
    %c0_117 = arith.constant 0 : index
    %c0_118 = arith.constant 0 : index
    %159 = vector.load %arg7[%c0_115, %c4_116, %c0_117, %c0_118] : memref<4x10x1x160xf32, #tpu.memory_space<vmem>>, vector<1x1x1x160xf32>
    %160 = vector.shape_cast %159 : vector<1x1x1x160xf32> to vector<1x160xf32>
    %161 = vector.broadcast %160 : vector<1x160xf32> to vector<16x160xf32>
    %162 = arith.addf %158, %161 : vector<16x160xf32>
    %163 = vector.extract_strided_slice %162 {offsets = [0, 0], sizes = [16, 128], strides = [1, 1]} : vector<16x160xf32> to vector<16x128xf32>
    %164 = arith.addf %133, %163 : vector<16x128xf32>
    %165 = vector.extract_strided_slice %162 {offsets = [0, 128], sizes = [16, 32], strides = [1, 1]} : vector<16x160xf32> to vector<16x32xf32>
    %166 = arith.addf %135, %165 : vector<16x32xf32>
    %c512_119 = arith.constant 512 : index
    %c0_120 = arith.constant 0 : index
    %167 = vector.load %arg13[%c512_119, %c0_120] : memref<528x32xf32, #tpu.memory_space<vmem>>, vector<16x32xf32>
    tpu.vector_store %arg13[%c512_119, %c0_120], %166 {strides = array<i32>} : memref<528x32xf32, #tpu.memory_space<vmem>>, vector<16x32xf32>,
    %c480 = arith.constant 480 : index
    %c0_121 = arith.constant 0 : index
    %168 = vector.load %arg13[%c480, %c0_121] : memref<528x32xf32, #tpu.memory_space<vmem>>, vector<16x32xf32>
    %169 = tpu.concatenate %168, %166 in 1 : vector<16x32xf32>, vector<16x32xf32> -> vector<16x64xf32>
    %170 = arith.truncf %169 : vector<16x64xf32> to vector<16x64xbf16>
    %c0_122 = arith.constant 0 : index
    %c5 = arith.constant 5 : index
    %c0_123 = arith.constant 0 : index
    %c0_124 = arith.constant 0 : index
    %171 = vector.load %arg4[%c0_122, %c5, %c0_123, %c0_124] : memref<4x10x64x64xbf16, #tpu.memory_space<vmem>>, vector<1x1x64x64xbf16>
    %172 = vector.shape_cast %171 : vector<1x1x64x64xbf16> to vector<64x64xbf16>
    %cst_125 = arith.constant dense<0.000000e+00> : vector<16x64xf32>
    %173 = tpu.matmul %170, %172, %cst_125 {dimension_numbers = #tpu.dot_dimension_numbers<[1], [0], [0], [1], [0, 0, 1, 1], [], []>} : vector<16x64xbf16>, vector<64x64xbf16>, vector<16x64xf32> -> vector<16x64xf32>
    %c0_126 = arith.constant 0 : index
    %c5_127 = arith.constant 5 : index
    %c0_128 = arith.constant 0 : index
    %c0_129 = arith.constant 0 : index
    %174 = vector.load %arg5[%c0_126, %c5_127, %c0_128, %c0_129] : memref<4x10x1x64xf32, #tpu.memory_space<vmem>>, vector<1x1x1x64xf32>
    %175 = vector.shape_cast %174 : vector<1x1x1x64xf32> to vector<1x64xf32>
    %176 = vector.broadcast %175 : vector<1x64xf32> to vector<16x64xf32>
    %177 = arith.addf %173, %176 : vector<16x64xf32>
    %178 = math.tanh %177 : vector<16x64xf32>
    %179 = vector.extract_strided_slice %178 {offsets = [0, 0], sizes = [16, 32], strides = [1, 1]} : vector<16x64xf32> to vector<16x32xf32>
    %180 = vector.extract_strided_slice %178 {offsets = [0, 32], sizes = [16, 32], strides = [1, 1]} : vector<16x64xf32> to vector<16x32xf32>
    %cst_130 = arith.constant 5.000000e-01 : f32
    %181 = vector.broadcast %cst_130 : f32 to vector<16x32xf32>
    %182 = arith.mulf %181, %180 : vector<16x32xf32>
    %cst_131 = arith.constant 5.000000e-01 : f32
    %183 = vector.broadcast %cst_131 : f32 to vector<16x32xf32>
    %184 = arith.addf %182, %183 : vector<16x32xf32>
    %185 = arith.mulf %179, %184 : vector<16x32xf32>
    %186 = arith.truncf %185 : vector<16x32xf32> to vector<16x32xbf16>
    %c0_132 = arith.constant 0 : index
    %c5_133 = arith.constant 5 : index
    %c0_134 = arith.constant 0 : index
    %c0_135 = arith.constant 0 : index
    %187 = vector.load %arg6[%c0_132, %c5_133, %c0_134, %c0_135] : memref<4x10x32x160xbf16, #tpu.memory_space<vmem>>, vector<1x1x32x160xbf16>
    %188 = vector.shape_cast %187 : vector<1x1x32x160xbf16> to vector<32x160xbf16>
    %cst_136 = arith.constant dense<0.000000e+00> : vector<16x160xf32>
    %189 = tpu.matmul %186, %188, %cst_136 {dimension_numbers = #tpu.dot_dimension_numbers<[1], [0], [0], [1], [0, 0, 1, 1], [], []>} : vector<16x32xbf16>, vector<32x160xbf16>, vector<16x160xf32> -> vector<16x160xf32>
    %c0_137 = arith.constant 0 : index
    %c5_138 = arith.constant 5 : index
    %c0_139 = arith.constant 0 : index
    %c0_140 = arith.constant 0 : index
    %190 = vector.load %arg7[%c0_137, %c5_138, %c0_139, %c0_140] : memref<4x10x1x160xf32, #tpu.memory_space<vmem>>, vector<1x1x1x160xf32>
    %191 = vector.shape_cast %190 : vector<1x1x1x160xf32> to vector<1x160xf32>
    %192 = vector.broadcast %191 : vector<1x160xf32> to vector<16x160xf32>
    %193 = arith.addf %189, %192 : vector<16x160xf32>
    %194 = vector.extract_strided_slice %193 {offsets = [0, 0], sizes = [16, 128], strides = [1, 1]} : vector<16x160xf32> to vector<16x128xf32>
    %195 = arith.addf %164, %194 : vector<16x128xf32>
    %196 = vector.extract_strided_slice %193 {offsets = [0, 128], sizes = [16, 32], strides = [1, 1]} : vector<16x160xf32> to vector<16x32xf32>
    %197 = arith.addf %166, %196 : vector<16x32xf32>
    %c512_141 = arith.constant 512 : index
    %c0_142 = arith.constant 0 : index
    %198 = vector.load %arg13[%c512_141, %c0_142] : memref<528x32xf32, #tpu.memory_space<vmem>>, vector<16x32xf32>
    tpu.vector_store %arg13[%c512_141, %c0_142], %197 {strides = array<i32>} : memref<528x32xf32, #tpu.memory_space<vmem>>, vector<16x32xf32>,
    %c448 = arith.constant 448 : index
    %c0_143 = arith.constant 0 : index
    %199 = vector.load %arg13[%c448, %c0_143] : memref<528x32xf32, #tpu.memory_space<vmem>>, vector<16x32xf32>
    %200 = tpu.concatenate %199, %197 in 1 : vector<16x32xf32>, vector<16x32xf32> -> vector<16x64xf32>
    %201 = arith.truncf %200 : vector<16x64xf32> to vector<16x64xbf16>
    %c0_144 = arith.constant 0 : index
    %c6 = arith.constant 6 : index
    %c0_145 = arith.constant 0 : index
    %c0_146 = arith.constant 0 : index
    %202 = vector.load %arg4[%c0_144, %c6, %c0_145, %c0_146] : memref<4x10x64x64xbf16, #tpu.memory_space<vmem>>, vector<1x1x64x64xbf16>
    %203 = vector.shape_cast %202 : vector<1x1x64x64xbf16> to vector<64x64xbf16>
    %cst_147 = arith.constant dense<0.000000e+00> : vector<16x64xf32>
    %204 = tpu.matmul %201, %203, %cst_147 {dimension_numbers = #tpu.dot_dimension_numbers<[1], [0], [0], [1], [0, 0, 1, 1], [], []>} : vector<16x64xbf16>, vector<64x64xbf16>, vector<16x64xf32> -> vector<16x64xf32>
    %c0_148 = arith.constant 0 : index
    %c6_149 = arith.constant 6 : index
    %c0_150 = arith.constant 0 : index
    %c0_151 = arith.constant 0 : index
    %205 = vector.load %arg5[%c0_148, %c6_149, %c0_150, %c0_151] : memref<4x10x1x64xf32, #tpu.memory_space<vmem>>, vector<1x1x1x64xf32>
    %206 = vector.shape_cast %205 : vector<1x1x1x64xf32> to vector<1x64xf32>
    %207 = vector.broadcast %206 : vector<1x64xf32> to vector<16x64xf32>
    %208 = arith.addf %204, %207 : vector<16x64xf32>
    %209 = math.tanh %208 : vector<16x64xf32>
    %210 = vector.extract_strided_slice %209 {offsets = [0, 0], sizes = [16, 32], strides = [1, 1]} : vector<16x64xf32> to vector<16x32xf32>
    %211 = vector.extract_strided_slice %209 {offsets = [0, 32], sizes = [16, 32], strides = [1, 1]} : vector<16x64xf32> to vector<16x32xf32>
    %cst_152 = arith.constant 5.000000e-01 : f32
    %212 = vector.broadcast %cst_152 : f32 to vector<16x32xf32>
    %213 = arith.mulf %212, %211 : vector<16x32xf32>
    %cst_153 = arith.constant 5.000000e-01 : f32
    %214 = vector.broadcast %cst_153 : f32 to vector<16x32xf32>
    %215 = arith.addf %213, %214 : vector<16x32xf32>
    %216 = arith.mulf %210, %215 : vector<16x32xf32>
    %217 = arith.truncf %216 : vector<16x32xf32> to vector<16x32xbf16>
    %c0_154 = arith.constant 0 : index
    %c6_155 = arith.constant 6 : index
    %c0_156 = arith.constant 0 : index
    %c0_157 = arith.constant 0 : index
    %218 = vector.load %arg6[%c0_154, %c6_155, %c0_156, %c0_157] : memref<4x10x32x160xbf16, #tpu.memory_space<vmem>>, vector<1x1x32x160xbf16>
    %219 = vector.shape_cast %218 : vector<1x1x32x160xbf16> to vector<32x160xbf16>
    %cst_158 = arith.constant dense<0.000000e+00> : vector<16x160xf32>
    %220 = tpu.matmul %217, %219, %cst_158 {dimension_numbers = #tpu.dot_dimension_numbers<[1], [0], [0], [1], [0, 0, 1, 1], [], []>} : vector<16x32xbf16>, vector<32x160xbf16>, vector<16x160xf32> -> vector<16x160xf32>
    %c0_159 = arith.constant 0 : index
    %c6_160 = arith.constant 6 : index
    %c0_161 = arith.constant 0 : index
    %c0_162 = arith.constant 0 : index
    %221 = vector.load %arg7[%c0_159, %c6_160, %c0_161, %c0_162] : memref<4x10x1x160xf32, #tpu.memory_space<vmem>>, vector<1x1x1x160xf32>
    %222 = vector.shape_cast %221 : vector<1x1x1x160xf32> to vector<1x160xf32>
    %223 = vector.broadcast %222 : vector<1x160xf32> to vector<16x160xf32>
    %224 = arith.addf %220, %223 : vector<16x160xf32>
    %225 = vector.extract_strided_slice %224 {offsets = [0, 0], sizes = [16, 128], strides = [1, 1]} : vector<16x160xf32> to vector<16x128xf32>
    %226 = arith.addf %195, %225 : vector<16x128xf32>
    %227 = vector.extract_strided_slice %224 {offsets = [0, 128], sizes = [16, 32], strides = [1, 1]} : vector<16x160xf32> to vector<16x32xf32>
    %228 = arith.addf %197, %227 : vector<16x32xf32>
    %c512_163 = arith.constant 512 : index
    %c0_164 = arith.constant 0 : index
    %229 = vector.load %arg13[%c512_163, %c0_164] : memref<528x32xf32, #tpu.memory_space<vmem>>, vector<16x32xf32>
    tpu.vector_store %arg13[%c512_163, %c0_164], %228 {strides = array<i32>} : memref<528x32xf32, #tpu.memory_space<vmem>>, vector<16x32xf32>,
    %c384 = arith.constant 384 : index
    %c0_165 = arith.constant 0 : index
    %230 = vector.load %arg13[%c384, %c0_165] : memref<528x32xf32, #tpu.memory_space<vmem>>, vector<16x32xf32>
    %231 = tpu.concatenate %230, %228 in 1 : vector<16x32xf32>, vector<16x32xf32> -> vector<16x64xf32>
    %232 = arith.truncf %231 : vector<16x64xf32> to vector<16x64xbf16>
    %c0_166 = arith.constant 0 : index
    %c7 = arith.constant 7 : index
    %c0_167 = arith.constant 0 : index
    %c0_168 = arith.constant 0 : index
    %233 = vector.load %arg4[%c0_166, %c7, %c0_167, %c0_168] : memref<4x10x64x64xbf16, #tpu.memory_space<vmem>>, vector<1x1x64x64xbf16>
    %234 = vector.shape_cast %233 : vector<1x1x64x64xbf16> to vector<64x64xbf16>
    %cst_169 = arith.constant dense<0.000000e+00> : vector<16x64xf32>
    %235 = tpu.matmul %232, %234, %cst_169 {dimension_numbers = #tpu.dot_dimension_numbers<[1], [0], [0], [1], [0, 0, 1, 1], [], []>} : vector<16x64xbf16>, vector<64x64xbf16>, vector<16x64xf32> -> vector<16x64xf32>
    %c0_170 = arith.constant 0 : index
    %c7_171 = arith.constant 7 : index
    %c0_172 = arith.constant 0 : index
    %c0_173 = arith.constant 0 : index
    %236 = vector.load %arg5[%c0_170, %c7_171, %c0_172, %c0_173] : memref<4x10x1x64xf32, #tpu.memory_space<vmem>>, vector<1x1x1x64xf32>
    %237 = vector.shape_cast %236 : vector<1x1x1x64xf32> to vector<1x64xf32>
    %238 = vector.broadcast %237 : vector<1x64xf32> to vector<16x64xf32>
    %239 = arith.addf %235, %238 : vector<16x64xf32>
    %240 = math.tanh %239 : vector<16x64xf32>
    %241 = vector.extract_strided_slice %240 {offsets = [0, 0], sizes = [16, 32], strides = [1, 1]} : vector<16x64xf32> to vector<16x32xf32>
    %242 = vector.extract_strided_slice %240 {offsets = [0, 32], sizes = [16, 32], strides = [1, 1]} : vector<16x64xf32> to vector<16x32xf32>
    %cst_174 = arith.constant 5.000000e-01 : f32
    %243 = vector.broadcast %cst_174 : f32 to vector<16x32xf32>
    %244 = arith.mulf %243, %242 : vector<16x32xf32>
    %cst_175 = arith.constant 5.000000e-01 : f32
    %245 = vector.broadcast %cst_175 : f32 to vector<16x32xf32>
    %246 = arith.addf %244, %245 : vector<16x32xf32>
    %247 = arith.mulf %241, %246 : vector<16x32xf32>
    %248 = arith.truncf %247 : vector<16x32xf32> to vector<16x32xbf16>
    %c0_176 = arith.constant 0 : index
    %c7_177 = arith.constant 7 : index
    %c0_178 = arith.constant 0 : index
    %c0_179 = arith.constant 0 : index
    %249 = vector.load %arg6[%c0_176, %c7_177, %c0_178, %c0_179] : memref<4x10x32x160xbf16, #tpu.memory_space<vmem>>, vector<1x1x32x160xbf16>
    %250 = vector.shape_cast %249 : vector<1x1x32x160xbf16> to vector<32x160xbf16>
    %cst_180 = arith.constant dense<0.000000e+00> : vector<16x160xf32>
    %251 = tpu.matmul %248, %250, %cst_180 {dimension_numbers = #tpu.dot_dimension_numbers<[1], [0], [0], [1], [0, 0, 1, 1], [], []>} : vector<16x32xbf16>, vector<32x160xbf16>, vector<16x160xf32> -> vector<16x160xf32>
    %c0_181 = arith.constant 0 : index
    %c7_182 = arith.constant 7 : index
    %c0_183 = arith.constant 0 : index
    %c0_184 = arith.constant 0 : index
    %252 = vector.load %arg7[%c0_181, %c7_182, %c0_183, %c0_184] : memref<4x10x1x160xf32, #tpu.memory_space<vmem>>, vector<1x1x1x160xf32>
    %253 = vector.shape_cast %252 : vector<1x1x1x160xf32> to vector<1x160xf32>
    %254 = vector.broadcast %253 : vector<1x160xf32> to vector<16x160xf32>
    %255 = arith.addf %251, %254 : vector<16x160xf32>
    %256 = vector.extract_strided_slice %255 {offsets = [0, 0], sizes = [16, 128], strides = [1, 1]} : vector<16x160xf32> to vector<16x128xf32>
    %257 = arith.addf %226, %256 : vector<16x128xf32>
    %258 = vector.extract_strided_slice %255 {offsets = [0, 128], sizes = [16, 32], strides = [1, 1]} : vector<16x160xf32> to vector<16x32xf32>
    %259 = arith.addf %228, %258 : vector<16x32xf32>
    %c512_185 = arith.constant 512 : index
    %c0_186 = arith.constant 0 : index
    %260 = vector.load %arg13[%c512_185, %c0_186] : memref<528x32xf32, #tpu.memory_space<vmem>>, vector<16x32xf32>
    tpu.vector_store %arg13[%c512_185, %c0_186], %259 {strides = array<i32>} : memref<528x32xf32, #tpu.memory_space<vmem>>, vector<16x32xf32>,
    %c256 = arith.constant 256 : index
    %c0_187 = arith.constant 0 : index
    %261 = vector.load %arg13[%c256, %c0_187] : memref<528x32xf32, #tpu.memory_space<vmem>>, vector<16x32xf32>
    %262 = tpu.concatenate %261, %259 in 1 : vector<16x32xf32>, vector<16x32xf32> -> vector<16x64xf32>
    %263 = arith.truncf %262 : vector<16x64xf32> to vector<16x64xbf16>
    %c0_188 = arith.constant 0 : index
    %c8 = arith.constant 8 : index
    %c0_189 = arith.constant 0 : index
    %c0_190 = arith.constant 0 : index
    %264 = vector.load %arg4[%c0_188, %c8, %c0_189, %c0_190] : memref<4x10x64x64xbf16, #tpu.memory_space<vmem>>, vector<1x1x64x64xbf16>
    %265 = vector.shape_cast %264 : vector<1x1x64x64xbf16> to vector<64x64xbf16>
    %cst_191 = arith.constant dense<0.000000e+00> : vector<16x64xf32>
    %266 = tpu.matmul %263, %265, %cst_191 {dimension_numbers = #tpu.dot_dimension_numbers<[1], [0], [0], [1], [0, 0, 1, 1], [], []>} : vector<16x64xbf16>, vector<64x64xbf16>, vector<16x64xf32> -> vector<16x64xf32>
    %c0_192 = arith.constant 0 : index
    %c8_193 = arith.constant 8 : index
    %c0_194 = arith.constant 0 : index
    %c0_195 = arith.constant 0 : index
    %267 = vector.load %arg5[%c0_192, %c8_193, %c0_194, %c0_195] : memref<4x10x1x64xf32, #tpu.memory_space<vmem>>, vector<1x1x1x64xf32>
    %268 = vector.shape_cast %267 : vector<1x1x1x64xf32> to vector<1x64xf32>
    %269 = vector.broadcast %268 : vector<1x64xf32> to vector<16x64xf32>
    %270 = arith.addf %266, %269 : vector<16x64xf32>
    %271 = math.tanh %270 : vector<16x64xf32>
    %272 = vector.extract_strided_slice %271 {offsets = [0, 0], sizes = [16, 32], strides = [1, 1]} : vector<16x64xf32> to vector<16x32xf32>
    %273 = vector.extract_strided_slice %271 {offsets = [0, 32], sizes = [16, 32], strides = [1, 1]} : vector<16x64xf32> to vector<16x32xf32>
    %cst_196 = arith.constant 5.000000e-01 : f32
    %274 = vector.broadcast %cst_196 : f32 to vector<16x32xf32>
    %275 = arith.mulf %274, %273 : vector<16x32xf32>
    %cst_197 = arith.constant 5.000000e-01 : f32
    %276 = vector.broadcast %cst_197 : f32 to vector<16x32xf32>
    %277 = arith.addf %275, %276 : vector<16x32xf32>
    %278 = arith.mulf %272, %277 : vector<16x32xf32>
    %279 = arith.truncf %278 : vector<16x32xf32> to vector<16x32xbf16>
    %c0_198 = arith.constant 0 : index
    %c8_199 = arith.constant 8 : index
    %c0_200 = arith.constant 0 : index
    %c0_201 = arith.constant 0 : index
    %280 = vector.load %arg6[%c0_198, %c8_199, %c0_200, %c0_201] : memref<4x10x32x160xbf16, #tpu.memory_space<vmem>>, vector<1x1x32x160xbf16>
    %281 = vector.shape_cast %280 : vector<1x1x32x160xbf16> to vector<32x160xbf16>
    %cst_202 = arith.constant dense<0.000000e+00> : vector<16x160xf32>
    %282 = tpu.matmul %279, %281, %cst_202 {dimension_numbers = #tpu.dot_dimension_numbers<[1], [0], [0], [1], [0, 0, 1, 1], [], []>} : vector<16x32xbf16>, vector<32x160xbf16>, vector<16x160xf32> -> vector<16x160xf32>
    %c0_203 = arith.constant 0 : index
    %c8_204 = arith.constant 8 : index
    %c0_205 = arith.constant 0 : index
    %c0_206 = arith.constant 0 : index
    %283 = vector.load %arg7[%c0_203, %c8_204, %c0_205, %c0_206] : memref<4x10x1x160xf32, #tpu.memory_space<vmem>>, vector<1x1x1x160xf32>
    %284 = vector.shape_cast %283 : vector<1x1x1x160xf32> to vector<1x160xf32>
    %285 = vector.broadcast %284 : vector<1x160xf32> to vector<16x160xf32>
    %286 = arith.addf %282, %285 : vector<16x160xf32>
    %287 = vector.extract_strided_slice %286 {offsets = [0, 0], sizes = [16, 128], strides = [1, 1]} : vector<16x160xf32> to vector<16x128xf32>
    %288 = arith.addf %257, %287 : vector<16x128xf32>
    %289 = vector.extract_strided_slice %286 {offsets = [0, 128], sizes = [16, 32], strides = [1, 1]} : vector<16x160xf32> to vector<16x32xf32>
    %290 = arith.addf %259, %289 : vector<16x32xf32>
    %c512_207 = arith.constant 512 : index
    %c0_208 = arith.constant 0 : index
    %291 = vector.load %arg13[%c512_207, %c0_208] : memref<528x32xf32, #tpu.memory_space<vmem>>, vector<16x32xf32>
    tpu.vector_store %arg13[%c512_207, %c0_208], %290 {strides = array<i32>} : memref<528x32xf32, #tpu.memory_space<vmem>>, vector<16x32xf32>,
    %c0_209 = arith.constant 0 : index
    %c0_210 = arith.constant 0 : index
    %292 = vector.load %arg13[%c0_209, %c0_210] : memref<528x32xf32, #tpu.memory_space<vmem>>, vector<16x32xf32>
    %293 = tpu.concatenate %292, %290 in 1 : vector<16x32xf32>, vector<16x32xf32> -> vector<16x64xf32>
    %294 = arith.truncf %293 : vector<16x64xf32> to vector<16x64xbf16>
    %c0_211 = arith.constant 0 : index
    %c9 = arith.constant 9 : index
    %c0_212 = arith.constant 0 : index
    %c0_213 = arith.constant 0 : index
    %295 = vector.load %arg4[%c0_211, %c9, %c0_212, %c0_213] : memref<4x10x64x64xbf16, #tpu.memory_space<vmem>>, vector<1x1x64x64xbf16>
    %296 = vector.shape_cast %295 : vector<1x1x64x64xbf16> to vector<64x64xbf16>
    %cst_214 = arith.constant dense<0.000000e+00> : vector<16x64xf32>
    %297 = tpu.matmul %294, %296, %cst_214 {dimension_numbers = #tpu.dot_dimension_numbers<[1], [0], [0], [1], [0, 0, 1, 1], [], []>} : vector<16x64xbf16>, vector<64x64xbf16>, vector<16x64xf32> -> vector<16x64xf32>
    %c0_215 = arith.constant 0 : index
    %c9_216 = arith.constant 9 : index
    %c0_217 = arith.constant 0 : index
    %c0_218 = arith.constant 0 : index
    %298 = vector.load %arg5[%c0_215, %c9_216, %c0_217, %c0_218] : memref<4x10x1x64xf32, #tpu.memory_space<vmem>>, vector<1x1x1x64xf32>
    %299 = vector.shape_cast %298 : vector<1x1x1x64xf32> to vector<1x64xf32>
    %300 = vector.broadcast %299 : vector<1x64xf32> to vector<16x64xf32>
    %301 = arith.addf %297, %300 : vector<16x64xf32>
    %302 = math.tanh %301 : vector<16x64xf32>
    %303 = vector.extract_strided_slice %302 {offsets = [0, 0], sizes = [16, 32], strides = [1, 1]} : vector<16x64xf32> to vector<16x32xf32>
    %304 = vector.extract_strided_slice %302 {offsets = [0, 32], sizes = [16, 32], strides = [1, 1]} : vector<16x64xf32> to vector<16x32xf32>
    %cst_219 = arith.constant 5.000000e-01 : f32
    %305 = vector.broadcast %cst_219 : f32 to vector<16x32xf32>
    %306 = arith.mulf %305, %304 : vector<16x32xf32>
    %cst_220 = arith.constant 5.000000e-01 : f32
    %307 = vector.broadcast %cst_220 : f32 to vector<16x32xf32>
    %308 = arith.addf %306, %307 : vector<16x32xf32>
    %309 = arith.mulf %303, %308 : vector<16x32xf32>
    %310 = arith.truncf %309 : vector<16x32xf32> to vector<16x32xbf16>
    %c0_221 = arith.constant 0 : index
    %c9_222 = arith.constant 9 : index
    %c0_223 = arith.constant 0 : index
    %c0_224 = arith.constant 0 : index
    %311 = vector.load %arg6[%c0_221, %c9_222, %c0_223, %c0_224] : memref<4x10x32x160xbf16, #tpu.memory_space<vmem>>, vector<1x1x32x160xbf16>
    %312 = vector.shape_cast %311 : vector<1x1x32x160xbf16> to vector<32x160xbf16>
    %cst_225 = arith.constant dense<0.000000e+00> : vector<16x160xf32>
    %313 = tpu.matmul %310, %312, %cst_225 {dimension_numbers = #tpu.dot_dimension_numbers<[1], [0], [0], [1], [0, 0, 1, 1], [], []>} : vector<16x32xbf16>, vector<32x160xbf16>, vector<16x160xf32> -> vector<16x160xf32>
    %c0_226 = arith.constant 0 : index
    %c9_227 = arith.constant 9 : index
    %c0_228 = arith.constant 0 : index
    %c0_229 = arith.constant 0 : index
    %314 = vector.load %arg7[%c0_226, %c9_227, %c0_228, %c0_229] : memref<4x10x1x160xf32, #tpu.memory_space<vmem>>, vector<1x1x1x160xf32>
    %315 = vector.shape_cast %314 : vector<1x1x1x160xf32> to vector<1x160xf32>
    %316 = vector.broadcast %315 : vector<1x160xf32> to vector<16x160xf32>
    %317 = arith.addf %313, %316 : vector<16x160xf32>
    %318 = vector.extract_strided_slice %317 {offsets = [0, 0], sizes = [16, 128], strides = [1, 1]} : vector<16x160xf32> to vector<16x128xf32>
    %319 = arith.addf %288, %318 : vector<16x128xf32>
    %320 = vector.extract_strided_slice %317 {offsets = [0, 128], sizes = [16, 32], strides = [1, 1]} : vector<16x160xf32> to vector<16x32xf32>
    %321 = arith.addf %290, %320 : vector<16x32xf32>
    %c512_230 = arith.constant 512 : index
    %c0_231 = arith.constant 0 : index
    %322 = vector.load %arg13[%c512_230, %c0_231] : memref<528x32xf32, #tpu.memory_space<vmem>>, vector<16x32xf32>
    tpu.vector_store %arg13[%c512_230, %c0_231], %321 {strides = array<i32>} : memref<528x32xf32, #tpu.memory_space<vmem>>, vector<16x32xf32>,
    %c511_232 = arith.constant 511 : index
    %c0_233 = arith.constant 0 : index
    %323 = vector.load %arg13[%c511_232, %c0_233] : memref<528x32xf32, #tpu.memory_space<vmem>>, vector<16x32xf32>
    %324 = tpu.concatenate %323, %321 in 1 : vector<16x32xf32>, vector<16x32xf32> -> vector<16x64xf32>
    %325 = arith.truncf %324 : vector<16x64xf32> to vector<16x64xbf16>
    %c1_234 = arith.constant 1 : index
    %c0_235 = arith.constant 0 : index
    %c0_236 = arith.constant 0 : index
    %c0_237 = arith.constant 0 : index
    %326 = vector.load %arg4[%c1_234, %c0_235, %c0_236, %c0_237] : memref<4x10x64x64xbf16, #tpu.memory_space<vmem>>, vector<1x1x64x64xbf16>
    %327 = vector.shape_cast %326 : vector<1x1x64x64xbf16> to vector<64x64xbf16>
    %cst_238 = arith.constant dense<0.000000e+00> : vector<16x64xf32>
    %328 = tpu.matmul %325, %327, %cst_238 {dimension_numbers = #tpu.dot_dimension_numbers<[1], [0], [0], [1], [0, 0, 1, 1], [], []>} : vector<16x64xbf16>, vector<64x64xbf16>, vector<16x64xf32> -> vector<16x64xf32>
    %c1_239 = arith.constant 1 : index
    %c0_240 = arith.constant 0 : index
    %c0_241 = arith.constant 0 : index
    %c0_242 = arith.constant 0 : index
    %329 = vector.load %arg5[%c1_239, %c0_240, %c0_241, %c0_242] : memref<4x10x1x64xf32, #tpu.memory_space<vmem>>, vector<1x1x1x64xf32>
    %330 = vector.shape_cast %329 : vector<1x1x1x64xf32> to vector<1x64xf32>
    %331 = vector.broadcast %330 : vector<1x64xf32> to vector<16x64xf32>
    %332 = arith.addf %328, %331 : vector<16x64xf32>
    %333 = math.tanh %332 : vector<16x64xf32>
    %334 = vector.extract_strided_slice %333 {offsets = [0, 0], sizes = [16, 32], strides = [1, 1]} : vector<16x64xf32> to vector<16x32xf32>
    %335 = vector.extract_strided_slice %333 {offsets = [0, 32], sizes = [16, 32], strides = [1, 1]} : vector<16x64xf32> to vector<16x32xf32>
    %cst_243 = arith.constant 5.000000e-01 : f32
    %336 = vector.broadcast %cst_243 : f32 to vector<16x32xf32>
    %337 = arith.mulf %336, %335 : vector<16x32xf32>
    %cst_244 = arith.constant 5.000000e-01 : f32
    %338 = vector.broadcast %cst_244 : f32 to vector<16x32xf32>
    %339 = arith.addf %337, %338 : vector<16x32xf32>
    %340 = arith.mulf %334, %339 : vector<16x32xf32>
    %341 = arith.truncf %340 : vector<16x32xf32> to vector<16x32xbf16>
    %c1_245 = arith.constant 1 : index
    %c0_246 = arith.constant 0 : index
    %c0_247 = arith.constant 0 : index
    %c0_248 = arith.constant 0 : index
    %342 = vector.load %arg6[%c1_245, %c0_246, %c0_247, %c0_248] : memref<4x10x32x160xbf16, #tpu.memory_space<vmem>>, vector<1x1x32x160xbf16>
    %343 = vector.shape_cast %342 : vector<1x1x32x160xbf16> to vector<32x160xbf16>
    %cst_249 = arith.constant dense<0.000000e+00> : vector<16x160xf32>
    %344 = tpu.matmul %341, %343, %cst_249 {dimension_numbers = #tpu.dot_dimension_numbers<[1], [0], [0], [1], [0, 0, 1, 1], [], []>} : vector<16x32xbf16>, vector<32x160xbf16>, vector<16x160xf32> -> vector<16x160xf32>
    %c1_250 = arith.constant 1 : index
    %c0_251 = arith.constant 0 : index
    %c0_252 = arith.constant 0 : index
    %c0_253 = arith.constant 0 : index
    %345 = vector.load %arg7[%c1_250, %c0_251, %c0_252, %c0_253] : memref<4x10x1x160xf32, #tpu.memory_space<vmem>>, vector<1x1x1x160xf32>
    %346 = vector.shape_cast %345 : vector<1x1x1x160xf32> to vector<1x160xf32>
    %347 = vector.broadcast %346 : vector<1x160xf32> to vector<16x160xf32>
    %348 = arith.addf %344, %347 : vector<16x160xf32>
    %349 = vector.extract_strided_slice %348 {offsets = [0, 0], sizes = [16, 128], strides = [1, 1]} : vector<16x160xf32> to vector<16x128xf32>
    %350 = arith.addf %319, %349 : vector<16x128xf32>
    %351 = vector.extract_strided_slice %348 {offsets = [0, 128], sizes = [16, 32], strides = [1, 1]} : vector<16x160xf32> to vector<16x32xf32>
    %352 = arith.addf %321, %351 : vector<16x32xf32>
    %c512_254 = arith.constant 512 : index
    %c0_255 = arith.constant 0 : index
    %353 = vector.load %arg13[%c512_254, %c0_255] : memref<528x32xf32, #tpu.memory_space<vmem>>, vector<16x32xf32>
    tpu.vector_store %arg13[%c512_254, %c0_255], %352 {strides = array<i32>} : memref<528x32xf32, #tpu.memory_space<vmem>>, vector<16x32xf32>,
    %c510_256 = arith.constant 510 : index
    %c0_257 = arith.constant 0 : index
    %354 = vector.load %arg13[%c510_256, %c0_257] : memref<528x32xf32, #tpu.memory_space<vmem>>, vector<16x32xf32>
    %355 = tpu.concatenate %354, %352 in 1 : vector<16x32xf32>, vector<16x32xf32> -> vector<16x64xf32>
    %356 = arith.truncf %355 : vector<16x64xf32> to vector<16x64xbf16>
    %c1_258 = arith.constant 1 : index
    %c1_259 = arith.constant 1 : index
    %c0_260 = arith.constant 0 : index
    %c0_261 = arith.constant 0 : index
    %357 = vector.load %arg4[%c1_258, %c1_259, %c0_260, %c0_261] : memref<4x10x64x64xbf16, #tpu.memory_space<vmem>>, vector<1x1x64x64xbf16>
    %358 = vector.shape_cast %357 : vector<1x1x64x64xbf16> to vector<64x64xbf16>
    %cst_262 = arith.constant dense<0.000000e+00> : vector<16x64xf32>
    %359 = tpu.matmul %356, %358, %cst_262 {dimension_numbers = #tpu.dot_dimension_numbers<[1], [0], [0], [1], [0, 0, 1, 1], [], []>} : vector<16x64xbf16>, vector<64x64xbf16>, vector<16x64xf32> -> vector<16x64xf32>
    %c1_263 = arith.constant 1 : index
    %c1_264 = arith.constant 1 : index
    %c0_265 = arith.constant 0 : index
    %c0_266 = arith.constant 0 : index
    %360 = vector.load %arg5[%c1_263, %c1_264, %c0_265, %c0_266] : memref<4x10x1x64xf32, #tpu.memory_space<vmem>>, vector<1x1x1x64xf32>
    %361 = vector.shape_cast %360 : vector<1x1x1x64xf32> to vector<1x64xf32>
    %362 = vector.broadcast %361 : vector<1x64xf32> to vector<16x64xf32>
    %363 = arith.addf %359, %362 : vector<16x64xf32>
    %364 = math.tanh %363 : vector<16x64xf32>
    %365 = vector.extract_strided_slice %364 {offsets = [0, 0], sizes = [16, 32], strides = [1, 1]} : vector<16x64xf32> to vector<16x32xf32>
    %366 = vector.extract_strided_slice %364 {offsets = [0, 32], sizes = [16, 32], strides = [1, 1]} : vector<16x64xf32> to vector<16x32xf32>
    %cst_267 = arith.constant 5.000000e-01 : f32
    %367 = vector.broadcast %cst_267 : f32 to vector<16x32xf32>
    %368 = arith.mulf %367, %366 : vector<16x32xf32>
    %cst_268 = arith.constant 5.000000e-01 : f32
    %369 = vector.broadcast %cst_268 : f32 to vector<16x32xf32>
    %370 = arith.addf %368, %369 : vector<16x32xf32>
    %371 = arith.mulf %365, %370 : vector<16x32xf32>
    %372 = arith.truncf %371 : vector<16x32xf32> to vector<16x32xbf16>
    %c1_269 = arith.constant 1 : index
    %c1_270 = arith.constant 1 : index
    %c0_271 = arith.constant 0 : index
    %c0_272 = arith.constant 0 : index
    %373 = vector.load %arg6[%c1_269, %c1_270, %c0_271, %c0_272] : memref<4x10x32x160xbf16, #tpu.memory_space<vmem>>, vector<1x1x32x160xbf16>
    %374 = vector.shape_cast %373 : vector<1x1x32x160xbf16> to vector<32x160xbf16>
    %cst_273 = arith.constant dense<0.000000e+00> : vector<16x160xf32>
    %375 = tpu.matmul %372, %374, %cst_273 {dimension_numbers = #tpu.dot_dimension_numbers<[1], [0], [0], [1], [0, 0, 1, 1], [], []>} : vector<16x32xbf16>, vector<32x160xbf16>, vector<16x160xf32> -> vector<16x160xf32>
    %c1_274 = arith.constant 1 : index
    %c1_275 = arith.constant 1 : index
    %c0_276 = arith.constant 0 : index
    %c0_277 = arith.constant 0 : index
    %376 = vector.load %arg7[%c1_274, %c1_275, %c0_276, %c0_277] : memref<4x10x1x160xf32, #tpu.memory_space<vmem>>, vector<1x1x1x160xf32>
    %377 = vector.shape_cast %376 : vector<1x1x1x160xf32> to vector<1x160xf32>
    %378 = vector.broadcast %377 : vector<1x160xf32> to vector<16x160xf32>
    %379 = arith.addf %375, %378 : vector<16x160xf32>
    %380 = vector.extract_strided_slice %379 {offsets = [0, 0], sizes = [16, 128], strides = [1, 1]} : vector<16x160xf32> to vector<16x128xf32>
    %381 = arith.addf %350, %380 : vector<16x128xf32>
    %382 = vector.extract_strided_slice %379 {offsets = [0, 128], sizes = [16, 32], strides = [1, 1]} : vector<16x160xf32> to vector<16x32xf32>
    %383 = arith.addf %352, %382 : vector<16x32xf32>
    %c512_278 = arith.constant 512 : index
    %c0_279 = arith.constant 0 : index
    %384 = vector.load %arg13[%c512_278, %c0_279] : memref<528x32xf32, #tpu.memory_space<vmem>>, vector<16x32xf32>
    tpu.vector_store %arg13[%c512_278, %c0_279], %383 {strides = array<i32>} : memref<528x32xf32, #tpu.memory_space<vmem>>, vector<16x32xf32>,
    %c508_280 = arith.constant 508 : index
    %c0_281 = arith.constant 0 : index
    %385 = vector.load %arg13[%c508_280, %c0_281] : memref<528x32xf32, #tpu.memory_space<vmem>>, vector<16x32xf32>
    %386 = tpu.concatenate %385, %383 in 1 : vector<16x32xf32>, vector<16x32xf32> -> vector<16x64xf32>
    %387 = arith.truncf %386 : vector<16x64xf32> to vector<16x64xbf16>
    %c1_282 = arith.constant 1 : index
    %c2_283 = arith.constant 2 : index
    %c0_284 = arith.constant 0 : index
    %c0_285 = arith.constant 0 : index
    %388 = vector.load %arg4[%c1_282, %c2_283, %c0_284, %c0_285] : memref<4x10x64x64xbf16, #tpu.memory_space<vmem>>, vector<1x1x64x64xbf16>
    %389 = vector.shape_cast %388 : vector<1x1x64x64xbf16> to vector<64x64xbf16>
    %cst_286 = arith.constant dense<0.000000e+00> : vector<16x64xf32>
    %390 = tpu.matmul %387, %389, %cst_286 {dimension_numbers = #tpu.dot_dimension_numbers<[1], [0], [0], [1], [0, 0, 1, 1], [], []>} : vector<16x64xbf16>, vector<64x64xbf16>, vector<16x64xf32> -> vector<16x64xf32>
    %c1_287 = arith.constant 1 : index
    %c2_288 = arith.constant 2 : index
    %c0_289 = arith.constant 0 : index
    %c0_290 = arith.constant 0 : index
    %391 = vector.load %arg5[%c1_287, %c2_288, %c0_289, %c0_290] : memref<4x10x1x64xf32, #tpu.memory_space<vmem>>, vector<1x1x1x64xf32>
    %392 = vector.shape_cast %391 : vector<1x1x1x64xf32> to vector<1x64xf32>
    %393 = vector.broadcast %392 : vector<1x64xf32> to vector<16x64xf32>
    %394 = arith.addf %390, %393 : vector<16x64xf32>
    %395 = math.tanh %394 : vector<16x64xf32>
    %396 = vector.extract_strided_slice %395 {offsets = [0, 0], sizes = [16, 32], strides = [1, 1]} : vector<16x64xf32> to vector<16x32xf32>
    %397 = vector.extract_strided_slice %395 {offsets = [0, 32], sizes = [16, 32], strides = [1, 1]} : vector<16x64xf32> to vector<16x32xf32>
    %cst_291 = arith.constant 5.000000e-01 : f32
    %398 = vector.broadcast %cst_291 : f32 to vector<16x32xf32>
    %399 = arith.mulf %398, %397 : vector<16x32xf32>
    %cst_292 = arith.constant 5.000000e-01 : f32
    %400 = vector.broadcast %cst_292 : f32 to vector<16x32xf32>
    %401 = arith.addf %399, %400 : vector<16x32xf32>
    %402 = arith.mulf %396, %401 : vector<16x32xf32>
    %403 = arith.truncf %402 : vector<16x32xf32> to vector<16x32xbf16>
    %c1_293 = arith.constant 1 : index
    %c2_294 = arith.constant 2 : index
    %c0_295 = arith.constant 0 : index
    %c0_296 = arith.constant 0 : index
    %404 = vector.load %arg6[%c1_293, %c2_294, %c0_295, %c0_296] : memref<4x10x32x160xbf16, #tpu.memory_space<vmem>>, vector<1x1x32x160xbf16>
    %405 = vector.shape_cast %404 : vector<1x1x32x160xbf16> to vector<32x160xbf16>
    %cst_297 = arith.constant dense<0.000000e+00> : vector<16x160xf32>
    %406 = tpu.matmul %403, %405, %cst_297 {dimension_numbers = #tpu.dot_dimension_numbers<[1], [0], [0], [1], [0, 0, 1, 1], [], []>} : vector<16x32xbf16>, vector<32x160xbf16>, vector<16x160xf32> -> vector<16x160xf32>
    %c1_298 = arith.constant 1 : index
    %c2_299 = arith.constant 2 : index
    %c0_300 = arith.constant 0 : index
    %c0_301 = arith.constant 0 : index
    %407 = vector.load %arg7[%c1_298, %c2_299, %c0_300, %c0_301] : memref<4x10x1x160xf32, #tpu.memory_space<vmem>>, vector<1x1x1x160xf32>
    %408 = vector.shape_cast %407 : vector<1x1x1x160xf32> to vector<1x160xf32>
    %409 = vector.broadcast %408 : vector<1x160xf32> to vector<16x160xf32>
    %410 = arith.addf %406, %409 : vector<16x160xf32>
    %411 = vector.extract_strided_slice %410 {offsets = [0, 0], sizes = [16, 128], strides = [1, 1]} : vector<16x160xf32> to vector<16x128xf32>
    %412 = arith.addf %381, %411 : vector<16x128xf32>
    %413 = vector.extract_strided_slice %410 {offsets = [0, 128], sizes = [16, 32], strides = [1, 1]} : vector<16x160xf32> to vector<16x32xf32>
    %414 = arith.addf %383, %413 : vector<16x32xf32>
    %c512_302 = arith.constant 512 : index
    %c0_303 = arith.constant 0 : index
    %415 = vector.load %arg13[%c512_302, %c0_303] : memref<528x32xf32, #tpu.memory_space<vmem>>, vector<16x32xf32>
    tpu.vector_store %arg13[%c512_302, %c0_303], %414 {strides = array<i32>} : memref<528x32xf32, #tpu.memory_space<vmem>>, vector<16x32xf32>,
    %c504_304 = arith.constant 504 : index
    %c0_305 = arith.constant 0 : index
    %416 = vector.load %arg13[%c504_304, %c0_305] : memref<528x32xf32, #tpu.memory_space<vmem>>, vector<16x32xf32>
    %417 = tpu.concatenate %416, %414 in 1 : vector<16x32xf32>, vector<16x32xf32> -> vector<16x64xf32>
    %418 = arith.truncf %417 : vector<16x64xf32> to vector<16x64xbf16>
    %c1_306 = arith.constant 1 : index
    %c3_307 = arith.constant 3 : index
    %c0_308 = arith.constant 0 : index
    %c0_309 = arith.constant 0 : index
    %419 = vector.load %arg4[%c1_306, %c3_307, %c0_308, %c0_309] : memref<4x10x64x64xbf16, #tpu.memory_space<vmem>>, vector<1x1x64x64xbf16>
    %420 = vector.shape_cast %419 : vector<1x1x64x64xbf16> to vector<64x64xbf16>
    %cst_310 = arith.constant dense<0.000000e+00> : vector<16x64xf32>
    %421 = tpu.matmul %418, %420, %cst_310 {dimension_numbers = #tpu.dot_dimension_numbers<[1], [0], [0], [1], [0, 0, 1, 1], [], []>} : vector<16x64xbf16>, vector<64x64xbf16>, vector<16x64xf32> -> vector<16x64xf32>
    %c1_311 = arith.constant 1 : index
    %c3_312 = arith.constant 3 : index
    %c0_313 = arith.constant 0 : index
    %c0_314 = arith.constant 0 : index
    %422 = vector.load %arg5[%c1_311, %c3_312, %c0_313, %c0_314] : memref<4x10x1x64xf32, #tpu.memory_space<vmem>>, vector<1x1x1x64xf32>
    %423 = vector.shape_cast %422 : vector<1x1x1x64xf32> to vector<1x64xf32>
    %424 = vector.broadcast %423 : vector<1x64xf32> to vector<16x64xf32>
    %425 = arith.addf %421, %424 : vector<16x64xf32>
    %426 = math.tanh %425 : vector<16x64xf32>
    %427 = vector.extract_strided_slice %426 {offsets = [0, 0], sizes = [16, 32], strides = [1, 1]} : vector<16x64xf32> to vector<16x32xf32>
    %428 = vector.extract_strided_slice %426 {offsets = [0, 32], sizes = [16, 32], strides = [1, 1]} : vector<16x64xf32> to vector<16x32xf32>
    %cst_315 = arith.constant 5.000000e-01 : f32
    %429 = vector.broadcast %cst_315 : f32 to vector<16x32xf32>
    %430 = arith.mulf %429, %428 : vector<16x32xf32>
    %cst_316 = arith.constant 5.000000e-01 : f32
    %431 = vector.broadcast %cst_316 : f32 to vector<16x32xf32>
    %432 = arith.addf %430, %431 : vector<16x32xf32>
    %433 = arith.mulf %427, %432 : vector<16x32xf32>
    %434 = arith.truncf %433 : vector<16x32xf32> to vector<16x32xbf16>
    %c1_317 = arith.constant 1 : index
    %c3_318 = arith.constant 3 : index
    %c0_319 = arith.constant 0 : index
    %c0_320 = arith.constant 0 : index
    %435 = vector.load %arg6[%c1_317, %c3_318, %c0_319, %c0_320] : memref<4x10x32x160xbf16, #tpu.memory_space<vmem>>, vector<1x1x32x160xbf16>
    %436 = vector.shape_cast %435 : vector<1x1x32x160xbf16> to vector<32x160xbf16>
    %cst_321 = arith.constant dense<0.000000e+00> : vector<16x160xf32>
    %437 = tpu.matmul %434, %436, %cst_321 {dimension_numbers = #tpu.dot_dimension_numbers<[1], [0], [0], [1], [0, 0, 1, 1], [], []>} : vector<16x32xbf16>, vector<32x160xbf16>, vector<16x160xf32> -> vector<16x160xf32>
    %c1_322 = arith.constant 1 : index
    %c3_323 = arith.constant 3 : index
    %c0_324 = arith.constant 0 : index
    %c0_325 = arith.constant 0 : index
    %438 = vector.load %arg7[%c1_322, %c3_323, %c0_324, %c0_325] : memref<4x10x1x160xf32, #tpu.memory_space<vmem>>, vector<1x1x1x160xf32>
    %439 = vector.shape_cast %438 : vector<1x1x1x160xf32> to vector<1x160xf32>
    %440 = vector.broadcast %439 : vector<1x160xf32> to vector<16x160xf32>
    %441 = arith.addf %437, %440 : vector<16x160xf32>
    %442 = vector.extract_strided_slice %441 {offsets = [0, 0], sizes = [16, 128], strides = [1, 1]} : vector<16x160xf32> to vector<16x128xf32>
    %443 = arith.addf %412, %442 : vector<16x128xf32>
    %444 = vector.extract_strided_slice %441 {offsets = [0, 128], sizes = [16, 32], strides = [1, 1]} : vector<16x160xf32> to vector<16x32xf32>
    %445 = arith.addf %414, %444 : vector<16x32xf32>
    %c512_326 = arith.constant 512 : index
    %c0_327 = arith.constant 0 : index
    %446 = vector.load %arg13[%c512_326, %c0_327] : memref<528x32xf32, #tpu.memory_space<vmem>>, vector<16x32xf32>
    tpu.vector_store %arg13[%c512_326, %c0_327], %445 {strides = array<i32>} : memref<528x32xf32, #tpu.memory_space<vmem>>, vector<16x32xf32>,
    %c496_328 = arith.constant 496 : index
    %c0_329 = arith.constant 0 : index
    %447 = vector.load %arg13[%c496_328, %c0_329] : memref<528x32xf32, #tpu.memory_space<vmem>>, vector<16x32xf32>
    %448 = tpu.concatenate %447, %445 in 1 : vector<16x32xf32>, vector<16x32xf32> -> vector<16x64xf32>
    %449 = arith.truncf %448 : vector<16x64xf32> to vector<16x64xbf16>
    %c1_330 = arith.constant 1 : index
    %c4_331 = arith.constant 4 : index
    %c0_332 = arith.constant 0 : index
    %c0_333 = arith.constant 0 : index
    %450 = vector.load %arg4[%c1_330, %c4_331, %c0_332, %c0_333] : memref<4x10x64x64xbf16, #tpu.memory_space<vmem>>, vector<1x1x64x64xbf16>
    %451 = vector.shape_cast %450 : vector<1x1x64x64xbf16> to vector<64x64xbf16>
    %cst_334 = arith.constant dense<0.000000e+00> : vector<16x64xf32>
    %452 = tpu.matmul %449, %451, %cst_334 {dimension_numbers = #tpu.dot_dimension_numbers<[1], [0], [0], [1], [0, 0, 1, 1], [], []>} : vector<16x64xbf16>, vector<64x64xbf16>, vector<16x64xf32> -> vector<16x64xf32>
    %c1_335 = arith.constant 1 : index
    %c4_336 = arith.constant 4 : index
    %c0_337 = arith.constant 0 : index
    %c0_338 = arith.constant 0 : index
    %453 = vector.load %arg5[%c1_335, %c4_336, %c0_337, %c0_338] : memref<4x10x1x64xf32, #tpu.memory_space<vmem>>, vector<1x1x1x64xf32>
    %454 = vector.shape_cast %453 : vector<1x1x1x64xf32> to vector<1x64xf32>
    %455 = vector.broadcast %454 : vector<1x64xf32> to vector<16x64xf32>
    %456 = arith.addf %452, %455 : vector<16x64xf32>
    %457 = math.tanh %456 : vector<16x64xf32>
    %458 = vector.extract_strided_slice %457 {offsets = [0, 0], sizes = [16, 32], strides = [1, 1]} : vector<16x64xf32> to vector<16x32xf32>
    %459 = vector.extract_strided_slice %457 {offsets = [0, 32], sizes = [16, 32], strides = [1, 1]} : vector<16x64xf32> to vector<16x32xf32>
    %cst_339 = arith.constant 5.000000e-01 : f32
    %460 = vector.broadcast %cst_339 : f32 to vector<16x32xf32>
    %461 = arith.mulf %460, %459 : vector<16x32xf32>
    %cst_340 = arith.constant 5.000000e-01 : f32
    %462 = vector.broadcast %cst_340 : f32 to vector<16x32xf32>
    %463 = arith.addf %461, %462 : vector<16x32xf32>
    %464 = arith.mulf %458, %463 : vector<16x32xf32>
    %465 = arith.truncf %464 : vector<16x32xf32> to vector<16x32xbf16>
    %c1_341 = arith.constant 1 : index
    %c4_342 = arith.constant 4 : index
    %c0_343 = arith.constant 0 : index
    %c0_344 = arith.constant 0 : index
    %466 = vector.load %arg6[%c1_341, %c4_342, %c0_343, %c0_344] : memref<4x10x32x160xbf16, #tpu.memory_space<vmem>>, vector<1x1x32x160xbf16>
    %467 = vector.shape_cast %466 : vector<1x1x32x160xbf16> to vector<32x160xbf16>
    %cst_345 = arith.constant dense<0.000000e+00> : vector<16x160xf32>
    %468 = tpu.matmul %465, %467, %cst_345 {dimension_numbers = #tpu.dot_dimension_numbers<[1], [0], [0], [1], [0, 0, 1, 1], [], []>} : vector<16x32xbf16>, vector<32x160xbf16>, vector<16x160xf32> -> vector<16x160xf32>
    %c1_346 = arith.constant 1 : index
    %c4_347 = arith.constant 4 : index
    %c0_348 = arith.constant 0 : index
    %c0_349 = arith.constant 0 : index
    %469 = vector.load %arg7[%c1_346, %c4_347, %c0_348, %c0_349] : memref<4x10x1x160xf32, #tpu.memory_space<vmem>>, vector<1x1x1x160xf32>
    %470 = vector.shape_cast %469 : vector<1x1x1x160xf32> to vector<1x160xf32>
    %471 = vector.broadcast %470 : vector<1x160xf32> to vector<16x160xf32>
    %472 = arith.addf %468, %471 : vector<16x160xf32>
    %473 = vector.extract_strided_slice %472 {offsets = [0, 0], sizes = [16, 128], strides = [1, 1]} : vector<16x160xf32> to vector<16x128xf32>
    %474 = arith.addf %443, %473 : vector<16x128xf32>
    %475 = vector.extract_strided_slice %472 {offsets = [0, 128], sizes = [16, 32], strides = [1, 1]} : vector<16x160xf32> to vector<16x32xf32>
    %476 = arith.addf %445, %475 : vector<16x32xf32>
    %c512_350 = arith.constant 512 : index
    %c0_351 = arith.constant 0 : index
    %477 = vector.load %arg13[%c512_350, %c0_351] : memref<528x32xf32, #tpu.memory_space<vmem>>, vector<16x32xf32>
    tpu.vector_store %arg13[%c512_350, %c0_351], %476 {strides = array<i32>} : memref<528x32xf32, #tpu.memory_space<vmem>>, vector<16x32xf32>,
    %c480_352 = arith.constant 480 : index
    %c0_353 = arith.constant 0 : index
    %478 = vector.load %arg13[%c480_352, %c0_353] : memref<528x32xf32, #tpu.memory_space<vmem>>, vector<16x32xf32>
    %479 = tpu.concatenate %478, %476 in 1 : vector<16x32xf32>, vector<16x32xf32> -> vector<16x64xf32>
    %480 = arith.truncf %479 : vector<16x64xf32> to vector<16x64xbf16>
    %c1_354 = arith.constant 1 : index
    %c5_355 = arith.constant 5 : index
    %c0_356 = arith.constant 0 : index
    %c0_357 = arith.constant 0 : index
    %481 = vector.load %arg4[%c1_354, %c5_355, %c0_356, %c0_357] : memref<4x10x64x64xbf16, #tpu.memory_space<vmem>>, vector<1x1x64x64xbf16>
    %482 = vector.shape_cast %481 : vector<1x1x64x64xbf16> to vector<64x64xbf16>
    %cst_358 = arith.constant dense<0.000000e+00> : vector<16x64xf32>
    %483 = tpu.matmul %480, %482, %cst_358 {dimension_numbers = #tpu.dot_dimension_numbers<[1], [0], [0], [1], [0, 0, 1, 1], [], []>} : vector<16x64xbf16>, vector<64x64xbf16>, vector<16x64xf32> -> vector<16x64xf32>
    %c1_359 = arith.constant 1 : index
    %c5_360 = arith.constant 5 : index
    %c0_361 = arith.constant 0 : index
    %c0_362 = arith.constant 0 : index
    %484 = vector.load %arg5[%c1_359, %c5_360, %c0_361, %c0_362] : memref<4x10x1x64xf32, #tpu.memory_space<vmem>>, vector<1x1x1x64xf32>
    %485 = vector.shape_cast %484 : vector<1x1x1x64xf32> to vector<1x64xf32>
    %486 = vector.broadcast %485 : vector<1x64xf32> to vector<16x64xf32>
    %487 = arith.addf %483, %486 : vector<16x64xf32>
    %488 = math.tanh %487 : vector<16x64xf32>
    %489 = vector.extract_strided_slice %488 {offsets = [0, 0], sizes = [16, 32], strides = [1, 1]} : vector<16x64xf32> to vector<16x32xf32>
    %490 = vector.extract_strided_slice %488 {offsets = [0, 32], sizes = [16, 32], strides = [1, 1]} : vector<16x64xf32> to vector<16x32xf32>
    %cst_363 = arith.constant 5.000000e-01 : f32
    %491 = vector.broadcast %cst_363 : f32 to vector<16x32xf32>
    %492 = arith.mulf %491, %490 : vector<16x32xf32>
    %cst_364 = arith.constant 5.000000e-01 : f32
    %493 = vector.broadcast %cst_364 : f32 to vector<16x32xf32>
    %494 = arith.addf %492, %493 : vector<16x32xf32>
    %495 = arith.mulf %489, %494 : vector<16x32xf32>
    %496 = arith.truncf %495 : vector<16x32xf32> to vector<16x32xbf16>
    %c1_365 = arith.constant 1 : index
    %c5_366 = arith.constant 5 : index
    %c0_367 = arith.constant 0 : index
    %c0_368 = arith.constant 0 : index
    %497 = vector.load %arg6[%c1_365, %c5_366, %c0_367, %c0_368] : memref<4x10x32x160xbf16, #tpu.memory_space<vmem>>, vector<1x1x32x160xbf16>
    %498 = vector.shape_cast %497 : vector<1x1x32x160xbf16> to vector<32x160xbf16>
    %cst_369 = arith.constant dense<0.000000e+00> : vector<16x160xf32>
    %499 = tpu.matmul %496, %498, %cst_369 {dimension_numbers = #tpu.dot_dimension_numbers<[1], [0], [0], [1], [0, 0, 1, 1], [], []>} : vector<16x32xbf16>, vector<32x160xbf16>, vector<16x160xf32> -> vector<16x160xf32>
    %c1_370 = arith.constant 1 : index
    %c5_371 = arith.constant 5 : index
    %c0_372 = arith.constant 0 : index
    %c0_373 = arith.constant 0 : index
    %500 = vector.load %arg7[%c1_370, %c5_371, %c0_372, %c0_373] : memref<4x10x1x160xf32, #tpu.memory_space<vmem>>, vector<1x1x1x160xf32>
    %501 = vector.shape_cast %500 : vector<1x1x1x160xf32> to vector<1x160xf32>
    %502 = vector.broadcast %501 : vector<1x160xf32> to vector<16x160xf32>
    %503 = arith.addf %499, %502 : vector<16x160xf32>
    %504 = vector.extract_strided_slice %503 {offsets = [0, 0], sizes = [16, 128], strides = [1, 1]} : vector<16x160xf32> to vector<16x128xf32>
    %505 = arith.addf %474, %504 : vector<16x128xf32>
    %506 = vector.extract_strided_slice %503 {offsets = [0, 128], sizes = [16, 32], strides = [1, 1]} : vector<16x160xf32> to vector<16x32xf32>
    %507 = arith.addf %476, %506 : vector<16x32xf32>
    %c512_374 = arith.constant 512 : index
    %c0_375 = arith.constant 0 : index
    %508 = vector.load %arg13[%c512_374, %c0_375] : memref<528x32xf32, #tpu.memory_space<vmem>>, vector<16x32xf32>
    tpu.vector_store %arg13[%c512_374, %c0_375], %507 {strides = array<i32>} : memref<528x32xf32, #tpu.memory_space<vmem>>, vector<16x32xf32>,
    %c448_376 = arith.constant 448 : index
    %c0_377 = arith.constant 0 : index
    %509 = vector.load %arg13[%c448_376, %c0_377] : memref<528x32xf32, #tpu.memory_space<vmem>>, vector<16x32xf32>
    %510 = tpu.concatenate %509, %507 in 1 : vector<16x32xf32>, vector<16x32xf32> -> vector<16x64xf32>
    %511 = arith.truncf %510 : vector<16x64xf32> to vector<16x64xbf16>
    %c1_378 = arith.constant 1 : index
    %c6_379 = arith.constant 6 : index
    %c0_380 = arith.constant 0 : index
    %c0_381 = arith.constant 0 : index
    %512 = vector.load %arg4[%c1_378, %c6_379, %c0_380, %c0_381] : memref<4x10x64x64xbf16, #tpu.memory_space<vmem>>, vector<1x1x64x64xbf16>
    %513 = vector.shape_cast %512 : vector<1x1x64x64xbf16> to vector<64x64xbf16>
    %cst_382 = arith.constant dense<0.000000e+00> : vector<16x64xf32>
    %514 = tpu.matmul %511, %513, %cst_382 {dimension_numbers = #tpu.dot_dimension_numbers<[1], [0], [0], [1], [0, 0, 1, 1], [], []>} : vector<16x64xbf16>, vector<64x64xbf16>, vector<16x64xf32> -> vector<16x64xf32>
    %c1_383 = arith.constant 1 : index
    %c6_384 = arith.constant 6 : index
    %c0_385 = arith.constant 0 : index
    %c0_386 = arith.constant 0 : index
    %515 = vector.load %arg5[%c1_383, %c6_384, %c0_385, %c0_386] : memref<4x10x1x64xf32, #tpu.memory_space<vmem>>, vector<1x1x1x64xf32>
    %516 = vector.shape_cast %515 : vector<1x1x1x64xf32> to vector<1x64xf32>
    %517 = vector.broadcast %516 : vector<1x64xf32> to vector<16x64xf32>
    %518 = arith.addf %514, %517 : vector<16x64xf32>
    %519 = math.tanh %518 : vector<16x64xf32>
    %520 = vector.extract_strided_slice %519 {offsets = [0, 0], sizes = [16, 32], strides = [1, 1]} : vector<16x64xf32> to vector<16x32xf32>
    %521 = vector.extract_strided_slice %519 {offsets = [0, 32], sizes = [16, 32], strides = [1, 1]} : vector<16x64xf32> to vector<16x32xf32>
    %cst_387 = arith.constant 5.000000e-01 : f32
    %522 = vector.broadcast %cst_387 : f32 to vector<16x32xf32>
    %523 = arith.mulf %522, %521 : vector<16x32xf32>
    %cst_388 = arith.constant 5.000000e-01 : f32
    %524 = vector.broadcast %cst_388 : f32 to vector<16x32xf32>
    %525 = arith.addf %523, %524 : vector<16x32xf32>
    %526 = arith.mulf %520, %525 : vector<16x32xf32>
    %527 = arith.truncf %526 : vector<16x32xf32> to vector<16x32xbf16>
    %c1_389 = arith.constant 1 : index
    %c6_390 = arith.constant 6 : index
    %c0_391 = arith.constant 0 : index
    %c0_392 = arith.constant 0 : index
    %528 = vector.load %arg6[%c1_389, %c6_390, %c0_391, %c0_392] : memref<4x10x32x160xbf16, #tpu.memory_space<vmem>>, vector<1x1x32x160xbf16>
    %529 = vector.shape_cast %528 : vector<1x1x32x160xbf16> to vector<32x160xbf16>
    %cst_393 = arith.constant dense<0.000000e+00> : vector<16x160xf32>
    %530 = tpu.matmul %527, %529, %cst_393 {dimension_numbers = #tpu.dot_dimension_numbers<[1], [0], [0], [1], [0, 0, 1, 1], [], []>} : vector<16x32xbf16>, vector<32x160xbf16>, vector<16x160xf32> -> vector<16x160xf32>
    %c1_394 = arith.constant 1 : index
    %c6_395 = arith.constant 6 : index
    %c0_396 = arith.constant 0 : index
    %c0_397 = arith.constant 0 : index
    %531 = vector.load %arg7[%c1_394, %c6_395, %c0_396, %c0_397] : memref<4x10x1x160xf32, #tpu.memory_space<vmem>>, vector<1x1x1x160xf32>
    %532 = vector.shape_cast %531 : vector<1x1x1x160xf32> to vector<1x160xf32>
    %533 = vector.broadcast %532 : vector<1x160xf32> to vector<16x160xf32>
    %534 = arith.addf %530, %533 : vector<16x160xf32>
    %535 = vector.extract_strided_slice %534 {offsets = [0, 0], sizes = [16, 128], strides = [1, 1]} : vector<16x160xf32> to vector<16x128xf32>
    %536 = arith.addf %505, %535 : vector<16x128xf32>
    %537 = vector.extract_strided_slice %534 {offsets = [0, 128], sizes = [16, 32], strides = [1, 1]} : vector<16x160xf32> to vector<16x32xf32>
    %538 = arith.addf %507, %537 : vector<16x32xf32>
    %c512_398 = arith.constant 512 : index
    %c0_399 = arith.constant 0 : index
    %539 = vector.load %arg13[%c512_398, %c0_399] : memref<528x32xf32, #tpu.memory_space<vmem>>, vector<16x32xf32>
    tpu.vector_store %arg13[%c512_398, %c0_399], %538 {strides = array<i32>} : memref<528x32xf32, #tpu.memory_space<vmem>>, vector<16x32xf32>,
    %c384_400 = arith.constant 384 : index
    %c0_401 = arith.constant 0 : index
    %540 = vector.load %arg13[%c384_400, %c0_401] : memref<528x32xf32, #tpu.memory_space<vmem>>, vector<16x32xf32>
    %541 = tpu.concatenate %540, %538 in 1 : vector<16x32xf32>, vector<16x32xf32> -> vector<16x64xf32>
    %542 = arith.truncf %541 : vector<16x64xf32> to vector<16x64xbf16>
    %c1_402 = arith.constant 1 : index
    %c7_403 = arith.constant 7 : index
    %c0_404 = arith.constant 0 : index
    %c0_405 = arith.constant 0 : index
    %543 = vector.load %arg4[%c1_402, %c7_403, %c0_404, %c0_405] : memref<4x10x64x64xbf16, #tpu.memory_space<vmem>>, vector<1x1x64x64xbf16>
    %544 = vector.shape_cast %543 : vector<1x1x64x64xbf16> to vector<64x64xbf16>
    %cst_406 = arith.constant dense<0.000000e+00> : vector<16x64xf32>
    %545 = tpu.matmul %542, %544, %cst_406 {dimension_numbers = #tpu.dot_dimension_numbers<[1], [0], [0], [1], [0, 0, 1, 1], [], []>} : vector<16x64xbf16>, vector<64x64xbf16>, vector<16x64xf32> -> vector<16x64xf32>
    %c1_407 = arith.constant 1 : index
    %c7_408 = arith.constant 7 : index
    %c0_409 = arith.constant 0 : index
    %c0_410 = arith.constant 0 : index
    %546 = vector.load %arg5[%c1_407, %c7_408, %c0_409, %c0_410] : memref<4x10x1x64xf32, #tpu.memory_space<vmem>>, vector<1x1x1x64xf32>
    %547 = vector.shape_cast %546 : vector<1x1x1x64xf32> to vector<1x64xf32>
    %548 = vector.broadcast %547 : vector<1x64xf32> to vector<16x64xf32>
    %549 = arith.addf %545, %548 : vector<16x64xf32>
    %550 = math.tanh %549 : vector<16x64xf32>
    %551 = vector.extract_strided_slice %550 {offsets = [0, 0], sizes = [16, 32], strides = [1, 1]} : vector<16x64xf32> to vector<16x32xf32>
    %552 = vector.extract_strided_slice %550 {offsets = [0, 32], sizes = [16, 32], strides = [1, 1]} : vector<16x64xf32> to vector<16x32xf32>
    %cst_411 = arith.constant 5.000000e-01 : f32
    %553 = vector.broadcast %cst_411 : f32 to vector<16x32xf32>
    %554 = arith.mulf %553, %552 : vector<16x32xf32>
    %cst_412 = arith.constant 5.000000e-01 : f32
    %555 = vector.broadcast %cst_412 : f32 to vector<16x32xf32>
    %556 = arith.addf %554, %555 : vector<16x32xf32>
    %557 = arith.mulf %551, %556 : vector<16x32xf32>
    %558 = arith.truncf %557 : vector<16x32xf32> to vector<16x32xbf16>
    %c1_413 = arith.constant 1 : index
    %c7_414 = arith.constant 7 : index
    %c0_415 = arith.constant 0 : index
    %c0_416 = arith.constant 0 : index
    %559 = vector.load %arg6[%c1_413, %c7_414, %c0_415, %c0_416] : memref<4x10x32x160xbf16, #tpu.memory_space<vmem>>, vector<1x1x32x160xbf16>
    %560 = vector.shape_cast %559 : vector<1x1x32x160xbf16> to vector<32x160xbf16>
    %cst_417 = arith.constant dense<0.000000e+00> : vector<16x160xf32>
    %561 = tpu.matmul %558, %560, %cst_417 {dimension_numbers = #tpu.dot_dimension_numbers<[1], [0], [0], [1], [0, 0, 1, 1], [], []>} : vector<16x32xbf16>, vector<32x160xbf16>, vector<16x160xf32> -> vector<16x160xf32>
    %c1_418 = arith.constant 1 : index
    %c7_419 = arith.constant 7 : index
    %c0_420 = arith.constant 0 : index
    %c0_421 = arith.constant 0 : index
    %562 = vector.load %arg7[%c1_418, %c7_419, %c0_420, %c0_421] : memref<4x10x1x160xf32, #tpu.memory_space<vmem>>, vector<1x1x1x160xf32>
    %563 = vector.shape_cast %562 : vector<1x1x1x160xf32> to vector<1x160xf32>
    %564 = vector.broadcast %563 : vector<1x160xf32> to vector<16x160xf32>
    %565 = arith.addf %561, %564 : vector<16x160xf32>
    %566 = vector.extract_strided_slice %565 {offsets = [0, 0], sizes = [16, 128], strides = [1, 1]} : vector<16x160xf32> to vector<16x128xf32>
    %567 = arith.addf %536, %566 : vector<16x128xf32>
    %568 = vector.extract_strided_slice %565 {offsets = [0, 128], sizes = [16, 32], strides = [1, 1]} : vector<16x160xf32> to vector<16x32xf32>
    %569 = arith.addf %538, %568 : vector<16x32xf32>
    %c512_422 = arith.constant 512 : index
    %c0_423 = arith.constant 0 : index
    %570 = vector.load %arg13[%c512_422, %c0_423] : memref<528x32xf32, #tpu.memory_space<vmem>>, vector<16x32xf32>
    tpu.vector_store %arg13[%c512_422, %c0_423], %569 {strides = array<i32>} : memref<528x32xf32, #tpu.memory_space<vmem>>, vector<16x32xf32>,
    %c256_424 = arith.constant 256 : index
    %c0_425 = arith.constant 0 : index
    %571 = vector.load %arg13[%c256_424, %c0_425] : memref<528x32xf32, #tpu.memory_space<vmem>>, vector<16x32xf32>
    %572 = tpu.concatenate %571, %569 in 1 : vector<16x32xf32>, vector<16x32xf32> -> vector<16x64xf32>
    %573 = arith.truncf %572 : vector<16x64xf32> to vector<16x64xbf16>
    %c1_426 = arith.constant 1 : index
    %c8_427 = arith.constant 8 : index
    %c0_428 = arith.constant 0 : index
    %c0_429 = arith.constant 0 : index
    %574 = vector.load %arg4[%c1_426, %c8_427, %c0_428, %c0_429] : memref<4x10x64x64xbf16, #tpu.memory_space<vmem>>, vector<1x1x64x64xbf16>
    %575 = vector.shape_cast %574 : vector<1x1x64x64xbf16> to vector<64x64xbf16>
    %cst_430 = arith.constant dense<0.000000e+00> : vector<16x64xf32>
    %576 = tpu.matmul %573, %575, %cst_430 {dimension_numbers = #tpu.dot_dimension_numbers<[1], [0], [0], [1], [0, 0, 1, 1], [], []>} : vector<16x64xbf16>, vector<64x64xbf16>, vector<16x64xf32> -> vector<16x64xf32>
    %c1_431 = arith.constant 1 : index
    %c8_432 = arith.constant 8 : index
    %c0_433 = arith.constant 0 : index
    %c0_434 = arith.constant 0 : index
    %577 = vector.load %arg5[%c1_431, %c8_432, %c0_433, %c0_434] : memref<4x10x1x64xf32, #tpu.memory_space<vmem>>, vector<1x1x1x64xf32>
    %578 = vector.shape_cast %577 : vector<1x1x1x64xf32> to vector<1x64xf32>
    %579 = vector.broadcast %578 : vector<1x64xf32> to vector<16x64xf32>
    %580 = arith.addf %576, %579 : vector<16x64xf32>
    %581 = math.tanh %580 : vector<16x64xf32>
    %582 = vector.extract_strided_slice %581 {offsets = [0, 0], sizes = [16, 32], strides = [1, 1]} : vector<16x64xf32> to vector<16x32xf32>
    %583 = vector.extract_strided_slice %581 {offsets = [0, 32], sizes = [16, 32], strides = [1, 1]} : vector<16x64xf32> to vector<16x32xf32>
    %cst_435 = arith.constant 5.000000e-01 : f32
    %584 = vector.broadcast %cst_435 : f32 to vector<16x32xf32>
    %585 = arith.mulf %584, %583 : vector<16x32xf32>
    %cst_436 = arith.constant 5.000000e-01 : f32
    %586 = vector.broadcast %cst_436 : f32 to vector<16x32xf32>
    %587 = arith.addf %585, %586 : vector<16x32xf32>
    %588 = arith.mulf %582, %587 : vector<16x32xf32>
    %589 = arith.truncf %588 : vector<16x32xf32> to vector<16x32xbf16>
    %c1_437 = arith.constant 1 : index
    %c8_438 = arith.constant 8 : index
    %c0_439 = arith.constant 0 : index
    %c0_440 = arith.constant 0 : index
    %590 = vector.load %arg6[%c1_437, %c8_438, %c0_439, %c0_440] : memref<4x10x32x160xbf16, #tpu.memory_space<vmem>>, vector<1x1x32x160xbf16>
    %591 = vector.shape_cast %590 : vector<1x1x32x160xbf16> to vector<32x160xbf16>
    %cst_441 = arith.constant dense<0.000000e+00> : vector<16x160xf32>
    %592 = tpu.matmul %589, %591, %cst_441 {dimension_numbers = #tpu.dot_dimension_numbers<[1], [0], [0], [1], [0, 0, 1, 1], [], []>} : vector<16x32xbf16>, vector<32x160xbf16>, vector<16x160xf32> -> vector<16x160xf32>
    %c1_442 = arith.constant 1 : index
    %c8_443 = arith.constant 8 : index
    %c0_444 = arith.constant 0 : index
    %c0_445 = arith.constant 0 : index
    %593 = vector.load %arg7[%c1_442, %c8_443, %c0_444, %c0_445] : memref<4x10x1x160xf32, #tpu.memory_space<vmem>>, vector<1x1x1x160xf32>
    %594 = vector.shape_cast %593 : vector<1x1x1x160xf32> to vector<1x160xf32>
    %595 = vector.broadcast %594 : vector<1x160xf32> to vector<16x160xf32>
    %596 = arith.addf %592, %595 : vector<16x160xf32>
    %597 = vector.extract_strided_slice %596 {offsets = [0, 0], sizes = [16, 128], strides = [1, 1]} : vector<16x160xf32> to vector<16x128xf32>
    %598 = arith.addf %567, %597 : vector<16x128xf32>
    %599 = vector.extract_strided_slice %596 {offsets = [0, 128], sizes = [16, 32], strides = [1, 1]} : vector<16x160xf32> to vector<16x32xf32>
    %600 = arith.addf %569, %599 : vector<16x32xf32>
    %c512_446 = arith.constant 512 : index
    %c0_447 = arith.constant 0 : index
    %601 = vector.load %arg13[%c512_446, %c0_447] : memref<528x32xf32, #tpu.memory_space<vmem>>, vector<16x32xf32>
    tpu.vector_store %arg13[%c512_446, %c0_447], %600 {strides = array<i32>} : memref<528x32xf32, #tpu.memory_space<vmem>>, vector<16x32xf32>,
    %c0_448 = arith.constant 0 : index
    %c0_449 = arith.constant 0 : index
    %602 = vector.load %arg13[%c0_448, %c0_449] : memref<528x32xf32, #tpu.memory_space<vmem>>, vector<16x32xf32>
    %603 = tpu.concatenate %602, %600 in 1 : vector<16x32xf32>, vector<16x32xf32> -> vector<16x64xf32>
    %604 = arith.truncf %603 : vector<16x64xf32> to vector<16x64xbf16>
    %c1_450 = arith.constant 1 : index
    %c9_451 = arith.constant 9 : index
    %c0_452 = arith.constant 0 : index
    %c0_453 = arith.constant 0 : index
    %605 = vector.load %arg4[%c1_450, %c9_451, %c0_452, %c0_453] : memref<4x10x64x64xbf16, #tpu.memory_space<vmem>>, vector<1x1x64x64xbf16>
    %606 = vector.shape_cast %605 : vector<1x1x64x64xbf16> to vector<64x64xbf16>
    %cst_454 = arith.constant dense<0.000000e+00> : vector<16x64xf32>
    %607 = tpu.matmul %604, %606, %cst_454 {dimension_numbers = #tpu.dot_dimension_numbers<[1], [0], [0], [1], [0, 0, 1, 1], [], []>} : vector<16x64xbf16>, vector<64x64xbf16>, vector<16x64xf32> -> vector<16x64xf32>
    %c1_455 = arith.constant 1 : index
    %c9_456 = arith.constant 9 : index
    %c0_457 = arith.constant 0 : index
    %c0_458 = arith.constant 0 : index
    %608 = vector.load %arg5[%c1_455, %c9_456, %c0_457, %c0_458] : memref<4x10x1x64xf32, #tpu.memory_space<vmem>>, vector<1x1x1x64xf32>
    %609 = vector.shape_cast %608 : vector<1x1x1x64xf32> to vector<1x64xf32>
    %610 = vector.broadcast %609 : vector<1x64xf32> to vector<16x64xf32>
    %611 = arith.addf %607, %610 : vector<16x64xf32>
    %612 = math.tanh %611 : vector<16x64xf32>
    %613 = vector.extract_strided_slice %612 {offsets = [0, 0], sizes = [16, 32], strides = [1, 1]} : vector<16x64xf32> to vector<16x32xf32>
    %614 = vector.extract_strided_slice %612 {offsets = [0, 32], sizes = [16, 32], strides = [1, 1]} : vector<16x64xf32> to vector<16x32xf32>
    %cst_459 = arith.constant 5.000000e-01 : f32
    %615 = vector.broadcast %cst_459 : f32 to vector<16x32xf32>
    %616 = arith.mulf %615, %614 : vector<16x32xf32>
    %cst_460 = arith.constant 5.000000e-01 : f32
    %617 = vector.broadcast %cst_460 : f32 to vector<16x32xf32>
    %618 = arith.addf %616, %617 : vector<16x32xf32>
    %619 = arith.mulf %613, %618 : vector<16x32xf32>
    %620 = arith.truncf %619 : vector<16x32xf32> to vector<16x32xbf16>
    %c1_461 = arith.constant 1 : index
    %c9_462 = arith.constant 9 : index
    %c0_463 = arith.constant 0 : index
    %c0_464 = arith.constant 0 : index
    %621 = vector.load %arg6[%c1_461, %c9_462, %c0_463, %c0_464] : memref<4x10x32x160xbf16, #tpu.memory_space<vmem>>, vector<1x1x32x160xbf16>
    %622 = vector.shape_cast %621 : vector<1x1x32x160xbf16> to vector<32x160xbf16>
    %cst_465 = arith.constant dense<0.000000e+00> : vector<16x160xf32>
    %623 = tpu.matmul %620, %622, %cst_465 {dimension_numbers = #tpu.dot_dimension_numbers<[1], [0], [0], [1], [0, 0, 1, 1], [], []>} : vector<16x32xbf16>, vector<32x160xbf16>, vector<16x160xf32> -> vector<16x160xf32>
    %c1_466 = arith.constant 1 : index
    %c9_467 = arith.constant 9 : index
    %c0_468 = arith.constant 0 : index
    %c0_469 = arith.constant 0 : index
    %624 = vector.load %arg7[%c1_466, %c9_467, %c0_468, %c0_469] : memref<4x10x1x160xf32, #tpu.memory_space<vmem>>, vector<1x1x1x160xf32>
    %625 = vector.shape_cast %624 : vector<1x1x1x160xf32> to vector<1x160xf32>
    %626 = vector.broadcast %625 : vector<1x160xf32> to vector<16x160xf32>
    %627 = arith.addf %623, %626 : vector<16x160xf32>
    %628 = vector.extract_strided_slice %627 {offsets = [0, 0], sizes = [16, 128], strides = [1, 1]} : vector<16x160xf32> to vector<16x128xf32>
    %629 = arith.addf %598, %628 : vector<16x128xf32>
    %630 = vector.extract_strided_slice %627 {offsets = [0, 128], sizes = [16, 32], strides = [1, 1]} : vector<16x160xf32> to vector<16x32xf32>
    %631 = arith.addf %600, %630 : vector<16x32xf32>
    %c512_470 = arith.constant 512 : index
    %c0_471 = arith.constant 0 : index
    %632 = vector.load %arg13[%c512_470, %c0_471] : memref<528x32xf32, #tpu.memory_space<vmem>>, vector<16x32xf32>
    tpu.vector_store %arg13[%c512_470, %c0_471], %631 {strides = array<i32>} : memref<528x32xf32, #tpu.memory_space<vmem>>, vector<16x32xf32>,
    %c511_472 = arith.constant 511 : index
    %c0_473 = arith.constant 0 : index
    %633 = vector.load %arg13[%c511_472, %c0_473] : memref<528x32xf32, #tpu.memory_space<vmem>>, vector<16x32xf32>
    %634 = tpu.concatenate %633, %631 in 1 : vector<16x32xf32>, vector<16x32xf32> -> vector<16x64xf32>
    %635 = arith.truncf %634 : vector<16x64xf32> to vector<16x64xbf16>
    %c2_474 = arith.constant 2 : index
    %c0_475 = arith.constant 0 : index
    %c0_476 = arith.constant 0 : index
    %c0_477 = arith.constant 0 : index
    %636 = vector.load %arg4[%c2_474, %c0_475, %c0_476, %c0_477] : memref<4x10x64x64xbf16, #tpu.memory_space<vmem>>, vector<1x1x64x64xbf16>
    %637 = vector.shape_cast %636 : vector<1x1x64x64xbf16> to vector<64x64xbf16>
    %cst_478 = arith.constant dense<0.000000e+00> : vector<16x64xf32>
    %638 = tpu.matmul %635, %637, %cst_478 {dimension_numbers = #tpu.dot_dimension_numbers<[1], [0], [0], [1], [0, 0, 1, 1], [], []>} : vector<16x64xbf16>, vector<64x64xbf16>, vector<16x64xf32> -> vector<16x64xf32>
    %c2_479 = arith.constant 2 : index
    %c0_480 = arith.constant 0 : index
    %c0_481 = arith.constant 0 : index
    %c0_482 = arith.constant 0 : index
    %639 = vector.load %arg5[%c2_479, %c0_480, %c0_481, %c0_482] : memref<4x10x1x64xf32, #tpu.memory_space<vmem>>, vector<1x1x1x64xf32>
    %640 = vector.shape_cast %639 : vector<1x1x1x64xf32> to vector<1x64xf32>
    %641 = vector.broadcast %640 : vector<1x64xf32> to vector<16x64xf32>
    %642 = arith.addf %638, %641 : vector<16x64xf32>
    %643 = math.tanh %642 : vector<16x64xf32>
    %644 = vector.extract_strided_slice %643 {offsets = [0, 0], sizes = [16, 32], strides = [1, 1]} : vector<16x64xf32> to vector<16x32xf32>
    %645 = vector.extract_strided_slice %643 {offsets = [0, 32], sizes = [16, 32], strides = [1, 1]} : vector<16x64xf32> to vector<16x32xf32>
    %cst_483 = arith.constant 5.000000e-01 : f32
    %646 = vector.broadcast %cst_483 : f32 to vector<16x32xf32>
    %647 = arith.mulf %646, %645 : vector<16x32xf32>
    %cst_484 = arith.constant 5.000000e-01 : f32
    %648 = vector.broadcast %cst_484 : f32 to vector<16x32xf32>
    %649 = arith.addf %647, %648 : vector<16x32xf32>
    %650 = arith.mulf %644, %649 : vector<16x32xf32>
    %651 = arith.truncf %650 : vector<16x32xf32> to vector<16x32xbf16>
    %c2_485 = arith.constant 2 : index
    %c0_486 = arith.constant 0 : index
    %c0_487 = arith.constant 0 : index
    %c0_488 = arith.constant 0 : index
    %652 = vector.load %arg6[%c2_485, %c0_486, %c0_487, %c0_488] : memref<4x10x32x160xbf16, #tpu.memory_space<vmem>>, vector<1x1x32x160xbf16>
    %653 = vector.shape_cast %652 : vector<1x1x32x160xbf16> to vector<32x160xbf16>
    %cst_489 = arith.constant dense<0.000000e+00> : vector<16x160xf32>
    %654 = tpu.matmul %651, %653, %cst_489 {dimension_numbers = #tpu.dot_dimension_numbers<[1], [0], [0], [1], [0, 0, 1, 1], [], []>} : vector<16x32xbf16>, vector<32x160xbf16>, vector<16x160xf32> -> vector<16x160xf32>
    %c2_490 = arith.constant 2 : index
    %c0_491 = arith.constant 0 : index
    %c0_492 = arith.constant 0 : index
    %c0_493 = arith.constant 0 : index
    %655 = vector.load %arg7[%c2_490, %c0_491, %c0_492, %c0_493] : memref<4x10x1x160xf32, #tpu.memory_space<vmem>>, vector<1x1x1x160xf32>
    %656 = vector.shape_cast %655 : vector<1x1x1x160xf32> to vector<1x160xf32>
    %657 = vector.broadcast %656 : vector<1x160xf32> to vector<16x160xf32>
    %658 = arith.addf %654, %657 : vector<16x160xf32>
    %659 = vector.extract_strided_slice %658 {offsets = [0, 0], sizes = [16, 128], strides = [1, 1]} : vector<16x160xf32> to vector<16x128xf32>
    %660 = arith.addf %629, %659 : vector<16x128xf32>
    %661 = vector.extract_strided_slice %658 {offsets = [0, 128], sizes = [16, 32], strides = [1, 1]} : vector<16x160xf32> to vector<16x32xf32>
    %662 = arith.addf %631, %661 : vector<16x32xf32>
    %c512_494 = arith.constant 512 : index
    %c0_495 = arith.constant 0 : index
    %663 = vector.load %arg13[%c512_494, %c0_495] : memref<528x32xf32, #tpu.memory_space<vmem>>, vector<16x32xf32>
    tpu.vector_store %arg13[%c512_494, %c0_495], %662 {strides = array<i32>} : memref<528x32xf32, #tpu.memory_space<vmem>>, vector<16x32xf32>,
    %c510_496 = arith.constant 510 : index
    %c0_497 = arith.constant 0 : index
    %664 = vector.load %arg13[%c510_496, %c0_497] : memref<528x32xf32, #tpu.memory_space<vmem>>, vector<16x32xf32>
    %665 = tpu.concatenate %664, %662 in 1 : vector<16x32xf32>, vector<16x32xf32> -> vector<16x64xf32>
    %666 = arith.truncf %665 : vector<16x64xf32> to vector<16x64xbf16>
    %c2_498 = arith.constant 2 : index
    %c1_499 = arith.constant 1 : index
    %c0_500 = arith.constant 0 : index
    %c0_501 = arith.constant 0 : index
    %667 = vector.load %arg4[%c2_498, %c1_499, %c0_500, %c0_501] : memref<4x10x64x64xbf16, #tpu.memory_space<vmem>>, vector<1x1x64x64xbf16>
    %668 = vector.shape_cast %667 : vector<1x1x64x64xbf16> to vector<64x64xbf16>
    %cst_502 = arith.constant dense<0.000000e+00> : vector<16x64xf32>
    %669 = tpu.matmul %666, %668, %cst_502 {dimension_numbers = #tpu.dot_dimension_numbers<[1], [0], [0], [1], [0, 0, 1, 1], [], []>} : vector<16x64xbf16>, vector<64x64xbf16>, vector<16x64xf32> -> vector<16x64xf32>
    %c2_503 = arith.constant 2 : index
    %c1_504 = arith.constant 1 : index
    %c0_505 = arith.constant 0 : index
    %c0_506 = arith.constant 0 : index
    %670 = vector.load %arg5[%c2_503, %c1_504, %c0_505, %c0_506] : memref<4x10x1x64xf32, #tpu.memory_space<vmem>>, vector<1x1x1x64xf32>
    %671 = vector.shape_cast %670 : vector<1x1x1x64xf32> to vector<1x64xf32>
    %672 = vector.broadcast %671 : vector<1x64xf32> to vector<16x64xf32>
    %673 = arith.addf %669, %672 : vector<16x64xf32>
    %674 = math.tanh %673 : vector<16x64xf32>
    %675 = vector.extract_strided_slice %674 {offsets = [0, 0], sizes = [16, 32], strides = [1, 1]} : vector<16x64xf32> to vector<16x32xf32>
    %676 = vector.extract_strided_slice %674 {offsets = [0, 32], sizes = [16, 32], strides = [1, 1]} : vector<16x64xf32> to vector<16x32xf32>
    %cst_507 = arith.constant 5.000000e-01 : f32
    %677 = vector.broadcast %cst_507 : f32 to vector<16x32xf32>
    %678 = arith.mulf %677, %676 : vector<16x32xf32>
    %cst_508 = arith.constant 5.000000e-01 : f32
    %679 = vector.broadcast %cst_508 : f32 to vector<16x32xf32>
    %680 = arith.addf %678, %679 : vector<16x32xf32>
    %681 = arith.mulf %675, %680 : vector<16x32xf32>
    %682 = arith.truncf %681 : vector<16x32xf32> to vector<16x32xbf16>
    %c2_509 = arith.constant 2 : index
    %c1_510 = arith.constant 1 : index
    %c0_511 = arith.constant 0 : index
    %c0_512 = arith.constant 0 : index
    %683 = vector.load %arg6[%c2_509, %c1_510, %c0_511, %c0_512] : memref<4x10x32x160xbf16, #tpu.memory_space<vmem>>, vector<1x1x32x160xbf16>
    %684 = vector.shape_cast %683 : vector<1x1x32x160xbf16> to vector<32x160xbf16>
    %cst_513 = arith.constant dense<0.000000e+00> : vector<16x160xf32>
    %685 = tpu.matmul %682, %684, %cst_513 {dimension_numbers = #tpu.dot_dimension_numbers<[1], [0], [0], [1], [0, 0, 1, 1], [], []>} : vector<16x32xbf16>, vector<32x160xbf16>, vector<16x160xf32> -> vector<16x160xf32>
    %c2_514 = arith.constant 2 : index
    %c1_515 = arith.constant 1 : index
    %c0_516 = arith.constant 0 : index
    %c0_517 = arith.constant 0 : index
    %686 = vector.load %arg7[%c2_514, %c1_515, %c0_516, %c0_517] : memref<4x10x1x160xf32, #tpu.memory_space<vmem>>, vector<1x1x1x160xf32>
    %687 = vector.shape_cast %686 : vector<1x1x1x160xf32> to vector<1x160xf32>
    %688 = vector.broadcast %687 : vector<1x160xf32> to vector<16x160xf32>
    %689 = arith.addf %685, %688 : vector<16x160xf32>
    %690 = vector.extract_strided_slice %689 {offsets = [0, 0], sizes = [16, 128], strides = [1, 1]} : vector<16x160xf32> to vector<16x128xf32>
    %691 = arith.addf %660, %690 : vector<16x128xf32>
    %692 = vector.extract_strided_slice %689 {offsets = [0, 128], sizes = [16, 32], strides = [1, 1]} : vector<16x160xf32> to vector<16x32xf32>
    %693 = arith.addf %662, %692 : vector<16x32xf32>
    %c512_518 = arith.constant 512 : index
    %c0_519 = arith.constant 0 : index
    %694 = vector.load %arg13[%c512_518, %c0_519] : memref<528x32xf32, #tpu.memory_space<vmem>>, vector<16x32xf32>
    tpu.vector_store %arg13[%c512_518, %c0_519], %693 {strides = array<i32>} : memref<528x32xf32, #tpu.memory_space<vmem>>, vector<16x32xf32>,
    %c508_520 = arith.constant 508 : index
    %c0_521 = arith.constant 0 : index
    %695 = vector.load %arg13[%c508_520, %c0_521] : memref<528x32xf32, #tpu.memory_space<vmem>>, vector<16x32xf32>
    %696 = tpu.concatenate %695, %693 in 1 : vector<16x32xf32>, vector<16x32xf32> -> vector<16x64xf32>
    %697 = arith.truncf %696 : vector<16x64xf32> to vector<16x64xbf16>
    %c2_522 = arith.constant 2 : index
    %c2_523 = arith.constant 2 : index
    %c0_524 = arith.constant 0 : index
    %c0_525 = arith.constant 0 : index
    %698 = vector.load %arg4[%c2_522, %c2_523, %c0_524, %c0_525] : memref<4x10x64x64xbf16, #tpu.memory_space<vmem>>, vector<1x1x64x64xbf16>
    %699 = vector.shape_cast %698 : vector<1x1x64x64xbf16> to vector<64x64xbf16>
    %cst_526 = arith.constant dense<0.000000e+00> : vector<16x64xf32>
    %700 = tpu.matmul %697, %699, %cst_526 {dimension_numbers = #tpu.dot_dimension_numbers<[1], [0], [0], [1], [0, 0, 1, 1], [], []>} : vector<16x64xbf16>, vector<64x64xbf16>, vector<16x64xf32> -> vector<16x64xf32>
    %c2_527 = arith.constant 2 : index
    %c2_528 = arith.constant 2 : index
    %c0_529 = arith.constant 0 : index
    %c0_530 = arith.constant 0 : index
    %701 = vector.load %arg5[%c2_527, %c2_528, %c0_529, %c0_530] : memref<4x10x1x64xf32, #tpu.memory_space<vmem>>, vector<1x1x1x64xf32>
    %702 = vector.shape_cast %701 : vector<1x1x1x64xf32> to vector<1x64xf32>
    %703 = vector.broadcast %702 : vector<1x64xf32> to vector<16x64xf32>
    %704 = arith.addf %700, %703 : vector<16x64xf32>
    %705 = math.tanh %704 : vector<16x64xf32>
    %706 = vector.extract_strided_slice %705 {offsets = [0, 0], sizes = [16, 32], strides = [1, 1]} : vector<16x64xf32> to vector<16x32xf32>
    %707 = vector.extract_strided_slice %705 {offsets = [0, 32], sizes = [16, 32], strides = [1, 1]} : vector<16x64xf32> to vector<16x32xf32>
    %cst_531 = arith.constant 5.000000e-01 : f32
    %708 = vector.broadcast %cst_531 : f32 to vector<16x32xf32>
    %709 = arith.mulf %708, %707 : vector<16x32xf32>
    %cst_532 = arith.constant 5.000000e-01 : f32
    %710 = vector.broadcast %cst_532 : f32 to vector<16x32xf32>
    %711 = arith.addf %709, %710 : vector<16x32xf32>
    %712 = arith.mulf %706, %711 : vector<16x32xf32>
    %713 = arith.truncf %712 : vector<16x32xf32> to vector<16x32xbf16>
    %c2_533 = arith.constant 2 : index
    %c2_534 = arith.constant 2 : index
    %c0_535 = arith.constant 0 : index
    %c0_536 = arith.constant 0 : index
    %714 = vector.load %arg6[%c2_533, %c2_534, %c0_535, %c0_536] : memref<4x10x32x160xbf16, #tpu.memory_space<vmem>>, vector<1x1x32x160xbf16>
    %715 = vector.shape_cast %714 : vector<1x1x32x160xbf16> to vector<32x160xbf16>
    %cst_537 = arith.constant dense<0.000000e+00> : vector<16x160xf32>
    %716 = tpu.matmul %713, %715, %cst_537 {dimension_numbers = #tpu.dot_dimension_numbers<[1], [0], [0], [1], [0, 0, 1, 1], [], []>} : vector<16x32xbf16>, vector<32x160xbf16>, vector<16x160xf32> -> vector<16x160xf32>
    %c2_538 = arith.constant 2 : index
    %c2_539 = arith.constant 2 : index
    %c0_540 = arith.constant 0 : index
    %c0_541 = arith.constant 0 : index
    %717 = vector.load %arg7[%c2_538, %c2_539, %c0_540, %c0_541] : memref<4x10x1x160xf32, #tpu.memory_space<vmem>>, vector<1x1x1x160xf32>
    %718 = vector.shape_cast %717 : vector<1x1x1x160xf32> to vector<1x160xf32>
    %719 = vector.broadcast %718 : vector<1x160xf32> to vector<16x160xf32>
    %720 = arith.addf %716, %719 : vector<16x160xf32>
    %721 = vector.extract_strided_slice %720 {offsets = [0, 0], sizes = [16, 128], strides = [1, 1]} : vector<16x160xf32> to vector<16x128xf32>
    %722 = arith.addf %691, %721 : vector<16x128xf32>
    %723 = vector.extract_strided_slice %720 {offsets = [0, 128], sizes = [16, 32], strides = [1, 1]} : vector<16x160xf32> to vector<16x32xf32>
    %724 = arith.addf %693, %723 : vector<16x32xf32>
    %c512_542 = arith.constant 512 : index
    %c0_543 = arith.constant 0 : index
    %725 = vector.load %arg13[%c512_542, %c0_543] : memref<528x32xf32, #tpu.memory_space<vmem>>, vector<16x32xf32>
    tpu.vector_store %arg13[%c512_542, %c0_543], %724 {strides = array<i32>} : memref<528x32xf32, #tpu.memory_space<vmem>>, vector<16x32xf32>,
    %c504_544 = arith.constant 504 : index
    %c0_545 = arith.constant 0 : index
    %726 = vector.load %arg13[%c504_544, %c0_545] : memref<528x32xf32, #tpu.memory_space<vmem>>, vector<16x32xf32>
    %727 = tpu.concatenate %726, %724 in 1 : vector<16x32xf32>, vector<16x32xf32> -> vector<16x64xf32>
    %728 = arith.truncf %727 : vector<16x64xf32> to vector<16x64xbf16>
    %c2_546 = arith.constant 2 : index
    %c3_547 = arith.constant 3 : index
    %c0_548 = arith.constant 0 : index
    %c0_549 = arith.constant 0 : index
    %729 = vector.load %arg4[%c2_546, %c3_547, %c0_548, %c0_549] : memref<4x10x64x64xbf16, #tpu.memory_space<vmem>>, vector<1x1x64x64xbf16>
    %730 = vector.shape_cast %729 : vector<1x1x64x64xbf16> to vector<64x64xbf16>
    %cst_550 = arith.constant dense<0.000000e+00> : vector<16x64xf32>
    %731 = tpu.matmul %728, %730, %cst_550 {dimension_numbers = #tpu.dot_dimension_numbers<[1], [0], [0], [1], [0, 0, 1, 1], [], []>} : vector<16x64xbf16>, vector<64x64xbf16>, vector<16x64xf32> -> vector<16x64xf32>
    %c2_551 = arith.constant 2 : index
    %c3_552 = arith.constant 3 : index
    %c0_553 = arith.constant 0 : index
    %c0_554 = arith.constant 0 : index
    %732 = vector.load %arg5[%c2_551, %c3_552, %c0_553, %c0_554] : memref<4x10x1x64xf32, #tpu.memory_space<vmem>>, vector<1x1x1x64xf32>
    %733 = vector.shape_cast %732 : vector<1x1x1x64xf32> to vector<1x64xf32>
    %734 = vector.broadcast %733 : vector<1x64xf32> to vector<16x64xf32>
    %735 = arith.addf %731, %734 : vector<16x64xf32>
    %736 = math.tanh %735 : vector<16x64xf32>
    %737 = vector.extract_strided_slice %736 {offsets = [0, 0], sizes = [16, 32], strides = [1, 1]} : vector<16x64xf32> to vector<16x32xf32>
    %738 = vector.extract_strided_slice %736 {offsets = [0, 32], sizes = [16, 32], strides = [1, 1]} : vector<16x64xf32> to vector<16x32xf32>
    %cst_555 = arith.constant 5.000000e-01 : f32
    %739 = vector.broadcast %cst_555 : f32 to vector<16x32xf32>
    %740 = arith.mulf %739, %738 : vector<16x32xf32>
    %cst_556 = arith.constant 5.000000e-01 : f32
    %741 = vector.broadcast %cst_556 : f32 to vector<16x32xf32>
    %742 = arith.addf %740, %741 : vector<16x32xf32>
    %743 = arith.mulf %737, %742 : vector<16x32xf32>
    %744 = arith.truncf %743 : vector<16x32xf32> to vector<16x32xbf16>
    %c2_557 = arith.constant 2 : index
    %c3_558 = arith.constant 3 : index
    %c0_559 = arith.constant 0 : index
    %c0_560 = arith.constant 0 : index
    %745 = vector.load %arg6[%c2_557, %c3_558, %c0_559, %c0_560] : memref<4x10x32x160xbf16, #tpu.memory_space<vmem>>, vector<1x1x32x160xbf16>
    %746 = vector.shape_cast %745 : vector<1x1x32x160xbf16> to vector<32x160xbf16>
    %cst_561 = arith.constant dense<0.000000e+00> : vector<16x160xf32>
    %747 = tpu.matmul %744, %746, %cst_561 {dimension_numbers = #tpu.dot_dimension_numbers<[1], [0], [0], [1], [0, 0, 1, 1], [], []>} : vector<16x32xbf16>, vector<32x160xbf16>, vector<16x160xf32> -> vector<16x160xf32>
    %c2_562 = arith.constant 2 : index
    %c3_563 = arith.constant 3 : index
    %c0_564 = arith.constant 0 : index
    %c0_565 = arith.constant 0 : index
    %748 = vector.load %arg7[%c2_562, %c3_563, %c0_564, %c0_565] : memref<4x10x1x160xf32, #tpu.memory_space<vmem>>, vector<1x1x1x160xf32>
    %749 = vector.shape_cast %748 : vector<1x1x1x160xf32> to vector<1x160xf32>
    %750 = vector.broadcast %749 : vector<1x160xf32> to vector<16x160xf32>
    %751 = arith.addf %747, %750 : vector<16x160xf32>
    %752 = vector.extract_strided_slice %751 {offsets = [0, 0], sizes = [16, 128], strides = [1, 1]} : vector<16x160xf32> to vector<16x128xf32>
    %753 = arith.addf %722, %752 : vector<16x128xf32>
    %754 = vector.extract_strided_slice %751 {offsets = [0, 128], sizes = [16, 32], strides = [1, 1]} : vector<16x160xf32> to vector<16x32xf32>
    %755 = arith.addf %724, %754 : vector<16x32xf32>
    %c512_566 = arith.constant 512 : index
    %c0_567 = arith.constant 0 : index
    %756 = vector.load %arg13[%c512_566, %c0_567] : memref<528x32xf32, #tpu.memory_space<vmem>>, vector<16x32xf32>
    tpu.vector_store %arg13[%c512_566, %c0_567], %755 {strides = array<i32>} : memref<528x32xf32, #tpu.memory_space<vmem>>, vector<16x32xf32>,
    %c496_568 = arith.constant 496 : index
    %c0_569 = arith.constant 0 : index
    %757 = vector.load %arg13[%c496_568, %c0_569] : memref<528x32xf32, #tpu.memory_space<vmem>>, vector<16x32xf32>
    %758 = tpu.concatenate %757, %755 in 1 : vector<16x32xf32>, vector<16x32xf32> -> vector<16x64xf32>
    %759 = arith.truncf %758 : vector<16x64xf32> to vector<16x64xbf16>
    %c2_570 = arith.constant 2 : index
    %c4_571 = arith.constant 4 : index
    %c0_572 = arith.constant 0 : index
    %c0_573 = arith.constant 0 : index
    %760 = vector.load %arg4[%c2_570, %c4_571, %c0_572, %c0_573] : memref<4x10x64x64xbf16, #tpu.memory_space<vmem>>, vector<1x1x64x64xbf16>
    %761 = vector.shape_cast %760 : vector<1x1x64x64xbf16> to vector<64x64xbf16>
    %cst_574 = arith.constant dense<0.000000e+00> : vector<16x64xf32>
    %762 = tpu.matmul %759, %761, %cst_574 {dimension_numbers = #tpu.dot_dimension_numbers<[1], [0], [0], [1], [0, 0, 1, 1], [], []>} : vector<16x64xbf16>, vector<64x64xbf16>, vector<16x64xf32> -> vector<16x64xf32>
    %c2_575 = arith.constant 2 : index
    %c4_576 = arith.constant 4 : index
    %c0_577 = arith.constant 0 : index
    %c0_578 = arith.constant 0 : index
    %763 = vector.load %arg5[%c2_575, %c4_576, %c0_577, %c0_578] : memref<4x10x1x64xf32, #tpu.memory_space<vmem>>, vector<1x1x1x64xf32>
    %764 = vector.shape_cast %763 : vector<1x1x1x64xf32> to vector<1x64xf32>
    %765 = vector.broadcast %764 : vector<1x64xf32> to vector<16x64xf32>
    %766 = arith.addf %762, %765 : vector<16x64xf32>
    %767 = math.tanh %766 : vector<16x64xf32>
    %768 = vector.extract_strided_slice %767 {offsets = [0, 0], sizes = [16, 32], strides = [1, 1]} : vector<16x64xf32> to vector<16x32xf32>
    %769 = vector.extract_strided_slice %767 {offsets = [0, 32], sizes = [16, 32], strides = [1, 1]} : vector<16x64xf32> to vector<16x32xf32>
    %cst_579 = arith.constant 5.000000e-01 : f32
    %770 = vector.broadcast %cst_579 : f32 to vector<16x32xf32>
    %771 = arith.mulf %770, %769 : vector<16x32xf32>
    %cst_580 = arith.constant 5.000000e-01 : f32
    %772 = vector.broadcast %cst_580 : f32 to vector<16x32xf32>
    %773 = arith.addf %771, %772 : vector<16x32xf32>
    %774 = arith.mulf %768, %773 : vector<16x32xf32>
    %775 = arith.truncf %774 : vector<16x32xf32> to vector<16x32xbf16>
    %c2_581 = arith.constant 2 : index
    %c4_582 = arith.constant 4 : index
    %c0_583 = arith.constant 0 : index
    %c0_584 = arith.constant 0 : index
    %776 = vector.load %arg6[%c2_581, %c4_582, %c0_583, %c0_584] : memref<4x10x32x160xbf16, #tpu.memory_space<vmem>>, vector<1x1x32x160xbf16>
    %777 = vector.shape_cast %776 : vector<1x1x32x160xbf16> to vector<32x160xbf16>
    %cst_585 = arith.constant dense<0.000000e+00> : vector<16x160xf32>
    %778 = tpu.matmul %775, %777, %cst_585 {dimension_numbers = #tpu.dot_dimension_numbers<[1], [0], [0], [1], [0, 0, 1, 1], [], []>} : vector<16x32xbf16>, vector<32x160xbf16>, vector<16x160xf32> -> vector<16x160xf32>
    %c2_586 = arith.constant 2 : index
    %c4_587 = arith.constant 4 : index
    %c0_588 = arith.constant 0 : index
    %c0_589 = arith.constant 0 : index
    %779 = vector.load %arg7[%c2_586, %c4_587, %c0_588, %c0_589] : memref<4x10x1x160xf32, #tpu.memory_space<vmem>>, vector<1x1x1x160xf32>
    %780 = vector.shape_cast %779 : vector<1x1x1x160xf32> to vector<1x160xf32>
    %781 = vector.broadcast %780 : vector<1x160xf32> to vector<16x160xf32>
    %782 = arith.addf %778, %781 : vector<16x160xf32>
    %783 = vector.extract_strided_slice %782 {offsets = [0, 0], sizes = [16, 128], strides = [1, 1]} : vector<16x160xf32> to vector<16x128xf32>
    %784 = arith.addf %753, %783 : vector<16x128xf32>
    %785 = vector.extract_strided_slice %782 {offsets = [0, 128], sizes = [16, 32], strides = [1, 1]} : vector<16x160xf32> to vector<16x32xf32>
    %786 = arith.addf %755, %785 : vector<16x32xf32>
    %c512_590 = arith.constant 512 : index
    %c0_591 = arith.constant 0 : index
    %787 = vector.load %arg13[%c512_590, %c0_591] : memref<528x32xf32, #tpu.memory_space<vmem>>, vector<16x32xf32>
    tpu.vector_store %arg13[%c512_590, %c0_591], %786 {strides = array<i32>} : memref<528x32xf32, #tpu.memory_space<vmem>>, vector<16x32xf32>,
    %c480_592 = arith.constant 480 : index
    %c0_593 = arith.constant 0 : index
    %788 = vector.load %arg13[%c480_592, %c0_593] : memref<528x32xf32, #tpu.memory_space<vmem>>, vector<16x32xf32>
    %789 = tpu.concatenate %788, %786 in 1 : vector<16x32xf32>, vector<16x32xf32> -> vector<16x64xf32>
    %790 = arith.truncf %789 : vector<16x64xf32> to vector<16x64xbf16>
    %c2_594 = arith.constant 2 : index
    %c5_595 = arith.constant 5 : index
    %c0_596 = arith.constant 0 : index
    %c0_597 = arith.constant 0 : index
    %791 = vector.load %arg4[%c2_594, %c5_595, %c0_596, %c0_597] : memref<4x10x64x64xbf16, #tpu.memory_space<vmem>>, vector<1x1x64x64xbf16>
    %792 = vector.shape_cast %791 : vector<1x1x64x64xbf16> to vector<64x64xbf16>
    %cst_598 = arith.constant dense<0.000000e+00> : vector<16x64xf32>
    %793 = tpu.matmul %790, %792, %cst_598 {dimension_numbers = #tpu.dot_dimension_numbers<[1], [0], [0], [1], [0, 0, 1, 1], [], []>} : vector<16x64xbf16>, vector<64x64xbf16>, vector<16x64xf32> -> vector<16x64xf32>
    %c2_599 = arith.constant 2 : index
    %c5_600 = arith.constant 5 : index
    %c0_601 = arith.constant 0 : index
    %c0_602 = arith.constant 0 : index
    %794 = vector.load %arg5[%c2_599, %c5_600, %c0_601, %c0_602] : memref<4x10x1x64xf32, #tpu.memory_space<vmem>>, vector<1x1x1x64xf32>
    %795 = vector.shape_cast %794 : vector<1x1x1x64xf32> to vector<1x64xf32>
    %796 = vector.broadcast %795 : vector<1x64xf32> to vector<16x64xf32>
    %797 = arith.addf %793, %796 : vector<16x64xf32>
    %798 = math.tanh %797 : vector<16x64xf32>
    %799 = vector.extract_strided_slice %798 {offsets = [0, 0], sizes = [16, 32], strides = [1, 1]} : vector<16x64xf32> to vector<16x32xf32>
    %800 = vector.extract_strided_slice %798 {offsets = [0, 32], sizes = [16, 32], strides = [1, 1]} : vector<16x64xf32> to vector<16x32xf32>
    %cst_603 = arith.constant 5.000000e-01 : f32
    %801 = vector.broadcast %cst_603 : f32 to vector<16x32xf32>
    %802 = arith.mulf %801, %800 : vector<16x32xf32>
    %cst_604 = arith.constant 5.000000e-01 : f32
    %803 = vector.broadcast %cst_604 : f32 to vector<16x32xf32>
    %804 = arith.addf %802, %803 : vector<16x32xf32>
    %805 = arith.mulf %799, %804 : vector<16x32xf32>
    %806 = arith.truncf %805 : vector<16x32xf32> to vector<16x32xbf16>
    %c2_605 = arith.constant 2 : index
    %c5_606 = arith.constant 5 : index
    %c0_607 = arith.constant 0 : index
    %c0_608 = arith.constant 0 : index
    %807 = vector.load %arg6[%c2_605, %c5_606, %c0_607, %c0_608] : memref<4x10x32x160xbf16, #tpu.memory_space<vmem>>, vector<1x1x32x160xbf16>
    %808 = vector.shape_cast %807 : vector<1x1x32x160xbf16> to vector<32x160xbf16>
    %cst_609 = arith.constant dense<0.000000e+00> : vector<16x160xf32>
    %809 = tpu.matmul %806, %808, %cst_609 {dimension_numbers = #tpu.dot_dimension_numbers<[1], [0], [0], [1], [0, 0, 1, 1], [], []>} : vector<16x32xbf16>, vector<32x160xbf16>, vector<16x160xf32> -> vector<16x160xf32>
    %c2_610 = arith.constant 2 : index
    %c5_611 = arith.constant 5 : index
    %c0_612 = arith.constant 0 : index
    %c0_613 = arith.constant 0 : index
    %810 = vector.load %arg7[%c2_610, %c5_611, %c0_612, %c0_613] : memref<4x10x1x160xf32, #tpu.memory_space<vmem>>, vector<1x1x1x160xf32>
    %811 = vector.shape_cast %810 : vector<1x1x1x160xf32> to vector<1x160xf32>
    %812 = vector.broadcast %811 : vector<1x160xf32> to vector<16x160xf32>
    %813 = arith.addf %809, %812 : vector<16x160xf32>
    %814 = vector.extract_strided_slice %813 {offsets = [0, 0], sizes = [16, 128], strides = [1, 1]} : vector<16x160xf32> to vector<16x128xf32>
    %815 = arith.addf %784, %814 : vector<16x128xf32>
    %816 = vector.extract_strided_slice %813 {offsets = [0, 128], sizes = [16, 32], strides = [1, 1]} : vector<16x160xf32> to vector<16x32xf32>
    %817 = arith.addf %786, %816 : vector<16x32xf32>
    %c512_614 = arith.constant 512 : index
    %c0_615 = arith.constant 0 : index
    %818 = vector.load %arg13[%c512_614, %c0_615] : memref<528x32xf32, #tpu.memory_space<vmem>>, vector<16x32xf32>
    tpu.vector_store %arg13[%c512_614, %c0_615], %817 {strides = array<i32>} : memref<528x32xf32, #tpu.memory_space<vmem>>, vector<16x32xf32>,
    %c448_616 = arith.constant 448 : index
    %c0_617 = arith.constant 0 : index
    %819 = vector.load %arg13[%c448_616, %c0_617] : memref<528x32xf32, #tpu.memory_space<vmem>>, vector<16x32xf32>
    %820 = tpu.concatenate %819, %817 in 1 : vector<16x32xf32>, vector<16x32xf32> -> vector<16x64xf32>
    %821 = arith.truncf %820 : vector<16x64xf32> to vector<16x64xbf16>
    %c2_618 = arith.constant 2 : index
    %c6_619 = arith.constant 6 : index
    %c0_620 = arith.constant 0 : index
    %c0_621 = arith.constant 0 : index
    %822 = vector.load %arg4[%c2_618, %c6_619, %c0_620, %c0_621] : memref<4x10x64x64xbf16, #tpu.memory_space<vmem>>, vector<1x1x64x64xbf16>
    %823 = vector.shape_cast %822 : vector<1x1x64x64xbf16> to vector<64x64xbf16>
    %cst_622 = arith.constant dense<0.000000e+00> : vector<16x64xf32>
    %824 = tpu.matmul %821, %823, %cst_622 {dimension_numbers = #tpu.dot_dimension_numbers<[1], [0], [0], [1], [0, 0, 1, 1], [], []>} : vector<16x64xbf16>, vector<64x64xbf16>, vector<16x64xf32> -> vector<16x64xf32>
    %c2_623 = arith.constant 2 : index
    %c6_624 = arith.constant 6 : index
    %c0_625 = arith.constant 0 : index
    %c0_626 = arith.constant 0 : index
    %825 = vector.load %arg5[%c2_623, %c6_624, %c0_625, %c0_626] : memref<4x10x1x64xf32, #tpu.memory_space<vmem>>, vector<1x1x1x64xf32>
    %826 = vector.shape_cast %825 : vector<1x1x1x64xf32> to vector<1x64xf32>
    %827 = vector.broadcast %826 : vector<1x64xf32> to vector<16x64xf32>
    %828 = arith.addf %824, %827 : vector<16x64xf32>
    %829 = math.tanh %828 : vector<16x64xf32>
    %830 = vector.extract_strided_slice %829 {offsets = [0, 0], sizes = [16, 32], strides = [1, 1]} : vector<16x64xf32> to vector<16x32xf32>
    %831 = vector.extract_strided_slice %829 {offsets = [0, 32], sizes = [16, 32], strides = [1, 1]} : vector<16x64xf32> to vector<16x32xf32>
    %cst_627 = arith.constant 5.000000e-01 : f32
    %832 = vector.broadcast %cst_627 : f32 to vector<16x32xf32>
    %833 = arith.mulf %832, %831 : vector<16x32xf32>
    %cst_628 = arith.constant 5.000000e-01 : f32
    %834 = vector.broadcast %cst_628 : f32 to vector<16x32xf32>
    %835 = arith.addf %833, %834 : vector<16x32xf32>
    %836 = arith.mulf %830, %835 : vector<16x32xf32>
    %837 = arith.truncf %836 : vector<16x32xf32> to vector<16x32xbf16>
    %c2_629 = arith.constant 2 : index
    %c6_630 = arith.constant 6 : index
    %c0_631 = arith.constant 0 : index
    %c0_632 = arith.constant 0 : index
    %838 = vector.load %arg6[%c2_629, %c6_630, %c0_631, %c0_632] : memref<4x10x32x160xbf16, #tpu.memory_space<vmem>>, vector<1x1x32x160xbf16>
    %839 = vector.shape_cast %838 : vector<1x1x32x160xbf16> to vector<32x160xbf16>
    %cst_633 = arith.constant dense<0.000000e+00> : vector<16x160xf32>
    %840 = tpu.matmul %837, %839, %cst_633 {dimension_numbers = #tpu.dot_dimension_numbers<[1], [0], [0], [1], [0, 0, 1, 1], [], []>} : vector<16x32xbf16>, vector<32x160xbf16>, vector<16x160xf32> -> vector<16x160xf32>
    %c2_634 = arith.constant 2 : index
    %c6_635 = arith.constant 6 : index
    %c0_636 = arith.constant 0 : index
    %c0_637 = arith.constant 0 : index
    %841 = vector.load %arg7[%c2_634, %c6_635, %c0_636, %c0_637] : memref<4x10x1x160xf32, #tpu.memory_space<vmem>>, vector<1x1x1x160xf32>
    %842 = vector.shape_cast %841 : vector<1x1x1x160xf32> to vector<1x160xf32>
    %843 = vector.broadcast %842 : vector<1x160xf32> to vector<16x160xf32>
    %844 = arith.addf %840, %843 : vector<16x160xf32>
    %845 = vector.extract_strided_slice %844 {offsets = [0, 0], sizes = [16, 128], strides = [1, 1]} : vector<16x160xf32> to vector<16x128xf32>
    %846 = arith.addf %815, %845 : vector<16x128xf32>
    %847 = vector.extract_strided_slice %844 {offsets = [0, 128], sizes = [16, 32], strides = [1, 1]} : vector<16x160xf32> to vector<16x32xf32>
    %848 = arith.addf %817, %847 : vector<16x32xf32>
    %c512_638 = arith.constant 512 : index
    %c0_639 = arith.constant 0 : index
    %849 = vector.load %arg13[%c512_638, %c0_639] : memref<528x32xf32, #tpu.memory_space<vmem>>, vector<16x32xf32>
    tpu.vector_store %arg13[%c512_638, %c0_639], %848 {strides = array<i32>} : memref<528x32xf32, #tpu.memory_space<vmem>>, vector<16x32xf32>,
    %c384_640 = arith.constant 384 : index
    %c0_641 = arith.constant 0 : index
    %850 = vector.load %arg13[%c384_640, %c0_641] : memref<528x32xf32, #tpu.memory_space<vmem>>, vector<16x32xf32>
    %851 = tpu.concatenate %850, %848 in 1 : vector<16x32xf32>, vector<16x32xf32> -> vector<16x64xf32>
    %852 = arith.truncf %851 : vector<16x64xf32> to vector<16x64xbf16>
    %c2_642 = arith.constant 2 : index
    %c7_643 = arith.constant 7 : index
    %c0_644 = arith.constant 0 : index
    %c0_645 = arith.constant 0 : index
    %853 = vector.load %arg4[%c2_642, %c7_643, %c0_644, %c0_645] : memref<4x10x64x64xbf16, #tpu.memory_space<vmem>>, vector<1x1x64x64xbf16>
    %854 = vector.shape_cast %853 : vector<1x1x64x64xbf16> to vector<64x64xbf16>
    %cst_646 = arith.constant dense<0.000000e+00> : vector<16x64xf32>
    %855 = tpu.matmul %852, %854, %cst_646 {dimension_numbers = #tpu.dot_dimension_numbers<[1], [0], [0], [1], [0, 0, 1, 1], [], []>} : vector<16x64xbf16>, vector<64x64xbf16>, vector<16x64xf32> -> vector<16x64xf32>
    %c2_647 = arith.constant 2 : index
    %c7_648 = arith.constant 7 : index
    %c0_649 = arith.constant 0 : index
    %c0_650 = arith.constant 0 : index
    %856 = vector.load %arg5[%c2_647, %c7_648, %c0_649, %c0_650] : memref<4x10x1x64xf32, #tpu.memory_space<vmem>>, vector<1x1x1x64xf32>
    %857 = vector.shape_cast %856 : vector<1x1x1x64xf32> to vector<1x64xf32>
    %858 = vector.broadcast %857 : vector<1x64xf32> to vector<16x64xf32>
    %859 = arith.addf %855, %858 : vector<16x64xf32>
    %860 = math.tanh %859 : vector<16x64xf32>
    %861 = vector.extract_strided_slice %860 {offsets = [0, 0], sizes = [16, 32], strides = [1, 1]} : vector<16x64xf32> to vector<16x32xf32>
    %862 = vector.extract_strided_slice %860 {offsets = [0, 32], sizes = [16, 32], strides = [1, 1]} : vector<16x64xf32> to vector<16x32xf32>
    %cst_651 = arith.constant 5.000000e-01 : f32
    %863 = vector.broadcast %cst_651 : f32 to vector<16x32xf32>
    %864 = arith.mulf %863, %862 : vector<16x32xf32>
    %cst_652 = arith.constant 5.000000e-01 : f32
    %865 = vector.broadcast %cst_652 : f32 to vector<16x32xf32>
    %866 = arith.addf %864, %865 : vector<16x32xf32>
    %867 = arith.mulf %861, %866 : vector<16x32xf32>
    %868 = arith.truncf %867 : vector<16x32xf32> to vector<16x32xbf16>
    %c2_653 = arith.constant 2 : index
    %c7_654 = arith.constant 7 : index
    %c0_655 = arith.constant 0 : index
    %c0_656 = arith.constant 0 : index
    %869 = vector.load %arg6[%c2_653, %c7_654, %c0_655, %c0_656] : memref<4x10x32x160xbf16, #tpu.memory_space<vmem>>, vector<1x1x32x160xbf16>
    %870 = vector.shape_cast %869 : vector<1x1x32x160xbf16> to vector<32x160xbf16>
    %cst_657 = arith.constant dense<0.000000e+00> : vector<16x160xf32>
    %871 = tpu.matmul %868, %870, %cst_657 {dimension_numbers = #tpu.dot_dimension_numbers<[1], [0], [0], [1], [0, 0, 1, 1], [], []>} : vector<16x32xbf16>, vector<32x160xbf16>, vector<16x160xf32> -> vector<16x160xf32>
    %c2_658 = arith.constant 2 : index
    %c7_659 = arith.constant 7 : index
    %c0_660 = arith.constant 0 : index
    %c0_661 = arith.constant 0 : index
    %872 = vector.load %arg7[%c2_658, %c7_659, %c0_660, %c0_661] : memref<4x10x1x160xf32, #tpu.memory_space<vmem>>, vector<1x1x1x160xf32>
    %873 = vector.shape_cast %872 : vector<1x1x1x160xf32> to vector<1x160xf32>
    %874 = vector.broadcast %873 : vector<1x160xf32> to vector<16x160xf32>
    %875 = arith.addf %871, %874 : vector<16x160xf32>
    %876 = vector.extract_strided_slice %875 {offsets = [0, 0], sizes = [16, 128], strides = [1, 1]} : vector<16x160xf32> to vector<16x128xf32>
    %877 = arith.addf %846, %876 : vector<16x128xf32>
    %878 = vector.extract_strided_slice %875 {offsets = [0, 128], sizes = [16, 32], strides = [1, 1]} : vector<16x160xf32> to vector<16x32xf32>
    %879 = arith.addf %848, %878 : vector<16x32xf32>
    %c512_662 = arith.constant 512 : index
    %c0_663 = arith.constant 0 : index
    %880 = vector.load %arg13[%c512_662, %c0_663] : memref<528x32xf32, #tpu.memory_space<vmem>>, vector<16x32xf32>
    tpu.vector_store %arg13[%c512_662, %c0_663], %879 {strides = array<i32>} : memref<528x32xf32, #tpu.memory_space<vmem>>, vector<16x32xf32>,
    %c256_664 = arith.constant 256 : index
    %c0_665 = arith.constant 0 : index
    %881 = vector.load %arg13[%c256_664, %c0_665] : memref<528x32xf32, #tpu.memory_space<vmem>>, vector<16x32xf32>
    %882 = tpu.concatenate %881, %879 in 1 : vector<16x32xf32>, vector<16x32xf32> -> vector<16x64xf32>
    %883 = arith.truncf %882 : vector<16x64xf32> to vector<16x64xbf16>
    %c2_666 = arith.constant 2 : index
    %c8_667 = arith.constant 8 : index
    %c0_668 = arith.constant 0 : index
    %c0_669 = arith.constant 0 : index
    %884 = vector.load %arg4[%c2_666, %c8_667, %c0_668, %c0_669] : memref<4x10x64x64xbf16, #tpu.memory_space<vmem>>, vector<1x1x64x64xbf16>
    %885 = vector.shape_cast %884 : vector<1x1x64x64xbf16> to vector<64x64xbf16>
    %cst_670 = arith.constant dense<0.000000e+00> : vector<16x64xf32>
    %886 = tpu.matmul %883, %885, %cst_670 {dimension_numbers = #tpu.dot_dimension_numbers<[1], [0], [0], [1], [0, 0, 1, 1], [], []>} : vector<16x64xbf16>, vector<64x64xbf16>, vector<16x64xf32> -> vector<16x64xf32>
    %c2_671 = arith.constant 2 : index
    %c8_672 = arith.constant 8 : index
    %c0_673 = arith.constant 0 : index
    %c0_674 = arith.constant 0 : index
    %887 = vector.load %arg5[%c2_671, %c8_672, %c0_673, %c0_674] : memref<4x10x1x64xf32, #tpu.memory_space<vmem>>, vector<1x1x1x64xf32>
    %888 = vector.shape_cast %887 : vector<1x1x1x64xf32> to vector<1x64xf32>
    %889 = vector.broadcast %888 : vector<1x64xf32> to vector<16x64xf32>
    %890 = arith.addf %886, %889 : vector<16x64xf32>
    %891 = math.tanh %890 : vector<16x64xf32>
    %892 = vector.extract_strided_slice %891 {offsets = [0, 0], sizes = [16, 32], strides = [1, 1]} : vector<16x64xf32> to vector<16x32xf32>
    %893 = vector.extract_strided_slice %891 {offsets = [0, 32], sizes = [16, 32], strides = [1, 1]} : vector<16x64xf32> to vector<16x32xf32>
    %cst_675 = arith.constant 5.000000e-01 : f32
    %894 = vector.broadcast %cst_675 : f32 to vector<16x32xf32>
    %895 = arith.mulf %894, %893 : vector<16x32xf32>
    %cst_676 = arith.constant 5.000000e-01 : f32
    %896 = vector.broadcast %cst_676 : f32 to vector<16x32xf32>
    %897 = arith.addf %895, %896 : vector<16x32xf32>
    %898 = arith.mulf %892, %897 : vector<16x32xf32>
    %899 = arith.truncf %898 : vector<16x32xf32> to vector<16x32xbf16>
    %c2_677 = arith.constant 2 : index
    %c8_678 = arith.constant 8 : index
    %c0_679 = arith.constant 0 : index
    %c0_680 = arith.constant 0 : index
    %900 = vector.load %arg6[%c2_677, %c8_678, %c0_679, %c0_680] : memref<4x10x32x160xbf16, #tpu.memory_space<vmem>>, vector<1x1x32x160xbf16>
    %901 = vector.shape_cast %900 : vector<1x1x32x160xbf16> to vector<32x160xbf16>
    %cst_681 = arith.constant dense<0.000000e+00> : vector<16x160xf32>
    %902 = tpu.matmul %899, %901, %cst_681 {dimension_numbers = #tpu.dot_dimension_numbers<[1], [0], [0], [1], [0, 0, 1, 1], [], []>} : vector<16x32xbf16>, vector<32x160xbf16>, vector<16x160xf32> -> vector<16x160xf32>
    %c2_682 = arith.constant 2 : index
    %c8_683 = arith.constant 8 : index
    %c0_684 = arith.constant 0 : index
    %c0_685 = arith.constant 0 : index
    %903 = vector.load %arg7[%c2_682, %c8_683, %c0_684, %c0_685] : memref<4x10x1x160xf32, #tpu.memory_space<vmem>>, vector<1x1x1x160xf32>
    %904 = vector.shape_cast %903 : vector<1x1x1x160xf32> to vector<1x160xf32>
    %905 = vector.broadcast %904 : vector<1x160xf32> to vector<16x160xf32>
    %906 = arith.addf %902, %905 : vector<16x160xf32>
    %907 = vector.extract_strided_slice %906 {offsets = [0, 0], sizes = [16, 128], strides = [1, 1]} : vector<16x160xf32> to vector<16x128xf32>
    %908 = arith.addf %877, %907 : vector<16x128xf32>
    %909 = vector.extract_strided_slice %906 {offsets = [0, 128], sizes = [16, 32], strides = [1, 1]} : vector<16x160xf32> to vector<16x32xf32>
    %910 = arith.addf %879, %909 : vector<16x32xf32>
    %c512_686 = arith.constant 512 : index
    %c0_687 = arith.constant 0 : index
    %911 = vector.load %arg13[%c512_686, %c0_687] : memref<528x32xf32, #tpu.memory_space<vmem>>, vector<16x32xf32>
    tpu.vector_store %arg13[%c512_686, %c0_687], %910 {strides = array<i32>} : memref<528x32xf32, #tpu.memory_space<vmem>>, vector<16x32xf32>,
    %c0_688 = arith.constant 0 : index
    %c0_689 = arith.constant 0 : index
    %912 = vector.load %arg13[%c0_688, %c0_689] : memref<528x32xf32, #tpu.memory_space<vmem>>, vector<16x32xf32>
    %913 = tpu.concatenate %912, %910 in 1 : vector<16x32xf32>, vector<16x32xf32> -> vector<16x64xf32>
    %914 = arith.truncf %913 : vector<16x64xf32> to vector<16x64xbf16>
    %c2_690 = arith.constant 2 : index
    %c9_691 = arith.constant 9 : index
    %c0_692 = arith.constant 0 : index
    %c0_693 = arith.constant 0 : index
    %915 = vector.load %arg4[%c2_690, %c9_691, %c0_692, %c0_693] : memref<4x10x64x64xbf16, #tpu.memory_space<vmem>>, vector<1x1x64x64xbf16>
    %916 = vector.shape_cast %915 : vector<1x1x64x64xbf16> to vector<64x64xbf16>
    %cst_694 = arith.constant dense<0.000000e+00> : vector<16x64xf32>
    %917 = tpu.matmul %914, %916, %cst_694 {dimension_numbers = #tpu.dot_dimension_numbers<[1], [0], [0], [1], [0, 0, 1, 1], [], []>} : vector<16x64xbf16>, vector<64x64xbf16>, vector<16x64xf32> -> vector<16x64xf32>
    %c2_695 = arith.constant 2 : index
    %c9_696 = arith.constant 9 : index
    %c0_697 = arith.constant 0 : index
    %c0_698 = arith.constant 0 : index
    %918 = vector.load %arg5[%c2_695, %c9_696, %c0_697, %c0_698] : memref<4x10x1x64xf32, #tpu.memory_space<vmem>>, vector<1x1x1x64xf32>
    %919 = vector.shape_cast %918 : vector<1x1x1x64xf32> to vector<1x64xf32>
    %920 = vector.broadcast %919 : vector<1x64xf32> to vector<16x64xf32>
    %921 = arith.addf %917, %920 : vector<16x64xf32>
    %922 = math.tanh %921 : vector<16x64xf32>
    %923 = vector.extract_strided_slice %922 {offsets = [0, 0], sizes = [16, 32], strides = [1, 1]} : vector<16x64xf32> to vector<16x32xf32>
    %924 = vector.extract_strided_slice %922 {offsets = [0, 32], sizes = [16, 32], strides = [1, 1]} : vector<16x64xf32> to vector<16x32xf32>
    %cst_699 = arith.constant 5.000000e-01 : f32
    %925 = vector.broadcast %cst_699 : f32 to vector<16x32xf32>
    %926 = arith.mulf %925, %924 : vector<16x32xf32>
    %cst_700 = arith.constant 5.000000e-01 : f32
    %927 = vector.broadcast %cst_700 : f32 to vector<16x32xf32>
    %928 = arith.addf %926, %927 : vector<16x32xf32>
    %929 = arith.mulf %923, %928 : vector<16x32xf32>
    %930 = arith.truncf %929 : vector<16x32xf32> to vector<16x32xbf16>
    %c2_701 = arith.constant 2 : index
    %c9_702 = arith.constant 9 : index
    %c0_703 = arith.constant 0 : index
    %c0_704 = arith.constant 0 : index
    %931 = vector.load %arg6[%c2_701, %c9_702, %c0_703, %c0_704] : memref<4x10x32x160xbf16, #tpu.memory_space<vmem>>, vector<1x1x32x160xbf16>
    %932 = vector.shape_cast %931 : vector<1x1x32x160xbf16> to vector<32x160xbf16>
    %cst_705 = arith.constant dense<0.000000e+00> : vector<16x160xf32>
    %933 = tpu.matmul %930, %932, %cst_705 {dimension_numbers = #tpu.dot_dimension_numbers<[1], [0], [0], [1], [0, 0, 1, 1], [], []>} : vector<16x32xbf16>, vector<32x160xbf16>, vector<16x160xf32> -> vector<16x160xf32>
    %c2_706 = arith.constant 2 : index
    %c9_707 = arith.constant 9 : index
    %c0_708 = arith.constant 0 : index
    %c0_709 = arith.constant 0 : index
    %934 = vector.load %arg7[%c2_706, %c9_707, %c0_708, %c0_709] : memref<4x10x1x160xf32, #tpu.memory_space<vmem>>, vector<1x1x1x160xf32>
    %935 = vector.shape_cast %934 : vector<1x1x1x160xf32> to vector<1x160xf32>
    %936 = vector.broadcast %935 : vector<1x160xf32> to vector<16x160xf32>
    %937 = arith.addf %933, %936 : vector<16x160xf32>
    %938 = vector.extract_strided_slice %937 {offsets = [0, 0], sizes = [16, 128], strides = [1, 1]} : vector<16x160xf32> to vector<16x128xf32>
    %939 = arith.addf %908, %938 : vector<16x128xf32>
    %940 = vector.extract_strided_slice %937 {offsets = [0, 128], sizes = [16, 32], strides = [1, 1]} : vector<16x160xf32> to vector<16x32xf32>
    %941 = arith.addf %910, %940 : vector<16x32xf32>
    %c512_710 = arith.constant 512 : index
    %c0_711 = arith.constant 0 : index
    %942 = vector.load %arg13[%c512_710, %c0_711] : memref<528x32xf32, #tpu.memory_space<vmem>>, vector<16x32xf32>
    tpu.vector_store %arg13[%c512_710, %c0_711], %941 {strides = array<i32>} : memref<528x32xf32, #tpu.memory_space<vmem>>, vector<16x32xf32>,
    %c511_712 = arith.constant 511 : index
    %c0_713 = arith.constant 0 : index
    %943 = vector.load %arg13[%c511_712, %c0_713] : memref<528x32xf32, #tpu.memory_space<vmem>>, vector<16x32xf32>
    %944 = tpu.concatenate %943, %941 in 1 : vector<16x32xf32>, vector<16x32xf32> -> vector<16x64xf32>
    %945 = arith.truncf %944 : vector<16x64xf32> to vector<16x64xbf16>
    %c3_714 = arith.constant 3 : index
    %c0_715 = arith.constant 0 : index
    %c0_716 = arith.constant 0 : index
    %c0_717 = arith.constant 0 : index
    %946 = vector.load %arg4[%c3_714, %c0_715, %c0_716, %c0_717] : memref<4x10x64x64xbf16, #tpu.memory_space<vmem>>, vector<1x1x64x64xbf16>
    %947 = vector.shape_cast %946 : vector<1x1x64x64xbf16> to vector<64x64xbf16>
    %cst_718 = arith.constant dense<0.000000e+00> : vector<16x64xf32>
    %948 = tpu.matmul %945, %947, %cst_718 {dimension_numbers = #tpu.dot_dimension_numbers<[1], [0], [0], [1], [0, 0, 1, 1], [], []>} : vector<16x64xbf16>, vector<64x64xbf16>, vector<16x64xf32> -> vector<16x64xf32>
    %c3_719 = arith.constant 3 : index
    %c0_720 = arith.constant 0 : index
    %c0_721 = arith.constant 0 : index
    %c0_722 = arith.constant 0 : index
    %949 = vector.load %arg5[%c3_719, %c0_720, %c0_721, %c0_722] : memref<4x10x1x64xf32, #tpu.memory_space<vmem>>, vector<1x1x1x64xf32>
    %950 = vector.shape_cast %949 : vector<1x1x1x64xf32> to vector<1x64xf32>
    %951 = vector.broadcast %950 : vector<1x64xf32> to vector<16x64xf32>
    %952 = arith.addf %948, %951 : vector<16x64xf32>
    %953 = math.tanh %952 : vector<16x64xf32>
    %954 = vector.extract_strided_slice %953 {offsets = [0, 0], sizes = [16, 32], strides = [1, 1]} : vector<16x64xf32> to vector<16x32xf32>
    %955 = vector.extract_strided_slice %953 {offsets = [0, 32], sizes = [16, 32], strides = [1, 1]} : vector<16x64xf32> to vector<16x32xf32>
    %cst_723 = arith.constant 5.000000e-01 : f32
    %956 = vector.broadcast %cst_723 : f32 to vector<16x32xf32>
    %957 = arith.mulf %956, %955 : vector<16x32xf32>
    %cst_724 = arith.constant 5.000000e-01 : f32
    %958 = vector.broadcast %cst_724 : f32 to vector<16x32xf32>
    %959 = arith.addf %957, %958 : vector<16x32xf32>
    %960 = arith.mulf %954, %959 : vector<16x32xf32>
    %961 = arith.truncf %960 : vector<16x32xf32> to vector<16x32xbf16>
    %c3_725 = arith.constant 3 : index
    %c0_726 = arith.constant 0 : index
    %c0_727 = arith.constant 0 : index
    %c0_728 = arith.constant 0 : index
    %962 = vector.load %arg6[%c3_725, %c0_726, %c0_727, %c0_728] : memref<4x10x32x160xbf16, #tpu.memory_space<vmem>>, vector<1x1x32x160xbf16>
    %963 = vector.shape_cast %962 : vector<1x1x32x160xbf16> to vector<32x160xbf16>
    %cst_729 = arith.constant dense<0.000000e+00> : vector<16x160xf32>
    %964 = tpu.matmul %961, %963, %cst_729 {dimension_numbers = #tpu.dot_dimension_numbers<[1], [0], [0], [1], [0, 0, 1, 1], [], []>} : vector<16x32xbf16>, vector<32x160xbf16>, vector<16x160xf32> -> vector<16x160xf32>
    %c3_730 = arith.constant 3 : index
    %c0_731 = arith.constant 0 : index
    %c0_732 = arith.constant 0 : index
    %c0_733 = arith.constant 0 : index
    %965 = vector.load %arg7[%c3_730, %c0_731, %c0_732, %c0_733] : memref<4x10x1x160xf32, #tpu.memory_space<vmem>>, vector<1x1x1x160xf32>
    %966 = vector.shape_cast %965 : vector<1x1x1x160xf32> to vector<1x160xf32>
    %967 = vector.broadcast %966 : vector<1x160xf32> to vector<16x160xf32>
    %968 = arith.addf %964, %967 : vector<16x160xf32>
    %969 = vector.extract_strided_slice %968 {offsets = [0, 0], sizes = [16, 128], strides = [1, 1]} : vector<16x160xf32> to vector<16x128xf32>
    %970 = arith.addf %939, %969 : vector<16x128xf32>
    %971 = vector.extract_strided_slice %968 {offsets = [0, 128], sizes = [16, 32], strides = [1, 1]} : vector<16x160xf32> to vector<16x32xf32>
    %972 = arith.addf %941, %971 : vector<16x32xf32>
    %c512_734 = arith.constant 512 : index
    %c0_735 = arith.constant 0 : index
    %973 = vector.load %arg13[%c512_734, %c0_735] : memref<528x32xf32, #tpu.memory_space<vmem>>, vector<16x32xf32>
    tpu.vector_store %arg13[%c512_734, %c0_735], %972 {strides = array<i32>} : memref<528x32xf32, #tpu.memory_space<vmem>>, vector<16x32xf32>,
    %c510_736 = arith.constant 510 : index
    %c0_737 = arith.constant 0 : index
    %974 = vector.load %arg13[%c510_736, %c0_737] : memref<528x32xf32, #tpu.memory_space<vmem>>, vector<16x32xf32>
    %975 = tpu.concatenate %974, %972 in 1 : vector<16x32xf32>, vector<16x32xf32> -> vector<16x64xf32>
    %976 = arith.truncf %975 : vector<16x64xf32> to vector<16x64xbf16>
    %c3_738 = arith.constant 3 : index
    %c1_739 = arith.constant 1 : index
    %c0_740 = arith.constant 0 : index
    %c0_741 = arith.constant 0 : index
    %977 = vector.load %arg4[%c3_738, %c1_739, %c0_740, %c0_741] : memref<4x10x64x64xbf16, #tpu.memory_space<vmem>>, vector<1x1x64x64xbf16>
    %978 = vector.shape_cast %977 : vector<1x1x64x64xbf16> to vector<64x64xbf16>
    %cst_742 = arith.constant dense<0.000000e+00> : vector<16x64xf32>
    %979 = tpu.matmul %976, %978, %cst_742 {dimension_numbers = #tpu.dot_dimension_numbers<[1], [0], [0], [1], [0, 0, 1, 1], [], []>} : vector<16x64xbf16>, vector<64x64xbf16>, vector<16x64xf32> -> vector<16x64xf32>
    %c3_743 = arith.constant 3 : index
    %c1_744 = arith.constant 1 : index
    %c0_745 = arith.constant 0 : index
    %c0_746 = arith.constant 0 : index
    %980 = vector.load %arg5[%c3_743, %c1_744, %c0_745, %c0_746] : memref<4x10x1x64xf32, #tpu.memory_space<vmem>>, vector<1x1x1x64xf32>
    %981 = vector.shape_cast %980 : vector<1x1x1x64xf32> to vector<1x64xf32>
    %982 = vector.broadcast %981 : vector<1x64xf32> to vector<16x64xf32>
    %983 = arith.addf %979, %982 : vector<16x64xf32>
    %984 = math.tanh %983 : vector<16x64xf32>
    %985 = vector.extract_strided_slice %984 {offsets = [0, 0], sizes = [16, 32], strides = [1, 1]} : vector<16x64xf32> to vector<16x32xf32>
    %986 = vector.extract_strided_slice %984 {offsets = [0, 32], sizes = [16, 32], strides = [1, 1]} : vector<16x64xf32> to vector<16x32xf32>
    %cst_747 = arith.constant 5.000000e-01 : f32
    %987 = vector.broadcast %cst_747 : f32 to vector<16x32xf32>
    %988 = arith.mulf %987, %986 : vector<16x32xf32>
    %cst_748 = arith.constant 5.000000e-01 : f32
    %989 = vector.broadcast %cst_748 : f32 to vector<16x32xf32>
    %990 = arith.addf %988, %989 : vector<16x32xf32>
    %991 = arith.mulf %985, %990 : vector<16x32xf32>
    %992 = arith.truncf %991 : vector<16x32xf32> to vector<16x32xbf16>
    %c3_749 = arith.constant 3 : index
    %c1_750 = arith.constant 1 : index
    %c0_751 = arith.constant 0 : index
    %c0_752 = arith.constant 0 : index
    %993 = vector.load %arg6[%c3_749, %c1_750, %c0_751, %c0_752] : memref<4x10x32x160xbf16, #tpu.memory_space<vmem>>, vector<1x1x32x160xbf16>
    %994 = vector.shape_cast %993 : vector<1x1x32x160xbf16> to vector<32x160xbf16>
    %cst_753 = arith.constant dense<0.000000e+00> : vector<16x160xf32>
    %995 = tpu.matmul %992, %994, %cst_753 {dimension_numbers = #tpu.dot_dimension_numbers<[1], [0], [0], [1], [0, 0, 1, 1], [], []>} : vector<16x32xbf16>, vector<32x160xbf16>, vector<16x160xf32> -> vector<16x160xf32>
    %c3_754 = arith.constant 3 : index
    %c1_755 = arith.constant 1 : index
    %c0_756 = arith.constant 0 : index
    %c0_757 = arith.constant 0 : index
    %996 = vector.load %arg7[%c3_754, %c1_755, %c0_756, %c0_757] : memref<4x10x1x160xf32, #tpu.memory_space<vmem>>, vector<1x1x1x160xf32>
    %997 = vector.shape_cast %996 : vector<1x1x1x160xf32> to vector<1x160xf32>
    %998 = vector.broadcast %997 : vector<1x160xf32> to vector<16x160xf32>
    %999 = arith.addf %995, %998 : vector<16x160xf32>
    %1000 = vector.extract_strided_slice %999 {offsets = [0, 0], sizes = [16, 128], strides = [1, 1]} : vector<16x160xf32> to vector<16x128xf32>
    %1001 = arith.addf %970, %1000 : vector<16x128xf32>
    %1002 = vector.extract_strided_slice %999 {offsets = [0, 128], sizes = [16, 32], strides = [1, 1]} : vector<16x160xf32> to vector<16x32xf32>
    %1003 = arith.addf %972, %1002 : vector<16x32xf32>
    %c512_758 = arith.constant 512 : index
    %c0_759 = arith.constant 0 : index
    %1004 = vector.load %arg13[%c512_758, %c0_759] : memref<528x32xf32, #tpu.memory_space<vmem>>, vector<16x32xf32>
    tpu.vector_store %arg13[%c512_758, %c0_759], %1003 {strides = array<i32>} : memref<528x32xf32, #tpu.memory_space<vmem>>, vector<16x32xf32>,
    %c508_760 = arith.constant 508 : index
    %c0_761 = arith.constant 0 : index
    %1005 = vector.load %arg13[%c508_760, %c0_761] : memref<528x32xf32, #tpu.memory_space<vmem>>, vector<16x32xf32>
    %1006 = tpu.concatenate %1005, %1003 in 1 : vector<16x32xf32>, vector<16x32xf32> -> vector<16x64xf32>
    %1007 = arith.truncf %1006 : vector<16x64xf32> to vector<16x64xbf16>
    %c3_762 = arith.constant 3 : index
    %c2_763 = arith.constant 2 : index
    %c0_764 = arith.constant 0 : index
    %c0_765 = arith.constant 0 : index
    %1008 = vector.load %arg4[%c3_762, %c2_763, %c0_764, %c0_765] : memref<4x10x64x64xbf16, #tpu.memory_space<vmem>>, vector<1x1x64x64xbf16>
    %1009 = vector.shape_cast %1008 : vector<1x1x64x64xbf16> to vector<64x64xbf16>
    %cst_766 = arith.constant dense<0.000000e+00> : vector<16x64xf32>
    %1010 = tpu.matmul %1007, %1009, %cst_766 {dimension_numbers = #tpu.dot_dimension_numbers<[1], [0], [0], [1], [0, 0, 1, 1], [], []>} : vector<16x64xbf16>, vector<64x64xbf16>, vector<16x64xf32> -> vector<16x64xf32>
    %c3_767 = arith.constant 3 : index
    %c2_768 = arith.constant 2 : index
    %c0_769 = arith.constant 0 : index
    %c0_770 = arith.constant 0 : index
    %1011 = vector.load %arg5[%c3_767, %c2_768, %c0_769, %c0_770] : memref<4x10x1x64xf32, #tpu.memory_space<vmem>>, vector<1x1x1x64xf32>
    %1012 = vector.shape_cast %1011 : vector<1x1x1x64xf32> to vector<1x64xf32>
    %1013 = vector.broadcast %1012 : vector<1x64xf32> to vector<16x64xf32>
    %1014 = arith.addf %1010, %1013 : vector<16x64xf32>
    %1015 = math.tanh %1014 : vector<16x64xf32>
    %1016 = vector.extract_strided_slice %1015 {offsets = [0, 0], sizes = [16, 32], strides = [1, 1]} : vector<16x64xf32> to vector<16x32xf32>
    %1017 = vector.extract_strided_slice %1015 {offsets = [0, 32], sizes = [16, 32], strides = [1, 1]} : vector<16x64xf32> to vector<16x32xf32>
    %cst_771 = arith.constant 5.000000e-01 : f32
    %1018 = vector.broadcast %cst_771 : f32 to vector<16x32xf32>
    %1019 = arith.mulf %1018, %1017 : vector<16x32xf32>
    %cst_772 = arith.constant 5.000000e-01 : f32
    %1020 = vector.broadcast %cst_772 : f32 to vector<16x32xf32>
    %1021 = arith.addf %1019, %1020 : vector<16x32xf32>
    %1022 = arith.mulf %1016, %1021 : vector<16x32xf32>
    %1023 = arith.truncf %1022 : vector<16x32xf32> to vector<16x32xbf16>
    %c3_773 = arith.constant 3 : index
    %c2_774 = arith.constant 2 : index
    %c0_775 = arith.constant 0 : index
    %c0_776 = arith.constant 0 : index
    %1024 = vector.load %arg6[%c3_773, %c2_774, %c0_775, %c0_776] : memref<4x10x32x160xbf16, #tpu.memory_space<vmem>>, vector<1x1x32x160xbf16>
    %1025 = vector.shape_cast %1024 : vector<1x1x32x160xbf16> to vector<32x160xbf16>
    %cst_777 = arith.constant dense<0.000000e+00> : vector<16x160xf32>
    %1026 = tpu.matmul %1023, %1025, %cst_777 {dimension_numbers = #tpu.dot_dimension_numbers<[1], [0], [0], [1], [0, 0, 1, 1], [], []>} : vector<16x32xbf16>, vector<32x160xbf16>, vector<16x160xf32> -> vector<16x160xf32>
    %c3_778 = arith.constant 3 : index
    %c2_779 = arith.constant 2 : index
    %c0_780 = arith.constant 0 : index
    %c0_781 = arith.constant 0 : index
    %1027 = vector.load %arg7[%c3_778, %c2_779, %c0_780, %c0_781] : memref<4x10x1x160xf32, #tpu.memory_space<vmem>>, vector<1x1x1x160xf32>
    %1028 = vector.shape_cast %1027 : vector<1x1x1x160xf32> to vector<1x160xf32>
    %1029 = vector.broadcast %1028 : vector<1x160xf32> to vector<16x160xf32>
    %1030 = arith.addf %1026, %1029 : vector<16x160xf32>
    %1031 = vector.extract_strided_slice %1030 {offsets = [0, 0], sizes = [16, 128], strides = [1, 1]} : vector<16x160xf32> to vector<16x128xf32>
    %1032 = arith.addf %1001, %1031 : vector<16x128xf32>
    %1033 = vector.extract_strided_slice %1030 {offsets = [0, 128], sizes = [16, 32], strides = [1, 1]} : vector<16x160xf32> to vector<16x32xf32>
    %1034 = arith.addf %1003, %1033 : vector<16x32xf32>
    %c512_782 = arith.constant 512 : index
    %c0_783 = arith.constant 0 : index
    %1035 = vector.load %arg13[%c512_782, %c0_783] : memref<528x32xf32, #tpu.memory_space<vmem>>, vector<16x32xf32>
    tpu.vector_store %arg13[%c512_782, %c0_783], %1034 {strides = array<i32>} : memref<528x32xf32, #tpu.memory_space<vmem>>, vector<16x32xf32>,
    %c504_784 = arith.constant 504 : index
    %c0_785 = arith.constant 0 : index
    %1036 = vector.load %arg13[%c504_784, %c0_785] : memref<528x32xf32, #tpu.memory_space<vmem>>, vector<16x32xf32>
    %1037 = tpu.concatenate %1036, %1034 in 1 : vector<16x32xf32>, vector<16x32xf32> -> vector<16x64xf32>
    %1038 = arith.truncf %1037 : vector<16x64xf32> to vector<16x64xbf16>
    %c3_786 = arith.constant 3 : index
    %c3_787 = arith.constant 3 : index
    %c0_788 = arith.constant 0 : index
    %c0_789 = arith.constant 0 : index
    %1039 = vector.load %arg4[%c3_786, %c3_787, %c0_788, %c0_789] : memref<4x10x64x64xbf16, #tpu.memory_space<vmem>>, vector<1x1x64x64xbf16>
    %1040 = vector.shape_cast %1039 : vector<1x1x64x64xbf16> to vector<64x64xbf16>
    %cst_790 = arith.constant dense<0.000000e+00> : vector<16x64xf32>
    %1041 = tpu.matmul %1038, %1040, %cst_790 {dimension_numbers = #tpu.dot_dimension_numbers<[1], [0], [0], [1], [0, 0, 1, 1], [], []>} : vector<16x64xbf16>, vector<64x64xbf16>, vector<16x64xf32> -> vector<16x64xf32>
    %c3_791 = arith.constant 3 : index
    %c3_792 = arith.constant 3 : index
    %c0_793 = arith.constant 0 : index
    %c0_794 = arith.constant 0 : index
    %1042 = vector.load %arg5[%c3_791, %c3_792, %c0_793, %c0_794] : memref<4x10x1x64xf32, #tpu.memory_space<vmem>>, vector<1x1x1x64xf32>
    %1043 = vector.shape_cast %1042 : vector<1x1x1x64xf32> to vector<1x64xf32>
    %1044 = vector.broadcast %1043 : vector<1x64xf32> to vector<16x64xf32>
    %1045 = arith.addf %1041, %1044 : vector<16x64xf32>
    %1046 = math.tanh %1045 : vector<16x64xf32>
    %1047 = vector.extract_strided_slice %1046 {offsets = [0, 0], sizes = [16, 32], strides = [1, 1]} : vector<16x64xf32> to vector<16x32xf32>
    %1048 = vector.extract_strided_slice %1046 {offsets = [0, 32], sizes = [16, 32], strides = [1, 1]} : vector<16x64xf32> to vector<16x32xf32>
    %cst_795 = arith.constant 5.000000e-01 : f32
    %1049 = vector.broadcast %cst_795 : f32 to vector<16x32xf32>
    %1050 = arith.mulf %1049, %1048 : vector<16x32xf32>
    %cst_796 = arith.constant 5.000000e-01 : f32
    %1051 = vector.broadcast %cst_796 : f32 to vector<16x32xf32>
    %1052 = arith.addf %1050, %1051 : vector<16x32xf32>
    %1053 = arith.mulf %1047, %1052 : vector<16x32xf32>
    %1054 = arith.truncf %1053 : vector<16x32xf32> to vector<16x32xbf16>
    %c3_797 = arith.constant 3 : index
    %c3_798 = arith.constant 3 : index
    %c0_799 = arith.constant 0 : index
    %c0_800 = arith.constant 0 : index
    %1055 = vector.load %arg6[%c3_797, %c3_798, %c0_799, %c0_800] : memref<4x10x32x160xbf16, #tpu.memory_space<vmem>>, vector<1x1x32x160xbf16>
    %1056 = vector.shape_cast %1055 : vector<1x1x32x160xbf16> to vector<32x160xbf16>
    %cst_801 = arith.constant dense<0.000000e+00> : vector<16x160xf32>
    %1057 = tpu.matmul %1054, %1056, %cst_801 {dimension_numbers = #tpu.dot_dimension_numbers<[1], [0], [0], [1], [0, 0, 1, 1], [], []>} : vector<16x32xbf16>, vector<32x160xbf16>, vector<16x160xf32> -> vector<16x160xf32>
    %c3_802 = arith.constant 3 : index
    %c3_803 = arith.constant 3 : index
    %c0_804 = arith.constant 0 : index
    %c0_805 = arith.constant 0 : index
    %1058 = vector.load %arg7[%c3_802, %c3_803, %c0_804, %c0_805] : memref<4x10x1x160xf32, #tpu.memory_space<vmem>>, vector<1x1x1x160xf32>
    %1059 = vector.shape_cast %1058 : vector<1x1x1x160xf32> to vector<1x160xf32>
    %1060 = vector.broadcast %1059 : vector<1x160xf32> to vector<16x160xf32>
    %1061 = arith.addf %1057, %1060 : vector<16x160xf32>
    %1062 = vector.extract_strided_slice %1061 {offsets = [0, 0], sizes = [16, 128], strides = [1, 1]} : vector<16x160xf32> to vector<16x128xf32>
    %1063 = arith.addf %1032, %1062 : vector<16x128xf32>
    %1064 = vector.extract_strided_slice %1061 {offsets = [0, 128], sizes = [16, 32], strides = [1, 1]} : vector<16x160xf32> to vector<16x32xf32>
    %1065 = arith.addf %1034, %1064 : vector<16x32xf32>
    %c512_806 = arith.constant 512 : index
    %c0_807 = arith.constant 0 : index
    %1066 = vector.load %arg13[%c512_806, %c0_807] : memref<528x32xf32, #tpu.memory_space<vmem>>, vector<16x32xf32>
    tpu.vector_store %arg13[%c512_806, %c0_807], %1065 {strides = array<i32>} : memref<528x32xf32, #tpu.memory_space<vmem>>, vector<16x32xf32>,
    %c496_808 = arith.constant 496 : index
    %c0_809 = arith.constant 0 : index
    %1067 = vector.load %arg13[%c496_808, %c0_809] : memref<528x32xf32, #tpu.memory_space<vmem>>, vector<16x32xf32>
    %1068 = tpu.concatenate %1067, %1065 in 1 : vector<16x32xf32>, vector<16x32xf32> -> vector<16x64xf32>
    %1069 = arith.truncf %1068 : vector<16x64xf32> to vector<16x64xbf16>
    %c3_810 = arith.constant 3 : index
    %c4_811 = arith.constant 4 : index
    %c0_812 = arith.constant 0 : index
    %c0_813 = arith.constant 0 : index
    %1070 = vector.load %arg4[%c3_810, %c4_811, %c0_812, %c0_813] : memref<4x10x64x64xbf16, #tpu.memory_space<vmem>>, vector<1x1x64x64xbf16>
    %1071 = vector.shape_cast %1070 : vector<1x1x64x64xbf16> to vector<64x64xbf16>
    %cst_814 = arith.constant dense<0.000000e+00> : vector<16x64xf32>
    %1072 = tpu.matmul %1069, %1071, %cst_814 {dimension_numbers = #tpu.dot_dimension_numbers<[1], [0], [0], [1], [0, 0, 1, 1], [], []>} : vector<16x64xbf16>, vector<64x64xbf16>, vector<16x64xf32> -> vector<16x64xf32>
    %c3_815 = arith.constant 3 : index
    %c4_816 = arith.constant 4 : index
    %c0_817 = arith.constant 0 : index
    %c0_818 = arith.constant 0 : index
    %1073 = vector.load %arg5[%c3_815, %c4_816, %c0_817, %c0_818] : memref<4x10x1x64xf32, #tpu.memory_space<vmem>>, vector<1x1x1x64xf32>
    %1074 = vector.shape_cast %1073 : vector<1x1x1x64xf32> to vector<1x64xf32>
    %1075 = vector.broadcast %1074 : vector<1x64xf32> to vector<16x64xf32>
    %1076 = arith.addf %1072, %1075 : vector<16x64xf32>
    %1077 = math.tanh %1076 : vector<16x64xf32>
    %1078 = vector.extract_strided_slice %1077 {offsets = [0, 0], sizes = [16, 32], strides = [1, 1]} : vector<16x64xf32> to vector<16x32xf32>
    %1079 = vector.extract_strided_slice %1077 {offsets = [0, 32], sizes = [16, 32], strides = [1, 1]} : vector<16x64xf32> to vector<16x32xf32>
    %cst_819 = arith.constant 5.000000e-01 : f32
    %1080 = vector.broadcast %cst_819 : f32 to vector<16x32xf32>
    %1081 = arith.mulf %1080, %1079 : vector<16x32xf32>
    %cst_820 = arith.constant 5.000000e-01 : f32
    %1082 = vector.broadcast %cst_820 : f32 to vector<16x32xf32>
    %1083 = arith.addf %1081, %1082 : vector<16x32xf32>
    %1084 = arith.mulf %1078, %1083 : vector<16x32xf32>
    %1085 = arith.truncf %1084 : vector<16x32xf32> to vector<16x32xbf16>
    %c3_821 = arith.constant 3 : index
    %c4_822 = arith.constant 4 : index
    %c0_823 = arith.constant 0 : index
    %c0_824 = arith.constant 0 : index
    %1086 = vector.load %arg6[%c3_821, %c4_822, %c0_823, %c0_824] : memref<4x10x32x160xbf16, #tpu.memory_space<vmem>>, vector<1x1x32x160xbf16>
    %1087 = vector.shape_cast %1086 : vector<1x1x32x160xbf16> to vector<32x160xbf16>
    %cst_825 = arith.constant dense<0.000000e+00> : vector<16x160xf32>
    %1088 = tpu.matmul %1085, %1087, %cst_825 {dimension_numbers = #tpu.dot_dimension_numbers<[1], [0], [0], [1], [0, 0, 1, 1], [], []>} : vector<16x32xbf16>, vector<32x160xbf16>, vector<16x160xf32> -> vector<16x160xf32>
    %c3_826 = arith.constant 3 : index
    %c4_827 = arith.constant 4 : index
    %c0_828 = arith.constant 0 : index
    %c0_829 = arith.constant 0 : index
    %1089 = vector.load %arg7[%c3_826, %c4_827, %c0_828, %c0_829] : memref<4x10x1x160xf32, #tpu.memory_space<vmem>>, vector<1x1x1x160xf32>
    %1090 = vector.shape_cast %1089 : vector<1x1x1x160xf32> to vector<1x160xf32>
    %1091 = vector.broadcast %1090 : vector<1x160xf32> to vector<16x160xf32>
    %1092 = arith.addf %1088, %1091 : vector<16x160xf32>
    %1093 = vector.extract_strided_slice %1092 {offsets = [0, 0], sizes = [16, 128], strides = [1, 1]} : vector<16x160xf32> to vector<16x128xf32>
    %1094 = arith.addf %1063, %1093 : vector<16x128xf32>
    %1095 = vector.extract_strided_slice %1092 {offsets = [0, 128], sizes = [16, 32], strides = [1, 1]} : vector<16x160xf32> to vector<16x32xf32>
    %1096 = arith.addf %1065, %1095 : vector<16x32xf32>
    %c512_830 = arith.constant 512 : index
    %c0_831 = arith.constant 0 : index
    %1097 = vector.load %arg13[%c512_830, %c0_831] : memref<528x32xf32, #tpu.memory_space<vmem>>, vector<16x32xf32>
    tpu.vector_store %arg13[%c512_830, %c0_831], %1096 {strides = array<i32>} : memref<528x32xf32, #tpu.memory_space<vmem>>, vector<16x32xf32>,
    %c480_832 = arith.constant 480 : index
    %c0_833 = arith.constant 0 : index
    %1098 = vector.load %arg13[%c480_832, %c0_833] : memref<528x32xf32, #tpu.memory_space<vmem>>, vector<16x32xf32>
    %1099 = tpu.concatenate %1098, %1096 in 1 : vector<16x32xf32>, vector<16x32xf32> -> vector<16x64xf32>
    %1100 = arith.truncf %1099 : vector<16x64xf32> to vector<16x64xbf16>
    %c3_834 = arith.constant 3 : index
    %c5_835 = arith.constant 5 : index
    %c0_836 = arith.constant 0 : index
    %c0_837 = arith.constant 0 : index
    %1101 = vector.load %arg4[%c3_834, %c5_835, %c0_836, %c0_837] : memref<4x10x64x64xbf16, #tpu.memory_space<vmem>>, vector<1x1x64x64xbf16>
    %1102 = vector.shape_cast %1101 : vector<1x1x64x64xbf16> to vector<64x64xbf16>
    %cst_838 = arith.constant dense<0.000000e+00> : vector<16x64xf32>
    %1103 = tpu.matmul %1100, %1102, %cst_838 {dimension_numbers = #tpu.dot_dimension_numbers<[1], [0], [0], [1], [0, 0, 1, 1], [], []>} : vector<16x64xbf16>, vector<64x64xbf16>, vector<16x64xf32> -> vector<16x64xf32>
    %c3_839 = arith.constant 3 : index
    %c5_840 = arith.constant 5 : index
    %c0_841 = arith.constant 0 : index
    %c0_842 = arith.constant 0 : index
    %1104 = vector.load %arg5[%c3_839, %c5_840, %c0_841, %c0_842] : memref<4x10x1x64xf32, #tpu.memory_space<vmem>>, vector<1x1x1x64xf32>
    %1105 = vector.shape_cast %1104 : vector<1x1x1x64xf32> to vector<1x64xf32>
    %1106 = vector.broadcast %1105 : vector<1x64xf32> to vector<16x64xf32>
    %1107 = arith.addf %1103, %1106 : vector<16x64xf32>
    %1108 = math.tanh %1107 : vector<16x64xf32>
    %1109 = vector.extract_strided_slice %1108 {offsets = [0, 0], sizes = [16, 32], strides = [1, 1]} : vector<16x64xf32> to vector<16x32xf32>
    %1110 = vector.extract_strided_slice %1108 {offsets = [0, 32], sizes = [16, 32], strides = [1, 1]} : vector<16x64xf32> to vector<16x32xf32>
    %cst_843 = arith.constant 5.000000e-01 : f32
    %1111 = vector.broadcast %cst_843 : f32 to vector<16x32xf32>
    %1112 = arith.mulf %1111, %1110 : vector<16x32xf32>
    %cst_844 = arith.constant 5.000000e-01 : f32
    %1113 = vector.broadcast %cst_844 : f32 to vector<16x32xf32>
    %1114 = arith.addf %1112, %1113 : vector<16x32xf32>
    %1115 = arith.mulf %1109, %1114 : vector<16x32xf32>
    %1116 = arith.truncf %1115 : vector<16x32xf32> to vector<16x32xbf16>
    %c3_845 = arith.constant 3 : index
    %c5_846 = arith.constant 5 : index
    %c0_847 = arith.constant 0 : index
    %c0_848 = arith.constant 0 : index
    %1117 = vector.load %arg6[%c3_845, %c5_846, %c0_847, %c0_848] : memref<4x10x32x160xbf16, #tpu.memory_space<vmem>>, vector<1x1x32x160xbf16>
    %1118 = vector.shape_cast %1117 : vector<1x1x32x160xbf16> to vector<32x160xbf16>
    %cst_849 = arith.constant dense<0.000000e+00> : vector<16x160xf32>
    %1119 = tpu.matmul %1116, %1118, %cst_849 {dimension_numbers = #tpu.dot_dimension_numbers<[1], [0], [0], [1], [0, 0, 1, 1], [], []>} : vector<16x32xbf16>, vector<32x160xbf16>, vector<16x160xf32> -> vector<16x160xf32>
    %c3_850 = arith.constant 3 : index
    %c5_851 = arith.constant 5 : index
    %c0_852 = arith.constant 0 : index
    %c0_853 = arith.constant 0 : index
    %1120 = vector.load %arg7[%c3_850, %c5_851, %c0_852, %c0_853] : memref<4x10x1x160xf32, #tpu.memory_space<vmem>>, vector<1x1x1x160xf32>
    %1121 = vector.shape_cast %1120 : vector<1x1x1x160xf32> to vector<1x160xf32>
    %1122 = vector.broadcast %1121 : vector<1x160xf32> to vector<16x160xf32>
    %1123 = arith.addf %1119, %1122 : vector<16x160xf32>
    %1124 = vector.extract_strided_slice %1123 {offsets = [0, 0], sizes = [16, 128], strides = [1, 1]} : vector<16x160xf32> to vector<16x128xf32>
    %1125 = arith.addf %1094, %1124 : vector<16x128xf32>
    %1126 = vector.extract_strided_slice %1123 {offsets = [0, 128], sizes = [16, 32], strides = [1, 1]} : vector<16x160xf32> to vector<16x32xf32>
    %1127 = arith.addf %1096, %1126 : vector<16x32xf32>
    %c512_854 = arith.constant 512 : index
    %c0_855 = arith.constant 0 : index
    %1128 = vector.load %arg13[%c512_854, %c0_855] : memref<528x32xf32, #tpu.memory_space<vmem>>, vector<16x32xf32>
    tpu.vector_store %arg13[%c512_854, %c0_855], %1127 {strides = array<i32>} : memref<528x32xf32, #tpu.memory_space<vmem>>, vector<16x32xf32>,
    %c448_856 = arith.constant 448 : index
    %c0_857 = arith.constant 0 : index
    %1129 = vector.load %arg13[%c448_856, %c0_857] : memref<528x32xf32, #tpu.memory_space<vmem>>, vector<16x32xf32>
    %1130 = tpu.concatenate %1129, %1127 in 1 : vector<16x32xf32>, vector<16x32xf32> -> vector<16x64xf32>
    %1131 = arith.truncf %1130 : vector<16x64xf32> to vector<16x64xbf16>
    %c3_858 = arith.constant 3 : index
    %c6_859 = arith.constant 6 : index
    %c0_860 = arith.constant 0 : index
    %c0_861 = arith.constant 0 : index
    %1132 = vector.load %arg4[%c3_858, %c6_859, %c0_860, %c0_861] : memref<4x10x64x64xbf16, #tpu.memory_space<vmem>>, vector<1x1x64x64xbf16>
    %1133 = vector.shape_cast %1132 : vector<1x1x64x64xbf16> to vector<64x64xbf16>
    %cst_862 = arith.constant dense<0.000000e+00> : vector<16x64xf32>
    %1134 = tpu.matmul %1131, %1133, %cst_862 {dimension_numbers = #tpu.dot_dimension_numbers<[1], [0], [0], [1], [0, 0, 1, 1], [], []>} : vector<16x64xbf16>, vector<64x64xbf16>, vector<16x64xf32> -> vector<16x64xf32>
    %c3_863 = arith.constant 3 : index
    %c6_864 = arith.constant 6 : index
    %c0_865 = arith.constant 0 : index
    %c0_866 = arith.constant 0 : index
    %1135 = vector.load %arg5[%c3_863, %c6_864, %c0_865, %c0_866] : memref<4x10x1x64xf32, #tpu.memory_space<vmem>>, vector<1x1x1x64xf32>
    %1136 = vector.shape_cast %1135 : vector<1x1x1x64xf32> to vector<1x64xf32>
    %1137 = vector.broadcast %1136 : vector<1x64xf32> to vector<16x64xf32>
    %1138 = arith.addf %1134, %1137 : vector<16x64xf32>
    %1139 = math.tanh %1138 : vector<16x64xf32>
    %1140 = vector.extract_strided_slice %1139 {offsets = [0, 0], sizes = [16, 32], strides = [1, 1]} : vector<16x64xf32> to vector<16x32xf32>
    %1141 = vector.extract_strided_slice %1139 {offsets = [0, 32], sizes = [16, 32], strides = [1, 1]} : vector<16x64xf32> to vector<16x32xf32>
    %cst_867 = arith.constant 5.000000e-01 : f32
    %1142 = vector.broadcast %cst_867 : f32 to vector<16x32xf32>
    %1143 = arith.mulf %1142, %1141 : vector<16x32xf32>
    %cst_868 = arith.constant 5.000000e-01 : f32
    %1144 = vector.broadcast %cst_868 : f32 to vector<16x32xf32>
    %1145 = arith.addf %1143, %1144 : vector<16x32xf32>
    %1146 = arith.mulf %1140, %1145 : vector<16x32xf32>
    %1147 = arith.truncf %1146 : vector<16x32xf32> to vector<16x32xbf16>
    %c3_869 = arith.constant 3 : index
    %c6_870 = arith.constant 6 : index
    %c0_871 = arith.constant 0 : index
    %c0_872 = arith.constant 0 : index
    %1148 = vector.load %arg6[%c3_869, %c6_870, %c0_871, %c0_872] : memref<4x10x32x160xbf16, #tpu.memory_space<vmem>>, vector<1x1x32x160xbf16>
    %1149 = vector.shape_cast %1148 : vector<1x1x32x160xbf16> to vector<32x160xbf16>
    %cst_873 = arith.constant dense<0.000000e+00> : vector<16x160xf32>
    %1150 = tpu.matmul %1147, %1149, %cst_873 {dimension_numbers = #tpu.dot_dimension_numbers<[1], [0], [0], [1], [0, 0, 1, 1], [], []>} : vector<16x32xbf16>, vector<32x160xbf16>, vector<16x160xf32> -> vector<16x160xf32>
    %c3_874 = arith.constant 3 : index
    %c6_875 = arith.constant 6 : index
    %c0_876 = arith.constant 0 : index
    %c0_877 = arith.constant 0 : index
    %1151 = vector.load %arg7[%c3_874, %c6_875, %c0_876, %c0_877] : memref<4x10x1x160xf32, #tpu.memory_space<vmem>>, vector<1x1x1x160xf32>
    %1152 = vector.shape_cast %1151 : vector<1x1x1x160xf32> to vector<1x160xf32>
    %1153 = vector.broadcast %1152 : vector<1x160xf32> to vector<16x160xf32>
    %1154 = arith.addf %1150, %1153 : vector<16x160xf32>
    %1155 = vector.extract_strided_slice %1154 {offsets = [0, 0], sizes = [16, 128], strides = [1, 1]} : vector<16x160xf32> to vector<16x128xf32>
    %1156 = arith.addf %1125, %1155 : vector<16x128xf32>
    %1157 = vector.extract_strided_slice %1154 {offsets = [0, 128], sizes = [16, 32], strides = [1, 1]} : vector<16x160xf32> to vector<16x32xf32>
    %1158 = arith.addf %1127, %1157 : vector<16x32xf32>
    %c512_878 = arith.constant 512 : index
    %c0_879 = arith.constant 0 : index
    %1159 = vector.load %arg13[%c512_878, %c0_879] : memref<528x32xf32, #tpu.memory_space<vmem>>, vector<16x32xf32>
    tpu.vector_store %arg13[%c512_878, %c0_879], %1158 {strides = array<i32>} : memref<528x32xf32, #tpu.memory_space<vmem>>, vector<16x32xf32>,
    %c384_880 = arith.constant 384 : index
    %c0_881 = arith.constant 0 : index
    %1160 = vector.load %arg13[%c384_880, %c0_881] : memref<528x32xf32, #tpu.memory_space<vmem>>, vector<16x32xf32>
    %1161 = tpu.concatenate %1160, %1158 in 1 : vector<16x32xf32>, vector<16x32xf32> -> vector<16x64xf32>
    %1162 = arith.truncf %1161 : vector<16x64xf32> to vector<16x64xbf16>
    %c3_882 = arith.constant 3 : index
    %c7_883 = arith.constant 7 : index
    %c0_884 = arith.constant 0 : index
    %c0_885 = arith.constant 0 : index
    %1163 = vector.load %arg4[%c3_882, %c7_883, %c0_884, %c0_885] : memref<4x10x64x64xbf16, #tpu.memory_space<vmem>>, vector<1x1x64x64xbf16>
    %1164 = vector.shape_cast %1163 : vector<1x1x64x64xbf16> to vector<64x64xbf16>
    %cst_886 = arith.constant dense<0.000000e+00> : vector<16x64xf32>
    %1165 = tpu.matmul %1162, %1164, %cst_886 {dimension_numbers = #tpu.dot_dimension_numbers<[1], [0], [0], [1], [0, 0, 1, 1], [], []>} : vector<16x64xbf16>, vector<64x64xbf16>, vector<16x64xf32> -> vector<16x64xf32>
    %c3_887 = arith.constant 3 : index
    %c7_888 = arith.constant 7 : index
    %c0_889 = arith.constant 0 : index
    %c0_890 = arith.constant 0 : index
    %1166 = vector.load %arg5[%c3_887, %c7_888, %c0_889, %c0_890] : memref<4x10x1x64xf32, #tpu.memory_space<vmem>>, vector<1x1x1x64xf32>
    %1167 = vector.shape_cast %1166 : vector<1x1x1x64xf32> to vector<1x64xf32>
    %1168 = vector.broadcast %1167 : vector<1x64xf32> to vector<16x64xf32>
    %1169 = arith.addf %1165, %1168 : vector<16x64xf32>
    %1170 = math.tanh %1169 : vector<16x64xf32>
    %1171 = vector.extract_strided_slice %1170 {offsets = [0, 0], sizes = [16, 32], strides = [1, 1]} : vector<16x64xf32> to vector<16x32xf32>
    %1172 = vector.extract_strided_slice %1170 {offsets = [0, 32], sizes = [16, 32], strides = [1, 1]} : vector<16x64xf32> to vector<16x32xf32>
    %cst_891 = arith.constant 5.000000e-01 : f32
    %1173 = vector.broadcast %cst_891 : f32 to vector<16x32xf32>
    %1174 = arith.mulf %1173, %1172 : vector<16x32xf32>
    %cst_892 = arith.constant 5.000000e-01 : f32
    %1175 = vector.broadcast %cst_892 : f32 to vector<16x32xf32>
    %1176 = arith.addf %1174, %1175 : vector<16x32xf32>
    %1177 = arith.mulf %1171, %1176 : vector<16x32xf32>
    %1178 = arith.truncf %1177 : vector<16x32xf32> to vector<16x32xbf16>
    %c3_893 = arith.constant 3 : index
    %c7_894 = arith.constant 7 : index
    %c0_895 = arith.constant 0 : index
    %c0_896 = arith.constant 0 : index
    %1179 = vector.load %arg6[%c3_893, %c7_894, %c0_895, %c0_896] : memref<4x10x32x160xbf16, #tpu.memory_space<vmem>>, vector<1x1x32x160xbf16>
    %1180 = vector.shape_cast %1179 : vector<1x1x32x160xbf16> to vector<32x160xbf16>
    %cst_897 = arith.constant dense<0.000000e+00> : vector<16x160xf32>
    %1181 = tpu.matmul %1178, %1180, %cst_897 {dimension_numbers = #tpu.dot_dimension_numbers<[1], [0], [0], [1], [0, 0, 1, 1], [], []>} : vector<16x32xbf16>, vector<32x160xbf16>, vector<16x160xf32> -> vector<16x160xf32>
    %c3_898 = arith.constant 3 : index
    %c7_899 = arith.constant 7 : index
    %c0_900 = arith.constant 0 : index
    %c0_901 = arith.constant 0 : index
    %1182 = vector.load %arg7[%c3_898, %c7_899, %c0_900, %c0_901] : memref<4x10x1x160xf32, #tpu.memory_space<vmem>>, vector<1x1x1x160xf32>
    %1183 = vector.shape_cast %1182 : vector<1x1x1x160xf32> to vector<1x160xf32>
    %1184 = vector.broadcast %1183 : vector<1x160xf32> to vector<16x160xf32>
    %1185 = arith.addf %1181, %1184 : vector<16x160xf32>
    %1186 = vector.extract_strided_slice %1185 {offsets = [0, 0], sizes = [16, 128], strides = [1, 1]} : vector<16x160xf32> to vector<16x128xf32>
    %1187 = arith.addf %1156, %1186 : vector<16x128xf32>
    %1188 = vector.extract_strided_slice %1185 {offsets = [0, 128], sizes = [16, 32], strides = [1, 1]} : vector<16x160xf32> to vector<16x32xf32>
    %1189 = arith.addf %1158, %1188 : vector<16x32xf32>
    %c512_902 = arith.constant 512 : index
    %c0_903 = arith.constant 0 : index
    %1190 = vector.load %arg13[%c512_902, %c0_903] : memref<528x32xf32, #tpu.memory_space<vmem>>, vector<16x32xf32>
    tpu.vector_store %arg13[%c512_902, %c0_903], %1189 {strides = array<i32>} : memref<528x32xf32, #tpu.memory_space<vmem>>, vector<16x32xf32>,
    %c256_904 = arith.constant 256 : index
    %c0_905 = arith.constant 0 : index
    %1191 = vector.load %arg13[%c256_904, %c0_905] : memref<528x32xf32, #tpu.memory_space<vmem>>, vector<16x32xf32>
    %1192 = tpu.concatenate %1191, %1189 in 1 : vector<16x32xf32>, vector<16x32xf32> -> vector<16x64xf32>
    %1193 = arith.truncf %1192 : vector<16x64xf32> to vector<16x64xbf16>
    %c3_906 = arith.constant 3 : index
    %c8_907 = arith.constant 8 : index
    %c0_908 = arith.constant 0 : index
    %c0_909 = arith.constant 0 : index
    %1194 = vector.load %arg4[%c3_906, %c8_907, %c0_908, %c0_909] : memref<4x10x64x64xbf16, #tpu.memory_space<vmem>>, vector<1x1x64x64xbf16>
    %1195 = vector.shape_cast %1194 : vector<1x1x64x64xbf16> to vector<64x64xbf16>
    %cst_910 = arith.constant dense<0.000000e+00> : vector<16x64xf32>
    %1196 = tpu.matmul %1193, %1195, %cst_910 {dimension_numbers = #tpu.dot_dimension_numbers<[1], [0], [0], [1], [0, 0, 1, 1], [], []>} : vector<16x64xbf16>, vector<64x64xbf16>, vector<16x64xf32> -> vector<16x64xf32>
    %c3_911 = arith.constant 3 : index
    %c8_912 = arith.constant 8 : index
    %c0_913 = arith.constant 0 : index
    %c0_914 = arith.constant 0 : index
    %1197 = vector.load %arg5[%c3_911, %c8_912, %c0_913, %c0_914] : memref<4x10x1x64xf32, #tpu.memory_space<vmem>>, vector<1x1x1x64xf32>
    %1198 = vector.shape_cast %1197 : vector<1x1x1x64xf32> to vector<1x64xf32>
    %1199 = vector.broadcast %1198 : vector<1x64xf32> to vector<16x64xf32>
    %1200 = arith.addf %1196, %1199 : vector<16x64xf32>
    %1201 = math.tanh %1200 : vector<16x64xf32>
    %1202 = vector.extract_strided_slice %1201 {offsets = [0, 0], sizes = [16, 32], strides = [1, 1]} : vector<16x64xf32> to vector<16x32xf32>
    %1203 = vector.extract_strided_slice %1201 {offsets = [0, 32], sizes = [16, 32], strides = [1, 1]} : vector<16x64xf32> to vector<16x32xf32>
    %cst_915 = arith.constant 5.000000e-01 : f32
    %1204 = vector.broadcast %cst_915 : f32 to vector<16x32xf32>
    %1205 = arith.mulf %1204, %1203 : vector<16x32xf32>
    %cst_916 = arith.constant 5.000000e-01 : f32
    %1206 = vector.broadcast %cst_916 : f32 to vector<16x32xf32>
    %1207 = arith.addf %1205, %1206 : vector<16x32xf32>
    %1208 = arith.mulf %1202, %1207 : vector<16x32xf32>
    %1209 = arith.truncf %1208 : vector<16x32xf32> to vector<16x32xbf16>
    %c3_917 = arith.constant 3 : index
    %c8_918 = arith.constant 8 : index
    %c0_919 = arith.constant 0 : index
    %c0_920 = arith.constant 0 : index
    %1210 = vector.load %arg6[%c3_917, %c8_918, %c0_919, %c0_920] : memref<4x10x32x160xbf16, #tpu.memory_space<vmem>>, vector<1x1x32x160xbf16>
    %1211 = vector.shape_cast %1210 : vector<1x1x32x160xbf16> to vector<32x160xbf16>
    %cst_921 = arith.constant dense<0.000000e+00> : vector<16x160xf32>
    %1212 = tpu.matmul %1209, %1211, %cst_921 {dimension_numbers = #tpu.dot_dimension_numbers<[1], [0], [0], [1], [0, 0, 1, 1], [], []>} : vector<16x32xbf16>, vector<32x160xbf16>, vector<16x160xf32> -> vector<16x160xf32>
    %c3_922 = arith.constant 3 : index
    %c8_923 = arith.constant 8 : index
    %c0_924 = arith.constant 0 : index
    %c0_925 = arith.constant 0 : index
    %1213 = vector.load %arg7[%c3_922, %c8_923, %c0_924, %c0_925] : memref<4x10x1x160xf32, #tpu.memory_space<vmem>>, vector<1x1x1x160xf32>
    %1214 = vector.shape_cast %1213 : vector<1x1x1x160xf32> to vector<1x160xf32>
    %1215 = vector.broadcast %1214 : vector<1x160xf32> to vector<16x160xf32>
    %1216 = arith.addf %1212, %1215 : vector<16x160xf32>
    %1217 = vector.extract_strided_slice %1216 {offsets = [0, 0], sizes = [16, 128], strides = [1, 1]} : vector<16x160xf32> to vector<16x128xf32>
    %1218 = arith.addf %1187, %1217 : vector<16x128xf32>
    %1219 = vector.extract_strided_slice %1216 {offsets = [0, 128], sizes = [16, 32], strides = [1, 1]} : vector<16x160xf32> to vector<16x32xf32>
    %1220 = arith.addf %1189, %1219 : vector<16x32xf32>
    %c512_926 = arith.constant 512 : index
    %c0_927 = arith.constant 0 : index
    %1221 = vector.load %arg13[%c512_926, %c0_927] : memref<528x32xf32, #tpu.memory_space<vmem>>, vector<16x32xf32>
    tpu.vector_store %arg13[%c512_926, %c0_927], %1220 {strides = array<i32>} : memref<528x32xf32, #tpu.memory_space<vmem>>, vector<16x32xf32>,
    %c0_928 = arith.constant 0 : index
    %c0_929 = arith.constant 0 : index
    %1222 = vector.load %arg13[%c0_928, %c0_929] : memref<528x32xf32, #tpu.memory_space<vmem>>, vector<16x32xf32>
    %1223 = tpu.concatenate %1222, %1220 in 1 : vector<16x32xf32>, vector<16x32xf32> -> vector<16x64xf32>
    %1224 = arith.truncf %1223 : vector<16x64xf32> to vector<16x64xbf16>
    %c3_930 = arith.constant 3 : index
    %c9_931 = arith.constant 9 : index
    %c0_932 = arith.constant 0 : index
    %c0_933 = arith.constant 0 : index
    %1225 = vector.load %arg4[%c3_930, %c9_931, %c0_932, %c0_933] : memref<4x10x64x64xbf16, #tpu.memory_space<vmem>>, vector<1x1x64x64xbf16>
    %1226 = vector.shape_cast %1225 : vector<1x1x64x64xbf16> to vector<64x64xbf16>
    %cst_934 = arith.constant dense<0.000000e+00> : vector<16x64xf32>
    %1227 = tpu.matmul %1224, %1226, %cst_934 {dimension_numbers = #tpu.dot_dimension_numbers<[1], [0], [0], [1], [0, 0, 1, 1], [], []>} : vector<16x64xbf16>, vector<64x64xbf16>, vector<16x64xf32> -> vector<16x64xf32>
    %c3_935 = arith.constant 3 : index
    %c9_936 = arith.constant 9 : index
    %c0_937 = arith.constant 0 : index
    %c0_938 = arith.constant 0 : index
    %1228 = vector.load %arg5[%c3_935, %c9_936, %c0_937, %c0_938] : memref<4x10x1x64xf32, #tpu.memory_space<vmem>>, vector<1x1x1x64xf32>
    %1229 = vector.shape_cast %1228 : vector<1x1x1x64xf32> to vector<1x64xf32>
    %1230 = vector.broadcast %1229 : vector<1x64xf32> to vector<16x64xf32>
    %1231 = arith.addf %1227, %1230 : vector<16x64xf32>
    %1232 = math.tanh %1231 : vector<16x64xf32>
    %1233 = vector.extract_strided_slice %1232 {offsets = [0, 0], sizes = [16, 32], strides = [1, 1]} : vector<16x64xf32> to vector<16x32xf32>
    %1234 = vector.extract_strided_slice %1232 {offsets = [0, 32], sizes = [16, 32], strides = [1, 1]} : vector<16x64xf32> to vector<16x32xf32>
    %cst_939 = arith.constant 5.000000e-01 : f32
    %1235 = vector.broadcast %cst_939 : f32 to vector<16x32xf32>
    %1236 = arith.mulf %1235, %1234 : vector<16x32xf32>
    %cst_940 = arith.constant 5.000000e-01 : f32
    %1237 = vector.broadcast %cst_940 : f32 to vector<16x32xf32>
    %1238 = arith.addf %1236, %1237 : vector<16x32xf32>
    %1239 = arith.mulf %1233, %1238 : vector<16x32xf32>
    %1240 = arith.truncf %1239 : vector<16x32xf32> to vector<16x32xbf16>
    %c3_941 = arith.constant 3 : index
    %c9_942 = arith.constant 9 : index
    %c0_943 = arith.constant 0 : index
    %c0_944 = arith.constant 0 : index
    %1241 = vector.load %arg6[%c3_941, %c9_942, %c0_943, %c0_944] : memref<4x10x32x160xbf16, #tpu.memory_space<vmem>>, vector<1x1x32x160xbf16>
    %1242 = vector.shape_cast %1241 : vector<1x1x32x160xbf16> to vector<32x160xbf16>
    %cst_945 = arith.constant dense<0.000000e+00> : vector<16x160xf32>
    %1243 = tpu.matmul %1240, %1242, %cst_945 {dimension_numbers = #tpu.dot_dimension_numbers<[1], [0], [0], [1], [0, 0, 1, 1], [], []>} : vector<16x32xbf16>, vector<32x160xbf16>, vector<16x160xf32> -> vector<16x160xf32>
    %c3_946 = arith.constant 3 : index
    %c9_947 = arith.constant 9 : index
    %c0_948 = arith.constant 0 : index
    %c0_949 = arith.constant 0 : index
    %1244 = vector.load %arg7[%c3_946, %c9_947, %c0_948, %c0_949] : memref<4x10x1x160xf32, #tpu.memory_space<vmem>>, vector<1x1x1x160xf32>
    %1245 = vector.shape_cast %1244 : vector<1x1x1x160xf32> to vector<1x160xf32>
    %1246 = vector.broadcast %1245 : vector<1x160xf32> to vector<16x160xf32>
    %1247 = arith.addf %1243, %1246 : vector<16x160xf32>
    %1248 = vector.extract_strided_slice %1247 {offsets = [0, 0], sizes = [16, 128], strides = [1, 1]} : vector<16x160xf32> to vector<16x128xf32>
    %1249 = arith.addf %1218, %1248 : vector<16x128xf32>
    %1250 = arith.truncf %1249 : vector<16x128xf32> to vector<16x128xbf16>
    %c0_950 = arith.constant 0 : index
    %c0_951 = arith.constant 0 : index
    %1251 = vector.load %arg8[%c0_950, %c0_951] : memref<128x64xbf16, #tpu.memory_space<vmem>>, vector<128x64xbf16>
    %cst_952 = arith.constant dense<0.000000e+00> : vector<16x64xf32>
    %1252 = tpu.matmul %1250, %1251, %cst_952 {dimension_numbers = #tpu.dot_dimension_numbers<[1], [0], [0], [1], [0, 0, 1, 1], [], []>} : vector<16x128xbf16>, vector<128x64xbf16>, vector<16x64xf32> -> vector<16x64xf32>
    %c0_953 = arith.constant 0 : index
    %c0_954 = arith.constant 0 : index
    %1253 = vector.load %arg9[%c0_953, %c0_954] : memref<1x64xf32, #tpu.memory_space<vmem>>, vector<1x64xf32>
    %1254 = vector.broadcast %1253 : vector<1x64xf32> to vector<16x64xf32>
    %1255 = arith.addf %1252, %1254 : vector<16x64xf32>
    %cst_955 = arith.constant 0.000000e+00 : f32
    %1256 = vector.broadcast %cst_955 : f32 to vector<16x64xf32>
    %1257 = arith.maximumf %1255, %1256 : vector<16x64xf32>
    %1258 = arith.truncf %1257 : vector<16x64xf32> to vector<16x64xbf16>
    %c0_956 = arith.constant 0 : index
    %c0_957 = arith.constant 0 : index
    %1259 = vector.load %arg10[%c0_956, %c0_957] : memref<64x16xbf16, #tpu.memory_space<vmem>>, vector<64x16xbf16>
    %cst_958 = arith.constant dense<0.000000e+00> : vector<16x16xf32>
    %1260 = tpu.matmul %1258, %1259, %cst_958 {dimension_numbers = #tpu.dot_dimension_numbers<[1], [0], [0], [1], [0, 0, 1, 1], [], []>} : vector<16x64xbf16>, vector<64x16xbf16>, vector<16x16xf32> -> vector<16x16xf32>
    %c0_959 = arith.constant 0 : index
    %c0_960 = arith.constant 0 : index
    %1261 = vector.load %arg11[%c0_959, %c0_960] : memref<1x16xf32, #tpu.memory_space<vmem>>, vector<1x16xf32>
    %1262 = vector.broadcast %1261 : vector<1x16xf32> to vector<16x16xf32>
    %1263 = arith.addf %1260, %1262 : vector<16x16xf32>
    %c0_961 = arith.constant 0 : index
    %c0_962 = arith.constant 0 : index
    %c0_963 = arith.constant 0 : index
    %1264 = vector.load %arg12[%c0_961, %c0_962, %c0_963] : memref<1x16x16xf32, #tpu.memory_space<vmem>>, vector<1x16x16xf32>
    %1265 = vector.shape_cast %1264 : vector<1x16x16xf32> to vector<16x16xf32>
    %1266 = vector.shape_cast %1263 : vector<16x16xf32> to vector<1x16x16xf32>
    tpu.vector_store %arg12[%c0_961, %c0_962, %c0_963], %1266 {strides = array<i32>} : memref<1x16x16xf32, #tpu.memory_space<vmem>>, vector<1x16x16xf32>,
    return
  }
  func.func @transform_0(%arg0: i32) -> (i32, i32, i32) {
    %c0_i32 = arith.constant 0 : i32
    %c0_i32_0 = arith.constant 0 : i32
    %c0_i32_1 = arith.constant 0 : i32
    return %arg0, %c0_i32, %c0_i32_0 : i32, i32, i32
  }
  func.func @transform_1(%arg0: i32) -> (i32, i32) {
    %c0_i32 = arith.constant 0 : i32
    %c0_i32_0 = arith.constant 0 : i32
    %c0_i32_1 = arith.constant 0 : i32
    return %c0_i32, %c0_i32_0 : i32, i32
  }
  func.func @transform_2(%arg0: i32) -> (i32, i32) {
    %c0_i32 = arith.constant 0 : i32
    %c0_i32_0 = arith.constant 0 : i32
    %c0_i32_1 = arith.constant 0 : i32
    return %c0_i32, %c0_i32_0 : i32, i32
  }
  func.func @transform_3(%arg0: i32) -> (i32, i32, i32, i32) {
    %c0_i32 = arith.constant 0 : i32
    %c0_i32_0 = arith.constant 0 : i32
    %c0_i32_1 = arith.constant 0 : i32
    %c0_i32_2 = arith.constant 0 : i32
    %c0_i32_3 = arith.constant 0 : i32
    return %c0_i32, %c0_i32_0, %c0_i32_1, %c0_i32_2 : i32, i32, i32, i32
  }
  func.func @transform_4(%arg0: i32) -> (i32, i32, i32, i32) {
    %c0_i32 = arith.constant 0 : i32
    %c0_i32_0 = arith.constant 0 : i32
    %c0_i32_1 = arith.constant 0 : i32
    %c0_i32_2 = arith.constant 0 : i32
    %c0_i32_3 = arith.constant 0 : i32
    return %c0_i32, %c0_i32_0, %c0_i32_1, %c0_i32_2 : i32, i32, i32, i32
  }
  func.func @transform_5(%arg0: i32) -> (i32, i32, i32, i32) {
    %c0_i32 = arith.constant 0 : i32
    %c0_i32_0 = arith.constant 0 : i32
    %c0_i32_1 = arith.constant 0 : i32
    %c0_i32_2 = arith.constant 0 : i32
    %c0_i32_3 = arith.constant 0 : i32
    return %c0_i32, %c0_i32_0, %c0_i32_1, %c0_i32_2 : i32, i32, i32, i32
  }
  func.func @transform_6(%arg0: i32) -> (i32, i32, i32, i32) {
    %c0_i32 = arith.constant 0 : i32
    %c0_i32_0 = arith.constant 0 : i32
    %c0_i32_1 = arith.constant 0 : i32
    %c0_i32_2 = arith.constant 0 : i32
    %c0_i32_3 = arith.constant 0 : i32
    return %c0_i32, %c0_i32_0, %c0_i32_1, %c0_i32_2 : i32, i32, i32, i32
  }
  func.func @transform_7(%arg0: i32) -> (i32, i32) {
    %c0_i32 = arith.constant 0 : i32
    %c0_i32_0 = arith.constant 0 : i32
    %c0_i32_1 = arith.constant 0 : i32
    return %c0_i32, %c0_i32_0 : i32, i32
  }
  func.func @transform_8(%arg0: i32) -> (i32, i32) {
    %c0_i32 = arith.constant 0 : i32
    %c0_i32_0 = arith.constant 0 : i32
    %c0_i32_1 = arith.constant 0 : i32
    return %c0_i32, %c0_i32_0 : i32, i32
  }
  func.func @transform_9(%arg0: i32) -> (i32, i32) {
    %c0_i32 = arith.constant 0 : i32
    %c0_i32_0 = arith.constant 0 : i32
    %c0_i32_1 = arith.constant 0 : i32
    return %c0_i32, %c0_i32_0 : i32, i32
  }
  func.func @transform_10(%arg0: i32) -> (i32, i32) {
    %c0_i32 = arith.constant 0 : i32
    %c0_i32_0 = arith.constant 0 : i32
    %c0_i32_1 = arith.constant 0 : i32
    return %c0_i32, %c0_i32_0 : i32, i32
  }
  func.func @transform_11(%arg0: i32) -> (i32, i32, i32) {
    %c0_i32 = arith.constant 0 : i32
    %c0_i32_0 = arith.constant 0 : i32
    %c0_i32_1 = arith.constant 0 : i32
    return %arg0, %c0_i32, %c0_i32_0 : i32, i32, i32
  }
}

</mosaic_0001>

<bundles_post_ra>
// kernel: a_call__.1
= control target key start
LH: loop header
LB: loop body
LE: loop exit
PB: predicated region body
PF: predicated region fallthrough
CT: control target
= control target key end

     0   :  { %16 = vsyncpa [#allocation4], 0  ;;  %s12980_s0 = inlined_call_operand.vmem [shape: f32[2,16,1], index: 0, kind: input, shape index: {}]   ;;  %s12981_s1 = inlined_call_operand.vmem [shape: f32[1,32], index: 1, kind: input, shape index: {}]   ;;  %s12982_s2 = inlined_call_operand.vmem [shape: f32[1,32], index: 2, kind: input, shape index: {}]   ;;  %s12983_s3 = inlined_call_operand.hbm [shape: bf16[4,10,64,64], index: 3, kind: input, shape index: {}]   ;;  %s12984_s4 = inlined_call_operand.vmem [shape: f32[4,10,1,64], index: 4, kind: input, shape index: {}]   ;;  %s12985_s5 = inlined_call_operand.hbm [shape: bf16[4,10,32,160], index: 5, kind: input, shape index: {}]   ;;  %s12986_s6 = inlined_call_operand.vmem [shape: f32[4,10,1,160], index: 6, kind: input, shape index: {}]   ;;  %s12987_s7 = inlined_call_operand.vmem [shape: bf16[128,64], index: 7, kind: input, shape index: {}]   ;;  %s12988_s8 = inlined_call_operand.vmem [shape: f32[1,64], index: 8, kind: input, shape index: {}]   ;;  %s12989_s9 = inlined_call_operand.vmem [shape: bf16[64,16], index: 9, kind: input, shape index: {}]   ;;  %s12990_s10 = inlined_call_operand.vmem [shape: f32[1,16], index: 10, kind: input, shape index: {}]   ;;  %s12991_s11 = inlined_call_operand.vmem [shape: f32[2,16,16], index: 11, kind: output, shape index: {}]  }
   0x1   :  { %17 = vsyncpa [#allocation6], 0  ;;  %s11208_s17 = smov 0  }
   0x2 LB: > { %s11137_s18 = smov [#allocation3]   ;;  %s11214_s20 = sadd.s32 4294967295, %s11135_s17   ;;  %s11135_s17 = sphi %s11208_s17, %s23_s17  }
   0x3   : > { %s308_s19 = sshll.u32 %s11137_s18, 4  ;;  %p8982_p0 = scmp.ge.s32.totalorder %s11135_s17, 1  ;;  %s309_s19 = int_to_ptr.vmem [resolvable:$true] %s308_s19 }
   0x4   : > { %p290_p1 = scmp.lt.s32.totalorder %s11135_s17, 3  ;;  %p10273_p3 = scmp.eq.s32.totalorder %s11214_s20, 0 }
   0x5   : > { %s11138_s22 = smov [#allocation5]   ;;  %s11080_s25 = scalar_lea.vmem %s309_s19, 20480 }
   0x6   : > { %p11218_p2 = pnand %p8982_p0, %p290_p1  ;;  %s324_s23 = sshll.u32 %s11138_s22, 4  ;;  %s325_s23 = int_to_ptr.vmem [resolvable:$true] %s324_s23 }
   0x7   : > { %p11081_p7 = scmp.ne.s32.totalorder %s309_s19, %s11080_s25  ;;  %p11088_p10 = scmp.lt.s32.totalorder %s309_s19, %s309_s19 }
   0x8   : > { %p10266_p4 = pneg %p11218_p2  ;;  %p11089_p11 = scmp.lt.s32.totalorder %s11080_s25, %s11080_s25 }
   0xa   : > { %p11227_p5 = pnand %p10273_p3, %p10266_p4  ;;  %p11090_p12 = por %p11089_p11, %p11088_p10 }
   0xc   : > { %p11071_p6 = pneg %p11227_p5 }
   0xe   : > { %p11083_p8 = pnand %p11081_p7, %p11071_p6 }
  0x10   : > { %p11084_p9 = pneg %p11083_p8 }
  0x12   : > { %p11091_p13 = pnand %p11090_p12, %p11084_p9 }
  0x14   : > { %11094 = shalt.err (!%p11091_p13)
}
  0x15   : > { %s11139_s26 = smov 64   ;;  %s11140_s27 = smov 4  }
  0x16   : > { %10269 = dma.hbm_to_vmem [thread:$0]  (!%p11227_p5), %s12983_s3, 20480, %s309_s19, [#allocation4], %s11139_s26, %s11139_s26, %s11140_s27  }
  0x17   : > { %s11106_s30 = scalar_lea.vmem %s325_s23, 20480  ;;  %p11114_p7 = scmp.lt.s32.totalorder %s325_s23, %s325_s23 }
  0x18   : > { %p11107_p0 = scmp.ne.s32.totalorder %s325_s23, %s11106_s30  ;;  %p11115_p8 = scmp.lt.s32.totalorder %s11106_s30, %s11106_s30 }
  0x1a   : > { %p11109_p1 = pnand %p11107_p0, %p11071_p6  ;;  %p11116_p10 = por %p11115_p8, %p11114_p7 }
  0x1c   : > { %p11110_p4 = pneg %p11109_p1 }
  0x1e   : > { %p11117_p9 = pnand %p11116_p10, %p11110_p4 }
  0x20   : > { %11120 = shalt.err (!%p11117_p9)
}
  0x21   : > { %s11141_s12 = smov 128   ;;  %s11142_s13 = smov 8  }
  0x22   : > { %10272 = dma.hbm_to_vmem [thread:$0]  (!%p11227_p5), %s12985_s5, 20480, %s325_s23, [#allocation6], %s11141_s12, %s11141_s12, %s11142_s13  }
  0x23   : > { %363 = sbr.rel (%p11218_p2) target bundleno = 27024 (0x6990), region = 64 }
  0x28   : > { %11126 = dma.done.wait (%p10273_p3), [#allocation4], 20480  }
  0x29   : > { %11128 = vsyncadd (%p10273_p3), [#allocation4], 4294946816 }
  0x2a   : > { %11130 = dma.done.wait (%p10273_p3), [#allocation6], 20480  }
  0x2b   : > { %11132 = vsyncadd (%p10273_p3), [#allocation6], 4294946816  ;;  %vm418_vm0 = vcmask 261120   ;;  %p407_p6 = scmp.lt.s32.totalorder %s11214_s20, 1  ;;  %v11143_v0 = vmov 0.0   ;;  %v11144_v1 = vmov 0   ;;  %v635_v50 = vlaneseq }
  0x2c   : > { %419 = vst.msk [vmem:[#allocation2] sm:$0xff] %vm418_vm0, %v11143_v0  ;;  %420 = vst.msk [vmem:[#allocation2 + $0x8] sm:$0xff] %vm418_vm0, %v11143_v0  ;;  %10296 = vset.pattern.permute.xlu0 %v11144_v1  ;;  %9746 = vmatprep.subr.bf16.mxu0 %v11143_v0  ;;  %v10497_v4 = vld [vmem:[#allocation3 + $0x18] sm:$0xff]   ;;  %v10498_v5 = vld [vmem:[#allocation3 + $0x10] sm:$0xff]   ;;  %vm11145_vm1 = vmmov 0   ;;  %s11146_s26 = smov 32  }
  0x2d   : > { %451 = vst.msk [vmem:[#allocation2 + $0x100] sm:$0xff] %vm418_vm0, %v11143_v0  ;;  %452 = vst.msk [vmem:[#allocation2 + $0x108] sm:$0xff] %vm418_vm0, %v11143_v0  ;;  %s12995_s20 = smov (!%p407_p6, %s11214_s20), 1  ;;  %700 = vmatprep.mubr.bf16.mxu1 %v11144_v1  ;;  %9747 = vmatpush3.bf16.msra.mxu0 %v10497_v4  ;;  %v10499_v6 = vld [vmem:[#allocation3 + $0x8] sm:$0xff]   ;;  %v8993_v7 = vld [vmem:[%s12981_s1] ss:$0 sm:$0xff] }
  0x2e   : > { %467 = vst.msk [vmem:[#allocation2 + $0x180] sm:$0xff] %vm418_vm0, %v11143_v0  ;;  %468 = vst.msk [vmem:[#allocation2 + $0x188] sm:$0xff] %vm418_vm0, %v11143_v0  ;;  %s9530_s16 = sshll.u32 %s12995_s20, 4  ;;  %9748 = vmatprep.subr.bf16.mxu0 %v11143_v0  ;;  %v8994_v8 = vld [vmem:[%s12982_s2] ss:$0 sm:$0xff]  ;;  %v10500_v9 = vld [vmem:[#allocation3] sm:$0xff]   ;;  %9754 = vmatprep.mubr.msk.bf16.mxu0 %vm11145_vm1, %v11143_v0 }
  0x2f   : > { %475 = vst.msk [vmem:[#allocation2 + $0x1c0] sm:$0xff] %vm418_vm0, %v11143_v0  ;;  %476 = vst.msk [vmem:[#allocation2 + $0x1c8] sm:$0xff] %vm418_vm0, %v11143_v0  ;;  %s411_s21 = scalar_lea.vmem %s12980_s0, %s9530_s16  ;;  %vm567_vm2 = vcmask 523264   ;;  %v8995_v25 = vld [vmem:[%s12984_s4] ss:$0 sm:$0xff]  ;;  %s11147_s29 = smov 96  }
  0x30   : > { %479 = vst.msk [vmem:[#allocation2 + $0x1e0] sm:$0xff] %vm418_vm0, %v11143_v0  ;;  %480 = vst.msk [vmem:[#allocation2 + $0x1e8] sm:$0xff] %vm418_vm0, %v11143_v0  ;;  %v483_v2 = vld [vmem:[%s411_s21] sm:$0xff]  ;;  %v484_v3 = vld [vmem:[%s411_s21 + $0x8] sm:$0xff]  ;;  %v11338_v51 = vshrl.u32 %v635_v50, 7  ;;  %s416_s12 = scalar_lea.vmem %s12991_s11, %s9530_s16  ;;  %vm8900_vm3 = vcmask 130048  }
  0x31   : > { %481 = vst.msk [vmem:[#allocation2 + $0x1f0] sm:$0xff] %vm418_vm0, %v11143_v0  ;;  %482 = vst.msk [vmem:[#allocation2 + $0x1f8] sm:$0xff] %vm418_vm0, %v11143_v0  ;;  %488 = vperm.xlu0 %10296, %v483_v2   ;;  %9749 = vmatpush3.bf16.msra.mxu0 %v10498_v5  ;;  %v10501_v32 = vld [vmem:[#allocation5 + $0x14] ss:$8 sps:$4 sm:$0xff]   ;;  %v10503_v33 = vld [vmem:[#allocation5 + $0x10] ss:$8 sps:$4 sm:$0xff]  }
  0x32   : > { %9750 = vmatprep.subr.bf16.mxu0 %v11143_v0  ;;  %680 = vmatprep.subr.bf16.mxu1 %v10501_v32  ;;  %v10504_v34 = vld [vmem:[#allocation5 + $0x4] ss:$8 sps:$4 sm:$0xff]   ;;  %v10506_v35 = vld [vmem:[#allocation5] ss:$8 sps:$4 sm:$0xff]   ;;  %v10507_v47 = vld [vmem:[#allocation3 + $0x38] sm:$0xff]   ;;  %v11341_v52 = vsub.s32 1, %v11338_v51 }
  0x33   : > { %681 = vmatpush1.bf16.msra.mxu1 %v10503_v33  ;;  %v10508_v48 = vld [vmem:[#allocation3 + $0x30] sm:$0xff]   ;;  %v10509_v49 = vld [vmem:[#allocation3 + $0x28] sm:$0xff]   ;;  %v10510_v56 = vld [vmem:[#allocation3 + $0x20] sm:$0xff]  }
  0x34   : > { %682 = vmatprep.subr.bf16.mxu1 %v10504_v34  ;;  %v11346_v53 = vld [vmem:[%s12986_s6] sm:$0x3]  ;;  %v10517_v33 = vld [vmem:[#allocation3 + $0x58] sm:$0xff]  }
  0x35   : > { %493 = vperm.xlu0 %10296, %v484_v3   ;;  %9751 = vmatpush3.bf16.msra.mxu0 %v10499_v6  ;;  %v642_v54 = vrot.slane %v11346_v53, %v11341_v52  ;;  %v10518_v34 = vld [vmem:[#allocation3 + $0x50] sm:$0xff]  }
  0x36   : > { %9752 = vmatprep.subr.bf16.mxu0 %v11143_v0 }
  0x37   : > { %683 = vmatpush1.bf16.msra.mxu1 %v10506_v35  ;;  %v10519_v35 = vld [vmem:[#allocation3 + $0x48] sm:$0xff]  }
  0x38   : > { %9758 = vmatprep.subr.bf16.mxu1 %v11143_v0 }
  0x39   : > { %9753 = vmatpush3.bf16.msra.mxu0 %v10500_v9 }
  0x3a   : > { %9770 = vmatprep.subr.bf16.mxu0 %v11143_v0 }
  0xac   : > { %v489_v10 = vpop.permute.xlu0 %488 }
  0xad   : > { %v502_v11 = vmul.f32 %v8993_v7, %v489_v10 }
  0xaf   : > { %v11310_v12 = vadd.f32 %v8994_v8, %v502_v11  ;;  %v10511_v11 = vld [vmem:[#allocation5 + $0x30] ss:$8 sps:$4 sm:$0xff]  }
  0xb0   : > { %v494_v13 = vpop.permute.xlu0 %493 }
  0xb1   : > { %513 = vst.msk [vmem:[#allocation2 + $0x200] sm:$0xff] %vm418_vm0, %v11310_v12  ;;  %v503_v14 = vmul.f32 %v8993_v7, %v494_v13  ;;  %v9007_v13 = vld [vmem:[%s12984_s4 + $0x1] ss:$0 sm:$0xff] }
  0xb3   : > { %v11314_v15 = vadd.f32 %v8994_v8, %v503_v14 }
  0xb5   : > { %514 = vst.msk [vmem:[#allocation2 + $0x208] sm:$0xff] %vm418_vm0, %v11314_v15  ;;  %v10297_v16 = vpack.i.bf16 %v11314_v15, %v11310_v12 }
  0xb7   : > { %10298 = vrot.lane.b32.xlu1 %v10297_v16, %s11146_s26 }
  0xb8   : > { %v515_v20 = vld [vmem:[#allocation2 + $0x1ff] sm:$0xff] }
  0xbc   : > { %v516_v21 = vld [vmem:[#allocation2 + $0x207] sm:$0xff] }
 0x129   : > { %v10299_v17 = vpop.permute.xlu1 %10298 }
 0x12a   : > { %v10301_v18 = vunpack.i.h.bf16 %v10299_v17  ;;  %v10300_v19 = vunpack.i.l.bf16 %v10299_v17 }
 0x12c   : > { %v525_v22 = vsel %vm418_vm0, %v515_v20, %v10300_v19  ;;  %v526_v23 = vsel %vm418_vm0, %v516_v21, %v10301_v18  ;;  %v10514_v20 = vld [vmem:[#allocation5 + $0x20] ss:$8 sps:$4 sm:$0xff]   ;;  %v10516_v21 = vld [vmem:[#allocation5 + $0x24] ss:$8 sps:$4 sm:$0xff]  }
 0x12d   : > { %v527_v24 = vpack.c.bf16 %v526_v23, %v525_v22 }
 0x12f   : > { %9755 = vmatmul.mubr.msk.bf16.vlgmr.msra.gmra.mxu0 %vm567_vm2, %v527_v24 }
 0x130   : > { %9778 = vmatprep.mubr.msk.bf16.mxu0 %vm11145_vm1, %v11143_v0  ;;  %9771 = vmatpush3.bf16.msra.mxu0 %v10517_v33  ;;  %v10530_v33 = vld [vmem:[#allocation3 + $0x60] sm:$0xff]  }
 0x131   : > { %9772 = vmatprep.subr.bf16.mxu0 %v11143_v0 }
 0x134   : > { %9773 = vmatpush3.bf16.msra.mxu0 %v10518_v34 }
 0x135   : > { %9774 = vmatprep.subr.bf16.mxu0 %v11143_v0 }
 0x138   : > { %9775 = vmatpush3.bf16.msra.mxu0 %v10519_v35 }
 0x139   : > { %9776 = vmatprep.subr.bf16.mxu0 %v11143_v0 }
 0x1ef   : > { %v605_v26 = vpop.f32.mrf.mxu0 }
 0x1f0   : > { %v606_v27 = vadd.f32 %v8995_v25, %v605_v26 }
 0x1f1   : > { %v9756_v28 = vpop.f32.mrf.mxu0 }
 0x1f2   : > { %10909 = vtanh.f32 %v606_v27 }
 0x1f3   : > { %v608_v29 = vpop.f32.mrf.mxu0 }
 0x1f4   : > { %v609_v30 = vadd.f32 %v8995_v25, %v608_v29 }
 0x1f5   : > { %v9757_v31 = vpop.f32.mrf.mxu0 }
 0x1f6   : > { %10911 = vtanh.f32 %v609_v30 }
 0x1ff   : > { %v10910_v36 = vpop.eup %10909 }
 0x200   : > { %v614_v37 = vmul.f32 0.5, %v10910_v36 }
 0x202   : > { %v616_v38 = vadd.f32 0.5, %v614_v37  ;;  %v9013_v37 = vld [vmem:[%s12986_s6 + $0x2] sm:$0x3] }
 0x203   : > { %v10912_v39 = vpop.eup %10911 }
 0x204   : > { %620 = vrot.lane.b32.xlu1 %v616_v38, %s11147_s29  ;;  %v615_v40 = vmul.f32 0.5, %v10912_v39 }
 0x206   : > { %v617_v41 = vadd.f32 0.5, %v615_v40  ;;  %v847_v40 = vrot.slane %v9013_v37, %v11341_v52 }
 0x208   : > { %622 = vrot.lane.b32.xlu0 %v617_v41, %s11147_s29 }
 0x276   : > { %v621_v42 = vpop.permute.xlu1 %620 }
 0x277   : > { %v626_v44 = vmul.f32 %v10910_v36, %v621_v42  ;;  %v11382_v36 = vsub.s32 0, %v11338_v51  ;;  %v10520_v42 = vld [vmem:[#allocation3 + $0x40] sm:$0xff]  }
 0x278   : > { %9777 = vmatpush3.bf16.msra.mxu0 %v10520_v42 }
 0x279   : > { %v638_v38 = vrot.slane %v11346_v53, %v11382_v36 }
 0x27a   : > { %v623_v43 = vpop.permute.xlu0 %622 }
 0x27b   : > { %v627_v45 = vmul.f32 %v10912_v39, %v623_v43  ;;  %v843_v39 = vrot.slane %v9013_v37, %v11382_v36 }
 0x27d   : > { %v628_v46 = vpack.c.bf16 %v627_v45, %v626_v44 }
 0x27f   : > { %9005 = vmatmul.mubr.msk.bf16.vlgmr.msra.gmra.mxu1 %vm418_vm0, %v628_v46 }
 0x280   : > { %9766 = vmatprep.mubr.msk.bf16.mxu1 %vm11145_vm1, %v11143_v0  ;;  %9759 = vmatpush3.bf16.msra.mxu1 %v10507_v47 }
 0x281   : > { %9760 = vmatprep.subr.bf16.mxu1 %v11143_v0 }
 0x284   : > { %9761 = vmatpush3.bf16.msra.mxu1 %v10508_v48 }
 0x285   : > { %9762 = vmatprep.subr.bf16.mxu1 %v11143_v0 }
 0x288   : > { %9763 = vmatpush3.bf16.msra.mxu1 %v10509_v49 }
 0x289   : > { %9764 = vmatprep.subr.bf16.mxu1 %v11143_v0 }
 0x28c   : > { %9765 = vmatpush3.bf16.msra.mxu1 %v10510_v56 }
 0x33f   : > { %v11350_v55 = vpop.f32.mrf.mxu1 }
 0x340   : > { %v703_v43 = vadd.f32 %v11350_v55, %v638_v38 }
 0x341   : > { %v704_v57 = vpop.f32.mrf.mxu1 }
 0x342   : > { %v705_v58 = vadd.f32 %v704_v57, %v642_v54 }
 0x343   : > { %v11352_v59 = vpop.f32.mrf.mxu1 }
 0x344   : > { %v11355_v60 = vadd.f32 %v705_v58, %v11310_v12  ;;  %v10513_v12 = vld [vmem:[#allocation5 + $0x34] ss:$8 sps:$4 sm:$0xff]   ;;  %v707_v49 = vadd.f32 %v11352_v59, %v638_v38 }
 0x345   : > { %v708_v61 = vpop.f32.mrf.mxu1  ;;  %885 = vmatprep.subr.bf16.mxu1 %v10513_v12 }
 0x346   : > { %715 = vst.msk [vmem:[#allocation2 + $0x200] sm:$0xff] %vm418_vm0, %v11355_v60  ;;  %v709_v62 = vadd.f32 %v708_v61, %v642_v54 }
 0x348   : > { %v11360_v63 = vadd.f32 %v709_v62, %v11314_v15 }
 0x34a   : > { %716 = vst.msk [vmem:[#allocation2 + $0x208] sm:$0xff] %vm418_vm0, %v11360_v63  ;;  %v10302_v2 = vpack.i.bf16 %v11360_v63, %v11355_v60 }
 0x34c   : > { %10303 = vrot.lane.b32.xlu1 %v10302_v2, %s11146_s26 }
 0x34d   : > { %v717_v6 = vld [vmem:[#allocation2 + $0x1fe] sm:$0xff] }
 0x351   : > { %v718_v7 = vld [vmem:[#allocation2 + $0x206] sm:$0xff] }
 0x3be   : > { %v10304_v3 = vpop.permute.xlu1 %10303 }
 0x3bf   : > { %v10306_v4 = vunpack.i.h.bf16 %v10304_v3  ;;  %v10305_v5 = vunpack.i.l.bf16 %v10304_v3 }
 0x3c1   : > { %v727_v8 = vsel %vm418_vm0, %v717_v6, %v10305_v5  ;;  %v728_v9 = vsel %vm418_vm0, %v718_v7, %v10306_v4  ;;  %v10523_v5 = vld [vmem:[#allocation5 + $0x54] ss:$8 sps:$4 sm:$0xff]   ;;  %v9020_v6 = vld [vmem:[%s12984_s4 + $0x2] ss:$0 sm:$0xff] }
 0x3c2   : > { %v729_v10 = vpack.c.bf16 %v728_v9, %v727_v8 }
 0x3c4   : > { %9767 = vmatmul.mubr.msk.bf16.vlgmr.msra.gmra.mxu1 %vm567_vm2, %v729_v10 }
 0x3c5   : > { %905 = vmatprep.mubr.bf16.mxu1 %v11144_v1  ;;  %886 = vmatpush1.bf16.msra.mxu1 %v10511_v11 }
 0x3c6   : > { %887 = vmatprep.subr.bf16.mxu1 %v10516_v21 }
 0x3c9   : > { %888 = vmatpush1.bf16.msra.mxu1 %v10514_v20 }
 0x3ca   : > { %1090 = vmatprep.subr.bf16.mxu1 %v10523_v5 }
 0x484   : > { %v808_v14 = vpop.f32.mrf.mxu1 }
 0x485   : > { %v809_v15 = vadd.f32 %v9007_v13, %v808_v14  ;;  %v10526_v14 = vld [vmem:[#allocation5 + $0x44] ss:$8 sps:$4 sm:$0xff]  }
 0x486   : > { %v9768_v16 = vpop.f32.mrf.mxu1 }
 0x487   : > { %10913 = vtanh.f32 %v809_v15 }
 0x488   : > { %v811_v17 = vpop.f32.mrf.mxu1 }
 0x489   : > { %v812_v18 = vadd.f32 %v9007_v13, %v811_v17  ;;  %v10524_v13 = vld [vmem:[#allocation5 + $0x40] ss:$8 sps:$4 sm:$0xff]  }
 0x48a   : > { %v9769_v19 = vpop.f32.mrf.mxu1 }
 0x48b   : > { %10915 = vtanh.f32 %v812_v18 }
 0x494   : > { %v10914_v22 = vpop.eup %10913 }
 0x495   : > { %v817_v23 = vmul.f32 0.5, %v10914_v22 }
 0x497   : > { %v819_v24 = vadd.f32 0.5, %v817_v23 }
 0x498   : > { %v10916_v25 = vpop.eup %10915 }
 0x499   : > { %823 = vrot.lane.b32.xlu0 %v819_v24, %s11147_s29  ;;  %v818_v26 = vmul.f32 0.5, %v10916_v25 }
 0x49b   : > { %v820_v27 = vadd.f32 0.5, %v818_v26  ;;  %v10527_v26 = vld [vmem:[#allocation3 + $0x78] sm:$0xff]  }
 0x49d   : > { %825 = vrot.lane.b32.xlu1 %v820_v27, %s11147_s29  ;;  %v10528_v27 = vld [vmem:[#allocation3 + $0x70] sm:$0xff]  }
 0x50b   : > { %v824_v28 = vpop.permute.xlu0 %823 }
 0x50c   : > { %v829_v30 = vmul.f32 %v10914_v22, %v824_v28  ;;  %v10529_v28 = vld [vmem:[#allocation3 + $0x68] sm:$0xff]  }
 0x50f   : > { %v826_v29 = vpop.permute.xlu1 %825 }
 0x510   : > { %v830_v31 = vmul.f32 %v10916_v25, %v826_v29  ;;  %v9026_v29 = vld [vmem:[%s12986_s6 + $0x4] sm:$0x3] }
 0x512   : > { %v831_v32 = vpack.c.bf16 %v830_v31, %v829_v30  ;;  %v1048_v30 = vrot.slane %v9026_v29, %v11382_v36  ;;  %v1052_v31 = vrot.slane %v9026_v29, %v11341_v52 }
 0x514   : > { %9018 = vmatmul.mubr.msk.bf16.vlgmr.msra.gmra.mxu1 %vm418_vm0, %v831_v32 }
 0x515   : > { %1110 = vmatprep.mubr.bf16.mxu1 %v11144_v1 }
 0x5d4   : > { %v907_v41 = vpop.f32.mrf.mxu1 }
 0x5d5   : > { %v908_v44 = vadd.f32 %v907_v41, %v843_v39 }
 0x5d6   : > { %v909_v45 = vpop.f32.mrf.mxu1 }
 0x5d7   : > { %v11392_v46 = vadd.f32 %v908_v44, %v703_v43  ;;  %v910_v47 = vadd.f32 %v909_v45, %v847_v40 }
 0x5d8   : > { %v911_v48 = vpop.f32.mrf.mxu1 }
 0x5d9   : > { %v11396_v50 = vadd.f32 %v910_v47, %v11355_v60  ;;  %v912_v51 = vadd.f32 %v911_v48, %v843_v39  ;;  %v11450_v47 = vld [vmem:[#allocation2 + $0x1f8] sm:$0xff] }
 0x5da   : > { %v913_v53 = vpop.f32.mrf.mxu1 }
 0x5db   : > { %920 = vst.msk [vmem:[#allocation2 + $0x200] sm:$0xff] %vm418_vm0, %v11396_v50  ;;  %v11400_v54 = vadd.f32 %v912_v51, %v707_v49  ;;  %v914_v55 = vadd.f32 %v913_v53, %v847_v40 }
 0x5dd   : > { %v11403_v56 = vadd.f32 %v914_v55, %v11360_v63  ;;  %v10521_v63 = vld [vmem:[#allocation5 + $0x50] ss:$8 sps:$4 sm:$0xff]  }
 0x5de   : > { %1091 = vmatpush1.bf16.msra.mxu1 %v10521_v63  ;;  %v10536_v63 = vld [vmem:[#allocation5 + $0x64] ss:$8 sps:$4 sm:$0xff]  }
 0x5df   : > { %921 = vst.msk [vmem:[#allocation2 + $0x208] sm:$0xff] %vm418_vm0, %v11403_v56  ;;  %v10307_v57 = vpack.i.bf16 %v11403_v56, %v11396_v50  ;;  %1092 = vmatprep.subr.bf16.mxu1 %v10526_v14 }
 0x5e1   : > { %10308 = vrot.lane.b32.xlu0 %v10307_v57, %s11146_s26  ;;  %v10533_v57 = vld [vmem:[#allocation5 + $0x74] ss:$8 sps:$4 sm:$0xff]  }
 0x5e2   : > { %v922_v61 = vld [vmem:[#allocation2 + $0x1fc] sm:$0xff]  ;;  %1093 = vmatpush1.bf16.msra.mxu1 %v10524_v13  ;;  %1295 = vmatprep.subr.bf16.mxu0 %v10533_v57 }
 0x5e3   : > { %9782 = vmatprep.subr.bf16.mxu1 %v11143_v0 }
 0x5e6   : > { %v923_v62 = vld [vmem:[#allocation2 + $0x204] sm:$0xff] }
 0x653   : > { %v10309_v58 = vpop.permute.xlu0 %10308 }
 0x654   : > { %v10311_v59 = vunpack.i.h.bf16 %v10309_v58  ;;  %v10310_v60 = vunpack.i.l.bf16 %v10309_v58  ;;  %v9033_v58 = vld [vmem:[%s12984_s4 + $0x3] ss:$0 sm:$0xff] }
 0x656   : > { %v932_v2 = vsel %vm418_vm0, %v922_v61, %v10310_v60  ;;  %v933_v3 = vsel %vm418_vm0, %v923_v62, %v10311_v59 }
 0x657   : > { %v934_v4 = vpack.c.bf16 %v933_v3, %v932_v2 }
 0x659   : > { %9779 = vmatmul.mubr.msk.bf16.vlgmr.msra.gmra.mxu0 %vm567_vm2, %v934_v4  ;;  %v10534_v4 = vld [vmem:[#allocation5 + $0x60] ss:$8 sps:$4 sm:$0xff]  }
 0x65a   : > { %1315 = vmatprep.mubr.bf16.mxu0 %v11144_v1 }
 0x719   : > { %v1013_v7 = vpop.f32.mrf.mxu0 }
 0x71a   : > { %v1014_v8 = vadd.f32 %v9020_v6, %v1013_v7 }
 0x71b   : > { %v9780_v9 = vpop.f32.mrf.mxu0 }
 0x71c   : > { %10917 = vtanh.f32 %v1014_v8 }
 0x71d   : > { %v1016_v10 = vpop.f32.mrf.mxu0 }
 0x71e   : > { %v1017_v11 = vadd.f32 %v9020_v6, %v1016_v10 }
 0x71f   : > { %v9781_v12 = vpop.f32.mrf.mxu0 }
 0x720   : > { %10919 = vtanh.f32 %v1017_v11 }
 0x729   : > { %v10918_v15 = vpop.eup %10917 }
 0x72a   : > { %v1022_v16 = vmul.f32 0.5, %v10918_v15 }
 0x72c   : > { %v1024_v17 = vadd.f32 0.5, %v1022_v16  ;;  %v10537_v16 = vld [vmem:[#allocation3 + $0x98] sm:$0xff]  }
 0x72d   : > { %v10920_v18 = vpop.eup %10919 }
 0x72e   : > { %1028 = vrot.lane.b32.xlu1 %v1024_v17, %s11147_s29  ;;  %v1023_v19 = vmul.f32 0.5, %v10920_v18  ;;  %v10538_v17 = vld [vmem:[#allocation3 + $0x90] sm:$0xff]  }
 0x730   : > { %v1025_v20 = vadd.f32 0.5, %v1023_v19  ;;  %v9039_v19 = vld [vmem:[%s12986_s6 + $0x6] sm:$0x3] }
 0x732   : > { %1030 = vrot.lane.b32.xlu0 %v1025_v20, %s11147_s29  ;;  %v1253_v20 = vrot.slane %v9039_v19, %v11382_v36 }
 0x7a0   : > { %v1029_v21 = vpop.permute.xlu1 %1028 }
 0x7a1   : > { %v1034_v23 = vmul.f32 %v10918_v15, %v1029_v21  ;;  %v1257_v21 = vrot.slane %v9039_v19, %v11341_v52 }
 0x7a4   : > { %v1031_v22 = vpop.permute.xlu0 %1030 }
 0x7a5   : > { %v1035_v24 = vmul.f32 %v10920_v18, %v1031_v22  ;;  %v10539_v18 = vld [vmem:[#allocation3 + $0x88] sm:$0xff]  }
 0x7a7   : > { %v1036_v25 = vpack.c.bf16 %v1035_v24, %v1034_v23  ;;  %v10540_v23 = vld [vmem:[#allocation3 + $0x80] sm:$0xff]  }
 0x7a9   : > { %9031 = vmatmul.mubr.msk.bf16.vlgmr.msra.gmra.mxu1 %vm418_vm0, %v1036_v25 }
 0x7aa   : > { %9790 = vmatprep.mubr.msk.bf16.mxu1 %vm11145_vm1, %v11143_v0  ;;  %9783 = vmatpush3.bf16.msra.mxu1 %v10527_v26 }
 0x7ab   : > { %9784 = vmatprep.subr.bf16.mxu1 %v11143_v0 }
 0x7ae   : > { %9785 = vmatpush3.bf16.msra.mxu1 %v10528_v27 }
 0x7af   : > { %9786 = vmatprep.subr.bf16.mxu1 %v11143_v0 }
 0x7b2   : > { %9787 = vmatpush3.bf16.msra.mxu1 %v10529_v28 }
 0x7b3   : > { %9788 = vmatprep.subr.bf16.mxu1 %v11143_v0 }
 0x7b6   : > { %9789 = vmatpush3.bf16.msra.mxu1 %v10530_v33 }
 0x869   : > { %v1112_v32 = vpop.f32.mrf.mxu1 }
 0x86a   : > { %v1113_v34 = vadd.f32 %v1112_v32, %v1048_v30 }
 0x86b   : > { %v1114_v35 = vpop.f32.mrf.mxu1 }
 0x86c   : > { %v11432_v37 = vadd.f32 %v1113_v34, %v11392_v46  ;;  %v1115_v38 = vadd.f32 %v1114_v35, %v1052_v31 }
 0x86d   : > { %v1116_v39 = vpop.f32.mrf.mxu1 }
 0x86e   : > { %v11435_v40 = vadd.f32 %v1115_v38, %v11396_v50  ;;  %v1117_v41 = vadd.f32 %v1116_v39, %v1048_v30  ;;  %v1332_v38 = vld [vmem:[#allocation2 + $0x1f0] sm:$0xff] }
 0x86f   : > { %v1118_v42 = vpop.f32.mrf.mxu1 }
 0x870   : > { %1125 = vst.msk [vmem:[#allocation2 + $0x200] sm:$0xff] %vm418_vm0, %v11435_v40  ;;  %v11440_v43 = vadd.f32 %v1117_v41, %v11400_v54  ;;  %v1119_v44 = vadd.f32 %v1118_v42, %v1052_v31 }
 0x872   : > { %v11443_v45 = vadd.f32 %v1119_v44, %v11403_v56  ;;  %v10531_v56 = vld [vmem:[#allocation5 + $0x70] ss:$8 sps:$4 sm:$0xff]  }
 0x873   : > { %1296 = vmatpush1.bf16.msra.mxu0 %v10531_v56  ;;  %v10541_v44 = vld [vmem:[#allocation5 + $0x90] ss:$8 sps:$4 sm:$0xff]  }
 0x874   : > { %1126 = vst.msk [vmem:[#allocation2 + $0x208] sm:$0xff] %vm418_vm0, %v11443_v45  ;;  %v10312_v46 = vpack.i.bf16 %v11443_v45, %v11435_v40  ;;  %1297 = vmatprep.subr.bf16.mxu0 %v10536_v63 }
 0x876   : > { %10313 = vrot.lane.b32.xlu1 %v10312_v46, %s11146_s26  ;;  %v9046_v46 = vld [vmem:[%s12984_s4 + $0x4] ss:$0 sm:$0xff] }
 0x877   : > { %v1128_v51 = vld [vmem:[#allocation2 + $0x200] sm:$0xff]  ;;  %1298 = vmatpush1.bf16.msra.mxu0 %v10534_v4 }
 0x878   : > { %9794 = vmatprep.subr.bf16.mxu0 %v11143_v0 }
 0x8e8   : > { %v10314_v48 = vpop.permute.xlu1 %10313 }
 0x8e9   : > { %v10316_v49 = vunpack.i.h.bf16 %v10314_v48  ;;  %v10315_v50 = vunpack.i.l.bf16 %v10314_v48 }
 0x8eb   : > { %v1137_v53 = vsel %vm418_vm0, %v11450_v47, %v10315_v50  ;;  %v1138_v54 = vsel %vm418_vm0, %v1128_v51, %v10316_v49 }
 0x8ec   : > { %v1139_v55 = vpack.c.bf16 %v1138_v54, %v1137_v53  ;;  %v10544_v54 = vld [vmem:[#allocation5 + $0x80] ss:$8 sps:$4 sm:$0xff]  }
 0x8ee   : > { %9791 = vmatmul.mubr.msk.bf16.vlgmr.msra.gmra.mxu1 %vm567_vm2, %v1139_v55  ;;  %v10546_v55 = vld [vmem:[#allocation5 + $0x84] ss:$8 sps:$4 sm:$0xff]  }
 0x8ef   : > { %1520 = vmatprep.mubr.bf16.mxu1 %v11144_v1 }
 0x9ae   : > { %v1218_v59 = vpop.f32.mrf.mxu1 }
 0x9af   : > { %v1219_v60 = vadd.f32 %v9033_v58, %v1218_v59 }
 0x9b0   : > { %v9792_v61 = vpop.f32.mrf.mxu1 }
 0x9b1   : > { %10921 = vtanh.f32 %v1219_v60 }
 0x9b2   : > { %v1221_v62 = vpop.f32.mrf.mxu1 }
 0x9b3   : > { %v1222_v2 = vadd.f32 %v9033_v58, %v1221_v62 }
 0x9b4   : > { %v9793_v3 = vpop.f32.mrf.mxu1 }
 0x9b5   : > { %10923 = vtanh.f32 %v1222_v2 }
 0x9be   : > { %v10922_v5 = vpop.eup %10921 }
 0x9bf   : > { %v1227_v6 = vmul.f32 0.5, %v10922_v5 }
 0x9c1   : > { %v1229_v7 = vadd.f32 0.5, %v1227_v6  ;;  %v10548_v6 = vld [vmem:[#allocation3 + $0xb0] sm:$0xff]  }
 0x9c2   : > { %v10924_v8 = vpop.eup %10923 }
 0x9c3   : > { %1233 = vrot.lane.b32.xlu0 %v1229_v7, %s11147_s29  ;;  %v1228_v9 = vmul.f32 0.5, %v10924_v8  ;;  %v10549_v7 = vld [vmem:[#allocation3 + $0xa8] sm:$0xff]  }
 0x9c5   : > { %v1230_v10 = vadd.f32 0.5, %v1228_v9 }
 0x9c7   : > { %1235 = vrot.lane.b32.xlu1 %v1230_v10, %s11147_s29 }
 0xa35   : > { %v1234_v11 = vpop.permute.xlu0 %1233 }
 0xa36   : > { %v1239_v13 = vmul.f32 %v10922_v5, %v1234_v11  ;;  %v10547_v5 = vld [vmem:[#allocation3 + $0xb8] sm:$0xff]  }
 0xa39   : > { %v1236_v12 = vpop.permute.xlu1 %1235 }
 0xa3a   : > { %v1240_v14 = vmul.f32 %v10924_v8, %v1236_v12  ;;  %v9052_v8 = vld [vmem:[%s12986_s6 + $0x8] sm:$0x3]  ;;  %v10550_v12 = vld [vmem:[#allocation3 + $0xa0] sm:$0xff]  }
 0xa3b   : > { %v1458_v9 = vrot.slane %v9052_v8, %v11382_v36  ;;  %v1462_v10 = vrot.slane %v9052_v8, %v11341_v52 }
 0xa3c   : > { %v1241_v15 = vpack.c.bf16 %v1240_v14, %v1239_v13 }
 0xa3e   : > { %9044 = vmatmul.mubr.msk.bf16.vlgmr.msra.gmra.mxu0 %vm418_vm0, %v1241_v15 }
 0xa3f   : > { %9802 = vmatprep.mubr.msk.bf16.mxu0 %vm11145_vm1, %v11143_v0  ;;  %9795 = vmatpush3.bf16.msra.mxu0 %v10537_v16 }
 0xa40   : > { %9796 = vmatprep.subr.bf16.mxu0 %v11143_v0 }
 0xa43   : > { %9797 = vmatpush3.bf16.msra.mxu0 %v10538_v17 }
 0xa44   : > { %9798 = vmatprep.subr.bf16.mxu0 %v11143_v0 }
 0xa47   : > { %9799 = vmatpush3.bf16.msra.mxu0 %v10539_v18 }
 0xa48   : > { %9800 = vmatprep.subr.bf16.mxu0 %v11143_v0 }
 0xa4b   : > { %9801 = vmatpush3.bf16.msra.mxu0 %v10540_v23 }
 0xafe   : > { %v1317_v22 = vpop.f32.mrf.mxu0 }
 0xaff   : > { %v1318_v24 = vadd.f32 %v1317_v22, %v1253_v20 }
 0xb00   : > { %v1319_v25 = vpop.f32.mrf.mxu0 }
 0xb01   : > { %v11475_v26 = vadd.f32 %v1318_v24, %v11432_v37  ;;  %v1320_v27 = vadd.f32 %v1319_v25, %v1257_v21 }
 0xb02   : > { %v1321_v28 = vpop.f32.mrf.mxu0 }
 0xb03   : > { %v11478_v29 = vadd.f32 %v1320_v27, %v11435_v40  ;;  %v1322_v30 = vadd.f32 %v1321_v28, %v1253_v20  ;;  %v1538_v27 = vld [vmem:[#allocation2 + $0x1e8] sm:$0xff] }
 0xb04   : > { %v1323_v31 = vpop.f32.mrf.mxu0 }
 0xb05   : > { %1330 = vst.msk [vmem:[#allocation2 + $0x200] sm:$0xff] %vm418_vm0, %v11478_v29  ;;  %v11483_v32 = vadd.f32 %v1322_v30, %v11440_v43  ;;  %v1324_v33 = vadd.f32 %v1323_v31, %v1257_v21 }
 0xb07   : > { %v11486_v34 = vadd.f32 %v1324_v33, %v11443_v45  ;;  %v10543_v45 = vld [vmem:[#allocation5 + $0x94] ss:$8 sps:$4 sm:$0xff]   ;;  %v10551_v33 = vld [vmem:[#allocation5 + $0xb0] ss:$8 sps:$4 sm:$0xff]  }
 0xb08   : > { %1500 = vmatprep.subr.bf16.mxu1 %v10543_v45 }
 0xb09   : > { %1331 = vst.msk [vmem:[#allocation2 + $0x208] sm:$0xff] %vm418_vm0, %v11486_v34  ;;  %v10317_v35 = vpack.i.bf16 %v11486_v34, %v11478_v29  ;;  %1501 = vmatpush1.bf16.msra.mxu1 %v10541_v44  ;;  %v10556_v44 = vld [vmem:[#allocation5 + $0xa4] ss:$8 sps:$4 sm:$0xff]  }
 0xb0a   : > { %1502 = vmatprep.subr.bf16.mxu1 %v10546_v55 }
 0xb0b   : > { %10318 = vrot.lane.b32.xlu0 %v10317_v35, %s11146_s26  ;;  %v9059_v35 = vld [vmem:[%s12984_s4 + $0x5] ss:$0 sm:$0xff] }
 0xb0d   : > { %1503 = vmatpush1.bf16.msra.mxu1 %v10544_v54 }
 0xb0e   : > { %9806 = vmatprep.subr.bf16.mxu1 %v11143_v0 }
 0xb7d   : > { %v10319_v37 = vpop.permute.xlu0 %10318 }
 0xb7e   : > { %v10321_v39 = vunpack.i.h.bf16 %v10319_v37  ;;  %v10320_v40 = vunpack.i.l.bf16 %v10319_v37 }
 0xb80   : > { %v1343_v41 = vsel %vm418_vm0, %v11450_v47, %v10321_v39  ;;  %v1342_v42 = vsel %vm418_vm0, %v1332_v38, %v10320_v40 }
 0xb81   : > { %v1344_v43 = vpack.c.bf16 %v1343_v41, %v1342_v42 }
 0xb83   : > { %9803 = vmatmul.mubr.msk.bf16.vlgmr.msra.gmra.mxu0 %vm567_vm2, %v1344_v43  ;;  %v10554_v43 = vld [vmem:[#allocation5 + $0xa0] ss:$8 sps:$4 sm:$0xff]  }
 0xb84   : > { %1725 = vmatprep.mubr.bf16.mxu0 %v11144_v1 }
 0xc43   : > { %v1423_v48 = vpop.f32.mrf.mxu0 }
 0xc44   : > { %v1424_v49 = vadd.f32 %v9046_v46, %v1423_v48 }
 0xc45   : > { %v9804_v50 = vpop.f32.mrf.mxu0 }
 0xc46   : > { %10925 = vtanh.f32 %v1424_v49 }
 0xc47   : > { %v1426_v47 = vpop.f32.mrf.mxu0 }
 0xc48   : > { %v1427_v51 = vadd.f32 %v9046_v46, %v1426_v47 }
 0xc49   : > { %v9805_v53 = vpop.f32.mrf.mxu0 }
 0xc4a   : > { %10927 = vtanh.f32 %v1427_v51 }
 0xc53   : > { %v10926_v56 = vpop.eup %10925 }
 0xc54   : > { %v1432_v57 = vmul.f32 0.5, %v10926_v56 }
 0xc56   : > { %v1434_v58 = vadd.f32 0.5, %v1432_v57  ;;  %v10557_v57 = vld [vmem:[#allocation3 + $0xd8] sm:$0xff]  }
 0xc57   : > { %v10928_v59 = vpop.eup %10927 }
 0xc58   : > { %1438 = vrot.lane.b32.xlu1 %v1434_v58, %s11147_s29  ;;  %v1433_v60 = vmul.f32 0.5, %v10928_v59  ;;  %v10558_v58 = vld [vmem:[#allocation3 + $0xd0] sm:$0xff]  }
 0xc5a   : > { %v1435_v61 = vadd.f32 0.5, %v1433_v60  ;;  %v9065_v60 = vld [vmem:[%s12986_s6 + $0xa] sm:$0x3] }
 0xc5c   : > { %1440 = vrot.lane.b32.xlu0 %v1435_v61, %s11147_s29  ;;  %v1663_v61 = vrot.slane %v9065_v60, %v11382_v36 }
 0xcca   : > { %v1439_v62 = vpop.permute.xlu1 %1438 }
 0xccb   : > { %v1444_v3 = vmul.f32 %v10926_v56, %v1439_v62  ;;  %v1667_v62 = vrot.slane %v9065_v60, %v11341_v52 }
 0xcce   : > { %v1441_v2 = vpop.permute.xlu0 %1440 }
 0xccf   : > { %v1445_v4 = vmul.f32 %v10928_v59, %v1441_v2  ;;  %v10559_v59 = vld [vmem:[#allocation3 + $0xc8] sm:$0xff]  }
 0xcd1   : > { %v1446_v63 = vpack.c.bf16 %v1445_v4, %v1444_v3  ;;  %v10560_v3 = vld [vmem:[#allocation3 + $0xc0] sm:$0xff]  }
 0xcd3   : > { %9057 = vmatmul.mubr.msk.bf16.vlgmr.msra.gmra.mxu1 %vm418_vm0, %v1446_v63 }
 0xcd4   : > { %9814 = vmatprep.mubr.msk.bf16.mxu1 %vm11145_vm1, %v11143_v0  ;;  %9807 = vmatpush3.bf16.msra.mxu1 %v10547_v5 }
 0xcd5   : > { %9808 = vmatprep.subr.bf16.mxu1 %v11143_v0 }
 0xcd8   : > { %9809 = vmatpush3.bf16.msra.mxu1 %v10548_v6 }
 0xcd9   : > { %9810 = vmatprep.subr.bf16.mxu1 %v11143_v0 }
 0xcdc   : > { %9811 = vmatpush3.bf16.msra.mxu1 %v10549_v7 }
 0xcdd   : > { %9812 = vmatprep.subr.bf16.mxu1 %v11143_v0 }
 0xce0   : > { %9813 = vmatpush3.bf16.msra.mxu1 %v10550_v12 }
 0xd93   : > { %v1522_v11 = vpop.f32.mrf.mxu1 }
 0xd94   : > { %v1523_v13 = vadd.f32 %v1522_v11, %v1458_v9 }
 0xd95   : > { %v1524_v14 = vpop.f32.mrf.mxu1 }
 0xd96   : > { %v11516_v15 = vadd.f32 %v1523_v13, %v11475_v26  ;;  %v1525_v16 = vadd.f32 %v1524_v14, %v1462_v10  ;;  %v1537_v26 = vld [vmem:[#allocation2 + $0x1e0] sm:$0xff] }
 0xd97   : > { %v1526_v17 = vpop.f32.mrf.mxu1 }
 0xd98   : > { %v11519_v18 = vadd.f32 %v1525_v16, %v11478_v29  ;;  %v1527_v19 = vadd.f32 %v1526_v17, %v1458_v9  ;;  %v1742_v16 = vld [vmem:[#allocation2 + $0x1c0] sm:$0xff]  ;;  %v1743_v17 = vld [vmem:[#allocation2 + $0x1c8] sm:$0xff] }
 0xd99   : > { %v1528_v20 = vpop.f32.mrf.mxu1 }
 0xd9a   : > { %1535 = vst.msk [vmem:[#allocation2 + $0x200] sm:$0xff] %vm418_vm0, %v11519_v18  ;;  %v11524_v21 = vadd.f32 %v1527_v19, %v11483_v32  ;;  %v1529_v22 = vadd.f32 %v1528_v20, %v1462_v10 }
 0xd9c   : > { %v11527_v23 = vadd.f32 %v1529_v22, %v11486_v34  ;;  %v10553_v34 = vld [vmem:[#allocation5 + $0xb4] ss:$8 sps:$4 sm:$0xff]  }
 0xd9d   : > { %1705 = vmatprep.subr.bf16.mxu0 %v10553_v34 }
 0xd9e   : > { %1536 = vst.msk [vmem:[#allocation2 + $0x208] sm:$0xff] %vm418_vm0, %v11527_v23  ;;  %v10322_v24 = vpack.i.bf16 %v11527_v23, %v11519_v18  ;;  %1706 = vmatpush1.bf16.msra.mxu0 %v10551_v33  ;;  %v10566_v33 = vld [vmem:[#allocation5 + $0xc4] ss:$8 sps:$4 sm:$0xff]  }
 0xd9f   : > { %1707 = vmatprep.subr.bf16.mxu0 %v10556_v44 }
 0xda0   : > { %10323 = vrot.lane.b32.xlu1 %v10322_v24, %s11146_s26  ;;  %v10563_v24 = vld [vmem:[#allocation5 + $0xd4] ss:$8 sps:$4 sm:$0xff]  }
 0xda1   : > { %1910 = vmatprep.subr.bf16.mxu1 %v10563_v24 }
 0xda2   : > { %1708 = vmatpush1.bf16.msra.mxu0 %v10554_v43 }
 0xda3   : > { %9818 = vmatprep.subr.bf16.mxu0 %v11143_v0 }
 0xe12   : > { %v10324_v25 = vpop.permute.xlu1 %10323 }
 0xe13   : > { %v10326_v28 = vunpack.i.h.bf16 %v10324_v25  ;;  %v10325_v29 = vunpack.i.l.bf16 %v10324_v25  ;;  %v9072_v25 = vld [vmem:[%s12984_s4 + $0x6] ss:$0 sm:$0xff] }
 0xe15   : > { %v1547_v30 = vsel %vm418_vm0, %v1537_v26, %v10325_v29  ;;  %v1548_v31 = vsel %vm418_vm0, %v1538_v27, %v10326_v28 }
 0xe16   : > { %v1549_v32 = vpack.c.bf16 %v1548_v31, %v1547_v30 }
 0xe18   : > { %9815 = vmatmul.mubr.msk.bf16.vlgmr.msra.gmra.mxu1 %vm567_vm2, %v1549_v32  ;;  %v10564_v32 = vld [vmem:[#allocation5 + $0xc0] ss:$8 sps:$4 sm:$0xff]  }
 0xe19   : > { %1930 = vmatprep.mubr.bf16.mxu1 %v11144_v1 }
 0xed8   : > { %v1628_v37 = vpop.f32.mrf.mxu1 }
 0xed9   : > { %v1629_v38 = vadd.f32 %v9059_v35, %v1628_v37 }
 0xeda   : > { %v9816_v39 = vpop.f32.mrf.mxu1 }
 0xedb   : > { %10929 = vtanh.f32 %v1629_v38 }
 0xedc   : > { %v1631_v40 = vpop.f32.mrf.mxu1 }
 0xedd   : > { %v1632_v41 = vadd.f32 %v9059_v35, %v1631_v40 }
 0xede   : > { %v9817_v42 = vpop.f32.mrf.mxu1 }
 0xedf   : > { %10931 = vtanh.f32 %v1632_v41 }
 0xee8   : > { %v10930_v45 = vpop.eup %10929 }
 0xee9   : > { %v1637_v46 = vmul.f32 0.5, %v10930_v45 }
 0xeeb   : > { %v1639_v48 = vadd.f32 0.5, %v1637_v46  ;;  %v10567_v46 = vld [vmem:[#allocation3 + $0xf8] sm:$0xff]  }
 0xeec   : > { %v10932_v49 = vpop.eup %10931 }
 0xeed   : > { %1643 = vrot.lane.b32.xlu0 %v1639_v48, %s11147_s29  ;;  %v1638_v50 = vmul.f32 0.5, %v10932_v49  ;;  %v10568_v48 = vld [vmem:[#allocation3 + $0xf0] sm:$0xff]  }
 0xeef   : > { %v1640_v47 = vadd.f32 0.5, %v1638_v50  ;;  %v9078_v50 = vld [vmem:[%s12986_s6 + $0xc] sm:$0x3] }
 0xef1   : > { %1645 = vrot.lane.b32.xlu1 %v1640_v47, %s11147_s29  ;;  %v1868_v47 = vrot.slane %v9078_v50, %v11382_v36 }
 0xf5f   : > { %v1644_v51 = vpop.permute.xlu0 %1643 }
 0xf60   : > { %v1649_v54 = vmul.f32 %v10930_v45, %v1644_v51  ;;  %v1872_v51 = vrot.slane %v9078_v50, %v11341_v52 }
 0xf63   : > { %v1646_v53 = vpop.permute.xlu1 %1645 }
 0xf64   : > { %v1650_v55 = vmul.f32 %v10932_v49, %v1646_v53  ;;  %v10569_v49 = vld [vmem:[#allocation3 + $0xe8] sm:$0xff]  }
 0xf66   : > { %v1651_v56 = vpack.c.bf16 %v1650_v55, %v1649_v54  ;;  %v10570_v54 = vld [vmem:[#allocation3 + $0xe0] sm:$0xff]  }
 0xf68   : > { %9070 = vmatmul.mubr.msk.bf16.vlgmr.msra.gmra.mxu0 %vm418_vm0, %v1651_v56 }
 0xf69   : > { %9826 = vmatprep.mubr.msk.bf16.mxu0 %vm11145_vm1, %v11143_v0  ;;  %9819 = vmatpush3.bf16.msra.mxu0 %v10557_v57 }
 0xf6a   : > { %9820 = vmatprep.subr.bf16.mxu0 %v11143_v0 }
 0xf6d   : > { %9821 = vmatpush3.bf16.msra.mxu0 %v10558_v58 }
 0xf6e   : > { %9822 = vmatprep.subr.bf16.mxu0 %v11143_v0 }
 0xf71   : > { %9823 = vmatpush3.bf16.msra.mxu0 %v10559_v59 }
 0xf72   : > { %9824 = vmatprep.subr.bf16.mxu0 %v11143_v0 }
 0xf75   : > { %9825 = vmatpush3.bf16.msra.mxu0 %v10560_v3 }
0x1028   : > { %v1727_v2 = vpop.f32.mrf.mxu0 }
0x1029   : > { %v1728_v4 = vadd.f32 %v1727_v2, %v1663_v61 }
0x102a   : > { %v1729_v63 = vpop.f32.mrf.mxu0 }
0x102b   : > { %v11556_v5 = vadd.f32 %v1728_v4, %v11516_v15  ;;  %v1730_v6 = vadd.f32 %v1729_v63, %v1667_v62 }
0x102c   : > { %v1731_v7 = vpop.f32.mrf.mxu0 }
0x102d   : > { %v11559_v8 = vadd.f32 %v1730_v6, %v11519_v18  ;;  %v1732_v9 = vadd.f32 %v1731_v7, %v1663_v61  ;;  %v1947_v6 = vld [vmem:[#allocation2 + $0x180] sm:$0xff]  ;;  %v1948_v7 = vld [vmem:[#allocation2 + $0x188] sm:$0xff] }
0x102e   : > { %v1733_v10 = vpop.f32.mrf.mxu0 }
0x102f   : > { %1740 = vst.msk [vmem:[#allocation2 + $0x200] sm:$0xff] %vm418_vm0, %v11559_v8  ;;  %v11564_v11 = vadd.f32 %v1732_v9, %v11524_v21  ;;  %v1734_v12 = vadd.f32 %v1733_v10, %v1667_v62 }
0x1031   : > { %v11567_v13 = vadd.f32 %v1734_v12, %v11527_v23  ;;  %v10561_v23 = vld [vmem:[#allocation5 + $0xd0] ss:$8 sps:$4 sm:$0xff]  }
0x1032   : > { %1911 = vmatpush1.bf16.msra.mxu1 %v10561_v23  ;;  %v10576_v23 = vld [vmem:[#allocation5 + $0xe4] ss:$8 sps:$4 sm:$0xff]  }
0x1033   : > { %1741 = vst.msk [vmem:[#allocation2 + $0x208] sm:$0xff] %vm418_vm0, %v11567_v13  ;;  %v10327_v14 = vpack.i.bf16 %v11567_v13, %v11559_v8  ;;  %1912 = vmatprep.subr.bf16.mxu1 %v10566_v33 }
0x1035   : > { %10328 = vrot.lane.b32.xlu0 %v10327_v14, %s11146_s26  ;;  %v10573_v14 = vld [vmem:[#allocation5 + $0xf4] ss:$8 sps:$4 sm:$0xff]  }
0x1036   : > { %1913 = vmatpush1.bf16.msra.mxu1 %v10564_v32  ;;  %2115 = vmatprep.subr.bf16.mxu0 %v10573_v14 }
0x1037   : > { %9830 = vmatprep.subr.bf16.mxu1 %v11143_v0 }
0x10a7   : > { %v10329_v15 = vpop.permute.xlu0 %10328 }
0x10a8   : > { %v10331_v18 = vunpack.i.h.bf16 %v10329_v15  ;;  %v10330_v19 = vunpack.i.l.bf16 %v10329_v15  ;;  %v9085_v15 = vld [vmem:[%s12984_s4 + $0x7] ss:$0 sm:$0xff] }
0x10aa   : > { %v1752_v20 = vsel %vm418_vm0, %v1742_v16, %v10330_v19  ;;  %v1753_v21 = vsel %vm418_vm0, %v1743_v17, %v10331_v18 }
0x10ab   : > { %v1754_v22 = vpack.c.bf16 %v1753_v21, %v1752_v20 }
0x10ad   : > { %9827 = vmatmul.mubr.msk.bf16.vlgmr.msra.gmra.mxu0 %vm567_vm2, %v1754_v22  ;;  %v10574_v22 = vld [vmem:[#allocation5 + $0xe0] ss:$8 sps:$4 sm:$0xff]  }
0x10ae   : > { %2135 = vmatprep.mubr.bf16.mxu0 %v11144_v1 }
0x116d   : > { %v1833_v26 = vpop.f32.mrf.mxu0 }
0x116e   : > { %v1834_v27 = vadd.f32 %v9072_v25, %v1833_v26 }
0x116f   : > { %v9828_v28 = vpop.f32.mrf.mxu0 }
0x1170   : > { %10933 = vtanh.f32 %v1834_v27 }
0x1171   : > { %v1836_v29 = vpop.f32.mrf.mxu0 }
0x1172   : > { %v1837_v30 = vadd.f32 %v9072_v25, %v1836_v29 }
0x1173   : > { %v9829_v31 = vpop.f32.mrf.mxu0 }
0x1174   : > { %10935 = vtanh.f32 %v1837_v30 }
0x117d   : > { %v10934_v34 = vpop.eup %10933 }
0x117e   : > { %v1842_v35 = vmul.f32 0.5, %v10934_v34 }
0x1180   : > { %v1844_v37 = vadd.f32 0.5, %v1842_v35  ;;  %v10577_v35 = vld [vmem:[#allocation3 + $0x118] sm:$0xff]  }
0x1181   : > { %v10936_v38 = vpop.eup %10935 }
0x1182   : > { %1848 = vrot.lane.b32.xlu1 %v1844_v37, %s11147_s29  ;;  %v1843_v39 = vmul.f32 0.5, %v10936_v38  ;;  %v10578_v37 = vld [vmem:[#allocation3 + $0x110] sm:$0xff]  }
0x1184   : > { %v1845_v40 = vadd.f32 0.5, %v1843_v39  ;;  %v9091_v39 = vld [vmem:[%s12986_s6 + $0xe] sm:$0x3] }
0x1186   : > { %1850 = vrot.lane.b32.xlu0 %v1845_v40, %s11147_s29  ;;  %v2073_v40 = vrot.slane %v9091_v39, %v11382_v36 }
0x11f4   : > { %v1849_v41 = vpop.permute.xlu1 %1848 }
0x11f5   : > { %v1854_v43 = vmul.f32 %v10934_v34, %v1849_v41  ;;  %v2077_v41 = vrot.slane %v9091_v39, %v11341_v52 }
0x11f8   : > { %v1851_v42 = vpop.permute.xlu0 %1850 }
0x11f9   : > { %v1855_v44 = vmul.f32 %v10936_v38, %v1851_v42  ;;  %v10579_v38 = vld [vmem:[#allocation3 + $0x108] sm:$0xff]  }
0x11fb   : > { %v1856_v45 = vpack.c.bf16 %v1855_v44, %v1854_v43  ;;  %v10580_v43 = vld [vmem:[#allocation3 + $0x100] sm:$0xff]  }
0x11fd   : > { %9083 = vmatmul.mubr.msk.bf16.vlgmr.msra.gmra.mxu1 %vm418_vm0, %v1856_v45 }
0x11fe   : > { %9838 = vmatprep.mubr.msk.bf16.mxu1 %vm11145_vm1, %v11143_v0  ;;  %9831 = vmatpush3.bf16.msra.mxu1 %v10567_v46 }
0x11ff   : > { %9832 = vmatprep.subr.bf16.mxu1 %v11143_v0 }
0x1202   : > { %9833 = vmatpush3.bf16.msra.mxu1 %v10568_v48 }
0x1203   : > { %9834 = vmatprep.subr.bf16.mxu1 %v11143_v0 }
0x1206   : > { %9835 = vmatpush3.bf16.msra.mxu1 %v10569_v49 }
0x1207   : > { %9836 = vmatprep.subr.bf16.mxu1 %v11143_v0 }
0x120a   : > { %9837 = vmatpush3.bf16.msra.mxu1 %v10570_v54 }
0x12bd   : > { %v1932_v53 = vpop.f32.mrf.mxu1 }
0x12be   : > { %v1933_v55 = vadd.f32 %v1932_v53, %v1868_v47 }
0x12bf   : > { %v1934_v56 = vpop.f32.mrf.mxu1 }
0x12c0   : > { %v11596_v57 = vadd.f32 %v1933_v55, %v11556_v5  ;;  %v1935_v58 = vadd.f32 %v1934_v56, %v1872_v51 }
0x12c1   : > { %v1936_v59 = vpop.f32.mrf.mxu1 }
0x12c2   : > { %v11599_v60 = vadd.f32 %v1935_v58, %v11559_v8  ;;  %v1937_v61 = vadd.f32 %v1936_v59, %v1868_v47  ;;  %v2152_v58 = vld [vmem:[#allocation2 + $0x100] sm:$0xff]  ;;  %v2153_v59 = vld [vmem:[#allocation2 + $0x108] sm:$0xff] }
0x12c3   : > { %v1938_v62 = vpop.f32.mrf.mxu1 }
0x12c4   : > { %1945 = vst.msk [vmem:[#allocation2 + $0x200] sm:$0xff] %vm418_vm0, %v11599_v60  ;;  %v11604_v2 = vadd.f32 %v1937_v61, %v11564_v11  ;;  %v1939_v3 = vadd.f32 %v1938_v62, %v1872_v51 }
0x12c6   : > { %v11607_v4 = vadd.f32 %v1939_v3, %v11567_v13  ;;  %v10571_v13 = vld [vmem:[#allocation5 + $0xf0] ss:$8 sps:$4 sm:$0xff]  }
0x12c7   : > { %2116 = vmatpush1.bf16.msra.mxu0 %v10571_v13  ;;  %v10586_v13 = vld [vmem:[#allocation5 + $0x104] ss:$8 sps:$4 sm:$0xff]  }
0x12c8   : > { %1946 = vst.msk [vmem:[#allocation2 + $0x208] sm:$0xff] %vm418_vm0, %v11607_v4  ;;  %v10332_v63 = vpack.i.bf16 %v11607_v4, %v11599_v60  ;;  %2117 = vmatprep.subr.bf16.mxu0 %v10576_v23 }
0x12ca   : > { %10333 = vrot.lane.b32.xlu1 %v10332_v63, %s11146_s26  ;;  %v10583_v63 = vld [vmem:[#allocation5 + $0x114] ss:$8 sps:$4 sm:$0xff]  }
0x12cb   : > { %2118 = vmatpush1.bf16.msra.mxu0 %v10574_v22  ;;  %2320 = vmatprep.subr.bf16.mxu1 %v10583_v63 }
0x12cc   : > { %9842 = vmatprep.subr.bf16.mxu0 %v11143_v0 }
0x133c   : > { %v10334_v5 = vpop.permute.xlu1 %10333 }
0x133d   : > { %v10336_v8 = vunpack.i.h.bf16 %v10334_v5  ;;  %v10335_v9 = vunpack.i.l.bf16 %v10334_v5  ;;  %v9098_v5 = vld [vmem:[%s12984_s4 + $0x8] ss:$0 sm:$0xff] }
0x133f   : > { %v1957_v10 = vsel %vm418_vm0, %v1947_v6, %v10335_v9  ;;  %v1958_v11 = vsel %vm418_vm0, %v1948_v7, %v10336_v8 }
0x1340   : > { %v1959_v12 = vpack.c.bf16 %v1958_v11, %v1957_v10 }
0x1342   : > { %9839 = vmatmul.mubr.msk.bf16.vlgmr.msra.gmra.mxu1 %vm567_vm2, %v1959_v12  ;;  %v10584_v12 = vld [vmem:[#allocation5 + $0x100] ss:$8 sps:$4 sm:$0xff]  }
0x1343   : > { %2340 = vmatprep.mubr.bf16.mxu1 %v11144_v1 }
0x1402   : > { %v2038_v16 = vpop.f32.mrf.mxu1 }
0x1403   : > { %v2039_v17 = vadd.f32 %v9085_v15, %v2038_v16 }
0x1404   : > { %v9840_v18 = vpop.f32.mrf.mxu1 }
0x1405   : > { %10937 = vtanh.f32 %v2039_v17 }
0x1406   : > { %v2041_v19 = vpop.f32.mrf.mxu1 }
0x1407   : > { %v2042_v20 = vadd.f32 %v9085_v15, %v2041_v19 }
0x1408   : > { %v9841_v21 = vpop.f32.mrf.mxu1 }
0x1409   : > { %10939 = vtanh.f32 %v2042_v20 }
0x1412   : > { %v10938_v24 = vpop.eup %10937 }
0x1413   : > { %v2047_v25 = vmul.f32 0.5, %v10938_v24 }
0x1415   : > { %v2049_v26 = vadd.f32 0.5, %v2047_v25  ;;  %v10587_v25 = vld [vmem:[#allocation3 + $0x138] sm:$0xff]  }
0x1416   : > { %v10940_v27 = vpop.eup %10939 }
0x1417   : > { %2053 = vrot.lane.b32.xlu0 %v2049_v26, %s11147_s29  ;;  %v2048_v28 = vmul.f32 0.5, %v10940_v27  ;;  %v10588_v26 = vld [vmem:[#allocation3 + $0x130] sm:$0xff]  }
0x1419   : > { %v2050_v29 = vadd.f32 0.5, %v2048_v28  ;;  %v9104_v28 = vld [vmem:[%s12986_s6 + $0x10] sm:$0x3] }
0x141b   : > { %2055 = vrot.lane.b32.xlu1 %v2050_v29, %s11147_s29  ;;  %v2278_v29 = vrot.slane %v9104_v28, %v11382_v36 }
0x1489   : > { %v2054_v30 = vpop.permute.xlu0 %2053 }
0x148a   : > { %v2059_v32 = vmul.f32 %v10938_v24, %v2054_v30  ;;  %v2282_v30 = vrot.slane %v9104_v28, %v11341_v52 }
0x148d   : > { %v2056_v31 = vpop.permute.xlu1 %2055 }
0x148e   : > { %v2060_v33 = vmul.f32 %v10940_v27, %v2056_v31  ;;  %v10589_v27 = vld [vmem:[#allocation3 + $0x128] sm:$0xff]  }
0x1490   : > { %v2061_v34 = vpack.c.bf16 %v2060_v33, %v2059_v32  ;;  %v10590_v32 = vld [vmem:[#allocation3 + $0x120] sm:$0xff]  }
0x1492   : > { %9096 = vmatmul.mubr.msk.bf16.vlgmr.msra.gmra.mxu0 %vm418_vm0, %v2061_v34 }
0x1493   : > { %9850 = vmatprep.mubr.msk.bf16.mxu0 %vm11145_vm1, %v11143_v0  ;;  %9843 = vmatpush3.bf16.msra.mxu0 %v10577_v35 }
0x1494   : > { %9844 = vmatprep.subr.bf16.mxu0 %v11143_v0 }
0x1497   : > { %9845 = vmatpush3.bf16.msra.mxu0 %v10578_v37 }
0x1498   : > { %9846 = vmatprep.subr.bf16.mxu0 %v11143_v0 }
0x149b   : > { %9847 = vmatpush3.bf16.msra.mxu0 %v10579_v38 }
0x149c   : > { %9848 = vmatprep.subr.bf16.mxu0 %v11143_v0 }
0x149f   : > { %9849 = vmatpush3.bf16.msra.mxu0 %v10580_v43 }
0x1552   : > { %v2137_v42 = vpop.f32.mrf.mxu0 }
0x1553   : > { %v2138_v44 = vadd.f32 %v2137_v42, %v2073_v40 }
0x1554   : > { %v2139_v45 = vpop.f32.mrf.mxu0 }
0x1555   : > { %v11636_v46 = vadd.f32 %v2138_v44, %v11596_v57  ;;  %v2140_v48 = vadd.f32 %v2139_v45, %v2077_v41 }
0x1556   : > { %v2141_v49 = vpop.f32.mrf.mxu0 }
0x1557   : > { %v11639_v50 = vadd.f32 %v2140_v48, %v11599_v60  ;;  %v2142_v47 = vadd.f32 %v2141_v49, %v2073_v40  ;;  %v2357_v48 = vld [vmem:[#allocation2] sm:$0xff]  ;;  %v2358_v49 = vld [vmem:[#allocation2 + $0x8] sm:$0xff] }
0x1558   : > { %v2143_v51 = vpop.f32.mrf.mxu0 }
0x1559   : > { %2150 = vst.msk [vmem:[#allocation2 + $0x200] sm:$0xff] %vm418_vm0, %v11639_v50  ;;  %v11644_v53 = vadd.f32 %v2142_v47, %v11604_v2  ;;  %v2144_v54 = vadd.f32 %v2143_v51, %v2077_v41 }
0x155b   : > { %v11647_v55 = vadd.f32 %v2144_v54, %v11607_v4  ;;  %v10581_v4 = vld [vmem:[#allocation5 + $0x110] ss:$8 sps:$4 sm:$0xff]  }
0x155c   : > { %2321 = vmatpush1.bf16.msra.mxu1 %v10581_v4  ;;  %v10596_v4 = vld [vmem:[#allocation5 + $0x124] ss:$8 sps:$4 sm:$0xff]  }
0x155d   : > { %2151 = vst.msk [vmem:[#allocation2 + $0x208] sm:$0xff] %vm418_vm0, %v11647_v55  ;;  %v10337_v56 = vpack.i.bf16 %v11647_v55, %v11639_v50  ;;  %2322 = vmatprep.subr.bf16.mxu1 %v10586_v13 }
0x155f   : > { %10338 = vrot.lane.b32.xlu0 %v10337_v56, %s11146_s26  ;;  %v10593_v56 = vld [vmem:[#allocation5 + $0x134] ss:$8 sps:$4 sm:$0xff]  }
0x1560   : > { %2323 = vmatpush1.bf16.msra.mxu1 %v10584_v12  ;;  %2525 = vmatprep.subr.bf16.mxu0 %v10593_v56 }
0x1561   : > { %9854 = vmatprep.subr.bf16.mxu1 %v11143_v0 }
0x15d1   : > { %v10339_v57 = vpop.permute.xlu0 %10338 }
0x15d2   : > { %v10341_v60 = vunpack.i.h.bf16 %v10339_v57  ;;  %v10340_v61 = vunpack.i.l.bf16 %v10339_v57  ;;  %v9111_v57 = vld [vmem:[%s12984_s4 + $0x9] ss:$0 sm:$0xff] }
0x15d4   : > { %v2162_v62 = vsel %vm418_vm0, %v2152_v58, %v10340_v61  ;;  %v2163_v2 = vsel %vm418_vm0, %v2153_v59, %v10341_v60 }
0x15d5   : > { %v2164_v3 = vpack.c.bf16 %v2163_v2, %v2162_v62 }
0x15d7   : > { %9851 = vmatmul.mubr.msk.bf16.vlgmr.msra.gmra.mxu0 %vm567_vm2, %v2164_v3  ;;  %v10594_v3 = vld [vmem:[#allocation5 + $0x120] ss:$8 sps:$4 sm:$0xff]  }
0x15d8   : > { %2545 = vmatprep.mubr.bf16.mxu0 %v11144_v1 }
0x1697   : > { %v2243_v6 = vpop.f32.mrf.mxu0 }
0x1698   : > { %v2244_v7 = vadd.f32 %v9098_v5, %v2243_v6 }
0x1699   : > { %v9852_v8 = vpop.f32.mrf.mxu0 }
0x169a   : > { %10941 = vtanh.f32 %v2244_v7 }
0x169b   : > { %v2246_v9 = vpop.f32.mrf.mxu0 }
0x169c   : > { %v2247_v10 = vadd.f32 %v9098_v5, %v2246_v9 }
0x169d   : > { %v9853_v11 = vpop.f32.mrf.mxu0 }
0x169e   : > { %10943 = vtanh.f32 %v2247_v10 }
0x16a7   : > { %v10942_v14 = vpop.eup %10941 }
0x16a8   : > { %v2252_v15 = vmul.f32 0.5, %v10942_v14 }
0x16aa   : > { %v2254_v16 = vadd.f32 0.5, %v2252_v15  ;;  %v10597_v15 = vld [vmem:[#allocation3 + $0x158] sm:$0xff]  }
0x16ab   : > { %v10944_v17 = vpop.eup %10943 }
0x16ac   : > { %2258 = vrot.lane.b32.xlu1 %v2254_v16, %s11147_s29  ;;  %v2253_v18 = vmul.f32 0.5, %v10944_v17  ;;  %v10598_v16 = vld [vmem:[#allocation3 + $0x150] sm:$0xff]  }
0x16ae   : > { %v2255_v19 = vadd.f32 0.5, %v2253_v18  ;;  %v9117_v18 = vld [vmem:[%s12986_s6 + $0x12] sm:$0x3] }
0x16b0   : > { %2260 = vrot.lane.b32.xlu0 %v2255_v19, %s11147_s29  ;;  %v2483_v19 = vrot.slane %v9117_v18, %v11382_v36 }
0x171e   : > { %v2259_v20 = vpop.permute.xlu1 %2258 }
0x171f   : > { %v2264_v22 = vmul.f32 %v10942_v14, %v2259_v20  ;;  %v2487_v20 = vrot.slane %v9117_v18, %v11341_v52 }
0x1722   : > { %v2261_v21 = vpop.permute.xlu0 %2260 }
0x1723   : > { %v2265_v23 = vmul.f32 %v10944_v17, %v2261_v21  ;;  %v10599_v17 = vld [vmem:[#allocation3 + $0x148] sm:$0xff]  }
0x1725   : > { %v2266_v24 = vpack.c.bf16 %v2265_v23, %v2264_v22  ;;  %v10600_v22 = vld [vmem:[#allocation3 + $0x140] sm:$0xff]  }
0x1727   : > { %9109 = vmatmul.mubr.msk.bf16.vlgmr.msra.gmra.mxu1 %vm418_vm0, %v2266_v24 }
0x1728   : > { %9862 = vmatprep.mubr.msk.bf16.mxu1 %vm11145_vm1, %v11143_v0  ;;  %9855 = vmatpush3.bf16.msra.mxu1 %v10587_v25 }
0x1729   : > { %9856 = vmatprep.subr.bf16.mxu1 %v11143_v0 }
0x172c   : > { %9857 = vmatpush3.bf16.msra.mxu1 %v10588_v26 }
0x172d   : > { %9858 = vmatprep.subr.bf16.mxu1 %v11143_v0 }
0x1730   : > { %9859 = vmatpush3.bf16.msra.mxu1 %v10589_v27 }
0x1731   : > { %9860 = vmatprep.subr.bf16.mxu1 %v11143_v0 }
0x1734   : > { %9861 = vmatpush3.bf16.msra.mxu1 %v10590_v32 }
0x17e7   : > { %v2342_v31 = vpop.f32.mrf.mxu1 }
0x17e8   : > { %v2343_v33 = vadd.f32 %v2342_v31, %v2278_v29 }
0x17e9   : > { %v2344_v34 = vpop.f32.mrf.mxu1 }
0x17ea   : > { %v11676_v35 = vadd.f32 %v2343_v33, %v11636_v46  ;;  %v2345_v37 = vadd.f32 %v2344_v34, %v2282_v30 }
0x17eb   : > { %v2346_v38 = vpop.f32.mrf.mxu1 }
0x17ec   : > { %v11679_v39 = vadd.f32 %v2345_v37, %v11639_v50  ;;  %v2347_v40 = vadd.f32 %v2346_v38, %v2278_v29 }
0x17ed   : > { %v2348_v41 = vpop.f32.mrf.mxu1 }
0x17ee   : > { %2355 = vst.msk [vmem:[#allocation2 + $0x200] sm:$0xff] %vm418_vm0, %v11679_v39  ;;  %v11684_v42 = vadd.f32 %v2347_v40, %v11644_v53  ;;  %v2349_v43 = vadd.f32 %v2348_v41, %v2282_v30 }
0x17f0   : > { %v11687_v44 = vadd.f32 %v2349_v43, %v11647_v55  ;;  %v10591_v55 = vld [vmem:[#allocation5 + $0x130] ss:$8 sps:$4 sm:$0xff]  }
0x17f1   : > { %2526 = vmatpush1.bf16.msra.mxu0 %v10591_v55  ;;  %v10606_v55 = vld [vmem:[#allocation5 + $0x144] ss:$8 sps:$4 sm:$0xff]  }
0x17f2   : > { %2356 = vst.msk [vmem:[#allocation2 + $0x208] sm:$0xff] %vm418_vm0, %v11687_v44  ;;  %v10342_v45 = vpack.i.bf16 %v11687_v44, %v11679_v39  ;;  %2527 = vmatprep.subr.bf16.mxu0 %v10596_v4 }
0x17f4   : > { %10343 = vrot.lane.b32.xlu1 %v10342_v45, %s11146_s26  ;;  %v10603_v45 = vld [vmem:[#allocation5 + $0x154] ss:$8 sps:$4 sm:$0xff]  }
0x17f5   : > { %2528 = vmatpush1.bf16.msra.mxu0 %v10594_v3  ;;  %2730 = vmatprep.subr.bf16.mxu1 %v10603_v45 }
0x17f6   : > { %9866 = vmatprep.subr.bf16.mxu0 %v11143_v0 }
0x1866   : > { %v10344_v46 = vpop.permute.xlu1 %10343 }
0x1867   : > { %v10346_v50 = vunpack.i.h.bf16 %v10344_v46  ;;  %v10345_v47 = vunpack.i.l.bf16 %v10344_v46  ;;  %v9124_v46 = vld [vmem:[%s12984_s4 + $0xa] ss:$0 sm:$0xff] }
0x1869   : > { %v2367_v51 = vsel %vm418_vm0, %v2357_v48, %v10345_v47  ;;  %v2368_v53 = vsel %vm418_vm0, %v2358_v49, %v10346_v50 }
0x186a   : > { %v2369_v54 = vpack.c.bf16 %v2368_v53, %v2367_v51 }
0x186c   : > { %9863 = vmatmul.mubr.msk.bf16.vlgmr.msra.gmra.mxu1 %vm567_vm2, %v2369_v54  ;;  %v10604_v54 = vld [vmem:[#allocation5 + $0x140] ss:$8 sps:$4 sm:$0xff]  }
0x186d   : > { %2750 = vmatprep.mubr.bf16.mxu1 %v11144_v1 }
0x192c   : > { %v2448_v58 = vpop.f32.mrf.mxu1 }
0x192d   : > { %v2449_v59 = vadd.f32 %v9111_v57, %v2448_v58 }
0x192e   : > { %v9864_v60 = vpop.f32.mrf.mxu1 }
0x192f   : > { %10945 = vtanh.f32 %v2449_v59 }
0x1930   : > { %v2451_v61 = vpop.f32.mrf.mxu1 }
0x1931   : > { %v2452_v62 = vadd.f32 %v9111_v57, %v2451_v61 }
0x1932   : > { %v9865_v2 = vpop.f32.mrf.mxu1 }
0x1933   : > { %10947 = vtanh.f32 %v2452_v62 }
0x193c   : > { %v10946_v63 = vpop.eup %10945 }
0x193d   : > { %v2457_v5 = vmul.f32 0.5, %v10946_v63 }
0x193f   : > { %v2459_v6 = vadd.f32 0.5, %v2457_v5  ;;  %v10607_v5 = vld [vmem:[#allocation3 + $0x178] sm:$0xff]  }
0x1940   : > { %v10948_v7 = vpop.eup %10947 }
0x1941   : > { %2463 = vrot.lane.b32.xlu0 %v2459_v6, %s11147_s29  ;;  %v2458_v8 = vmul.f32 0.5, %v10948_v7  ;;  %v10608_v6 = vld [vmem:[#allocation3 + $0x170] sm:$0xff]  }
0x1943   : > { %v2460_v9 = vadd.f32 0.5, %v2458_v8  ;;  %v9130_v8 = vld [vmem:[%s12986_s6 + $0x14] sm:$0x3] }
0x1945   : > { %2465 = vrot.lane.b32.xlu1 %v2460_v9, %s11147_s29  ;;  %v2688_v9 = vrot.slane %v9130_v8, %v11382_v36 }
0x19b3   : > { %v2464_v10 = vpop.permute.xlu0 %2463 }
0x19b4   : > { %v2469_v12 = vmul.f32 %v10946_v63, %v2464_v10  ;;  %v2692_v10 = vrot.slane %v9130_v8, %v11341_v52 }
0x19b7   : > { %v2466_v11 = vpop.permute.xlu1 %2465 }
0x19b8   : > { %v2470_v13 = vmul.f32 %v10948_v7, %v2466_v11  ;;  %v10609_v7 = vld [vmem:[#allocation3 + $0x168] sm:$0xff]  }
0x19ba   : > { %v2471_v14 = vpack.c.bf16 %v2470_v13, %v2469_v12  ;;  %v10610_v12 = vld [vmem:[#allocation3 + $0x160] sm:$0xff]  }
0x19bc   : > { %9122 = vmatmul.mubr.msk.bf16.vlgmr.msra.gmra.mxu0 %vm418_vm0, %v2471_v14 }
0x19bd   : > { %9874 = vmatprep.mubr.msk.bf16.mxu0 %vm11145_vm1, %v11143_v0  ;;  %9867 = vmatpush3.bf16.msra.mxu0 %v10597_v15 }
0x19be   : > { %9868 = vmatprep.subr.bf16.mxu0 %v11143_v0 }
0x19c1   : > { %9869 = vmatpush3.bf16.msra.mxu0 %v10598_v16 }
0x19c2   : > { %9870 = vmatprep.subr.bf16.mxu0 %v11143_v0 }
0x19c5   : > { %9871 = vmatpush3.bf16.msra.mxu0 %v10599_v17 }
0x19c6   : > { %9872 = vmatprep.subr.bf16.mxu0 %v11143_v0 }
0x19c9   : > { %9873 = vmatpush3.bf16.msra.mxu0 %v10600_v22 }
0x1a7c   : > { %v2547_v21 = vpop.f32.mrf.mxu0 }
0x1a7d   : > { %v2548_v23 = vadd.f32 %v2547_v21, %v2483_v19 }
0x1a7e   : > { %v2549_v24 = vpop.f32.mrf.mxu0 }
0x1a7f   : > { %v11716_v25 = vadd.f32 %v2548_v23, %v11676_v35  ;;  %v2550_v26 = vadd.f32 %v2549_v24, %v2487_v20 }
0x1a80   : > { %v2551_v27 = vpop.f32.mrf.mxu0 }
0x1a81   : > { %v11719_v28 = vadd.f32 %v2550_v26, %v11679_v39  ;;  %v2552_v29 = vadd.f32 %v2551_v27, %v2483_v19 }
0x1a82   : > { %v2553_v30 = vpop.f32.mrf.mxu0 }
0x1a83   : > { %2560 = vst.msk [vmem:[#allocation2 + $0x200] sm:$0xff] %vm418_vm0, %v11719_v28  ;;  %v11724_v31 = vadd.f32 %v2552_v29, %v11684_v42  ;;  %v2554_v32 = vadd.f32 %v2553_v30, %v2487_v20 }
0x1a85   : > { %v11727_v33 = vadd.f32 %v2554_v32, %v11687_v44  ;;  %v10601_v44 = vld [vmem:[#allocation5 + $0x150] ss:$8 sps:$4 sm:$0xff]  }
0x1a86   : > { %2731 = vmatpush1.bf16.msra.mxu1 %v10601_v44  ;;  %v10616_v44 = vld [vmem:[#allocation5 + $0x164] ss:$8 sps:$4 sm:$0xff]  }
0x1a87   : > { %2561 = vst.msk [vmem:[#allocation2 + $0x208] sm:$0xff] %vm418_vm0, %v11727_v33  ;;  %v10347_v34 = vpack.i.bf16 %v11727_v33, %v11719_v28  ;;  %2732 = vmatprep.subr.bf16.mxu1 %v10606_v55 }
0x1a89   : > { %10348 = vrot.lane.b32.xlu0 %v10347_v34, %s11146_s26  ;;  %v10613_v34 = vld [vmem:[#allocation5 + $0x174] ss:$8 sps:$4 sm:$0xff]  }
0x1a8a   : > { %v2562_v39 = vld [vmem:[#allocation2 + $0x1ff] sm:$0xff]  ;;  %2733 = vmatpush1.bf16.msra.mxu1 %v10604_v54  ;;  %2935 = vmatprep.subr.bf16.mxu0 %v10613_v34 }
0x1a8b   : > { %9878 = vmatprep.subr.bf16.mxu1 %v11143_v0 }
0x1a8e   : > { %v2563_v40 = vld [vmem:[#allocation2 + $0x207] sm:$0xff] }
0x1afb   : > { %v10349_v35 = vpop.permute.xlu0 %10348 }
0x1afc   : > { %v10351_v37 = vunpack.i.h.bf16 %v10349_v35  ;;  %v10350_v38 = vunpack.i.l.bf16 %v10349_v35  ;;  %v9137_v35 = vld [vmem:[%s12984_s4 + $0xb] ss:$0 sm:$0xff] }
0x1afe   : > { %v2572_v41 = vsel %vm418_vm0, %v2562_v39, %v10350_v38  ;;  %v2573_v42 = vsel %vm418_vm0, %v2563_v40, %v10351_v37 }
0x1aff   : > { %v2574_v43 = vpack.c.bf16 %v2573_v42, %v2572_v41 }
0x1b01   : > { %9875 = vmatmul.mubr.msk.bf16.vlgmr.msra.gmra.mxu0 %vm567_vm2, %v2574_v43  ;;  %v10614_v43 = vld [vmem:[#allocation5 + $0x160] ss:$8 sps:$4 sm:$0xff]  }
0x1b02   : > { %2955 = vmatprep.mubr.bf16.mxu0 %v11144_v1 }
0x1bc1   : > { %v2653_v48 = vpop.f32.mrf.mxu0 }
0x1bc2   : > { %v2654_v49 = vadd.f32 %v9124_v46, %v2653_v48 }
0x1bc3   : > { %v9876_v50 = vpop.f32.mrf.mxu0 }
0x1bc4   : > { %10949 = vtanh.f32 %v2654_v49 }
0x1bc5   : > { %v2656_v47 = vpop.f32.mrf.mxu0 }
0x1bc6   : > { %v2657_v51 = vadd.f32 %v9124_v46, %v2656_v47 }
0x1bc7   : > { %v9877_v53 = vpop.f32.mrf.mxu0 }
0x1bc8   : > { %10951 = vtanh.f32 %v2657_v51 }
0x1bd1   : > { %v10950_v56 = vpop.eup %10949 }
0x1bd2   : > { %v2662_v57 = vmul.f32 0.5, %v10950_v56 }
0x1bd4   : > { %v2664_v58 = vadd.f32 0.5, %v2662_v57  ;;  %v10617_v57 = vld [vmem:[#allocation3 + $0x198] sm:$0xff]  }
0x1bd5   : > { %v10952_v59 = vpop.eup %10951 }
0x1bd6   : > { %2668 = vrot.lane.b32.xlu1 %v2664_v58, %s11147_s29  ;;  %v2663_v60 = vmul.f32 0.5, %v10952_v59  ;;  %v10618_v58 = vld [vmem:[#allocation3 + $0x190] sm:$0xff]  }
0x1bd8   : > { %v2665_v61 = vadd.f32 0.5, %v2663_v60  ;;  %v9143_v60 = vld [vmem:[%s12986_s6 + $0x16] sm:$0x3] }
0x1bda   : > { %2670 = vrot.lane.b32.xlu0 %v2665_v61, %s11147_s29  ;;  %v2893_v61 = vrot.slane %v9143_v60, %v11382_v36 }
0x1c48   : > { %v2669_v62 = vpop.permute.xlu1 %2668 }
0x1c49   : > { %v2674_v3 = vmul.f32 %v10950_v56, %v2669_v62  ;;  %v2897_v62 = vrot.slane %v9143_v60, %v11341_v52 }
0x1c4c   : > { %v2671_v2 = vpop.permute.xlu0 %2670 }
0x1c4d   : > { %v2675_v4 = vmul.f32 %v10952_v59, %v2671_v2  ;;  %v10619_v59 = vld [vmem:[#allocation3 + $0x188] sm:$0xff]  }
0x1c4f   : > { %v2676_v63 = vpack.c.bf16 %v2675_v4, %v2674_v3  ;;  %v10620_v3 = vld [vmem:[#allocation3 + $0x180] sm:$0xff]  }
0x1c51   : > { %9135 = vmatmul.mubr.msk.bf16.vlgmr.msra.gmra.mxu1 %vm418_vm0, %v2676_v63 }
0x1c52   : > { %9886 = vmatprep.mubr.msk.bf16.mxu1 %vm11145_vm1, %v11143_v0  ;;  %9879 = vmatpush3.bf16.msra.mxu1 %v10607_v5 }
0x1c53   : > { %9880 = vmatprep.subr.bf16.mxu1 %v11143_v0 }
0x1c56   : > { %9881 = vmatpush3.bf16.msra.mxu1 %v10608_v6 }
0x1c57   : > { %9882 = vmatprep.subr.bf16.mxu1 %v11143_v0 }
0x1c5a   : > { %9883 = vmatpush3.bf16.msra.mxu1 %v10609_v7 }
0x1c5b   : > { %9884 = vmatprep.subr.bf16.mxu1 %v11143_v0 }
0x1c5e   : > { %9885 = vmatpush3.bf16.msra.mxu1 %v10610_v12 }
0x1d11   : > { %v2752_v11 = vpop.f32.mrf.mxu1 }
0x1d12   : > { %v2753_v13 = vadd.f32 %v2752_v11, %v2688_v9 }
0x1d13   : > { %v2754_v14 = vpop.f32.mrf.mxu1 }
0x1d14   : > { %v11756_v15 = vadd.f32 %v2753_v13, %v11716_v25  ;;  %v2755_v16 = vadd.f32 %v2754_v14, %v2692_v10 }
0x1d15   : > { %v2756_v17 = vpop.f32.mrf.mxu1 }
0x1d16   : > { %v11759_v18 = vadd.f32 %v2755_v16, %v11719_v28  ;;  %v2757_v19 = vadd.f32 %v2756_v17, %v2688_v9 }
0x1d17   : > { %v2758_v20 = vpop.f32.mrf.mxu1 }
0x1d18   : > { %2765 = vst.msk [vmem:[#allocation2 + $0x200] sm:$0xff] %vm418_vm0, %v11759_v18  ;;  %v11764_v21 = vadd.f32 %v2757_v19, %v11724_v31  ;;  %v2759_v22 = vadd.f32 %v2758_v20, %v2692_v10 }
0x1d1a   : > { %v11767_v23 = vadd.f32 %v2759_v22, %v11727_v33  ;;  %v10611_v33 = vld [vmem:[#allocation5 + $0x170] ss:$8 sps:$4 sm:$0xff]  }
0x1d1b   : > { %2936 = vmatpush1.bf16.msra.mxu0 %v10611_v33  ;;  %v10626_v33 = vld [vmem:[#allocation5 + $0x184] ss:$8 sps:$4 sm:$0xff]  }
0x1d1c   : > { %2766 = vst.msk [vmem:[#allocation2 + $0x208] sm:$0xff] %vm418_vm0, %v11767_v23  ;;  %v10352_v24 = vpack.i.bf16 %v11767_v23, %v11759_v18  ;;  %2937 = vmatprep.subr.bf16.mxu0 %v10616_v44 }
0x1d1e   : > { %10353 = vrot.lane.b32.xlu1 %v10352_v24, %s11146_s26  ;;  %v10623_v24 = vld [vmem:[#allocation5 + $0x194] ss:$8 sps:$4 sm:$0xff]  }
0x1d1f   : > { %v2767_v28 = vld [vmem:[#allocation2 + $0x1fe] sm:$0xff]  ;;  %2938 = vmatpush1.bf16.msra.mxu0 %v10614_v43  ;;  %3140 = vmatprep.subr.bf16.mxu1 %v10623_v24 }
0x1d20   : > { %9890 = vmatprep.subr.bf16.mxu0 %v11143_v0 }
0x1d23   : > { %v2768_v29 = vld [vmem:[#allocation2 + $0x206] sm:$0xff] }
0x1d90   : > { %v10354_v25 = vpop.permute.xlu1 %10353 }
0x1d91   : > { %v10356_v26 = vunpack.i.h.bf16 %v10354_v25  ;;  %v10355_v27 = vunpack.i.l.bf16 %v10354_v25  ;;  %v9150_v25 = vld [vmem:[%s12984_s4 + $0xc] ss:$0 sm:$0xff] }
0x1d93   : > { %v2777_v30 = vsel %vm418_vm0, %v2767_v28, %v10355_v27  ;;  %v2778_v31 = vsel %vm418_vm0, %v2768_v29, %v10356_v26 }
0x1d94   : > { %v2779_v32 = vpack.c.bf16 %v2778_v31, %v2777_v30 }
0x1d96   : > { %9887 = vmatmul.mubr.msk.bf16.vlgmr.msra.gmra.mxu1 %vm567_vm2, %v2779_v32  ;;  %v10624_v32 = vld [vmem:[#allocation5 + $0x180] ss:$8 sps:$4 sm:$0xff]  }
0x1d97   : > { %3160 = vmatprep.mubr.bf16.mxu1 %v11144_v1 }
0x1e56   : > { %v2858_v37 = vpop.f32.mrf.mxu1 }
0x1e57   : > { %v2859_v38 = vadd.f32 %v9137_v35, %v2858_v37 }
0x1e58   : > { %v9888_v39 = vpop.f32.mrf.mxu1 }
0x1e59   : > { %10953 = vtanh.f32 %v2859_v38 }
0x1e5a   : > { %v2861_v40 = vpop.f32.mrf.mxu1 }
0x1e5b   : > { %v2862_v41 = vadd.f32 %v9137_v35, %v2861_v40 }
0x1e5c   : > { %v9889_v42 = vpop.f32.mrf.mxu1 }
0x1e5d   : > { %10955 = vtanh.f32 %v2862_v41 }
0x1e66   : > { %v10954_v45 = vpop.eup %10953 }
0x1e67   : > { %v2867_v46 = vmul.f32 0.5, %v10954_v45 }
0x1e69   : > { %v2869_v48 = vadd.f32 0.5, %v2867_v46  ;;  %v10627_v46 = vld [vmem:[#allocation3 + $0x1b8] sm:$0xff]  }
0x1e6a   : > { %v10956_v49 = vpop.eup %10955 }
0x1e6b   : > { %2873 = vrot.lane.b32.xlu0 %v2869_v48, %s11147_s29  ;;  %v2868_v50 = vmul.f32 0.5, %v10956_v49  ;;  %v10628_v48 = vld [vmem:[#allocation3 + $0x1b0] sm:$0xff]  }
0x1e6d   : > { %v2870_v47 = vadd.f32 0.5, %v2868_v50  ;;  %v9156_v50 = vld [vmem:[%s12986_s6 + $0x18] sm:$0x3] }
0x1e6f   : > { %2875 = vrot.lane.b32.xlu1 %v2870_v47, %s11147_s29  ;;  %v3098_v47 = vrot.slane %v9156_v50, %v11382_v36 }
0x1edd   : > { %v2874_v51 = vpop.permute.xlu0 %2873 }
0x1ede   : > { %v2879_v54 = vmul.f32 %v10954_v45, %v2874_v51  ;;  %v3102_v51 = vrot.slane %v9156_v50, %v11341_v52 }
0x1ee1   : > { %v2876_v53 = vpop.permute.xlu1 %2875 }
0x1ee2   : > { %v2880_v55 = vmul.f32 %v10956_v49, %v2876_v53  ;;  %v10629_v49 = vld [vmem:[#allocation3 + $0x1a8] sm:$0xff]  }
0x1ee4   : > { %v2881_v56 = vpack.c.bf16 %v2880_v55, %v2879_v54  ;;  %v10630_v54 = vld [vmem:[#allocation3 + $0x1a0] sm:$0xff]  }
0x1ee6   : > { %9148 = vmatmul.mubr.msk.bf16.vlgmr.msra.gmra.mxu0 %vm418_vm0, %v2881_v56 }
0x1ee7   : > { %9898 = vmatprep.mubr.msk.bf16.mxu0 %vm11145_vm1, %v11143_v0  ;;  %9891 = vmatpush3.bf16.msra.mxu0 %v10617_v57 }
0x1ee8   : > { %9892 = vmatprep.subr.bf16.mxu0 %v11143_v0 }
0x1eeb   : > { %9893 = vmatpush3.bf16.msra.mxu0 %v10618_v58 }
0x1eec   : > { %9894 = vmatprep.subr.bf16.mxu0 %v11143_v0 }
0x1eef   : > { %9895 = vmatpush3.bf16.msra.mxu0 %v10619_v59 }
0x1ef0   : > { %9896 = vmatprep.subr.bf16.mxu0 %v11143_v0 }
0x1ef3   : > { %9897 = vmatpush3.bf16.msra.mxu0 %v10620_v3 }
0x1fa6   : > { %v2957_v2 = vpop.f32.mrf.mxu0 }
0x1fa7   : > { %v2958_v4 = vadd.f32 %v2957_v2, %v2893_v61 }
0x1fa8   : > { %v2959_v63 = vpop.f32.mrf.mxu0 }
0x1fa9   : > { %v11796_v5 = vadd.f32 %v2958_v4, %v11756_v15  ;;  %v2960_v6 = vadd.f32 %v2959_v63, %v2897_v62 }
0x1faa   : > { %v2961_v7 = vpop.f32.mrf.mxu0 }
0x1fab   : > { %v11799_v8 = vadd.f32 %v2960_v6, %v11759_v18  ;;  %v2962_v9 = vadd.f32 %v2961_v7, %v2893_v61 }
0x1fac   : > { %v2963_v10 = vpop.f32.mrf.mxu0 }
0x1fad   : > { %2970 = vst.msk [vmem:[#allocation2 + $0x200] sm:$0xff] %vm418_vm0, %v11799_v8  ;;  %v11804_v11 = vadd.f32 %v2962_v9, %v11764_v21  ;;  %v2964_v12 = vadd.f32 %v2963_v10, %v2897_v62 }
0x1faf   : > { %v11807_v13 = vadd.f32 %v2964_v12, %v11767_v23  ;;  %v10621_v23 = vld [vmem:[#allocation5 + $0x190] ss:$8 sps:$4 sm:$0xff]  }
0x1fb0   : > { %3141 = vmatpush1.bf16.msra.mxu1 %v10621_v23  ;;  %v10636_v23 = vld [vmem:[#allocation5 + $0x1a4] ss:$8 sps:$4 sm:$0xff]  }
0x1fb1   : > { %2971 = vst.msk [vmem:[#allocation2 + $0x208] sm:$0xff] %vm418_vm0, %v11807_v13  ;;  %v10357_v14 = vpack.i.bf16 %v11807_v13, %v11799_v8  ;;  %3142 = vmatprep.subr.bf16.mxu1 %v10626_v33 }
0x1fb3   : > { %10358 = vrot.lane.b32.xlu0 %v10357_v14, %s11146_s26  ;;  %v10633_v14 = vld [vmem:[#allocation5 + $0x1b4] ss:$8 sps:$4 sm:$0xff]  }
0x1fb4   : > { %v2972_v18 = vld [vmem:[#allocation2 + $0x1fc] sm:$0xff]  ;;  %3143 = vmatpush1.bf16.msra.mxu1 %v10624_v32  ;;  %3345 = vmatprep.subr.bf16.mxu0 %v10633_v14 }
0x1fb5   : > { %9902 = vmatprep.subr.bf16.mxu1 %v11143_v0 }
0x1fb8   : > { %v2973_v19 = vld [vmem:[#allocation2 + $0x204] sm:$0xff] }
0x2025   : > { %v10359_v15 = vpop.permute.xlu0 %10358 }
0x2026   : > { %v10361_v16 = vunpack.i.h.bf16 %v10359_v15  ;;  %v10360_v17 = vunpack.i.l.bf16 %v10359_v15  ;;  %v9163_v15 = vld [vmem:[%s12984_s4 + $0xd] ss:$0 sm:$0xff] }
0x2028   : > { %v2982_v20 = vsel %vm418_vm0, %v2972_v18, %v10360_v17  ;;  %v2983_v21 = vsel %vm418_vm0, %v2973_v19, %v10361_v16 }
0x2029   : > { %v2984_v22 = vpack.c.bf16 %v2983_v21, %v2982_v20 }
0x202b   : > { %9899 = vmatmul.mubr.msk.bf16.vlgmr.msra.gmra.mxu0 %vm567_vm2, %v2984_v22  ;;  %v10634_v22 = vld [vmem:[#allocation5 + $0x1a0] ss:$8 sps:$4 sm:$0xff]  }
0x202c   : > { %3365 = vmatprep.mubr.bf16.mxu0 %v11144_v1 }
0x20eb   : > { %v3063_v26 = vpop.f32.mrf.mxu0 }
0x20ec   : > { %v3064_v27 = vadd.f32 %v9150_v25, %v3063_v26 }
0x20ed   : > { %v9900_v28 = vpop.f32.mrf.mxu0 }
0x20ee   : > { %10957 = vtanh.f32 %v3064_v27 }
0x20ef   : > { %v3066_v29 = vpop.f32.mrf.mxu0 }
0x20f0   : > { %v3067_v30 = vadd.f32 %v9150_v25, %v3066_v29 }
0x20f1   : > { %v9901_v31 = vpop.f32.mrf.mxu0 }
0x20f2   : > { %10959 = vtanh.f32 %v3067_v30 }
0x20fb   : > { %v10958_v34 = vpop.eup %10957 }
0x20fc   : > { %v3072_v35 = vmul.f32 0.5, %v10958_v34 }
0x20fe   : > { %v3074_v37 = vadd.f32 0.5, %v3072_v35  ;;  %v10637_v35 = vld [vmem:[#allocation3 + $0x1d8] sm:$0xff]  }
0x20ff   : > { %v10960_v38 = vpop.eup %10959 }
0x2100   : > { %3078 = vrot.lane.b32.xlu1 %v3074_v37, %s11147_s29  ;;  %v3073_v39 = vmul.f32 0.5, %v10960_v38  ;;  %v10638_v37 = vld [vmem:[#allocation3 + $0x1d0] sm:$0xff]  }
0x2102   : > { %v3075_v40 = vadd.f32 0.5, %v3073_v39  ;;  %v9169_v39 = vld [vmem:[%s12986_s6 + $0x1a] sm:$0x3] }
0x2104   : > { %3080 = vrot.lane.b32.xlu0 %v3075_v40, %s11147_s29  ;;  %v3303_v40 = vrot.slane %v9169_v39, %v11382_v36 }
0x2172   : > { %v3079_v41 = vpop.permute.xlu1 %3078 }
0x2173   : > { %v3084_v43 = vmul.f32 %v10958_v34, %v3079_v41  ;;  %v3307_v41 = vrot.slane %v9169_v39, %v11341_v52 }
0x2176   : > { %v3081_v42 = vpop.permute.xlu0 %3080 }
0x2177   : > { %v3085_v44 = vmul.f32 %v10960_v38, %v3081_v42  ;;  %v10639_v38 = vld [vmem:[#allocation3 + $0x1c8] sm:$0xff]  }
0x2179   : > { %v3086_v45 = vpack.c.bf16 %v3085_v44, %v3084_v43  ;;  %v10640_v43 = vld [vmem:[#allocation3 + $0x1c0] sm:$0xff]  }
0x217b   : > { %9161 = vmatmul.mubr.msk.bf16.vlgmr.msra.gmra.mxu1 %vm418_vm0, %v3086_v45 }
0x217c   : > { %9910 = vmatprep.mubr.msk.bf16.mxu1 %vm11145_vm1, %v11143_v0  ;;  %9903 = vmatpush3.bf16.msra.mxu1 %v10627_v46 }
0x217d   : > { %9904 = vmatprep.subr.bf16.mxu1 %v11143_v0 }
0x2180   : > { %9905 = vmatpush3.bf16.msra.mxu1 %v10628_v48 }
0x2181   : > { %9906 = vmatprep.subr.bf16.mxu1 %v11143_v0 }
0x2184   : > { %9907 = vmatpush3.bf16.msra.mxu1 %v10629_v49 }
0x2185   : > { %9908 = vmatprep.subr.bf16.mxu1 %v11143_v0 }
0x2188   : > { %9909 = vmatpush3.bf16.msra.mxu1 %v10630_v54 }
0x223b   : > { %v3162_v53 = vpop.f32.mrf.mxu1 }
0x223c   : > { %v3163_v55 = vadd.f32 %v3162_v53, %v3098_v47 }
0x223d   : > { %v3164_v56 = vpop.f32.mrf.mxu1 }
0x223e   : > { %v11836_v57 = vadd.f32 %v3163_v55, %v11796_v5  ;;  %v3165_v58 = vadd.f32 %v3164_v56, %v3102_v51  ;;  %v11854_v5 = vld [vmem:[#allocation2 + $0x1f8] sm:$0xff] }
0x223f   : > { %v3166_v59 = vpop.f32.mrf.mxu1 }
0x2240   : > { %v11839_v60 = vadd.f32 %v3165_v58, %v11799_v8  ;;  %v3167_v61 = vadd.f32 %v3166_v59, %v3098_v47 }
0x2241   : > { %v3168_v62 = vpop.f32.mrf.mxu1 }
0x2242   : > { %3175 = vst.msk [vmem:[#allocation2 + $0x200] sm:$0xff] %vm418_vm0, %v11839_v60  ;;  %v11844_v2 = vadd.f32 %v3167_v61, %v11804_v11  ;;  %v3169_v3 = vadd.f32 %v3168_v62, %v3102_v51 }
0x2244   : > { %v11847_v4 = vadd.f32 %v3169_v3, %v11807_v13  ;;  %v10631_v13 = vld [vmem:[#allocation5 + $0x1b0] ss:$8 sps:$4 sm:$0xff]  }
0x2245   : > { %3346 = vmatpush1.bf16.msra.mxu0 %v10631_v13  ;;  %v10641_v3 = vld [vmem:[#allocation5 + $0x1d0] ss:$8 sps:$4 sm:$0xff]  }
0x2246   : > { %3176 = vst.msk [vmem:[#allocation2 + $0x208] sm:$0xff] %vm418_vm0, %v11847_v4  ;;  %v10362_v63 = vpack.i.bf16 %v11847_v4, %v11839_v60  ;;  %3347 = vmatprep.subr.bf16.mxu0 %v10636_v23 }
0x2248   : > { %10363 = vrot.lane.b32.xlu1 %v10362_v63, %s11146_s26  ;;  %v9176_v63 = vld [vmem:[%s12984_s4 + $0xe] ss:$0 sm:$0xff] }
0x2249   : > { %v3178_v9 = vld [vmem:[#allocation2 + $0x200] sm:$0xff]  ;;  %3348 = vmatpush1.bf16.msra.mxu0 %v10634_v22 }
0x224a   : > { %9914 = vmatprep.subr.bf16.mxu0 %v11143_v0 }
0x22ba   : > { %v10364_v6 = vpop.permute.xlu1 %10363 }
0x22bb   : > { %v10366_v7 = vunpack.i.h.bf16 %v10364_v6  ;;  %v10365_v8 = vunpack.i.l.bf16 %v10364_v6 }
0x22bd   : > { %v3187_v10 = vsel %vm418_vm0, %v11854_v5, %v10365_v8  ;;  %v3188_v11 = vsel %vm418_vm0, %v3178_v9, %v10366_v7 }
0x22be   : > { %v3189_v12 = vpack.c.bf16 %v3188_v11, %v3187_v10  ;;  %v10644_v11 = vld [vmem:[#allocation5 + $0x1c0] ss:$8 sps:$4 sm:$0xff]  }
0x22c0   : > { %9911 = vmatmul.mubr.msk.bf16.vlgmr.msra.gmra.mxu1 %vm567_vm2, %v3189_v12  ;;  %v10646_v12 = vld [vmem:[#allocation5 + $0x1c4] ss:$8 sps:$4 sm:$0xff]  }
0x22c1   : > { %3570 = vmatprep.mubr.bf16.mxu1 %v11144_v1 }
0x2380   : > { %v3268_v16 = vpop.f32.mrf.mxu1 }
0x2381   : > { %v3269_v17 = vadd.f32 %v9163_v15, %v3268_v16 }
0x2382   : > { %v9912_v18 = vpop.f32.mrf.mxu1 }
0x2383   : > { %10961 = vtanh.f32 %v3269_v17 }
0x2384   : > { %v3271_v19 = vpop.f32.mrf.mxu1 }
0x2385   : > { %v3272_v20 = vadd.f32 %v9163_v15, %v3271_v19 }
0x2386   : > { %v9913_v21 = vpop.f32.mrf.mxu1 }
0x2387   : > { %10963 = vtanh.f32 %v3272_v20 }
0x2390   : > { %v10962_v24 = vpop.eup %10961 }
0x2391   : > { %v3277_v25 = vmul.f32 0.5, %v10962_v24 }
0x2393   : > { %v3279_v26 = vadd.f32 0.5, %v3277_v25  ;;  %v10648_v25 = vld [vmem:[#allocation3 + $0x1f0] sm:$0xff]  }
0x2394   : > { %v10964_v27 = vpop.eup %10963 }
0x2395   : > { %3283 = vrot.lane.b32.xlu0 %v3279_v26, %s11147_s29  ;;  %v3278_v28 = vmul.f32 0.5, %v10964_v27  ;;  %v10649_v26 = vld [vmem:[#allocation3 + $0x1e8] sm:$0xff]  }
0x2397   : > { %v3280_v29 = vadd.f32 0.5, %v3278_v28 }
0x2399   : > { %3285 = vrot.lane.b32.xlu1 %v3280_v29, %s11147_s29 }
0x2407   : > { %v3284_v30 = vpop.permute.xlu0 %3283 }
0x2408   : > { %v3289_v32 = vmul.f32 %v10962_v24, %v3284_v30  ;;  %v10647_v24 = vld [vmem:[#allocation3 + $0x1f8] sm:$0xff]  }
0x240b   : > { %v3286_v31 = vpop.permute.xlu1 %3285 }
0x240c   : > { %v3290_v33 = vmul.f32 %v10964_v27, %v3286_v31  ;;  %v9182_v27 = vld [vmem:[%s12986_s6 + $0x1c] sm:$0x3]  ;;  %v10650_v31 = vld [vmem:[#allocation3 + $0x1e0] sm:$0xff]  }
0x240d   : > { %v3508_v28 = vrot.slane %v9182_v27, %v11382_v36  ;;  %v3512_v29 = vrot.slane %v9182_v27, %v11341_v52 }
0x240e   : > { %v3291_v34 = vpack.c.bf16 %v3290_v33, %v3289_v32 }
0x2410   : > { %9174 = vmatmul.mubr.msk.bf16.vlgmr.msra.gmra.mxu0 %vm418_vm0, %v3291_v34 }
0x2411   : > { %9922 = vmatprep.mubr.msk.bf16.mxu0 %vm11145_vm1, %v11143_v0  ;;  %9915 = vmatpush3.bf16.msra.mxu0 %v10637_v35 }
0x2412   : > { %9916 = vmatprep.subr.bf16.mxu0 %v11143_v0 }
0x2415   : > { %9917 = vmatpush3.bf16.msra.mxu0 %v10638_v37 }
0x2416   : > { %9918 = vmatprep.subr.bf16.mxu0 %v11143_v0 }
0x2419   : > { %9919 = vmatpush3.bf16.msra.mxu0 %v10639_v38 }
0x241a   : > { %9920 = vmatprep.subr.bf16.mxu0 %v11143_v0 }
0x241d   : > { %9921 = vmatpush3.bf16.msra.mxu0 %v10640_v43 }
0x24d0   : > { %v3367_v42 = vpop.f32.mrf.mxu0 }
0x24d1   : > { %v3368_v44 = vadd.f32 %v3367_v42, %v3303_v40 }
0x24d2   : > { %v3369_v45 = vpop.f32.mrf.mxu0 }
0x24d3   : > { %v11879_v46 = vadd.f32 %v3368_v44, %v11836_v57  ;;  %v3370_v48 = vadd.f32 %v3369_v45, %v3307_v41  ;;  %v3382_v57 = vld [vmem:[#allocation2 + $0x1f0] sm:$0xff]  ;;  %v3587_v45 = vld [vmem:[#allocation2 + $0x1e0] sm:$0xff] }
0x24d4   : > { %v3371_v49 = vpop.f32.mrf.mxu0 }
0x24d5   : > { %v11882_v50 = vadd.f32 %v3370_v48, %v11839_v60  ;;  %v3372_v47 = vadd.f32 %v3371_v49, %v3303_v40 }
0x24d6   : > { %v3373_v51 = vpop.f32.mrf.mxu0 }
0x24d7   : > { %3380 = vst.msk [vmem:[#allocation2 + $0x200] sm:$0xff] %vm418_vm0, %v11882_v50  ;;  %v11887_v53 = vadd.f32 %v3372_v47, %v11844_v2  ;;  %v3374_v54 = vadd.f32 %v3373_v51, %v3307_v41 }
0x24d9   : > { %v11890_v55 = vadd.f32 %v3374_v54, %v11847_v4  ;;  %v10643_v4 = vld [vmem:[#allocation5 + $0x1d4] ss:$8 sps:$4 sm:$0xff]   ;;  %v10651_v54 = vld [vmem:[#allocation5 + $0x1f0] ss:$8 sps:$4 sm:$0xff]  }
0x24da   : > { %3550 = vmatprep.subr.bf16.mxu1 %v10643_v4 }
0x24db   : > { %3381 = vst.msk [vmem:[#allocation2 + $0x208] sm:$0xff] %vm418_vm0, %v11890_v55  ;;  %v10367_v56 = vpack.i.bf16 %v11890_v55, %v11882_v50  ;;  %3551 = vmatpush1.bf16.msra.mxu1 %v10641_v3  ;;  %v10656_v3 = vld [vmem:[#allocation5 + $0x1e4] ss:$8 sps:$4 sm:$0xff]  }
0x24dc   : > { %3552 = vmatprep.subr.bf16.mxu1 %v10646_v12 }
0x24dd   : > { %10368 = vrot.lane.b32.xlu0 %v10367_v56, %s11146_s26  ;;  %v9189_v56 = vld [vmem:[%s12984_s4 + $0xf] ss:$0 sm:$0xff] }
0x24df   : > { %3553 = vmatpush1.bf16.msra.mxu1 %v10644_v11 }
0x24e0   : > { %9926 = vmatprep.subr.bf16.mxu1 %v11143_v0 }
0x254f   : > { %v10369_v58 = vpop.permute.xlu0 %10368 }
0x2550   : > { %v10371_v59 = vunpack.i.h.bf16 %v10369_v58  ;;  %v10370_v60 = vunpack.i.l.bf16 %v10369_v58 }
0x2552   : > { %v3393_v61 = vsel %vm418_vm0, %v11854_v5, %v10371_v59  ;;  %v3392_v62 = vsel %vm418_vm0, %v3382_v57, %v10370_v60 }
0x2553   : > { %v3394_v2 = vpack.c.bf16 %v3393_v61, %v3392_v62 }
0x2555   : > { %9923 = vmatmul.mubr.msk.bf16.vlgmr.msra.gmra.mxu0 %vm567_vm2, %v3394_v2  ;;  %v10654_v2 = vld [vmem:[#allocation5 + $0x1e0] ss:$8 sps:$4 sm:$0xff]  }
0x2556   : > { %3775 = vmatprep.mubr.bf16.mxu0 %v11144_v1 }
0x2615   : > { %v3473_v6 = vpop.f32.mrf.mxu0 }
0x2616   : > { %v3474_v7 = vadd.f32 %v9176_v63, %v3473_v6 }
0x2617   : > { %v9924_v8 = vpop.f32.mrf.mxu0 }
0x2618   : > { %10965 = vtanh.f32 %v3474_v7 }
0x2619   : > { %v3476_v5 = vpop.f32.mrf.mxu0 }
0x261a   : > { %v3477_v9 = vadd.f32 %v9176_v63, %v3476_v5 }
0x261b   : > { %v9925_v10 = vpop.f32.mrf.mxu0 }
0x261c   : > { %10967 = vtanh.f32 %v3477_v9 }
0x2625   : > { %v10966_v13 = vpop.eup %10965 }
0x2626   : > { %v3482_v14 = vmul.f32 0.5, %v10966_v13 }
0x2628   : > { %v3484_v15 = vadd.f32 0.5, %v3482_v14  ;;  %v10657_v14 = vld [vmem:[#allocation3 + $0x218] sm:$0xff]  }
0x2629   : > { %v10968_v16 = vpop.eup %10967 }
0x262a   : > { %3488 = vrot.lane.b32.xlu1 %v3484_v15, %s11147_s29  ;;  %v3483_v17 = vmul.f32 0.5, %v10968_v16  ;;  %v10658_v15 = vld [vmem:[#allocation3 + $0x210] sm:$0xff]  }
0x262c   : > { %v3485_v18 = vadd.f32 0.5, %v3483_v17  ;;  %v9195_v17 = vld [vmem:[%s12986_s6 + $0x1e] sm:$0x3] }
0x262e   : > { %3490 = vrot.lane.b32.xlu0 %v3485_v18, %s11147_s29  ;;  %v3713_v18 = vrot.slane %v9195_v17, %v11382_v36 }
0x269c   : > { %v3489_v19 = vpop.permute.xlu1 %3488 }
0x269d   : > { %v3494_v21 = vmul.f32 %v10966_v13, %v3489_v19  ;;  %v3717_v19 = vrot.slane %v9195_v17, %v11341_v52 }
0x26a0   : > { %v3491_v20 = vpop.permute.xlu0 %3490 }
0x26a1   : > { %v3495_v22 = vmul.f32 %v10968_v16, %v3491_v20  ;;  %v10659_v16 = vld [vmem:[#allocation3 + $0x208] sm:$0xff]  }
0x26a3   : > { %v3496_v23 = vpack.c.bf16 %v3495_v22, %v3494_v21  ;;  %v10660_v21 = vld [vmem:[#allocation3 + $0x200] sm:$0xff]  }
0x26a5   : > { %9187 = vmatmul.mubr.msk.bf16.vlgmr.msra.gmra.mxu1 %vm418_vm0, %v3496_v23 }
0x26a6   : > { %9934 = vmatprep.mubr.msk.bf16.mxu1 %vm11145_vm1, %v11143_v0  ;;  %9927 = vmatpush3.bf16.msra.mxu1 %v10647_v24 }
0x26a7   : > { %9928 = vmatprep.subr.bf16.mxu1 %v11143_v0 }
0x26aa   : > { %9929 = vmatpush3.bf16.msra.mxu1 %v10648_v25 }
0x26ab   : > { %9930 = vmatprep.subr.bf16.mxu1 %v11143_v0 }
0x26ae   : > { %9931 = vmatpush3.bf16.msra.mxu1 %v10649_v26 }
0x26af   : > { %9932 = vmatprep.subr.bf16.mxu1 %v11143_v0 }
0x26b2   : > { %9933 = vmatpush3.bf16.msra.mxu1 %v10650_v31 }
0x2765   : > { %v3572_v30 = vpop.f32.mrf.mxu1 }
0x2766   : > { %v3573_v32 = vadd.f32 %v3572_v30, %v3508_v28 }
0x2767   : > { %v3574_v33 = vpop.f32.mrf.mxu1 }
0x2768   : > { %v11920_v34 = vadd.f32 %v3573_v32, %v11879_v46  ;;  %v3575_v35 = vadd.f32 %v3574_v33, %v3512_v29  ;;  %v3588_v46 = vld [vmem:[#allocation2 + $0x1e8] sm:$0xff] }
0x2769   : > { %v3576_v37 = vpop.f32.mrf.mxu1 }
0x276a   : > { %v11923_v38 = vadd.f32 %v3575_v35, %v11882_v50  ;;  %v3577_v39 = vadd.f32 %v3576_v37, %v3508_v28  ;;  %v3793_v35 = vld [vmem:[#allocation2 + $0x1c8] sm:$0xff] }
0x276b   : > { %v3578_v40 = vpop.f32.mrf.mxu1 }
0x276c   : > { %3585 = vst.msk [vmem:[#allocation2 + $0x200] sm:$0xff] %vm418_vm0, %v11923_v38  ;;  %v11928_v41 = vadd.f32 %v3577_v39, %v11887_v53  ;;  %v3579_v42 = vadd.f32 %v3578_v40, %v3512_v29 }
0x276e   : > { %v11931_v43 = vadd.f32 %v3579_v42, %v11890_v55  ;;  %v10653_v55 = vld [vmem:[#allocation5 + $0x1f4] ss:$8 sps:$4 sm:$0xff]  }
0x276f   : > { %3755 = vmatprep.subr.bf16.mxu0 %v10653_v55 }
0x2770   : > { %3586 = vst.msk [vmem:[#allocation2 + $0x208] sm:$0xff] %vm418_vm0, %v11931_v43  ;;  %v10372_v44 = vpack.i.bf16 %v11931_v43, %v11923_v38  ;;  %3756 = vmatpush1.bf16.msra.mxu0 %v10651_v54  ;;  %v10666_v54 = vld [vmem:[#allocation5 + $0x204] ss:$8 sps:$4 sm:$0xff]  }
0x2771   : > { %3757 = vmatprep.subr.bf16.mxu0 %v10656_v3 }
0x2772   : > { %10373 = vrot.lane.b32.xlu1 %v10372_v44, %s11146_s26  ;;  %v10663_v44 = vld [vmem:[#allocation5 + $0x214] ss:$8 sps:$4 sm:$0xff]  }
0x2773   : > { %3960 = vmatprep.subr.bf16.mxu1 %v10663_v44 }
0x2774   : > { %3758 = vmatpush1.bf16.msra.mxu0 %v10654_v2 }
0x2775   : > { %9938 = vmatprep.subr.bf16.mxu0 %v11143_v0 }
0x27e4   : > { %v10374_v48 = vpop.permute.xlu1 %10373 }
0x27e5   : > { %v10376_v49 = vunpack.i.h.bf16 %v10374_v48  ;;  %v10375_v50 = vunpack.i.l.bf16 %v10374_v48 }
0x27e7   : > { %v3598_v47 = vsel %vm418_vm0, %v3588_v46, %v10376_v49  ;;  %v3597_v51 = vsel %vm418_vm0, %v3587_v45, %v10375_v50  ;;  %v9202_v45 = vld [vmem:[%s12984_s4 + $0x10] ss:$0 sm:$0xff] }
0x27e8   : > { %v3599_v53 = vpack.c.bf16 %v3598_v47, %v3597_v51 }
0x27ea   : > { %9935 = vmatmul.mubr.msk.bf16.vlgmr.msra.gmra.mxu1 %vm567_vm2, %v3599_v53  ;;  %v10664_v53 = vld [vmem:[#allocation5 + $0x200] ss:$8 sps:$4 sm:$0xff]  }
0x27eb   : > { %3980 = vmatprep.mubr.bf16.mxu1 %v11144_v1 }
0x28aa   : > { %v3678_v57 = vpop.f32.mrf.mxu1 }
0x28ab   : > { %v3679_v58 = vadd.f32 %v9189_v56, %v3678_v57 }
0x28ac   : > { %v9936_v59 = vpop.f32.mrf.mxu1 }
0x28ad   : > { %10969 = vtanh.f32 %v3679_v58 }
0x28ae   : > { %v3681_v60 = vpop.f32.mrf.mxu1 }
0x28af   : > { %v3682_v61 = vadd.f32 %v9189_v56, %v3681_v60 }
0x28b0   : > { %v9937_v62 = vpop.f32.mrf.mxu1 }
0x28b1   : > { %10971 = vtanh.f32 %v3682_v61 }
0x28ba   : > { %v10970_v4 = vpop.eup %10969 }
0x28bb   : > { %v3687_v63 = vmul.f32 0.5, %v10970_v4 }
0x28bd   : > { %v3689_v6 = vadd.f32 0.5, %v3687_v63  ;;  %v10667_v63 = vld [vmem:[#allocation3 + $0x238] sm:$0xff]  }
0x28be   : > { %v10972_v7 = vpop.eup %10971 }
0x28bf   : > { %3693 = vrot.lane.b32.xlu0 %v3689_v6, %s11147_s29  ;;  %v3688_v8 = vmul.f32 0.5, %v10972_v7  ;;  %v10668_v6 = vld [vmem:[#allocation3 + $0x230] sm:$0xff]  }
0x28c1   : > { %v3690_v5 = vadd.f32 0.5, %v3688_v8  ;;  %v9208_v8 = vld [vmem:[%s12986_s6 + $0x20] sm:$0x3] }
0x28c3   : > { %3695 = vrot.lane.b32.xlu1 %v3690_v5, %s11147_s29  ;;  %v3918_v5 = vrot.slane %v9208_v8, %v11382_v36 }
0x2931   : > { %v3694_v9 = vpop.permute.xlu0 %3693 }
0x2932   : > { %v3699_v11 = vmul.f32 %v10970_v4, %v3694_v9  ;;  %v3922_v9 = vrot.slane %v9208_v8, %v11341_v52 }
0x2935   : > { %v3696_v10 = vpop.permute.xlu1 %3695 }
0x2936   : > { %v3700_v12 = vmul.f32 %v10972_v7, %v3696_v10  ;;  %v10669_v7 = vld [vmem:[#allocation3 + $0x228] sm:$0xff]  }
0x2938   : > { %v3701_v13 = vpack.c.bf16 %v3700_v12, %v3699_v11  ;;  %v10670_v11 = vld [vmem:[#allocation3 + $0x220] sm:$0xff]  }
0x293a   : > { %9200 = vmatmul.mubr.msk.bf16.vlgmr.msra.gmra.mxu0 %vm418_vm0, %v3701_v13 }
0x293b   : > { %9946 = vmatprep.mubr.msk.bf16.mxu0 %vm11145_vm1, %v11143_v0  ;;  %9939 = vmatpush3.bf16.msra.mxu0 %v10657_v14 }
0x293c   : > { %9940 = vmatprep.subr.bf16.mxu0 %v11143_v0 }
0x293f   : > { %9941 = vmatpush3.bf16.msra.mxu0 %v10658_v15 }
0x2940   : > { %9942 = vmatprep.subr.bf16.mxu0 %v11143_v0 }
0x2943   : > { %9943 = vmatpush3.bf16.msra.mxu0 %v10659_v16 }
0x2944   : > { %9944 = vmatprep.subr.bf16.mxu0 %v11143_v0 }
0x2947   : > { %9945 = vmatpush3.bf16.msra.mxu0 %v10660_v21 }
0x29fa   : > { %v3777_v20 = vpop.f32.mrf.mxu0 }
0x29fb   : > { %v3778_v22 = vadd.f32 %v3777_v20, %v3713_v18 }
0x29fc   : > { %v3779_v23 = vpop.f32.mrf.mxu0 }
0x29fd   : > { %v11960_v24 = vadd.f32 %v3778_v22, %v11920_v34  ;;  %v3780_v25 = vadd.f32 %v3779_v23, %v3717_v19  ;;  %v3792_v34 = vld [vmem:[#allocation2 + $0x1c0] sm:$0xff] }
0x29fe   : > { %v3781_v26 = vpop.f32.mrf.mxu0 }
0x29ff   : > { %v11963_v27 = vadd.f32 %v3780_v25, %v11923_v38  ;;  %v3782_v28 = vadd.f32 %v3781_v26, %v3713_v18  ;;  %v3998_v25 = vld [vmem:[#allocation2 + $0x188] sm:$0xff] }
0x2a00   : > { %v3783_v29 = vpop.f32.mrf.mxu0 }
0x2a01   : > { %3790 = vst.msk [vmem:[#allocation2 + $0x200] sm:$0xff] %vm418_vm0, %v11963_v27  ;;  %v11968_v30 = vadd.f32 %v3782_v28, %v11928_v41  ;;  %v3784_v31 = vadd.f32 %v3783_v29, %v3717_v19 }
0x2a03   : > { %v11971_v32 = vadd.f32 %v3784_v31, %v11931_v43  ;;  %v10661_v43 = vld [vmem:[#allocation5 + $0x210] ss:$8 sps:$4 sm:$0xff]  }
0x2a04   : > { %3961 = vmatpush1.bf16.msra.mxu1 %v10661_v43  ;;  %v10676_v43 = vld [vmem:[#allocation5 + $0x224] ss:$8 sps:$4 sm:$0xff]  }
0x2a05   : > { %3791 = vst.msk [vmem:[#allocation2 + $0x208] sm:$0xff] %vm418_vm0, %v11971_v32  ;;  %v10377_v33 = vpack.i.bf16 %v11971_v32, %v11963_v27  ;;  %3962 = vmatprep.subr.bf16.mxu1 %v10666_v54 }
0x2a07   : > { %10378 = vrot.lane.b32.xlu0 %v10377_v33, %s11146_s26  ;;  %v10673_v33 = vld [vmem:[#allocation5 + $0x234] ss:$8 sps:$4 sm:$0xff]  }
0x2a08   : > { %3963 = vmatpush1.bf16.msra.mxu1 %v10664_v53  ;;  %4165 = vmatprep.subr.bf16.mxu0 %v10673_v33 }
0x2a09   : > { %9950 = vmatprep.subr.bf16.mxu1 %v11143_v0 }
0x2a79   : > { %v10379_v37 = vpop.permute.xlu0 %10378 }
0x2a7a   : > { %v10381_v38 = vunpack.i.h.bf16 %v10379_v37  ;;  %v10380_v39 = vunpack.i.l.bf16 %v10379_v37 }
0x2a7c   : > { %v3803_v40 = vsel %vm418_vm0, %v3793_v35, %v10381_v38  ;;  %v3802_v41 = vsel %vm418_vm0, %v3792_v34, %v10380_v39  ;;  %v9215_v34 = vld [vmem:[%s12984_s4 + $0x11] ss:$0 sm:$0xff] }
0x2a7d   : > { %v3804_v42 = vpack.c.bf16 %v3803_v40, %v3802_v41 }
0x2a7f   : > { %9947 = vmatmul.mubr.msk.bf16.vlgmr.msra.gmra.mxu0 %vm567_vm2, %v3804_v42  ;;  %v10674_v42 = vld [vmem:[#allocation5 + $0x220] ss:$8 sps:$4 sm:$0xff]  }
0x2a80   : > { %4185 = vmatprep.mubr.bf16.mxu0 %v11144_v1 }
0x2b3f   : > { %v3883_v46 = vpop.f32.mrf.mxu0 }
0x2b40   : > { %v3884_v48 = vadd.f32 %v9202_v45, %v3883_v46 }
0x2b41   : > { %v9948_v49 = vpop.f32.mrf.mxu0 }
0x2b42   : > { %10973 = vtanh.f32 %v3884_v48 }
0x2b43   : > { %v3886_v50 = vpop.f32.mrf.mxu0 }
0x2b44   : > { %v3887_v47 = vadd.f32 %v9202_v45, %v3886_v50 }
0x2b45   : > { %v9949_v51 = vpop.f32.mrf.mxu0 }
0x2b46   : > { %10975 = vtanh.f32 %v3887_v47 }
0x2b4f   : > { %v10974_v55 = vpop.eup %10973 }
0x2b50   : > { %v3892_v56 = vmul.f32 0.5, %v10974_v55 }
0x2b52   : > { %v3894_v57 = vadd.f32 0.5, %v3892_v56  ;;  %v10677_v56 = vld [vmem:[#allocation3 + $0x258] sm:$0xff]  }
0x2b53   : > { %v10976_v58 = vpop.eup %10975 }
0x2b54   : > { %3898 = vrot.lane.b32.xlu1 %v3894_v57, %s11147_s29  ;;  %v3893_v59 = vmul.f32 0.5, %v10976_v58  ;;  %v10678_v57 = vld [vmem:[#allocation3 + $0x250] sm:$0xff]  }
0x2b56   : > { %v3895_v60 = vadd.f32 0.5, %v3893_v59  ;;  %v9221_v59 = vld [vmem:[%s12986_s6 + $0x22] sm:$0x3] }
0x2b58   : > { %3900 = vrot.lane.b32.xlu0 %v3895_v60, %s11147_s29  ;;  %v4123_v60 = vrot.slane %v9221_v59, %v11382_v36 }
0x2bc6   : > { %v3899_v61 = vpop.permute.xlu1 %3898 }
0x2bc7   : > { %v3904_v2 = vmul.f32 %v10974_v55, %v3899_v61  ;;  %v4127_v61 = vrot.slane %v9221_v59, %v11341_v52 }
0x2bca   : > { %v3901_v62 = vpop.permute.xlu0 %3900 }
0x2bcb   : > { %v3905_v3 = vmul.f32 %v10976_v58, %v3901_v62  ;;  %v10679_v58 = vld [vmem:[#allocation3 + $0x248] sm:$0xff]  }
0x2bcd   : > { %v3906_v4 = vpack.c.bf16 %v3905_v3, %v3904_v2  ;;  %v10680_v2 = vld [vmem:[#allocation3 + $0x240] sm:$0xff]  }
0x2bcf   : > { %9213 = vmatmul.mubr.msk.bf16.vlgmr.msra.gmra.mxu1 %vm418_vm0, %v3906_v4 }
0x2bd0   : > { %9958 = vmatprep.mubr.msk.bf16.mxu1 %vm11145_vm1, %v11143_v0  ;;  %9951 = vmatpush3.bf16.msra.mxu1 %v10667_v63 }
0x2bd1   : > { %9952 = vmatprep.subr.bf16.mxu1 %v11143_v0 }
0x2bd4   : > { %9953 = vmatpush3.bf16.msra.mxu1 %v10668_v6 }
0x2bd5   : > { %9954 = vmatprep.subr.bf16.mxu1 %v11143_v0 }
0x2bd8   : > { %9955 = vmatpush3.bf16.msra.mxu1 %v10669_v7 }
0x2bd9   : > { %9956 = vmatprep.subr.bf16.mxu1 %v11143_v0 }
0x2bdc   : > { %9957 = vmatpush3.bf16.msra.mxu1 %v10670_v11 }
0x2c8f   : > { %v3982_v10 = vpop.f32.mrf.mxu1 }
0x2c90   : > { %v3983_v12 = vadd.f32 %v3982_v10, %v3918_v5 }
0x2c91   : > { %v3984_v13 = vpop.f32.mrf.mxu1 }
0x2c92   : > { %v12000_v14 = vadd.f32 %v3983_v12, %v11960_v24  ;;  %v3985_v15 = vadd.f32 %v3984_v13, %v3922_v9  ;;  %v3997_v24 = vld [vmem:[#allocation2 + $0x180] sm:$0xff] }
0x2c93   : > { %v3986_v16 = vpop.f32.mrf.mxu1 }
0x2c94   : > { %v12003_v17 = vadd.f32 %v3985_v15, %v11963_v27  ;;  %v3987_v18 = vadd.f32 %v3986_v16, %v3918_v5  ;;  %v4203_v15 = vld [vmem:[#allocation2 + $0x108] sm:$0xff] }
0x2c95   : > { %v3988_v19 = vpop.f32.mrf.mxu1 }
0x2c96   : > { %3995 = vst.msk [vmem:[#allocation2 + $0x200] sm:$0xff] %vm418_vm0, %v12003_v17  ;;  %v12008_v20 = vadd.f32 %v3987_v18, %v11968_v30  ;;  %v3989_v21 = vadd.f32 %v3988_v19, %v3922_v9 }
0x2c98   : > { %v12011_v22 = vadd.f32 %v3989_v21, %v11971_v32  ;;  %v10671_v32 = vld [vmem:[#allocation5 + $0x230] ss:$8 sps:$4 sm:$0xff]  }
0x2c99   : > { %4166 = vmatpush1.bf16.msra.mxu0 %v10671_v32  ;;  %v10686_v32 = vld [vmem:[#allocation5 + $0x244] ss:$8 sps:$4 sm:$0xff]  }
0x2c9a   : > { %3996 = vst.msk [vmem:[#allocation2 + $0x208] sm:$0xff] %vm418_vm0, %v12011_v22  ;;  %v10382_v23 = vpack.i.bf16 %v12011_v22, %v12003_v17  ;;  %4167 = vmatprep.subr.bf16.mxu0 %v10676_v43 }
0x2c9c   : > { %10383 = vrot.lane.b32.xlu1 %v10382_v23, %s11146_s26  ;;  %v10683_v23 = vld [vmem:[#allocation5 + $0x254] ss:$8 sps:$4 sm:$0xff]  }
0x2c9d   : > { %4168 = vmatpush1.bf16.msra.mxu0 %v10674_v42  ;;  %4370 = vmatprep.subr.bf16.mxu1 %v10683_v23 }
0x2c9e   : > { %9962 = vmatprep.subr.bf16.mxu0 %v11143_v0 }
0x2d0e   : > { %v10384_v26 = vpop.permute.xlu1 %10383 }
0x2d0f   : > { %v10386_v27 = vunpack.i.h.bf16 %v10384_v26  ;;  %v10385_v28 = vunpack.i.l.bf16 %v10384_v26 }
0x2d11   : > { %v4008_v29 = vsel %vm418_vm0, %v3998_v25, %v10386_v27  ;;  %v4007_v30 = vsel %vm418_vm0, %v3997_v24, %v10385_v28  ;;  %v9228_v24 = vld [vmem:[%s12984_s4 + $0x12] ss:$0 sm:$0xff] }
0x2d12   : > { %v4009_v31 = vpack.c.bf16 %v4008_v29, %v4007_v30 }
0x2d14   : > { %9959 = vmatmul.mubr.msk.bf16.vlgmr.msra.gmra.mxu1 %vm567_vm2, %v4009_v31  ;;  %v10684_v31 = vld [vmem:[#allocation5 + $0x240] ss:$8 sps:$4 sm:$0xff]  }
0x2d15   : > { %4390 = vmatprep.mubr.bf16.mxu1 %v11144_v1 }
0x2dd4   : > { %v4088_v35 = vpop.f32.mrf.mxu1 }
0x2dd5   : > { %v4089_v37 = vadd.f32 %v9215_v34, %v4088_v35 }
0x2dd6   : > { %v9960_v38 = vpop.f32.mrf.mxu1 }
0x2dd7   : > { %10977 = vtanh.f32 %v4089_v37 }
0x2dd8   : > { %v4091_v39 = vpop.f32.mrf.mxu1 }
0x2dd9   : > { %v4092_v40 = vadd.f32 %v9215_v34, %v4091_v39 }
0x2dda   : > { %v9961_v41 = vpop.f32.mrf.mxu1 }
0x2ddb   : > { %10979 = vtanh.f32 %v4092_v40 }
0x2de4   : > { %v10978_v44 = vpop.eup %10977 }
0x2de5   : > { %v4097_v45 = vmul.f32 0.5, %v10978_v44 }
0x2de7   : > { %v4099_v46 = vadd.f32 0.5, %v4097_v45  ;;  %v10687_v45 = vld [vmem:[#allocation3 + $0x278] sm:$0xff]  }
0x2de8   : > { %v10980_v48 = vpop.eup %10979 }
0x2de9   : > { %4103 = vrot.lane.b32.xlu0 %v4099_v46, %s11147_s29  ;;  %v4098_v49 = vmul.f32 0.5, %v10980_v48  ;;  %v10688_v46 = vld [vmem:[#allocation3 + $0x270] sm:$0xff]  }
0x2deb   : > { %v4100_v50 = vadd.f32 0.5, %v4098_v49  ;;  %v9234_v49 = vld [vmem:[%s12986_s6 + $0x24] sm:$0x3] }
0x2ded   : > { %4105 = vrot.lane.b32.xlu1 %v4100_v50, %s11147_s29  ;;  %v4328_v50 = vrot.slane %v9234_v49, %v11382_v36 }
0x2e5b   : > { %v4104_v47 = vpop.permute.xlu0 %4103 }
0x2e5c   : > { %v4109_v53 = vmul.f32 %v10978_v44, %v4104_v47  ;;  %v4332_v47 = vrot.slane %v9234_v49, %v11341_v52 }
0x2e5f   : > { %v4106_v51 = vpop.permute.xlu1 %4105 }
0x2e60   : > { %v4110_v54 = vmul.f32 %v10980_v48, %v4106_v51  ;;  %v10689_v48 = vld [vmem:[#allocation3 + $0x268] sm:$0xff]  }
0x2e62   : > { %v4111_v55 = vpack.c.bf16 %v4110_v54, %v4109_v53  ;;  %v10690_v53 = vld [vmem:[#allocation3 + $0x260] sm:$0xff]  }
0x2e64   : > { %9226 = vmatmul.mubr.msk.bf16.vlgmr.msra.gmra.mxu0 %vm418_vm0, %v4111_v55 }
0x2e65   : > { %9970 = vmatprep.mubr.msk.bf16.mxu0 %vm11145_vm1, %v11143_v0  ;;  %9963 = vmatpush3.bf16.msra.mxu0 %v10677_v56 }
0x2e66   : > { %9964 = vmatprep.subr.bf16.mxu0 %v11143_v0 }
0x2e69   : > { %9965 = vmatpush3.bf16.msra.mxu0 %v10678_v57 }
0x2e6a   : > { %9966 = vmatprep.subr.bf16.mxu0 %v11143_v0 }
0x2e6d   : > { %9967 = vmatpush3.bf16.msra.mxu0 %v10679_v58 }
0x2e6e   : > { %9968 = vmatprep.subr.bf16.mxu0 %v11143_v0 }
0x2e71   : > { %9969 = vmatpush3.bf16.msra.mxu0 %v10680_v2 }
0x2f24   : > { %v4187_v62 = vpop.f32.mrf.mxu0 }
0x2f25   : > { %v4188_v3 = vadd.f32 %v4187_v62, %v4123_v60 }
0x2f26   : > { %v4189_v4 = vpop.f32.mrf.mxu0 }
0x2f27   : > { %v12040_v63 = vadd.f32 %v4188_v3, %v12000_v14  ;;  %v4190_v6 = vadd.f32 %v4189_v4, %v4127_v61  ;;  %v4202_v14 = vld [vmem:[#allocation2 + $0x100] sm:$0xff] }
0x2f28   : > { %v4191_v7 = vpop.f32.mrf.mxu0 }
0x2f29   : > { %v12043_v8 = vadd.f32 %v4190_v6, %v12003_v17  ;;  %v4192_v5 = vadd.f32 %v4191_v7, %v4123_v60  ;;  %v4408_v6 = vld [vmem:[#allocation2 + $0x8] sm:$0xff] }
0x2f2a   : > { %v4193_v9 = vpop.f32.mrf.mxu0 }
0x2f2b   : > { %4200 = vst.msk [vmem:[#allocation2 + $0x200] sm:$0xff] %vm418_vm0, %v12043_v8  ;;  %v12048_v10 = vadd.f32 %v4192_v5, %v12008_v20  ;;  %v4194_v11 = vadd.f32 %v4193_v9, %v4127_v61 }
0x2f2d   : > { %v12051_v12 = vadd.f32 %v4194_v11, %v12011_v22  ;;  %v10681_v22 = vld [vmem:[#allocation5 + $0x250] ss:$8 sps:$4 sm:$0xff]  }
0x2f2e   : > { %4371 = vmatpush1.bf16.msra.mxu1 %v10681_v22  ;;  %v10696_v22 = vld [vmem:[#allocation5 + $0x264] ss:$8 sps:$4 sm:$0xff]  }
0x2f2f   : > { %4201 = vst.msk [vmem:[#allocation2 + $0x208] sm:$0xff] %vm418_vm0, %v12051_v12  ;;  %v10387_v13 = vpack.i.bf16 %v12051_v12, %v12043_v8  ;;  %4372 = vmatprep.subr.bf16.mxu1 %v10686_v32 }
0x2f31   : > { %10388 = vrot.lane.b32.xlu0 %v10387_v13, %s11146_s26  ;;  %v10693_v13 = vld [vmem:[#allocation5 + $0x274] ss:$8 sps:$4 sm:$0xff]  }
0x2f32   : > { %4373 = vmatpush1.bf16.msra.mxu1 %v10684_v31  ;;  %4575 = vmatprep.subr.bf16.mxu0 %v10693_v13 }
0x2f33   : > { %9974 = vmatprep.subr.bf16.mxu1 %v11143_v0 }
0x2fa3   : > { %v10389_v16 = vpop.permute.xlu0 %10388 }
0x2fa4   : > { %v10391_v17 = vunpack.i.h.bf16 %v10389_v16  ;;  %v10390_v18 = vunpack.i.l.bf16 %v10389_v16 }
0x2fa6   : > { %v4213_v19 = vsel %vm418_vm0, %v4203_v15, %v10391_v17  ;;  %v4212_v20 = vsel %vm418_vm0, %v4202_v14, %v10390_v18  ;;  %v9241_v14 = vld [vmem:[%s12984_s4 + $0x13] ss:$0 sm:$0xff] }
0x2fa7   : > { %v4214_v21 = vpack.c.bf16 %v4213_v19, %v4212_v20 }
0x2fa9   : > { %9971 = vmatmul.mubr.msk.bf16.vlgmr.msra.gmra.mxu0 %vm567_vm2, %v4214_v21  ;;  %v10694_v21 = vld [vmem:[#allocation5 + $0x260] ss:$8 sps:$4 sm:$0xff]  }
0x2faa   : > { %4595 = vmatprep.mubr.bf16.mxu0 %v11144_v1 }
0x3069   : > { %v4293_v25 = vpop.f32.mrf.mxu0 }
0x306a   : > { %v4294_v26 = vadd.f32 %v9228_v24, %v4293_v25 }
0x306b   : > { %v9972_v27 = vpop.f32.mrf.mxu0 }
0x306c   : > { %10981 = vtanh.f32 %v4294_v26 }
0x306d   : > { %v4296_v28 = vpop.f32.mrf.mxu0 }
0x306e   : > { %v4297_v29 = vadd.f32 %v9228_v24, %v4296_v28 }
0x306f   : > { %v9973_v30 = vpop.f32.mrf.mxu0 }
0x3070   : > { %10983 = vtanh.f32 %v4297_v29 }
0x3079   : > { %v10982_v33 = vpop.eup %10981 }
0x307a   : > { %v4302_v34 = vmul.f32 0.5, %v10982_v33 }
0x307c   : > { %v4304_v35 = vadd.f32 0.5, %v4302_v34  ;;  %v10697_v34 = vld [vmem:[#allocation3 + $0x298] sm:$0xff]  }
0x307d   : > { %v10984_v37 = vpop.eup %10983 }
0x307e   : > { %4308 = vrot.lane.b32.xlu1 %v4304_v35, %s11147_s29  ;;  %v4303_v38 = vmul.f32 0.5, %v10984_v37  ;;  %v10698_v35 = vld [vmem:[#allocation3 + $0x290] sm:$0xff]  }
0x3080   : > { %v4305_v39 = vadd.f32 0.5, %v4303_v38  ;;  %v9247_v38 = vld [vmem:[%s12986_s6 + $0x26] sm:$0x3] }
0x3082   : > { %4310 = vrot.lane.b32.xlu0 %v4305_v39, %s11147_s29  ;;  %v4533_v39 = vrot.slane %v9247_v38, %v11382_v36 }
0x30f0   : > { %v4309_v40 = vpop.permute.xlu1 %4308 }
0x30f1   : > { %v4314_v42 = vmul.f32 %v10982_v33, %v4309_v40  ;;  %v4537_v40 = vrot.slane %v9247_v38, %v11341_v52 }
0x30f4   : > { %v4311_v41 = vpop.permute.xlu0 %4310 }
0x30f5   : > { %v4315_v43 = vmul.f32 %v10984_v37, %v4311_v41  ;;  %v10699_v37 = vld [vmem:[#allocation3 + $0x288] sm:$0xff]  }
0x30f7   : > { %v4316_v44 = vpack.c.bf16 %v4315_v43, %v4314_v42  ;;  %v10700_v42 = vld [vmem:[#allocation3 + $0x280] sm:$0xff]  }
0x30f9   : > { %9239 = vmatmul.mubr.msk.bf16.vlgmr.msra.gmra.mxu1 %vm418_vm0, %v4316_v44 }
0x30fa   : > { %9982 = vmatprep.mubr.msk.bf16.mxu1 %vm11145_vm1, %v11143_v0  ;;  %9975 = vmatpush3.bf16.msra.mxu1 %v10687_v45 }
0x30fb   : > { %9976 = vmatprep.subr.bf16.mxu1 %v11143_v0 }
0x30fe   : > { %9977 = vmatpush3.bf16.msra.mxu1 %v10688_v46 }
0x30ff   : > { %9978 = vmatprep.subr.bf16.mxu1 %v11143_v0 }
0x3102   : > { %9979 = vmatpush3.bf16.msra.mxu1 %v10689_v48 }
0x3103   : > { %9980 = vmatprep.subr.bf16.mxu1 %v11143_v0 }
0x3106   : > { %9981 = vmatpush3.bf16.msra.mxu1 %v10690_v53 }
0x31b9   : > { %v4392_v51 = vpop.f32.mrf.mxu1 }
0x31ba   : > { %v4393_v54 = vadd.f32 %v4392_v51, %v4328_v50 }
0x31bb   : > { %v4394_v55 = vpop.f32.mrf.mxu1 }
0x31bc   : > { %v12080_v56 = vadd.f32 %v4393_v54, %v12040_v63  ;;  %v4395_v57 = vadd.f32 %v4394_v55, %v4332_v47  ;;  %v4407_v63 = vld [vmem:[#allocation2] sm:$0xff] }
0x31bd   : > { %v4396_v58 = vpop.f32.mrf.mxu1 }
0x31be   : > { %v12083_v59 = vadd.f32 %v4395_v57, %v12043_v8  ;;  %v4397_v60 = vadd.f32 %v4396_v58, %v4328_v50 }
0x31bf   : > { %v4398_v61 = vpop.f32.mrf.mxu1 }
0x31c0   : > { %4405 = vst.msk [vmem:[#allocation2 + $0x200] sm:$0xff] %vm418_vm0, %v12083_v59  ;;  %v12088_v62 = vadd.f32 %v4397_v60, %v12048_v10  ;;  %v4399_v2 = vadd.f32 %v4398_v61, %v4332_v47 }
0x31c2   : > { %v12091_v3 = vadd.f32 %v4399_v2, %v12051_v12  ;;  %v10691_v12 = vld [vmem:[#allocation5 + $0x270] ss:$8 sps:$4 sm:$0xff]  }
0x31c3   : > { %4576 = vmatpush1.bf16.msra.mxu0 %v10691_v12  ;;  %v10706_v12 = vld [vmem:[#allocation5 + $0x284] ss:$8 sps:$4 sm:$0xff]  }
0x31c4   : > { %4406 = vst.msk [vmem:[#allocation2 + $0x208] sm:$0xff] %vm418_vm0, %v12091_v3  ;;  %v10392_v4 = vpack.i.bf16 %v12091_v3, %v12083_v59  ;;  %4577 = vmatprep.subr.bf16.mxu0 %v10696_v22 }
0x31c6   : > { %10393 = vrot.lane.b32.xlu1 %v10392_v4, %s11146_s26  ;;  %v10703_v4 = vld [vmem:[#allocation5 + $0x294] ss:$8 sps:$4 sm:$0xff]  }
0x31c7   : > { %4578 = vmatpush1.bf16.msra.mxu0 %v10694_v21  ;;  %4780 = vmatprep.subr.bf16.mxu1 %v10703_v4 }
0x31c8   : > { %9986 = vmatprep.subr.bf16.mxu0 %v11143_v0 }
0x3238   : > { %v10394_v7 = vpop.permute.xlu1 %10393 }
0x3239   : > { %v10396_v8 = vunpack.i.h.bf16 %v10394_v7  ;;  %v10395_v5 = vunpack.i.l.bf16 %v10394_v7 }
0x323b   : > { %v4418_v9 = vsel %vm418_vm0, %v4408_v6, %v10396_v8  ;;  %v4417_v10 = vsel %vm418_vm0, %v4407_v63, %v10395_v5  ;;  %v9254_v63 = vld [vmem:[%s12984_s4 + $0x14] ss:$0 sm:$0xff] }
0x323c   : > { %v4419_v11 = vpack.c.bf16 %v4418_v9, %v4417_v10 }
0x323e   : > { %9983 = vmatmul.mubr.msk.bf16.vlgmr.msra.gmra.mxu1 %vm567_vm2, %v4419_v11  ;;  %v10704_v11 = vld [vmem:[#allocation5 + $0x280] ss:$8 sps:$4 sm:$0xff]  }
0x323f   : > { %4800 = vmatprep.mubr.bf16.mxu1 %v11144_v1 }
0x32fe   : > { %v4498_v15 = vpop.f32.mrf.mxu1 }
0x32ff   : > { %v4499_v16 = vadd.f32 %v9241_v14, %v4498_v15 }
0x3300   : > { %v9984_v17 = vpop.f32.mrf.mxu1 }
0x3301   : > { %10985 = vtanh.f32 %v4499_v16 }
0x3302   : > { %v4501_v18 = vpop.f32.mrf.mxu1 }
0x3303   : > { %v4502_v19 = vadd.f32 %v9241_v14, %v4501_v18 }
0x3304   : > { %v9985_v20 = vpop.f32.mrf.mxu1 }
0x3305   : > { %10987 = vtanh.f32 %v4502_v19 }
0x330e   : > { %v10986_v23 = vpop.eup %10985 }
0x330f   : > { %v4507_v24 = vmul.f32 0.5, %v10986_v23 }
0x3311   : > { %v4509_v25 = vadd.f32 0.5, %v4507_v24  ;;  %v10707_v24 = vld [vmem:[#allocation3 + $0x2b8] sm:$0xff]  }
0x3312   : > { %v10988_v26 = vpop.eup %10987 }
0x3313   : > { %4513 = vrot.lane.b32.xlu0 %v4509_v25, %s11147_s29  ;;  %v4508_v27 = vmul.f32 0.5, %v10988_v26  ;;  %v10708_v25 = vld [vmem:[#allocation3 + $0x2b0] sm:$0xff]  }
0x3315   : > { %v4510_v28 = vadd.f32 0.5, %v4508_v27  ;;  %v9260_v27 = vld [vmem:[%s12986_s6 + $0x28] sm:$0x3] }
0x3317   : > { %4515 = vrot.lane.b32.xlu1 %v4510_v28, %s11147_s29  ;;  %v4738_v28 = vrot.slane %v9260_v27, %v11382_v36 }
0x3385   : > { %v4514_v29 = vpop.permute.xlu0 %4513 }
0x3386   : > { %v4519_v31 = vmul.f32 %v10986_v23, %v4514_v29  ;;  %v4742_v29 = vrot.slane %v9260_v27, %v11341_v52 }
0x3389   : > { %v4516_v30 = vpop.permute.xlu1 %4515 }
0x338a   : > { %v4520_v32 = vmul.f32 %v10988_v26, %v4516_v30  ;;  %v10709_v26 = vld [vmem:[#allocation3 + $0x2a8] sm:$0xff]  }
0x338c   : > { %v4521_v33 = vpack.c.bf16 %v4520_v32, %v4519_v31  ;;  %v10710_v31 = vld [vmem:[#allocation3 + $0x2a0] sm:$0xff]  }
0x338e   : > { %9252 = vmatmul.mubr.msk.bf16.vlgmr.msra.gmra.mxu0 %vm418_vm0, %v4521_v33 }
0x338f   : > { %9994 = vmatprep.mubr.msk.bf16.mxu0 %vm11145_vm1, %v11143_v0  ;;  %9987 = vmatpush3.bf16.msra.mxu0 %v10697_v34 }
0x3390   : > { %9988 = vmatprep.subr.bf16.mxu0 %v11143_v0 }
0x3393   : > { %9989 = vmatpush3.bf16.msra.mxu0 %v10698_v35 }
0x3394   : > { %9990 = vmatprep.subr.bf16.mxu0 %v11143_v0 }
0x3397   : > { %9991 = vmatpush3.bf16.msra.mxu0 %v10699_v37 }
0x3398   : > { %9992 = vmatprep.subr.bf16.mxu0 %v11143_v0 }
0x339b   : > { %9993 = vmatpush3.bf16.msra.mxu0 %v10700_v42 }
0x344e   : > { %v4597_v41 = vpop.f32.mrf.mxu0 }
0x344f   : > { %v4598_v43 = vadd.f32 %v4597_v41, %v4533_v39 }
0x3450   : > { %v4599_v44 = vpop.f32.mrf.mxu0 }
0x3451   : > { %v12120_v45 = vadd.f32 %v4598_v43, %v12080_v56  ;;  %v4600_v46 = vadd.f32 %v4599_v44, %v4537_v40 }
0x3452   : > { %v4601_v48 = vpop.f32.mrf.mxu0 }
0x3453   : > { %v12123_v49 = vadd.f32 %v4600_v46, %v12083_v59  ;;  %v4602_v50 = vadd.f32 %v4601_v48, %v4533_v39 }
0x3454   : > { %v4603_v47 = vpop.f32.mrf.mxu0 }
0x3455   : > { %4610 = vst.msk [vmem:[#allocation2 + $0x200] sm:$0xff] %vm418_vm0, %v12123_v49  ;;  %v12128_v51 = vadd.f32 %v4602_v50, %v12088_v62  ;;  %v4604_v53 = vadd.f32 %v4603_v47, %v4537_v40 }
0x3457   : > { %v12131_v54 = vadd.f32 %v4604_v53, %v12091_v3  ;;  %v10701_v3 = vld [vmem:[#allocation5 + $0x290] ss:$8 sps:$4 sm:$0xff]  }
0x3458   : > { %4781 = vmatpush1.bf16.msra.mxu1 %v10701_v3  ;;  %v10716_v3 = vld [vmem:[#allocation5 + $0x2a4] ss:$8 sps:$4 sm:$0xff]  }
0x3459   : > { %4611 = vst.msk [vmem:[#allocation2 + $0x208] sm:$0xff] %vm418_vm0, %v12131_v54  ;;  %v10397_v55 = vpack.i.bf16 %v12131_v54, %v12123_v49  ;;  %4782 = vmatprep.subr.bf16.mxu1 %v10706_v12 }
0x345b   : > { %10398 = vrot.lane.b32.xlu0 %v10397_v55, %s11146_s26  ;;  %v10713_v55 = vld [vmem:[#allocation5 + $0x2b4] ss:$8 sps:$4 sm:$0xff]  }
0x345c   : > { %v4612_v60 = vld [vmem:[#allocation2 + $0x1ff] sm:$0xff]  ;;  %4783 = vmatpush1.bf16.msra.mxu1 %v10704_v11  ;;  %4985 = vmatprep.subr.bf16.mxu0 %v10713_v55 }
0x345d   : > { %9998 = vmatprep.subr.bf16.mxu1 %v11143_v0 }
0x3460   : > { %v4613_v59 = vld [vmem:[#allocation2 + $0x207] sm:$0xff] }
0x34cd   : > { %v10399_v56 = vpop.permute.xlu0 %10398 }
0x34ce   : > { %v10401_v57 = vunpack.i.h.bf16 %v10399_v56  ;;  %v10400_v58 = vunpack.i.l.bf16 %v10399_v56  ;;  %v9267_v56 = vld [vmem:[%s12984_s4 + $0x15] ss:$0 sm:$0xff] }
0x34d0   : > { %v4622_v61 = vsel %vm418_vm0, %v4612_v60, %v10400_v58  ;;  %v4623_v62 = vsel %vm418_vm0, %v4613_v59, %v10401_v57 }
0x34d1   : > { %v4624_v2 = vpack.c.bf16 %v4623_v62, %v4622_v61 }
0x34d3   : > { %9995 = vmatmul.mubr.msk.bf16.vlgmr.msra.gmra.mxu0 %vm567_vm2, %v4624_v2  ;;  %v10714_v2 = vld [vmem:[#allocation5 + $0x2a0] ss:$8 sps:$4 sm:$0xff]  }
0x34d4   : > { %5005 = vmatprep.mubr.bf16.mxu0 %v11144_v1 }
0x3593   : > { %v4703_v6 = vpop.f32.mrf.mxu0 }
0x3594   : > { %v4704_v7 = vadd.f32 %v9254_v63, %v4703_v6 }
0x3595   : > { %v9996_v8 = vpop.f32.mrf.mxu0 }
0x3596   : > { %10989 = vtanh.f32 %v4704_v7 }
0x3597   : > { %v4706_v5 = vpop.f32.mrf.mxu0 }
0x3598   : > { %v4707_v9 = vadd.f32 %v9254_v63, %v4706_v5 }
0x3599   : > { %v9997_v10 = vpop.f32.mrf.mxu0 }
0x359a   : > { %10991 = vtanh.f32 %v4707_v9 }
0x35a3   : > { %v10990_v13 = vpop.eup %10989 }
0x35a4   : > { %v4712_v14 = vmul.f32 0.5, %v10990_v13 }
0x35a6   : > { %v4714_v15 = vadd.f32 0.5, %v4712_v14  ;;  %v10717_v14 = vld [vmem:[#allocation3 + $0x2d8] sm:$0xff]  }
0x35a7   : > { %v10992_v16 = vpop.eup %10991 }
0x35a8   : > { %4718 = vrot.lane.b32.xlu1 %v4714_v15, %s11147_s29  ;;  %v4713_v17 = vmul.f32 0.5, %v10992_v16  ;;  %v10718_v15 = vld [vmem:[#allocation3 + $0x2d0] sm:$0xff]  }
0x35aa   : > { %v4715_v18 = vadd.f32 0.5, %v4713_v17  ;;  %v9273_v17 = vld [vmem:[%s12986_s6 + $0x2a] sm:$0x3] }
0x35ac   : > { %4720 = vrot.lane.b32.xlu0 %v4715_v18, %s11147_s29  ;;  %v4943_v18 = vrot.slane %v9273_v17, %v11382_v36 }
0x361a   : > { %v4719_v19 = vpop.permute.xlu1 %4718 }
0x361b   : > { %v4724_v21 = vmul.f32 %v10990_v13, %v4719_v19  ;;  %v4947_v19 = vrot.slane %v9273_v17, %v11341_v52 }
0x361e   : > { %v4721_v20 = vpop.permute.xlu0 %4720 }
0x361f   : > { %v4725_v22 = vmul.f32 %v10992_v16, %v4721_v20  ;;  %v10719_v16 = vld [vmem:[#allocation3 + $0x2c8] sm:$0xff]  }
0x3621   : > { %v4726_v23 = vpack.c.bf16 %v4725_v22, %v4724_v21  ;;  %v10720_v21 = vld [vmem:[#allocation3 + $0x2c0] sm:$0xff]  }
0x3623   : > { %9265 = vmatmul.mubr.msk.bf16.vlgmr.msra.gmra.mxu1 %vm418_vm0, %v4726_v23 }
0x3624   : > { %10006 = vmatprep.mubr.msk.bf16.mxu1 %vm11145_vm1, %v11143_v0  ;;  %9999 = vmatpush3.bf16.msra.mxu1 %v10707_v24 }
0x3625   : > { %10000 = vmatprep.subr.bf16.mxu1 %v11143_v0 }
0x3628   : > { %10001 = vmatpush3.bf16.msra.mxu1 %v10708_v25 }
0x3629   : > { %10002 = vmatprep.subr.bf16.mxu1 %v11143_v0 }
0x362c   : > { %10003 = vmatpush3.bf16.msra.mxu1 %v10709_v26 }
0x362d   : > { %10004 = vmatprep.subr.bf16.mxu1 %v11143_v0 }
0x3630   : > { %10005 = vmatpush3.bf16.msra.mxu1 %v10710_v31 }
0x36e3   : > { %v4802_v30 = vpop.f32.mrf.mxu1 }
0x36e4   : > { %v4803_v32 = vadd.f32 %v4802_v30, %v4738_v28 }
0x36e5   : > { %v4804_v33 = vpop.f32.mrf.mxu1 }
0x36e6   : > { %v12160_v34 = vadd.f32 %v4803_v32, %v12120_v45  ;;  %v4805_v35 = vadd.f32 %v4804_v33, %v4742_v29 }
0x36e7   : > { %v4806_v37 = vpop.f32.mrf.mxu1 }
0x36e8   : > { %v12163_v38 = vadd.f32 %v4805_v35, %v12123_v49  ;;  %v4807_v39 = vadd.f32 %v4806_v37, %v4738_v28 }
0x36e9   : > { %v4808_v40 = vpop.f32.mrf.mxu1 }
0x36ea   : > { %4815 = vst.msk [vmem:[#allocation2 + $0x200] sm:$0xff] %vm418_vm0, %v12163_v38  ;;  %v12168_v41 = vadd.f32 %v4807_v39, %v12128_v51  ;;  %v4809_v42 = vadd.f32 %v4808_v40, %v4742_v29 }
0x36ec   : > { %v12171_v43 = vadd.f32 %v4809_v42, %v12131_v54  ;;  %v10711_v54 = vld [vmem:[#allocation5 + $0x2b0] ss:$8 sps:$4 sm:$0xff]  }
0x36ed   : > { %4986 = vmatpush1.bf16.msra.mxu0 %v10711_v54  ;;  %v10726_v54 = vld [vmem:[#allocation5 + $0x2c4] ss:$8 sps:$4 sm:$0xff]  }
0x36ee   : > { %4816 = vst.msk [vmem:[#allocation2 + $0x208] sm:$0xff] %vm418_vm0, %v12171_v43  ;;  %v10402_v44 = vpack.i.bf16 %v12171_v43, %v12163_v38  ;;  %4987 = vmatprep.subr.bf16.mxu0 %v10716_v3 }
0x36f0   : > { %10403 = vrot.lane.b32.xlu1 %v10402_v44, %s11146_s26  ;;  %v10723_v44 = vld [vmem:[#allocation5 + $0x2d4] ss:$8 sps:$4 sm:$0xff]  }
0x36f1   : > { %v4817_v50 = vld [vmem:[#allocation2 + $0x1fe] sm:$0xff]  ;;  %4988 = vmatpush1.bf16.msra.mxu0 %v10714_v2  ;;  %5190 = vmatprep.subr.bf16.mxu1 %v10723_v44 }
0x36f2   : > { %10010 = vmatprep.subr.bf16.mxu0 %v11143_v0 }
0x36f5   : > { %v4818_v49 = vld [vmem:[#allocation2 + $0x206] sm:$0xff] }
0x3762   : > { %v10404_v45 = vpop.permute.xlu1 %10403 }
0x3763   : > { %v10406_v46 = vunpack.i.h.bf16 %v10404_v45  ;;  %v10405_v48 = vunpack.i.l.bf16 %v10404_v45  ;;  %v9280_v45 = vld [vmem:[%s12984_s4 + $0x16] ss:$0 sm:$0xff] }
0x3765   : > { %v4827_v47 = vsel %vm418_vm0, %v4817_v50, %v10405_v48  ;;  %v4828_v51 = vsel %vm418_vm0, %v4818_v49, %v10406_v46 }
0x3766   : > { %v4829_v53 = vpack.c.bf16 %v4828_v51, %v4827_v47 }
0x3768   : > { %10007 = vmatmul.mubr.msk.bf16.vlgmr.msra.gmra.mxu1 %vm567_vm2, %v4829_v53  ;;  %v10724_v53 = vld [vmem:[#allocation5 + $0x2c0] ss:$8 sps:$4 sm:$0xff]  }
0x3769   : > { %5210 = vmatprep.mubr.bf16.mxu1 %v11144_v1 }
0x3828   : > { %v4908_v57 = vpop.f32.mrf.mxu1 }
0x3829   : > { %v4909_v58 = vadd.f32 %v9267_v56, %v4908_v57 }
0x382a   : > { %v10008_v59 = vpop.f32.mrf.mxu1 }
0x382b   : > { %10993 = vtanh.f32 %v4909_v58 }
0x382c   : > { %v4911_v60 = vpop.f32.mrf.mxu1 }
0x382d   : > { %v4912_v61 = vadd.f32 %v9267_v56, %v4911_v60 }
0x382e   : > { %v10009_v62 = vpop.f32.mrf.mxu1 }
0x382f   : > { %10995 = vtanh.f32 %v4912_v61 }
0x3838   : > { %v10994_v4 = vpop.eup %10993 }
0x3839   : > { %v4917_v63 = vmul.f32 0.5, %v10994_v4 }
0x383b   : > { %v4919_v6 = vadd.f32 0.5, %v4917_v63  ;;  %v10727_v63 = vld [vmem:[#allocation3 + $0x2f8] sm:$0xff]  }
0x383c   : > { %v10996_v7 = vpop.eup %10995 }
0x383d   : > { %4923 = vrot.lane.b32.xlu0 %v4919_v6, %s11147_s29  ;;  %v4918_v8 = vmul.f32 0.5, %v10996_v7  ;;  %v10728_v6 = vld [vmem:[#allocation3 + $0x2f0] sm:$0xff]  }
0x383f   : > { %v4920_v5 = vadd.f32 0.5, %v4918_v8  ;;  %v9286_v8 = vld [vmem:[%s12986_s6 + $0x2c] sm:$0x3] }
0x3841   : > { %4925 = vrot.lane.b32.xlu1 %v4920_v5, %s11147_s29  ;;  %v5148_v5 = vrot.slane %v9286_v8, %v11382_v36 }
0x38af   : > { %v4924_v9 = vpop.permute.xlu0 %4923 }
0x38b0   : > { %v4929_v11 = vmul.f32 %v10994_v4, %v4924_v9  ;;  %v5152_v9 = vrot.slane %v9286_v8, %v11341_v52 }
0x38b3   : > { %v4926_v10 = vpop.permute.xlu1 %4925 }
0x38b4   : > { %v4930_v12 = vmul.f32 %v10996_v7, %v4926_v10  ;;  %v10729_v7 = vld [vmem:[#allocation3 + $0x2e8] sm:$0xff]  }
0x38b6   : > { %v4931_v13 = vpack.c.bf16 %v4930_v12, %v4929_v11  ;;  %v10730_v11 = vld [vmem:[#allocation3 + $0x2e0] sm:$0xff]  }
0x38b8   : > { %9278 = vmatmul.mubr.msk.bf16.vlgmr.msra.gmra.mxu0 %vm418_vm0, %v4931_v13 }
0x38b9   : > { %10018 = vmatprep.mubr.msk.bf16.mxu0 %vm11145_vm1, %v11143_v0  ;;  %10011 = vmatpush3.bf16.msra.mxu0 %v10717_v14 }
0x38ba   : > { %10012 = vmatprep.subr.bf16.mxu0 %v11143_v0 }
0x38bd   : > { %10013 = vmatpush3.bf16.msra.mxu0 %v10718_v15 }
0x38be   : > { %10014 = vmatprep.subr.bf16.mxu0 %v11143_v0 }
0x38c1   : > { %10015 = vmatpush3.bf16.msra.mxu0 %v10719_v16 }
0x38c2   : > { %10016 = vmatprep.subr.bf16.mxu0 %v11143_v0 }
0x38c5   : > { %10017 = vmatpush3.bf16.msra.mxu0 %v10720_v21 }
0x3978   : > { %v5007_v20 = vpop.f32.mrf.mxu0 }
0x3979   : > { %v5008_v22 = vadd.f32 %v5007_v20, %v4943_v18 }
0x397a   : > { %v5009_v23 = vpop.f32.mrf.mxu0 }
0x397b   : > { %v12200_v24 = vadd.f32 %v5008_v22, %v12160_v34  ;;  %v5010_v25 = vadd.f32 %v5009_v23, %v4947_v19 }
0x397c   : > { %v5011_v26 = vpop.f32.mrf.mxu0 }
0x397d   : > { %v12203_v27 = vadd.f32 %v5010_v25, %v12163_v38  ;;  %v5012_v28 = vadd.f32 %v5011_v26, %v4943_v18 }
0x397e   : > { %v5013_v29 = vpop.f32.mrf.mxu0 }
0x397f   : > { %5020 = vst.msk [vmem:[#allocation2 + $0x200] sm:$0xff] %vm418_vm0, %v12203_v27  ;;  %v12208_v30 = vadd.f32 %v5012_v28, %v12168_v41  ;;  %v5014_v31 = vadd.f32 %v5013_v29, %v4947_v19 }
0x3981   : > { %v12211_v32 = vadd.f32 %v5014_v31, %v12171_v43  ;;  %v10721_v43 = vld [vmem:[#allocation5 + $0x2d0] ss:$8 sps:$4 sm:$0xff]  }
0x3982   : > { %5191 = vmatpush1.bf16.msra.mxu1 %v10721_v43  ;;  %v10736_v43 = vld [vmem:[#allocation5 + $0x2e4] ss:$8 sps:$4 sm:$0xff]  }
0x3983   : > { %5021 = vst.msk [vmem:[#allocation2 + $0x208] sm:$0xff] %vm418_vm0, %v12211_v32  ;;  %v10407_v33 = vpack.i.bf16 %v12211_v32, %v12203_v27  ;;  %5192 = vmatprep.subr.bf16.mxu1 %v10726_v54 }
0x3985   : > { %10408 = vrot.lane.b32.xlu0 %v10407_v33, %s11146_s26  ;;  %v10733_v33 = vld [vmem:[#allocation5 + $0x2f4] ss:$8 sps:$4 sm:$0xff]  }
0x3986   : > { %v5022_v39 = vld [vmem:[#allocation2 + $0x1fc] sm:$0xff]  ;;  %5193 = vmatpush1.bf16.msra.mxu1 %v10724_v53  ;;  %5395 = vmatprep.subr.bf16.mxu0 %v10733_v33 }
0x3987   : > { %10022 = vmatprep.subr.bf16.mxu1 %v11143_v0 }
0x398a   : > { %v5023_v38 = vld [vmem:[#allocation2 + $0x204] sm:$0xff] }
0x39f7   : > { %v10409_v34 = vpop.permute.xlu0 %10408 }
0x39f8   : > { %v10411_v35 = vunpack.i.h.bf16 %v10409_v34  ;;  %v10410_v37 = vunpack.i.l.bf16 %v10409_v34  ;;  %v9293_v34 = vld [vmem:[%s12984_s4 + $0x17] ss:$0 sm:$0xff] }
0x39fa   : > { %v5032_v40 = vsel %vm418_vm0, %v5022_v39, %v10410_v37  ;;  %v5033_v41 = vsel %vm418_vm0, %v5023_v38, %v10411_v35 }
0x39fb   : > { %v5034_v42 = vpack.c.bf16 %v5033_v41, %v5032_v40 }
0x39fd   : > { %10019 = vmatmul.mubr.msk.bf16.vlgmr.msra.gmra.mxu0 %vm567_vm2, %v5034_v42  ;;  %v10734_v42 = vld [vmem:[#allocation5 + $0x2e0] ss:$8 sps:$4 sm:$0xff]  }
0x39fe   : > { %5415 = vmatprep.mubr.bf16.mxu0 %v11144_v1 }
0x3abd   : > { %v5113_v46 = vpop.f32.mrf.mxu0 }
0x3abe   : > { %v5114_v48 = vadd.f32 %v9280_v45, %v5113_v46 }
0x3abf   : > { %v10020_v49 = vpop.f32.mrf.mxu0 }
0x3ac0   : > { %10997 = vtanh.f32 %v5114_v48 }
0x3ac1   : > { %v5116_v50 = vpop.f32.mrf.mxu0 }
0x3ac2   : > { %v5117_v47 = vadd.f32 %v9280_v45, %v5116_v50 }
0x3ac3   : > { %v10021_v51 = vpop.f32.mrf.mxu0 }
0x3ac4   : > { %10999 = vtanh.f32 %v5117_v47 }
0x3acd   : > { %v10998_v55 = vpop.eup %10997 }
0x3ace   : > { %v5122_v56 = vmul.f32 0.5, %v10998_v55 }
0x3ad0   : > { %v5124_v57 = vadd.f32 0.5, %v5122_v56  ;;  %v10737_v56 = vld [vmem:[#allocation3 + $0x318] sm:$0xff]  }
0x3ad1   : > { %v11000_v58 = vpop.eup %10999 }
0x3ad2   : > { %5128 = vrot.lane.b32.xlu1 %v5124_v57, %s11147_s29  ;;  %v5123_v59 = vmul.f32 0.5, %v11000_v58  ;;  %v10738_v57 = vld [vmem:[#allocation3 + $0x310] sm:$0xff]  }
0x3ad4   : > { %v5125_v60 = vadd.f32 0.5, %v5123_v59  ;;  %v9299_v59 = vld [vmem:[%s12986_s6 + $0x2e] sm:$0x3] }
0x3ad6   : > { %5130 = vrot.lane.b32.xlu0 %v5125_v60, %s11147_s29  ;;  %v5353_v60 = vrot.slane %v9299_v59, %v11382_v36 }
0x3b44   : > { %v5129_v61 = vpop.permute.xlu1 %5128 }
0x3b45   : > { %v5134_v2 = vmul.f32 %v10998_v55, %v5129_v61  ;;  %v5357_v61 = vrot.slane %v9299_v59, %v11341_v52 }
0x3b48   : > { %v5131_v62 = vpop.permute.xlu0 %5130 }
0x3b49   : > { %v5135_v3 = vmul.f32 %v11000_v58, %v5131_v62  ;;  %v10739_v58 = vld [vmem:[#allocation3 + $0x308] sm:$0xff]  }
0x3b4b   : > { %v5136_v4 = vpack.c.bf16 %v5135_v3, %v5134_v2  ;;  %v10740_v2 = vld [vmem:[#allocation3 + $0x300] sm:$0xff]  }
0x3b4d   : > { %9291 = vmatmul.mubr.msk.bf16.vlgmr.msra.gmra.mxu1 %vm418_vm0, %v5136_v4 }
0x3b4e   : > { %10030 = vmatprep.mubr.msk.bf16.mxu1 %vm11145_vm1, %v11143_v0  ;;  %10023 = vmatpush3.bf16.msra.mxu1 %v10727_v63 }
0x3b4f   : > { %10024 = vmatprep.subr.bf16.mxu1 %v11143_v0 }
0x3b52   : > { %10025 = vmatpush3.bf16.msra.mxu1 %v10728_v6 }
0x3b53   : > { %10026 = vmatprep.subr.bf16.mxu1 %v11143_v0 }
0x3b56   : > { %10027 = vmatpush3.bf16.msra.mxu1 %v10729_v7 }
0x3b57   : > { %10028 = vmatprep.subr.bf16.mxu1 %v11143_v0 }
0x3b5a   : > { %10029 = vmatpush3.bf16.msra.mxu1 %v10730_v11 }
0x3c0d   : > { %v5212_v10 = vpop.f32.mrf.mxu1 }
0x3c0e   : > { %v5213_v12 = vadd.f32 %v5212_v10, %v5148_v5 }
0x3c0f   : > { %v5214_v13 = vpop.f32.mrf.mxu1 }
0x3c10   : > { %v12240_v14 = vadd.f32 %v5213_v12, %v12200_v24  ;;  %v5215_v15 = vadd.f32 %v5214_v13, %v5152_v9  ;;  %v12258_v24 = vld [vmem:[#allocation2 + $0x1f8] sm:$0xff] }
0x3c11   : > { %v5216_v16 = vpop.f32.mrf.mxu1 }
0x3c12   : > { %v12243_v17 = vadd.f32 %v5215_v15, %v12203_v27  ;;  %v5217_v18 = vadd.f32 %v5216_v16, %v5148_v5 }
0x3c13   : > { %v5218_v19 = vpop.f32.mrf.mxu1 }
0x3c14   : > { %5225 = vst.msk [vmem:[#allocation2 + $0x200] sm:$0xff] %vm418_vm0, %v12243_v17  ;;  %v12248_v20 = vadd.f32 %v5217_v18, %v12208_v30  ;;  %v5219_v21 = vadd.f32 %v5218_v19, %v5152_v9 }
0x3c16   : > { %v12251_v22 = vadd.f32 %v5219_v21, %v12211_v32  ;;  %v10731_v32 = vld [vmem:[#allocation5 + $0x2f0] ss:$8 sps:$4 sm:$0xff]  }
0x3c17   : > { %5396 = vmatpush1.bf16.msra.mxu0 %v10731_v32  ;;  %v10741_v21 = vld [vmem:[#allocation5 + $0x310] ss:$8 sps:$4 sm:$0xff]  }
0x3c18   : > { %5226 = vst.msk [vmem:[#allocation2 + $0x208] sm:$0xff] %vm418_vm0, %v12251_v22  ;;  %v10412_v23 = vpack.i.bf16 %v12251_v22, %v12243_v17  ;;  %5397 = vmatprep.subr.bf16.mxu0 %v10736_v43 }
0x3c1a   : > { %10413 = vrot.lane.b32.xlu1 %v10412_v23, %s11146_s26  ;;  %v9306_v23 = vld [vmem:[%s12984_s4 + $0x18] ss:$0 sm:$0xff] }
0x3c1b   : > { %v5228_v28 = vld [vmem:[#allocation2 + $0x200] sm:$0xff]  ;;  %5398 = vmatpush1.bf16.msra.mxu0 %v10734_v42 }
0x3c1c   : > { %10034 = vmatprep.subr.bf16.mxu0 %v11143_v0 }
0x3c8c   : > { %v10414_v25 = vpop.permute.xlu1 %10413 }
0x3c8d   : > { %v10416_v26 = vunpack.i.h.bf16 %v10414_v25  ;;  %v10415_v27 = vunpack.i.l.bf16 %v10414_v25 }
0x3c8f   : > { %v5237_v29 = vsel %vm418_vm0, %v12258_v24, %v10415_v27  ;;  %v5238_v30 = vsel %vm418_vm0, %v5228_v28, %v10416_v26 }
0x3c90   : > { %v5239_v31 = vpack.c.bf16 %v5238_v30, %v5237_v29  ;;  %v10744_v30 = vld [vmem:[#allocation5 + $0x300] ss:$8 sps:$4 sm:$0xff]  }
0x3c92   : > { %10031 = vmatmul.mubr.msk.bf16.vlgmr.msra.gmra.mxu1 %vm567_vm2, %v5239_v31  ;;  %v10746_v31 = vld [vmem:[#allocation5 + $0x304] ss:$8 sps:$4 sm:$0xff]  }
0x3c93   : > { %5620 = vmatprep.mubr.bf16.mxu1 %v11144_v1 }
0x3d52   : > { %v5318_v35 = vpop.f32.mrf.mxu1 }
0x3d53   : > { %v5319_v37 = vadd.f32 %v9293_v34, %v5318_v35 }
0x3d54   : > { %v10032_v38 = vpop.f32.mrf.mxu1 }
0x3d55   : > { %11001 = vtanh.f32 %v5319_v37 }
0x3d56   : > { %v5321_v39 = vpop.f32.mrf.mxu1 }
0x3d57   : > { %v5322_v40 = vadd.f32 %v9293_v34, %v5321_v39 }
0x3d58   : > { %v10033_v41 = vpop.f32.mrf.mxu1 }
0x3d59   : > { %11003 = vtanh.f32 %v5322_v40 }
0x3d62   : > { %v11002_v44 = vpop.eup %11001 }
0x3d63   : > { %v5327_v45 = vmul.f32 0.5, %v11002_v44 }
0x3d65   : > { %v5329_v46 = vadd.f32 0.5, %v5327_v45  ;;  %v10748_v45 = vld [vmem:[#allocation3 + $0x330] sm:$0xff]  }
0x3d66   : > { %v11004_v48 = vpop.eup %11003 }
0x3d67   : > { %5333 = vrot.lane.b32.xlu0 %v5329_v46, %s11147_s29  ;;  %v5328_v49 = vmul.f32 0.5, %v11004_v48  ;;  %v10749_v46 = vld [vmem:[#allocation3 + $0x328] sm:$0xff]  }
0x3d69   : > { %v5330_v50 = vadd.f32 0.5, %v5328_v49 }
0x3d6b   : > { %5335 = vrot.lane.b32.xlu1 %v5330_v50, %s11147_s29 }
0x3dd9   : > { %v5334_v47 = vpop.permute.xlu0 %5333 }
0x3dda   : > { %v5339_v53 = vmul.f32 %v11002_v44, %v5334_v47  ;;  %v10747_v44 = vld [vmem:[#allocation3 + $0x338] sm:$0xff]  }
0x3ddd   : > { %v5336_v51 = vpop.permute.xlu1 %5335 }
0x3dde   : > { %v5340_v54 = vmul.f32 %v11004_v48, %v5336_v51  ;;  %v9312_v48 = vld [vmem:[%s12986_s6 + $0x30] sm:$0x3] }
0x3ddf   : > { %v5558_v49 = vrot.slane %v9312_v48, %v11382_v36  ;;  %v5562_v50 = vrot.slane %v9312_v48, %v11341_v52  ;;  %v10750_v51 = vld [vmem:[#allocation3 + $0x320] sm:$0xff]  }
0x3de0   : > { %v5341_v55 = vpack.c.bf16 %v5340_v54, %v5339_v53 }
0x3de2   : > { %9304 = vmatmul.mubr.msk.bf16.vlgmr.msra.gmra.mxu0 %vm418_vm0, %v5341_v55 }
0x3de3   : > { %10042 = vmatprep.mubr.msk.bf16.mxu0 %vm11145_vm1, %v11143_v0  ;;  %10035 = vmatpush3.bf16.msra.mxu0 %v10737_v56 }
0x3de4   : > { %10036 = vmatprep.subr.bf16.mxu0 %v11143_v0 }
0x3de7   : > { %10037 = vmatpush3.bf16.msra.mxu0 %v10738_v57 }
0x3de8   : > { %10038 = vmatprep.subr.bf16.mxu0 %v11143_v0 }
0x3deb   : > { %10039 = vmatpush3.bf16.msra.mxu0 %v10739_v58 }
0x3dec   : > { %10040 = vmatprep.subr.bf16.mxu0 %v11143_v0 }
0x3def   : > { %10041 = vmatpush3.bf16.msra.mxu0 %v10740_v2 }
0x3ea2   : > { %v5417_v62 = vpop.f32.mrf.mxu0 }
0x3ea3   : > { %v5418_v3 = vadd.f32 %v5417_v62, %v5353_v60 }
0x3ea4   : > { %v5419_v4 = vpop.f32.mrf.mxu0 }
0x3ea5   : > { %v12283_v63 = vadd.f32 %v5418_v3, %v12240_v14  ;;  %v5420_v6 = vadd.f32 %v5419_v4, %v5357_v61  ;;  %v5432_v14 = vld [vmem:[#allocation2 + $0x1f0] sm:$0xff]  ;;  %v5637_v4 = vld [vmem:[#allocation2 + $0x1e0] sm:$0xff] }
0x3ea6   : > { %v5421_v7 = vpop.f32.mrf.mxu0 }
0x3ea7   : > { %v12286_v8 = vadd.f32 %v5420_v6, %v12243_v17  ;;  %v5422_v5 = vadd.f32 %v5421_v7, %v5353_v60 }
0x3ea8   : > { %v5423_v9 = vpop.f32.mrf.mxu0 }
0x3ea9   : > { %5430 = vst.msk [vmem:[#allocation2 + $0x200] sm:$0xff] %vm418_vm0, %v12286_v8  ;;  %v12291_v10 = vadd.f32 %v5422_v5, %v12248_v20  ;;  %v5424_v11 = vadd.f32 %v5423_v9, %v5357_v61 }
0x3eab   : > { %v12294_v12 = vadd.f32 %v5424_v11, %v12251_v22  ;;  %v10743_v22 = vld [vmem:[#allocation5 + $0x314] ss:$8 sps:$4 sm:$0xff]   ;;  %v10751_v11 = vld [vmem:[#allocation5 + $0x330] ss:$8 sps:$4 sm:$0xff]  }
0x3eac   : > { %5600 = vmatprep.subr.bf16.mxu1 %v10743_v22 }
0x3ead   : > { %5431 = vst.msk [vmem:[#allocation2 + $0x208] sm:$0xff] %vm418_vm0, %v12294_v12  ;;  %v10417_v13 = vpack.i.bf16 %v12294_v12, %v12286_v8  ;;  %5601 = vmatpush1.bf16.msra.mxu1 %v10741_v21  ;;  %v10756_v21 = vld [vmem:[#allocation5 + $0x324] ss:$8 sps:$4 sm:$0xff]  }
0x3eae   : > { %5602 = vmatprep.subr.bf16.mxu1 %v10746_v31 }
0x3eaf   : > { %10418 = vrot.lane.b32.xlu0 %v10417_v13, %s11146_s26  ;;  %v9319_v13 = vld [vmem:[%s12984_s4 + $0x19] ss:$0 sm:$0xff] }
0x3eb1   : > { %5603 = vmatpush1.bf16.msra.mxu1 %v10744_v30 }
0x3eb2   : > { %10046 = vmatprep.subr.bf16.mxu1 %v11143_v0 }
0x3f21   : > { %v10419_v15 = vpop.permute.xlu0 %10418 }
0x3f22   : > { %v10421_v16 = vunpack.i.h.bf16 %v10419_v15  ;;  %v10420_v17 = vunpack.i.l.bf16 %v10419_v15 }
0x3f24   : > { %v5443_v18 = vsel %vm418_vm0, %v12258_v24, %v10421_v16  ;;  %v5442_v19 = vsel %vm418_vm0, %v5432_v14, %v10420_v17 }
0x3f25   : > { %v5444_v20 = vpack.c.bf16 %v5443_v18, %v5442_v19 }
0x3f27   : > { %10043 = vmatmul.mubr.msk.bf16.vlgmr.msra.gmra.mxu0 %vm567_vm2, %v5444_v20  ;;  %v10754_v20 = vld [vmem:[#allocation5 + $0x320] ss:$8 sps:$4 sm:$0xff]  }
0x3f28   : > { %5825 = vmatprep.mubr.bf16.mxu0 %v11144_v1 }
0x3fe7   : > { %v5523_v25 = vpop.f32.mrf.mxu0 }
0x3fe8   : > { %v5524_v26 = vadd.f32 %v9306_v23, %v5523_v25 }
0x3fe9   : > { %v10044_v27 = vpop.f32.mrf.mxu0 }
0x3fea   : > { %11005 = vtanh.f32 %v5524_v26 }
0x3feb   : > { %v5526_v24 = vpop.f32.mrf.mxu0 }
0x3fec   : > { %v5527_v28 = vadd.f32 %v9306_v23, %v5526_v24 }
0x3fed   : > { %v10045_v29 = vpop.f32.mrf.mxu0 }
0x3fee   : > { %11007 = vtanh.f32 %v5527_v28 }
0x3ff7   : > { %v11006_v32 = vpop.eup %11005 }
0x3ff8   : > { %v5532_v33 = vmul.f32 0.5, %v11006_v32 }
0x3ffa   : > { %v5534_v34 = vadd.f32 0.5, %v5532_v33  ;;  %v10757_v33 = vld [vmem:[#allocation3 + $0x358] sm:$0xff]  }
0x3ffb   : > { %v11008_v35 = vpop.eup %11007 }
0x3ffc   : > { %5538 = vrot.lane.b32.xlu1 %v5534_v34, %s11147_s29  ;;  %v5533_v37 = vmul.f32 0.5, %v11008_v35  ;;  %v10758_v34 = vld [vmem:[#allocation3 + $0x350] sm:$0xff]  }
0x3ffe   : > { %v5535_v38 = vadd.f32 0.5, %v5533_v37  ;;  %v9325_v37 = vld [vmem:[%s12986_s6 + $0x32] sm:$0x3] }
0x4000   : > { %5540 = vrot.lane.b32.xlu0 %v5535_v38, %s11147_s29  ;;  %v5763_v38 = vrot.slane %v9325_v37, %v11382_v36 }
0x406e   : > { %v5539_v39 = vpop.permute.xlu1 %5538 }
0x406f   : > { %v5544_v41 = vmul.f32 %v11006_v32, %v5539_v39  ;;  %v5767_v39 = vrot.slane %v9325_v37, %v11341_v52 }
0x4072   : > { %v5541_v40 = vpop.permute.xlu0 %5540 }
0x4073   : > { %v5545_v42 = vmul.f32 %v11008_v35, %v5541_v40  ;;  %v10759_v35 = vld [vmem:[#allocation3 + $0x348] sm:$0xff]  }
0x4075   : > { %v5546_v43 = vpack.c.bf16 %v5545_v42, %v5544_v41  ;;  %v10760_v41 = vld [vmem:[#allocation3 + $0x340] sm:$0xff]  }
0x4077   : > { %9317 = vmatmul.mubr.msk.bf16.vlgmr.msra.gmra.mxu1 %vm418_vm0, %v5546_v43 }
0x4078   : > { %10054 = vmatprep.mubr.msk.bf16.mxu1 %vm11145_vm1, %v11143_v0  ;;  %10047 = vmatpush3.bf16.msra.mxu1 %v10747_v44 }
0x4079   : > { %10048 = vmatprep.subr.bf16.mxu1 %v11143_v0 }
0x407c   : > { %10049 = vmatpush3.bf16.msra.mxu1 %v10748_v45 }
0x407d   : > { %10050 = vmatprep.subr.bf16.mxu1 %v11143_v0 }
0x4080   : > { %10051 = vmatpush3.bf16.msra.mxu1 %v10749_v46 }
0x4081   : > { %10052 = vmatprep.subr.bf16.mxu1 %v11143_v0 }
0x4084   : > { %10053 = vmatpush3.bf16.msra.mxu1 %v10750_v51 }
0x4137   : > { %v5622_v47 = vpop.f32.mrf.mxu1 }
0x4138   : > { %v5623_v53 = vadd.f32 %v5622_v47, %v5558_v49 }
0x4139   : > { %v5624_v54 = vpop.f32.mrf.mxu1 }
0x413a   : > { %v12324_v55 = vadd.f32 %v5623_v53, %v12283_v63  ;;  %v5625_v56 = vadd.f32 %v5624_v54, %v5562_v50  ;;  %v5638_v63 = vld [vmem:[#allocation2 + $0x1e8] sm:$0xff] }
0x413b   : > { %v5626_v57 = vpop.f32.mrf.mxu1 }
0x413c   : > { %v12327_v58 = vadd.f32 %v5625_v56, %v12286_v8  ;;  %v5627_v59 = vadd.f32 %v5626_v57, %v5558_v49  ;;  %v5843_v56 = vld [vmem:[#allocation2 + $0x1c8] sm:$0xff] }
0x413d   : > { %v5628_v60 = vpop.f32.mrf.mxu1 }
0x413e   : > { %5635 = vst.msk [vmem:[#allocation2 + $0x200] sm:$0xff] %vm418_vm0, %v12327_v58  ;;  %v12332_v61 = vadd.f32 %v5627_v59, %v12291_v10  ;;  %v5629_v62 = vadd.f32 %v5628_v60, %v5562_v50 }
0x4140   : > { %v12335_v2 = vadd.f32 %v5629_v62, %v12294_v12  ;;  %v10753_v12 = vld [vmem:[#allocation5 + $0x334] ss:$8 sps:$4 sm:$0xff]  }
0x4141   : > { %5805 = vmatprep.subr.bf16.mxu0 %v10753_v12 }
0x4142   : > { %5636 = vst.msk [vmem:[#allocation2 + $0x208] sm:$0xff] %vm418_vm0, %v12335_v2  ;;  %v10422_v3 = vpack.i.bf16 %v12335_v2, %v12327_v58  ;;  %5806 = vmatpush1.bf16.msra.mxu0 %v10751_v11  ;;  %v10766_v11 = vld [vmem:[#allocation5 + $0x344] ss:$8 sps:$4 sm:$0xff]  }
0x4143   : > { %5807 = vmatprep.subr.bf16.mxu0 %v10756_v21 }
0x4144   : > { %10423 = vrot.lane.b32.xlu1 %v10422_v3, %s11146_s26  ;;  %v10763_v3 = vld [vmem:[#allocation5 + $0x354] ss:$8 sps:$4 sm:$0xff]  }
0x4145   : > { %6010 = vmatprep.subr.bf16.mxu1 %v10763_v3 }
0x4146   : > { %5808 = vmatpush1.bf16.msra.mxu0 %v10754_v20 }
0x4147   : > { %10058 = vmatprep.subr.bf16.mxu0 %v11143_v0 }
0x41b6   : > { %v10424_v6 = vpop.permute.xlu1 %10423 }
0x41b7   : > { %v10426_v7 = vunpack.i.h.bf16 %v10424_v6  ;;  %v10425_v8 = vunpack.i.l.bf16 %v10424_v6 }
0x41b9   : > { %v5648_v5 = vsel %vm418_vm0, %v5638_v63, %v10426_v7  ;;  %v5647_v9 = vsel %vm418_vm0, %v5637_v4, %v10425_v8  ;;  %v9332_v4 = vld [vmem:[%s12984_s4 + $0x1a] ss:$0 sm:$0xff] }
0x41ba   : > { %v5649_v10 = vpack.c.bf16 %v5648_v5, %v5647_v9 }
0x41bc   : > { %10055 = vmatmul.mubr.msk.bf16.vlgmr.msra.gmra.mxu1 %vm567_vm2, %v5649_v10  ;;  %v10764_v10 = vld [vmem:[#allocation5 + $0x340] ss:$8 sps:$4 sm:$0xff]  }
0x41bd   : > { %6030 = vmatprep.mubr.bf16.mxu1 %v11144_v1 }
0x427c   : > { %v5728_v14 = vpop.f32.mrf.mxu1 }
0x427d   : > { %v5729_v15 = vadd.f32 %v9319_v13, %v5728_v14 }
0x427e   : > { %v10056_v16 = vpop.f32.mrf.mxu1 }
0x427f   : > { %11009 = vtanh.f32 %v5729_v15 }
0x4280   : > { %v5731_v17 = vpop.f32.mrf.mxu1 }
0x4281   : > { %v5732_v18 = vadd.f32 %v9319_v13, %v5731_v17 }
0x4282   : > { %v10057_v19 = vpop.f32.mrf.mxu1 }
0x4283   : > { %11011 = vtanh.f32 %v5732_v18 }
0x428c   : > { %v11010_v22 = vpop.eup %11009 }
0x428d   : > { %v5737_v23 = vmul.f32 0.5, %v11010_v22 }
0x428f   : > { %v5739_v25 = vadd.f32 0.5, %v5737_v23  ;;  %v10767_v23 = vld [vmem:[#allocation3 + $0x378] sm:$0xff]  }
0x4290   : > { %v11012_v26 = vpop.eup %11011 }
0x4291   : > { %5743 = vrot.lane.b32.xlu0 %v5739_v25, %s11147_s29  ;;  %v5738_v27 = vmul.f32 0.5, %v11012_v26  ;;  %v10768_v25 = vld [vmem:[#allocation3 + $0x370] sm:$0xff]  }
0x4293   : > { %v5740_v24 = vadd.f32 0.5, %v5738_v27  ;;  %v9338_v27 = vld [vmem:[%s12986_s6 + $0x34] sm:$0x3] }
0x4295   : > { %5745 = vrot.lane.b32.xlu1 %v5740_v24, %s11147_s29  ;;  %v5968_v24 = vrot.slane %v9338_v27, %v11382_v36 }
0x4303   : > { %v5744_v28 = vpop.permute.xlu0 %5743 }
0x4304   : > { %v5749_v30 = vmul.f32 %v11010_v22, %v5744_v28  ;;  %v5972_v28 = vrot.slane %v9338_v27, %v11341_v52 }
0x4307   : > { %v5746_v29 = vpop.permute.xlu1 %5745 }
0x4308   : > { %v5750_v31 = vmul.f32 %v11012_v26, %v5746_v29  ;;  %v10769_v26 = vld [vmem:[#allocation3 + $0x368] sm:$0xff]  }
0x430a   : > { %v5751_v32 = vpack.c.bf16 %v5750_v31, %v5749_v30  ;;  %v10770_v30 = vld [vmem:[#allocation3 + $0x360] sm:$0xff]  }
0x430c   : > { %9330 = vmatmul.mubr.msk.bf16.vlgmr.msra.gmra.mxu0 %vm418_vm0, %v5751_v32 }
0x430d   : > { %10066 = vmatprep.mubr.msk.bf16.mxu0 %vm11145_vm1, %v11143_v0  ;;  %10059 = vmatpush3.bf16.msra.mxu0 %v10757_v33 }
0x430e   : > { %10060 = vmatprep.subr.bf16.mxu0 %v11143_v0 }
0x4311   : > { %10061 = vmatpush3.bf16.msra.mxu0 %v10758_v34 }
0x4312   : > { %10062 = vmatprep.subr.bf16.mxu0 %v11143_v0 }
0x4315   : > { %10063 = vmatpush3.bf16.msra.mxu0 %v10759_v35 }
0x4316   : > { %10064 = vmatprep.subr.bf16.mxu0 %v11143_v0 }
0x4319   : > { %10065 = vmatpush3.bf16.msra.mxu0 %v10760_v41 }
0x43cc   : > { %v5827_v40 = vpop.f32.mrf.mxu0 }
0x43cd   : > { %v5828_v42 = vadd.f32 %v5827_v40, %v5763_v38 }
0x43ce   : > { %v5829_v43 = vpop.f32.mrf.mxu0 }
0x43cf   : > { %v12364_v44 = vadd.f32 %v5828_v42, %v12324_v55  ;;  %v5830_v45 = vadd.f32 %v5829_v43, %v5767_v39  ;;  %v5842_v55 = vld [vmem:[#allocation2 + $0x1c0] sm:$0xff] }
0x43d0   : > { %v5831_v46 = vpop.f32.mrf.mxu0 }
0x43d1   : > { %v12367_v48 = vadd.f32 %v5830_v45, %v12327_v58  ;;  %v5832_v49 = vadd.f32 %v5831_v46, %v5763_v38  ;;  %v6048_v45 = vld [vmem:[#allocation2 + $0x188] sm:$0xff] }
0x43d2   : > { %v5833_v50 = vpop.f32.mrf.mxu0 }
0x43d3   : > { %5840 = vst.msk [vmem:[#allocation2 + $0x200] sm:$0xff] %vm418_vm0, %v12367_v48  ;;  %v12372_v47 = vadd.f32 %v5832_v49, %v12332_v61  ;;  %v5834_v51 = vadd.f32 %v5833_v50, %v5767_v39 }
0x43d5   : > { %v12375_v53 = vadd.f32 %v5834_v51, %v12335_v2  ;;  %v10761_v2 = vld [vmem:[#allocation5 + $0x350] ss:$8 sps:$4 sm:$0xff]  }
0x43d6   : > { %6011 = vmatpush1.bf16.msra.mxu1 %v10761_v2  ;;  %v10776_v2 = vld [vmem:[#allocation5 + $0x364] ss:$8 sps:$4 sm:$0xff]  }
0x43d7   : > { %5841 = vst.msk [vmem:[#allocation2 + $0x208] sm:$0xff] %vm418_vm0, %v12375_v53  ;;  %v10427_v54 = vpack.i.bf16 %v12375_v53, %v12367_v48  ;;  %6012 = vmatprep.subr.bf16.mxu1 %v10766_v11 }
0x43d9   : > { %10428 = vrot.lane.b32.xlu0 %v10427_v54, %s11146_s26  ;;  %v10773_v54 = vld [vmem:[#allocation5 + $0x374] ss:$8 sps:$4 sm:$0xff]  }
0x43da   : > { %6013 = vmatpush1.bf16.msra.mxu1 %v10764_v10  ;;  %6215 = vmatprep.subr.bf16.mxu0 %v10773_v54 }
0x43db   : > { %10070 = vmatprep.subr.bf16.mxu1 %v11143_v0 }
0x444b   : > { %v10429_v57 = vpop.permute.xlu0 %10428 }
0x444c   : > { %v10431_v58 = vunpack.i.h.bf16 %v10429_v57  ;;  %v10430_v59 = vunpack.i.l.bf16 %v10429_v57 }
0x444e   : > { %v5853_v60 = vsel %vm418_vm0, %v5843_v56, %v10431_v58  ;;  %v5852_v61 = vsel %vm418_vm0, %v5842_v55, %v10430_v59  ;;  %v9345_v55 = vld [vmem:[%s12984_s4 + $0x1b] ss:$0 sm:$0xff] }
0x444f   : > { %v5854_v62 = vpack.c.bf16 %v5853_v60, %v5852_v61 }
0x4451   : > { %10067 = vmatmul.mubr.msk.bf16.vlgmr.msra.gmra.mxu0 %vm567_vm2, %v5854_v62  ;;  %v10774_v62 = vld [vmem:[#allocation5 + $0x360] ss:$8 sps:$4 sm:$0xff]  }
0x4452   : > { %6235 = vmatprep.mubr.bf16.mxu0 %v11144_v1 }
0x4511   : > { %v5933_v63 = vpop.f32.mrf.mxu0 }
0x4512   : > { %v5934_v6 = vadd.f32 %v9332_v4, %v5933_v63 }
0x4513   : > { %v10068_v7 = vpop.f32.mrf.mxu0 }
0x4514   : > { %11013 = vtanh.f32 %v5934_v6 }
0x4515   : > { %v5936_v8 = vpop.f32.mrf.mxu0 }
0x4516   : > { %v5937_v5 = vadd.f32 %v9332_v4, %v5936_v8 }
0x4517   : > { %v10069_v9 = vpop.f32.mrf.mxu0 }
0x4518   : > { %11015 = vtanh.f32 %v5937_v5 }
0x4521   : > { %v11014_v12 = vpop.eup %11013 }
0x4522   : > { %v5942_v13 = vmul.f32 0.5, %v11014_v12 }
0x4524   : > { %v5944_v14 = vadd.f32 0.5, %v5942_v13  ;;  %v10777_v13 = vld [vmem:[#allocation3 + $0x398] sm:$0xff]  }
0x4525   : > { %v11016_v15 = vpop.eup %11015 }
0x4526   : > { %5948 = vrot.lane.b32.xlu1 %v5944_v14, %s11147_s29  ;;  %v5943_v16 = vmul.f32 0.5, %v11016_v15  ;;  %v10778_v14 = vld [vmem:[#allocation3 + $0x390] sm:$0xff]  }
0x4528   : > { %v5945_v17 = vadd.f32 0.5, %v5943_v16  ;;  %v9351_v16 = vld [vmem:[%s12986_s6 + $0x36] sm:$0x3] }
0x452a   : > { %5950 = vrot.lane.b32.xlu0 %v5945_v17, %s11147_s29  ;;  %v6173_v17 = vrot.slane %v9351_v16, %v11382_v36 }
0x4598   : > { %v5949_v18 = vpop.permute.xlu1 %5948 }
0x4599   : > { %v5954_v20 = vmul.f32 %v11014_v12, %v5949_v18  ;;  %v6177_v18 = vrot.slane %v9351_v16, %v11341_v52 }
0x459c   : > { %v5951_v19 = vpop.permute.xlu0 %5950 }
0x459d   : > { %v5955_v21 = vmul.f32 %v11016_v15, %v5951_v19  ;;  %v10779_v15 = vld [vmem:[#allocation3 + $0x388] sm:$0xff]  }
0x459f   : > { %v5956_v22 = vpack.c.bf16 %v5955_v21, %v5954_v20  ;;  %v10780_v20 = vld [vmem:[#allocation3 + $0x380] sm:$0xff]  }
0x45a1   : > { %9343 = vmatmul.mubr.msk.bf16.vlgmr.msra.gmra.mxu1 %vm418_vm0, %v5956_v22 }
0x45a2   : > { %10078 = vmatprep.mubr.msk.bf16.mxu1 %vm11145_vm1, %v11143_v0  ;;  %10071 = vmatpush3.bf16.msra.mxu1 %v10767_v23 }
0x45a3   : > { %10072 = vmatprep.subr.bf16.mxu1 %v11143_v0 }
0x45a6   : > { %10073 = vmatpush3.bf16.msra.mxu1 %v10768_v25 }
0x45a7   : > { %10074 = vmatprep.subr.bf16.mxu1 %v11143_v0 }
0x45aa   : > { %10075 = vmatpush3.bf16.msra.mxu1 %v10769_v26 }
0x45ab   : > { %10076 = vmatprep.subr.bf16.mxu1 %v11143_v0 }
0x45ae   : > { %10077 = vmatpush3.bf16.msra.mxu1 %v10770_v30 }
0x4661   : > { %v6032_v29 = vpop.f32.mrf.mxu1 }
0x4662   : > { %v6033_v31 = vadd.f32 %v6032_v29, %v5968_v24 }
0x4663   : > { %v6034_v32 = vpop.f32.mrf.mxu1 }
0x4664   : > { %v12404_v33 = vadd.f32 %v6033_v31, %v12364_v44  ;;  %v6035_v34 = vadd.f32 %v6034_v32, %v5972_v28  ;;  %v6047_v44 = vld [vmem:[#allocation2 + $0x180] sm:$0xff] }
0x4665   : > { %v6036_v35 = vpop.f32.mrf.mxu1 }
0x4666   : > { %v12407_v37 = vadd.f32 %v6035_v34, %v12367_v48  ;;  %v6037_v38 = vadd.f32 %v6036_v35, %v5968_v24  ;;  %v6253_v34 = vld [vmem:[#allocation2 + $0x108] sm:$0xff] }
0x4667   : > { %v6038_v39 = vpop.f32.mrf.mxu1 }
0x4668   : > { %6045 = vst.msk [vmem:[#allocation2 + $0x200] sm:$0xff] %vm418_vm0, %v12407_v37  ;;  %v12412_v40 = vadd.f32 %v6037_v38, %v12372_v47  ;;  %v6039_v41 = vadd.f32 %v6038_v39, %v5972_v28 }
0x466a   : > { %v12415_v42 = vadd.f32 %v6039_v41, %v12375_v53  ;;  %v10771_v53 = vld [vmem:[#allocation5 + $0x370] ss:$8 sps:$4 sm:$0xff]  }
0x466b   : > { %6216 = vmatpush1.bf16.msra.mxu0 %v10771_v53  ;;  %v10786_v53 = vld [vmem:[#allocation5 + $0x384] ss:$8 sps:$4 sm:$0xff]  }
0x466c   : > { %6046 = vst.msk [vmem:[#allocation2 + $0x208] sm:$0xff] %vm418_vm0, %v12415_v42  ;;  %v10432_v43 = vpack.i.bf16 %v12415_v42, %v12407_v37  ;;  %6217 = vmatprep.subr.bf16.mxu0 %v10776_v2 }
0x466e   : > { %10433 = vrot.lane.b32.xlu1 %v10432_v43, %s11146_s26  ;;  %v10783_v43 = vld [vmem:[#allocation5 + $0x394] ss:$8 sps:$4 sm:$0xff]  }
0x466f   : > { %6218 = vmatpush1.bf16.msra.mxu0 %v10774_v62  ;;  %6420 = vmatprep.subr.bf16.mxu1 %v10783_v43 }
0x4670   : > { %10082 = vmatprep.subr.bf16.mxu0 %v11143_v0 }
0x46e0   : > { %v10434_v46 = vpop.permute.xlu1 %10433 }
0x46e1   : > { %v10436_v48 = vunpack.i.h.bf16 %v10434_v46  ;;  %v10435_v49 = vunpack.i.l.bf16 %v10434_v46 }
0x46e3   : > { %v6058_v50 = vsel %vm418_vm0, %v6048_v45, %v10436_v48  ;;  %v6057_v47 = vsel %vm418_vm0, %v6047_v44, %v10435_v49  ;;  %v9358_v44 = vld [vmem:[%s12984_s4 + $0x1c] ss:$0 sm:$0xff] }
0x46e4   : > { %v6059_v51 = vpack.c.bf16 %v6058_v50, %v6057_v47 }
0x46e6   : > { %10079 = vmatmul.mubr.msk.bf16.vlgmr.msra.gmra.mxu1 %vm567_vm2, %v6059_v51  ;;  %v10784_v51 = vld [vmem:[#allocation5 + $0x380] ss:$8 sps:$4 sm:$0xff]  }
0x46e7   : > { %6440 = vmatprep.mubr.bf16.mxu1 %v11144_v1 }
0x47a6   : > { %v6138_v56 = vpop.f32.mrf.mxu1 }
0x47a7   : > { %v6139_v57 = vadd.f32 %v9345_v55, %v6138_v56 }
0x47a8   : > { %v10080_v58 = vpop.f32.mrf.mxu1 }
0x47a9   : > { %11017 = vtanh.f32 %v6139_v57 }
0x47aa   : > { %v6141_v59 = vpop.f32.mrf.mxu1 }
0x47ab   : > { %v6142_v60 = vadd.f32 %v9345_v55, %v6141_v59 }
0x47ac   : > { %v10081_v61 = vpop.f32.mrf.mxu1 }
0x47ad   : > { %11019 = vtanh.f32 %v6142_v60 }
0x47b6   : > { %v11018_v3 = vpop.eup %11017 }
0x47b7   : > { %v6147_v4 = vmul.f32 0.5, %v11018_v3 }
0x47b9   : > { %v6149_v63 = vadd.f32 0.5, %v6147_v4  ;;  %v10787_v4 = vld [vmem:[#allocation3 + $0x3b8] sm:$0xff]  }
0x47ba   : > { %v11020_v6 = vpop.eup %11019 }
0x47bb   : > { %6153 = vrot.lane.b32.xlu0 %v6149_v63, %s11147_s29  ;;  %v6148_v7 = vmul.f32 0.5, %v11020_v6  ;;  %v10788_v63 = vld [vmem:[#allocation3 + $0x3b0] sm:$0xff]  }
0x47bd   : > { %v6150_v8 = vadd.f32 0.5, %v6148_v7  ;;  %v9364_v7 = vld [vmem:[%s12986_s6 + $0x38] sm:$0x3] }
0x47bf   : > { %6155 = vrot.lane.b32.xlu1 %v6150_v8, %s11147_s29  ;;  %v6378_v8 = vrot.slane %v9364_v7, %v11382_v36 }
0x482d   : > { %v6154_v5 = vpop.permute.xlu0 %6153 }
0x482e   : > { %v6159_v10 = vmul.f32 %v11018_v3, %v6154_v5  ;;  %v6382_v5 = vrot.slane %v9364_v7, %v11341_v52 }
0x4831   : > { %v6156_v9 = vpop.permute.xlu1 %6155 }
0x4832   : > { %v6160_v11 = vmul.f32 %v11020_v6, %v6156_v9  ;;  %v10789_v6 = vld [vmem:[#allocation3 + $0x3a8] sm:$0xff]  }
0x4834   : > { %v6161_v12 = vpack.c.bf16 %v6160_v11, %v6159_v10  ;;  %v10790_v10 = vld [vmem:[#allocation3 + $0x3a0] sm:$0xff]  }
0x4836   : > { %9356 = vmatmul.mubr.msk.bf16.vlgmr.msra.gmra.mxu0 %vm418_vm0, %v6161_v12 }
0x4837   : > { %10090 = vmatprep.mubr.msk.bf16.mxu0 %vm11145_vm1, %v11143_v0  ;;  %10083 = vmatpush3.bf16.msra.mxu0 %v10777_v13 }
0x4838   : > { %10084 = vmatprep.subr.bf16.mxu0 %v11143_v0 }
0x483b   : > { %10085 = vmatpush3.bf16.msra.mxu0 %v10778_v14 }
0x483c   : > { %10086 = vmatprep.subr.bf16.mxu0 %v11143_v0 }
0x483f   : > { %10087 = vmatpush3.bf16.msra.mxu0 %v10779_v15 }
0x4840   : > { %10088 = vmatprep.subr.bf16.mxu0 %v11143_v0 }
0x4843   : > { %10089 = vmatpush3.bf16.msra.mxu0 %v10780_v20 }
0x48f6   : > { %v6237_v19 = vpop.f32.mrf.mxu0 }
0x48f7   : > { %v6238_v21 = vadd.f32 %v6237_v19, %v6173_v17 }
0x48f8   : > { %v6239_v22 = vpop.f32.mrf.mxu0 }
0x48f9   : > { %v12444_v23 = vadd.f32 %v6238_v21, %v12404_v33  ;;  %v6240_v25 = vadd.f32 %v6239_v22, %v6177_v18  ;;  %v6252_v33 = vld [vmem:[#allocation2 + $0x100] sm:$0xff] }
0x48fa   : > { %v6241_v26 = vpop.f32.mrf.mxu0 }
0x48fb   : > { %v12447_v27 = vadd.f32 %v6240_v25, %v12407_v37  ;;  %v6242_v24 = vadd.f32 %v6241_v26, %v6173_v17  ;;  %v6458_v25 = vld [vmem:[#allocation2 + $0x8] sm:$0xff] }
0x48fc   : > { %v6243_v28 = vpop.f32.mrf.mxu0 }
0x48fd   : > { %6250 = vst.msk [vmem:[#allocation2 + $0x200] sm:$0xff] %vm418_vm0, %v12447_v27  ;;  %v12452_v29 = vadd.f32 %v6242_v24, %v12412_v40  ;;  %v6244_v30 = vadd.f32 %v6243_v28, %v6177_v18 }
0x48ff   : > { %v12455_v31 = vadd.f32 %v6244_v30, %v12415_v42  ;;  %v10781_v42 = vld [vmem:[#allocation5 + $0x390] ss:$8 sps:$4 sm:$0xff]  }
0x4900   : > { %6421 = vmatpush1.bf16.msra.mxu1 %v10781_v42  ;;  %v10796_v42 = vld [vmem:[#allocation5 + $0x3a4] ss:$8 sps:$4 sm:$0xff]  }
0x4901   : > { %6251 = vst.msk [vmem:[#allocation2 + $0x208] sm:$0xff] %vm418_vm0, %v12455_v31  ;;  %v10437_v32 = vpack.i.bf16 %v12455_v31, %v12447_v27  ;;  %6422 = vmatprep.subr.bf16.mxu1 %v10786_v53 }
0x4903   : > { %10438 = vrot.lane.b32.xlu0 %v10437_v32, %s11146_s26  ;;  %v10793_v32 = vld [vmem:[#allocation5 + $0x3b4] ss:$8 sps:$4 sm:$0xff]  }
0x4904   : > { %6423 = vmatpush1.bf16.msra.mxu1 %v10784_v51  ;;  %6625 = vmatprep.subr.bf16.mxu0 %v10793_v32 }
0x4905   : > { %10094 = vmatprep.subr.bf16.mxu1 %v11143_v0 }
0x4975   : > { %v10439_v35 = vpop.permute.xlu0 %10438 }
0x4976   : > { %v10441_v37 = vunpack.i.h.bf16 %v10439_v35  ;;  %v10440_v38 = vunpack.i.l.bf16 %v10439_v35 }
0x4978   : > { %v6263_v39 = vsel %vm418_vm0, %v6253_v34, %v10441_v37  ;;  %v6262_v40 = vsel %vm418_vm0, %v6252_v33, %v10440_v38  ;;  %v9371_v33 = vld [vmem:[%s12984_s4 + $0x1d] ss:$0 sm:$0xff] }
0x4979   : > { %v6264_v41 = vpack.c.bf16 %v6263_v39, %v6262_v40 }
0x497b   : > { %10091 = vmatmul.mubr.msk.bf16.vlgmr.msra.gmra.mxu0 %vm567_vm2, %v6264_v41  ;;  %v10794_v41 = vld [vmem:[#allocation5 + $0x3a0] ss:$8 sps:$4 sm:$0xff]  }
0x497c   : > { %6645 = vmatprep.mubr.bf16.mxu0 %v11144_v1 }
0x4a3b   : > { %v6343_v45 = vpop.f32.mrf.mxu0 }
0x4a3c   : > { %v6344_v46 = vadd.f32 %v9358_v44, %v6343_v45 }
0x4a3d   : > { %v10092_v48 = vpop.f32.mrf.mxu0 }
0x4a3e   : > { %11021 = vtanh.f32 %v6344_v46 }
0x4a3f   : > { %v6346_v49 = vpop.f32.mrf.mxu0 }
0x4a40   : > { %v6347_v50 = vadd.f32 %v9358_v44, %v6346_v49 }
0x4a41   : > { %v10093_v47 = vpop.f32.mrf.mxu0 }
0x4a42   : > { %11023 = vtanh.f32 %v6347_v50 }
0x4a4b   : > { %v11022_v54 = vpop.eup %11021 }
0x4a4c   : > { %v6352_v55 = vmul.f32 0.5, %v11022_v54 }
0x4a4e   : > { %v6354_v56 = vadd.f32 0.5, %v6352_v55  ;;  %v10797_v55 = vld [vmem:[#allocation3 + $0x3d8] sm:$0xff]  }
0x4a4f   : > { %v11024_v57 = vpop.eup %11023 }
0x4a50   : > { %6358 = vrot.lane.b32.xlu1 %v6354_v56, %s11147_s29  ;;  %v6353_v58 = vmul.f32 0.5, %v11024_v57  ;;  %v10798_v56 = vld [vmem:[#allocation3 + $0x3d0] sm:$0xff]  }
0x4a52   : > { %v6355_v59 = vadd.f32 0.5, %v6353_v58  ;;  %v9377_v58 = vld [vmem:[%s12986_s6 + $0x3a] sm:$0x3] }
0x4a54   : > { %6360 = vrot.lane.b32.xlu0 %v6355_v59, %s11147_s29  ;;  %v6583_v59 = vrot.slane %v9377_v58, %v11382_v36 }
0x4ac2   : > { %v6359_v60 = vpop.permute.xlu1 %6358 }
0x4ac3   : > { %v6364_v62 = vmul.f32 %v11022_v54, %v6359_v60  ;;  %v6587_v60 = vrot.slane %v9377_v58, %v11341_v52 }
0x4ac6   : > { %v6361_v61 = vpop.permute.xlu0 %6360 }
0x4ac7   : > { %v6365_v2 = vmul.f32 %v11024_v57, %v6361_v61  ;;  %v10799_v57 = vld [vmem:[#allocation3 + $0x3c8] sm:$0xff]  }
0x4ac9   : > { %v6366_v3 = vpack.c.bf16 %v6365_v2, %v6364_v62  ;;  %v10800_v62 = vld [vmem:[#allocation3 + $0x3c0] sm:$0xff]  }
0x4acb   : > { %9369 = vmatmul.mubr.msk.bf16.vlgmr.msra.gmra.mxu1 %vm418_vm0, %v6366_v3 }
0x4acc   : > { %10102 = vmatprep.mubr.msk.bf16.mxu1 %vm11145_vm1, %v11143_v0  ;;  %10095 = vmatpush3.bf16.msra.mxu1 %v10787_v4 }
0x4acd   : > { %10096 = vmatprep.subr.bf16.mxu1 %v11143_v0 }
0x4ad0   : > { %10097 = vmatpush3.bf16.msra.mxu1 %v10788_v63 }
0x4ad1   : > { %10098 = vmatprep.subr.bf16.mxu1 %v11143_v0 }
0x4ad4   : > { %10099 = vmatpush3.bf16.msra.mxu1 %v10789_v6 }
0x4ad5   : > { %10100 = vmatprep.subr.bf16.mxu1 %v11143_v0 }
0x4ad8   : > { %10101 = vmatpush3.bf16.msra.mxu1 %v10790_v10 }
0x4b8b   : > { %v6442_v9 = vpop.f32.mrf.mxu1 }
0x4b8c   : > { %v6443_v11 = vadd.f32 %v6442_v9, %v6378_v8 }
0x4b8d   : > { %v6444_v12 = vpop.f32.mrf.mxu1 }
0x4b8e   : > { %v12484_v13 = vadd.f32 %v6443_v11, %v12444_v23  ;;  %v6445_v14 = vadd.f32 %v6444_v12, %v6382_v5  ;;  %v6457_v23 = vld [vmem:[#allocation2] sm:$0xff] }
0x4b8f   : > { %v6446_v15 = vpop.f32.mrf.mxu1 }
0x4b90   : > { %v12487_v16 = vadd.f32 %v6445_v14, %v12447_v27  ;;  %v6447_v17 = vadd.f32 %v6446_v15, %v6378_v8 }
0x4b91   : > { %v6448_v18 = vpop.f32.mrf.mxu1 }
0x4b92   : > { %6455 = vst.msk [vmem:[#allocation2 + $0x200] sm:$0xff] %vm418_vm0, %v12487_v16  ;;  %v12492_v19 = vadd.f32 %v6447_v17, %v12452_v29  ;;  %v6449_v20 = vadd.f32 %v6448_v18, %v6382_v5 }
0x4b94   : > { %v12495_v21 = vadd.f32 %v6449_v20, %v12455_v31  ;;  %v10791_v31 = vld [vmem:[#allocation5 + $0x3b0] ss:$8 sps:$4 sm:$0xff]  }
0x4b95   : > { %6626 = vmatpush1.bf16.msra.mxu0 %v10791_v31  ;;  %v10806_v31 = vld [vmem:[#allocation5 + $0x3c4] ss:$8 sps:$4 sm:$0xff]  }
0x4b96   : > { %6456 = vst.msk [vmem:[#allocation2 + $0x208] sm:$0xff] %vm418_vm0, %v12495_v21  ;;  %v10442_v22 = vpack.i.bf16 %v12495_v21, %v12487_v16  ;;  %6627 = vmatprep.subr.bf16.mxu0 %v10796_v42 }
0x4b98   : > { %10443 = vrot.lane.b32.xlu1 %v10442_v22, %s11146_s26  ;;  %v10803_v22 = vld [vmem:[#allocation5 + $0x3d4] ss:$8 sps:$4 sm:$0xff]  }
0x4b99   : > { %6628 = vmatpush1.bf16.msra.mxu0 %v10794_v41  ;;  %6830 = vmatprep.subr.bf16.mxu1 %v10803_v22 }
0x4b9a   : > { %10106 = vmatprep.subr.bf16.mxu0 %v11143_v0 }
0x4c0a   : > { %v10444_v26 = vpop.permute.xlu1 %10443 }
0x4c0b   : > { %v10446_v27 = vunpack.i.h.bf16 %v10444_v26  ;;  %v10445_v24 = vunpack.i.l.bf16 %v10444_v26 }
0x4c0d   : > { %v6468_v28 = vsel %vm418_vm0, %v6458_v25, %v10446_v27  ;;  %v6467_v29 = vsel %vm418_vm0, %v6457_v23, %v10445_v24  ;;  %v9384_v23 = vld [vmem:[%s12984_s4 + $0x1e] ss:$0 sm:$0xff] }
0x4c0e   : > { %v6469_v30 = vpack.c.bf16 %v6468_v28, %v6467_v29 }
0x4c10   : > { %10103 = vmatmul.mubr.msk.bf16.vlgmr.msra.gmra.mxu1 %vm567_vm2, %v6469_v30  ;;  %v10804_v30 = vld [vmem:[#allocation5 + $0x3c0] ss:$8 sps:$4 sm:$0xff]  }
0x4c11   : > { %6850 = vmatprep.mubr.bf16.mxu1 %v11144_v1 }
0x4cd0   : > { %v6548_v34 = vpop.f32.mrf.mxu1 }
0x4cd1   : > { %v6549_v35 = vadd.f32 %v9371_v33, %v6548_v34 }
0x4cd2   : > { %v10104_v37 = vpop.f32.mrf.mxu1 }
0x4cd3   : > { %11025 = vtanh.f32 %v6549_v35 }
0x4cd4   : > { %v6551_v38 = vpop.f32.mrf.mxu1 }
0x4cd5   : > { %v6552_v39 = vadd.f32 %v9371_v33, %v6551_v38 }
0x4cd6   : > { %v10105_v40 = vpop.f32.mrf.mxu1 }
0x4cd7   : > { %11027 = vtanh.f32 %v6552_v39 }
0x4ce0   : > { %v11026_v43 = vpop.eup %11025 }
0x4ce1   : > { %v6557_v44 = vmul.f32 0.5, %v11026_v43 }
0x4ce3   : > { %v6559_v45 = vadd.f32 0.5, %v6557_v44  ;;  %v10807_v44 = vld [vmem:[#allocation3 + $0x3f8] sm:$0xff]  }
0x4ce4   : > { %v11028_v46 = vpop.eup %11027 }
0x4ce5   : > { %6563 = vrot.lane.b32.xlu0 %v6559_v45, %s11147_s29  ;;  %v6558_v48 = vmul.f32 0.5, %v11028_v46  ;;  %v10808_v45 = vld [vmem:[#allocation3 + $0x3f0] sm:$0xff]  }
0x4ce7   : > { %v6560_v49 = vadd.f32 0.5, %v6558_v48  ;;  %v9390_v48 = vld [vmem:[%s12986_s6 + $0x3c] sm:$0x3] }
0x4ce9   : > { %6565 = vrot.lane.b32.xlu1 %v6560_v49, %s11147_s29  ;;  %v6788_v49 = vrot.slane %v9390_v48, %v11382_v36 }
0x4d57   : > { %v6564_v50 = vpop.permute.xlu0 %6563 }
0x4d58   : > { %v6569_v51 = vmul.f32 %v11026_v43, %v6564_v50  ;;  %v6792_v50 = vrot.slane %v9390_v48, %v11341_v52 }
0x4d5b   : > { %v6566_v47 = vpop.permute.xlu1 %6565 }
0x4d5c   : > { %v6570_v53 = vmul.f32 %v11028_v46, %v6566_v47  ;;  %v10809_v46 = vld [vmem:[#allocation3 + $0x3e8] sm:$0xff]  }
0x4d5e   : > { %v6571_v54 = vpack.c.bf16 %v6570_v53, %v6569_v51  ;;  %v10810_v51 = vld [vmem:[#allocation3 + $0x3e0] sm:$0xff]  }
0x4d60   : > { %9382 = vmatmul.mubr.msk.bf16.vlgmr.msra.gmra.mxu0 %vm418_vm0, %v6571_v54 }
0x4d61   : > { %10114 = vmatprep.mubr.msk.bf16.mxu0 %vm11145_vm1, %v11143_v0  ;;  %10107 = vmatpush3.bf16.msra.mxu0 %v10797_v55 }
0x4d62   : > { %10108 = vmatprep.subr.bf16.mxu0 %v11143_v0 }
0x4d65   : > { %10109 = vmatpush3.bf16.msra.mxu0 %v10798_v56 }
0x4d66   : > { %10110 = vmatprep.subr.bf16.mxu0 %v11143_v0 }
0x4d69   : > { %10111 = vmatpush3.bf16.msra.mxu0 %v10799_v57 }
0x4d6a   : > { %10112 = vmatprep.subr.bf16.mxu0 %v11143_v0 }
0x4d6d   : > { %10113 = vmatpush3.bf16.msra.mxu0 %v10800_v62 }
0x4e20   : > { %v6647_v61 = vpop.f32.mrf.mxu0 }
0x4e21   : > { %v6648_v2 = vadd.f32 %v6647_v61, %v6583_v59 }
0x4e22   : > { %v6649_v3 = vpop.f32.mrf.mxu0 }
0x4e23   : > { %v12524_v4 = vadd.f32 %v6648_v2, %v12484_v13  ;;  %v6650_v63 = vadd.f32 %v6649_v3, %v6587_v60 }
0x4e24   : > { %v6651_v6 = vpop.f32.mrf.mxu0 }
0x4e25   : > { %v12527_v7 = vadd.f32 %v6650_v63, %v12487_v16  ;;  %v6652_v8 = vadd.f32 %v6651_v6, %v6583_v59 }
0x4e26   : > { %v6653_v5 = vpop.f32.mrf.mxu0 }
0x4e27   : > { %6660 = vst.msk [vmem:[#allocation2 + $0x200] sm:$0xff] %vm418_vm0, %v12527_v7  ;;  %v12532_v9 = vadd.f32 %v6652_v8, %v12492_v19  ;;  %v6654_v10 = vadd.f32 %v6653_v5, %v6587_v60 }
0x4e29   : > { %v12535_v11 = vadd.f32 %v6654_v10, %v12495_v21  ;;  %v10801_v21 = vld [vmem:[#allocation5 + $0x3d0] ss:$8 sps:$4 sm:$0xff]  }
0x4e2a   : > { %6831 = vmatpush1.bf16.msra.mxu1 %v10801_v21  ;;  %v10816_v21 = vld [vmem:[#allocation5 + $0x3e4] ss:$8 sps:$4 sm:$0xff]  }
0x4e2b   : > { %6661 = vst.msk [vmem:[#allocation2 + $0x208] sm:$0xff] %vm418_vm0, %v12535_v11  ;;  %v10447_v12 = vpack.i.bf16 %v12535_v11, %v12527_v7  ;;  %6832 = vmatprep.subr.bf16.mxu1 %v10806_v31 }
0x4e2d   : > { %10448 = vrot.lane.b32.xlu0 %v10447_v12, %s11146_s26  ;;  %v10813_v12 = vld [vmem:[#allocation5 + $0x3f4] ss:$8 sps:$4 sm:$0xff]  }
0x4e2e   : > { %v6662_v16 = vld [vmem:[#allocation2 + $0x1ff] sm:$0xff]  ;;  %6833 = vmatpush1.bf16.msra.mxu1 %v10804_v30  ;;  %7035 = vmatprep.subr.bf16.mxu0 %v10813_v12 }
0x4e2f   : > { %10118 = vmatprep.subr.bf16.mxu1 %v11143_v0 }
0x4e32   : > { %v6663_v17 = vld [vmem:[#allocation2 + $0x207] sm:$0xff] }
0x4e9f   : > { %v10449_v13 = vpop.permute.xlu0 %10448 }
0x4ea0   : > { %v10451_v14 = vunpack.i.h.bf16 %v10449_v13  ;;  %v10450_v15 = vunpack.i.l.bf16 %v10449_v13  ;;  %v9397_v13 = vld [vmem:[%s12984_s4 + $0x1f] ss:$0 sm:$0xff] }
0x4ea2   : > { %v6672_v18 = vsel %vm418_vm0, %v6662_v16, %v10450_v15  ;;  %v6673_v19 = vsel %vm418_vm0, %v6663_v17, %v10451_v14 }
0x4ea3   : > { %v6674_v20 = vpack.c.bf16 %v6673_v19, %v6672_v18 }
0x4ea5   : > { %10115 = vmatmul.mubr.msk.bf16.vlgmr.msra.gmra.mxu0 %vm567_vm2, %v6674_v20  ;;  %v10814_v20 = vld [vmem:[#allocation5 + $0x3e0] ss:$8 sps:$4 sm:$0xff]  }
0x4ea6   : > { %7055 = vmatprep.mubr.bf16.mxu0 %v11144_v1 }
0x4f65   : > { %v6753_v25 = vpop.f32.mrf.mxu0 }
0x4f66   : > { %v6754_v26 = vadd.f32 %v9384_v23, %v6753_v25 }
0x4f67   : > { %v10116_v27 = vpop.f32.mrf.mxu0 }
0x4f68   : > { %11029 = vtanh.f32 %v6754_v26 }
0x4f69   : > { %v6756_v24 = vpop.f32.mrf.mxu0 }
0x4f6a   : > { %v6757_v28 = vadd.f32 %v9384_v23, %v6756_v24 }
0x4f6b   : > { %v10117_v29 = vpop.f32.mrf.mxu0 }
0x4f6c   : > { %11031 = vtanh.f32 %v6757_v28 }
0x4f75   : > { %v11030_v32 = vpop.eup %11029 }
0x4f76   : > { %v6762_v33 = vmul.f32 0.5, %v11030_v32 }
0x4f78   : > { %v6764_v34 = vadd.f32 0.5, %v6762_v33  ;;  %v10817_v33 = vld [vmem:[#allocation3 + $0x418] sm:$0xff]  }
0x4f79   : > { %v11032_v35 = vpop.eup %11031 }
0x4f7a   : > { %6768 = vrot.lane.b32.xlu1 %v6764_v34, %s11147_s29  ;;  %v6763_v37 = vmul.f32 0.5, %v11032_v35  ;;  %v10818_v34 = vld [vmem:[#allocation3 + $0x410] sm:$0xff]  }
0x4f7c   : > { %v6765_v38 = vadd.f32 0.5, %v6763_v37  ;;  %v9403_v37 = vld [vmem:[%s12986_s6 + $0x3e] sm:$0x3] }
0x4f7e   : > { %6770 = vrot.lane.b32.xlu0 %v6765_v38, %s11147_s29  ;;  %v6993_v38 = vrot.slane %v9403_v37, %v11382_v36 }
0x4fec   : > { %v6769_v39 = vpop.permute.xlu1 %6768 }
0x4fed   : > { %v6774_v41 = vmul.f32 %v11030_v32, %v6769_v39  ;;  %v6997_v39 = vrot.slane %v9403_v37, %v11341_v52 }
0x4ff0   : > { %v6771_v40 = vpop.permute.xlu0 %6770 }
0x4ff1   : > { %v6775_v42 = vmul.f32 %v11032_v35, %v6771_v40  ;;  %v10819_v35 = vld [vmem:[#allocation3 + $0x408] sm:$0xff]  }
0x4ff3   : > { %v6776_v43 = vpack.c.bf16 %v6775_v42, %v6774_v41  ;;  %v10820_v41 = vld [vmem:[#allocation3 + $0x400] sm:$0xff]  }
0x4ff5   : > { %9395 = vmatmul.mubr.msk.bf16.vlgmr.msra.gmra.mxu1 %vm418_vm0, %v6776_v43 }
0x4ff6   : > { %10126 = vmatprep.mubr.msk.bf16.mxu1 %vm11145_vm1, %v11143_v0  ;;  %10119 = vmatpush3.bf16.msra.mxu1 %v10807_v44 }
0x4ff7   : > { %10120 = vmatprep.subr.bf16.mxu1 %v11143_v0 }
0x4ffa   : > { %10121 = vmatpush3.bf16.msra.mxu1 %v10808_v45 }
0x4ffb   : > { %10122 = vmatprep.subr.bf16.mxu1 %v11143_v0 }
0x4ffe   : > { %10123 = vmatpush3.bf16.msra.mxu1 %v10809_v46 }
0x4fff   : > { %10124 = vmatprep.subr.bf16.mxu1 %v11143_v0 }
0x5002   : > { %10125 = vmatpush3.bf16.msra.mxu1 %v10810_v51 }
0x50b5   : > { %v6852_v47 = vpop.f32.mrf.mxu1 }
0x50b6   : > { %v6853_v53 = vadd.f32 %v6852_v47, %v6788_v49 }
0x50b7   : > { %v6854_v54 = vpop.f32.mrf.mxu1 }
0x50b8   : > { %v12564_v55 = vadd.f32 %v6853_v53, %v12524_v4  ;;  %v6855_v56 = vadd.f32 %v6854_v54, %v6792_v50 }
0x50b9   : > { %v6856_v57 = vpop.f32.mrf.mxu1 }
0x50ba   : > { %v12567_v58 = vadd.f32 %v6855_v56, %v12527_v7  ;;  %v6857_v59 = vadd.f32 %v6856_v57, %v6788_v49 }
0x50bb   : > { %v6858_v60 = vpop.f32.mrf.mxu1 }
0x50bc   : > { %6865 = vst.msk [vmem:[#allocation2 + $0x200] sm:$0xff] %vm418_vm0, %v12567_v58  ;;  %v12572_v61 = vadd.f32 %v6857_v59, %v12532_v9  ;;  %v6859_v62 = vadd.f32 %v6858_v60, %v6792_v50 }
0x50be   : > { %v12575_v2 = vadd.f32 %v6859_v62, %v12535_v11  ;;  %v10811_v11 = vld [vmem:[#allocation5 + $0x3f0] ss:$8 sps:$4 sm:$0xff]  }
0x50bf   : > { %7036 = vmatpush1.bf16.msra.mxu0 %v10811_v11  ;;  %v10826_v11 = vld [vmem:[#allocation5 + $0x404] ss:$8 sps:$4 sm:$0xff]  }
0x50c0   : > { %6866 = vst.msk [vmem:[#allocation2 + $0x208] sm:$0xff] %vm418_vm0, %v12575_v2  ;;  %v10452_v3 = vpack.i.bf16 %v12575_v2, %v12567_v58  ;;  %7037 = vmatprep.subr.bf16.mxu0 %v10816_v21 }
0x50c2   : > { %10453 = vrot.lane.b32.xlu1 %v10452_v3, %s11146_s26  ;;  %v10823_v3 = vld [vmem:[#allocation5 + $0x414] ss:$8 sps:$4 sm:$0xff]  }
0x50c3   : > { %v6867_v7 = vld [vmem:[#allocation2 + $0x1fe] sm:$0xff]  ;;  %7038 = vmatpush1.bf16.msra.mxu0 %v10814_v20  ;;  %7240 = vmatprep.subr.bf16.mxu1 %v10823_v3 }
0x50c4   : > { %10130 = vmatprep.subr.bf16.mxu0 %v11143_v0 }
0x50c7   : > { %v6868_v8 = vld [vmem:[#allocation2 + $0x206] sm:$0xff] }
0x5134   : > { %v10454_v4 = vpop.permute.xlu1 %10453 }
0x5135   : > { %v10456_v63 = vunpack.i.h.bf16 %v10454_v4  ;;  %v10455_v6 = vunpack.i.l.bf16 %v10454_v4  ;;  %v9410_v4 = vld [vmem:[%s12984_s4 + $0x20] ss:$0 sm:$0xff] }
0x5137   : > { %v6877_v5 = vsel %vm418_vm0, %v6867_v7, %v10455_v6  ;;  %v6878_v9 = vsel %vm418_vm0, %v6868_v8, %v10456_v63 }
0x5138   : > { %v6879_v10 = vpack.c.bf16 %v6878_v9, %v6877_v5 }
0x513a   : > { %10127 = vmatmul.mubr.msk.bf16.vlgmr.msra.gmra.mxu1 %vm567_vm2, %v6879_v10  ;;  %v10824_v10 = vld [vmem:[#allocation5 + $0x400] ss:$8 sps:$4 sm:$0xff]  }
0x513b   : > { %7260 = vmatprep.mubr.bf16.mxu1 %v11144_v1 }
0x51fa   : > { %v6958_v14 = vpop.f32.mrf.mxu1 }
0x51fb   : > { %v6959_v15 = vadd.f32 %v9397_v13, %v6958_v14 }
0x51fc   : > { %v10128_v16 = vpop.f32.mrf.mxu1 }
0x51fd   : > { %11033 = vtanh.f32 %v6959_v15 }
0x51fe   : > { %v6961_v17 = vpop.f32.mrf.mxu1 }
0x51ff   : > { %v6962_v18 = vadd.f32 %v9397_v13, %v6961_v17 }
0x5200   : > { %v10129_v19 = vpop.f32.mrf.mxu1 }
0x5201   : > { %11035 = vtanh.f32 %v6962_v18 }
0x520a   : > { %v11034_v22 = vpop.eup %11033 }
0x520b   : > { %v6967_v23 = vmul.f32 0.5, %v11034_v22 }
0x520d   : > { %v6969_v25 = vadd.f32 0.5, %v6967_v23  ;;  %v10827_v23 = vld [vmem:[#allocation3 + $0x438] sm:$0xff]  }
0x520e   : > { %v11036_v26 = vpop.eup %11035 }
0x520f   : > { %6973 = vrot.lane.b32.xlu0 %v6969_v25, %s11147_s29  ;;  %v6968_v27 = vmul.f32 0.5, %v11036_v26  ;;  %v10828_v25 = vld [vmem:[#allocation3 + $0x430] sm:$0xff]  }
0x5211   : > { %v6970_v24 = vadd.f32 0.5, %v6968_v27  ;;  %v9416_v27 = vld [vmem:[%s12986_s6 + $0x40] sm:$0x3] }
0x5213   : > { %6975 = vrot.lane.b32.xlu1 %v6970_v24, %s11147_s29  ;;  %v7198_v24 = vrot.slane %v9416_v27, %v11382_v36 }
0x5281   : > { %v6974_v28 = vpop.permute.xlu0 %6973 }
0x5282   : > { %v6979_v30 = vmul.f32 %v11034_v22, %v6974_v28  ;;  %v7202_v28 = vrot.slane %v9416_v27, %v11341_v52 }
0x5285   : > { %v6976_v29 = vpop.permute.xlu1 %6975 }
0x5286   : > { %v6980_v31 = vmul.f32 %v11036_v26, %v6976_v29  ;;  %v10829_v26 = vld [vmem:[#allocation3 + $0x428] sm:$0xff]  }
0x5288   : > { %v6981_v32 = vpack.c.bf16 %v6980_v31, %v6979_v30  ;;  %v10830_v30 = vld [vmem:[#allocation3 + $0x420] sm:$0xff]  }
0x528a   : > { %9408 = vmatmul.mubr.msk.bf16.vlgmr.msra.gmra.mxu0 %vm418_vm0, %v6981_v32 }
0x528b   : > { %10138 = vmatprep.mubr.msk.bf16.mxu0 %vm11145_vm1, %v11143_v0  ;;  %10131 = vmatpush3.bf16.msra.mxu0 %v10817_v33 }
0x528c   : > { %10132 = vmatprep.subr.bf16.mxu0 %v11143_v0 }
0x528f   : > { %10133 = vmatpush3.bf16.msra.mxu0 %v10818_v34 }
0x5290   : > { %10134 = vmatprep.subr.bf16.mxu0 %v11143_v0 }
0x5293   : > { %10135 = vmatpush3.bf16.msra.mxu0 %v10819_v35 }
0x5294   : > { %10136 = vmatprep.subr.bf16.mxu0 %v11143_v0 }
0x5297   : > { %10137 = vmatpush3.bf16.msra.mxu0 %v10820_v41 }
0x534a   : > { %v7057_v40 = vpop.f32.mrf.mxu0 }
0x534b   : > { %v7058_v42 = vadd.f32 %v7057_v40, %v6993_v38 }
0x534c   : > { %v7059_v43 = vpop.f32.mrf.mxu0 }
0x534d   : > { %v12604_v44 = vadd.f32 %v7058_v42, %v12564_v55  ;;  %v7060_v45 = vadd.f32 %v7059_v43, %v6997_v39 }
0x534e   : > { %v7061_v46 = vpop.f32.mrf.mxu0 }
0x534f   : > { %v12607_v48 = vadd.f32 %v7060_v45, %v12567_v58  ;;  %v7062_v49 = vadd.f32 %v7061_v46, %v6993_v38 }
0x5350   : > { %v7063_v50 = vpop.f32.mrf.mxu0 }
0x5351   : > { %7070 = vst.msk [vmem:[#allocation2 + $0x200] sm:$0xff] %vm418_vm0, %v12607_v48  ;;  %v12612_v47 = vadd.f32 %v7062_v49, %v12572_v61  ;;  %v7064_v51 = vadd.f32 %v7063_v50, %v6997_v39 }
0x5353   : > { %v12615_v53 = vadd.f32 %v7064_v51, %v12575_v2  ;;  %v10821_v2 = vld [vmem:[#allocation5 + $0x410] ss:$8 sps:$4 sm:$0xff]  }
0x5354   : > { %7241 = vmatpush1.bf16.msra.mxu1 %v10821_v2  ;;  %v10836_v2 = vld [vmem:[#allocation5 + $0x424] ss:$8 sps:$4 sm:$0xff]  }
0x5355   : > { %v10457_v54 = vpack.i.bf16 %v12615_v53, %v12607_v48  ;;  %7071 = vst.msk [vmem:[#allocation2 + $0x208] sm:$0xff] %vm418_vm0, %v12615_v53  ;;  %7242 = vmatprep.subr.bf16.mxu1 %v10826_v11 }
0x5357   : > { %10458 = vrot.lane.b32.xlu0 %v10457_v54, %s11146_s26  ;;  %v10833_v54 = vld [vmem:[#allocation5 + $0x434] ss:$8 sps:$4 sm:$0xff]  }
0x5358   : > { %v7072_v58 = vld [vmem:[#allocation2 + $0x1fc] sm:$0xff]  ;;  %7243 = vmatpush1.bf16.msra.mxu1 %v10824_v10  ;;  %7445 = vmatprep.subr.bf16.mxu0 %v10833_v54 }
0x5359   : > { %10142 = vmatprep.subr.bf16.mxu1 %v11143_v0 }
0x535c   : > { %v7073_v59 = vld [vmem:[#allocation2 + $0x204] sm:$0xff] }
0x53c9   : > { %v10459_v55 = vpop.permute.xlu0 %10458 }
0x53ca   : > { %v10461_v56 = vunpack.i.h.bf16 %v10459_v55  ;;  %v10460_v57 = vunpack.i.l.bf16 %v10459_v55  ;;  %v9423_v55 = vld [vmem:[%s12984_s4 + $0x21] ss:$0 sm:$0xff] }
0x53cc   : > { %v7082_v60 = vsel %vm418_vm0, %v7072_v58, %v10460_v57  ;;  %v7083_v61 = vsel %vm418_vm0, %v7073_v59, %v10461_v56 }
0x53cd   : > { %v7084_v62 = vpack.c.bf16 %v7083_v61, %v7082_v60 }
0x53cf   : > { %10139 = vmatmul.mubr.msk.bf16.vlgmr.msra.gmra.mxu0 %vm567_vm2, %v7084_v62  ;;  %v10834_v62 = vld [vmem:[#allocation5 + $0x420] ss:$8 sps:$4 sm:$0xff]  }
0x53d0   : > { %7465 = vmatprep.mubr.bf16.mxu0 %v11144_v1 }
0x548f   : > { %v7163_v63 = vpop.f32.mrf.mxu0 }
0x5490   : > { %v7164_v6 = vadd.f32 %v9410_v4, %v7163_v63 }
0x5491   : > { %v10140_v7 = vpop.f32.mrf.mxu0 }
0x5492   : > { %11037 = vtanh.f32 %v7164_v6 }
0x5493   : > { %v7166_v8 = vpop.f32.mrf.mxu0 }
0x5494   : > { %v7167_v5 = vadd.f32 %v9410_v4, %v7166_v8 }
0x5495   : > { %v10141_v9 = vpop.f32.mrf.mxu0 }
0x5496   : > { %11039 = vtanh.f32 %v7167_v5 }
0x549f   : > { %v11038_v12 = vpop.eup %11037 }
0x54a0   : > { %v7172_v13 = vmul.f32 0.5, %v11038_v12 }
0x54a2   : > { %v7174_v14 = vadd.f32 0.5, %v7172_v13  ;;  %v10837_v13 = vld [vmem:[#allocation3 + $0x458] sm:$0xff]  }
0x54a3   : > { %v11040_v15 = vpop.eup %11039 }
0x54a4   : > { %7178 = vrot.lane.b32.xlu1 %v7174_v14, %s11147_s29  ;;  %v7173_v16 = vmul.f32 0.5, %v11040_v15  ;;  %v10838_v14 = vld [vmem:[#allocation3 + $0x450] sm:$0xff]  }
0x54a6   : > { %v7175_v17 = vadd.f32 0.5, %v7173_v16  ;;  %v9429_v16 = vld [vmem:[%s12986_s6 + $0x42] sm:$0x3] }
0x54a8   : > { %7180 = vrot.lane.b32.xlu0 %v7175_v17, %s11147_s29  ;;  %v7403_v17 = vrot.slane %v9429_v16, %v11382_v36 }
0x5516   : > { %v7179_v18 = vpop.permute.xlu1 %7178 }
0x5517   : > { %v7184_v20 = vmul.f32 %v11038_v12, %v7179_v18  ;;  %v7407_v18 = vrot.slane %v9429_v16, %v11341_v52 }
0x551a   : > { %v7181_v19 = vpop.permute.xlu0 %7180 }
0x551b   : > { %v7185_v21 = vmul.f32 %v11040_v15, %v7181_v19  ;;  %v10839_v15 = vld [vmem:[#allocation3 + $0x448] sm:$0xff]  }
0x551d   : > { %v7186_v22 = vpack.c.bf16 %v7185_v21, %v7184_v20  ;;  %v10840_v20 = vld [vmem:[#allocation3 + $0x440] sm:$0xff]  }
0x551f   : > { %9421 = vmatmul.mubr.msk.bf16.vlgmr.msra.gmra.mxu1 %vm418_vm0, %v7186_v22 }
0x5520   : > { %10150 = vmatprep.mubr.msk.bf16.mxu1 %vm11145_vm1, %v11143_v0  ;;  %10143 = vmatpush3.bf16.msra.mxu1 %v10827_v23 }
0x5521   : > { %10144 = vmatprep.subr.bf16.mxu1 %v11143_v0 }
0x5524   : > { %10145 = vmatpush3.bf16.msra.mxu1 %v10828_v25 }
0x5525   : > { %10146 = vmatprep.subr.bf16.mxu1 %v11143_v0 }
0x5528   : > { %10147 = vmatpush3.bf16.msra.mxu1 %v10829_v26 }
0x5529   : > { %10148 = vmatprep.subr.bf16.mxu1 %v11143_v0 }
0x552c   : > { %10149 = vmatpush3.bf16.msra.mxu1 %v10830_v30 }
0x55df   : > { %v7262_v29 = vpop.f32.mrf.mxu1 }
0x55e0   : > { %v7263_v31 = vadd.f32 %v7262_v29, %v7198_v24 }
0x55e1   : > { %v7264_v32 = vpop.f32.mrf.mxu1 }
0x55e2   : > { %v12644_v33 = vadd.f32 %v7263_v31, %v12604_v44  ;;  %v7265_v34 = vadd.f32 %v7264_v32, %v7202_v28  ;;  %v12662_v44 = vld [vmem:[#allocation2 + $0x1f8] sm:$0xff] }
0x55e3   : > { %v7266_v35 = vpop.f32.mrf.mxu1 }
0x55e4   : > { %v12647_v37 = vadd.f32 %v7265_v34, %v12607_v48  ;;  %v7267_v38 = vadd.f32 %v7266_v35, %v7198_v24 }
0x55e5   : > { %v7268_v39 = vpop.f32.mrf.mxu1 }
0x55e6   : > { %7275 = vst.msk [vmem:[#allocation2 + $0x200] sm:$0xff] %vm418_vm0, %v12647_v37  ;;  %v12652_v40 = vadd.f32 %v7267_v38, %v12612_v47  ;;  %v7269_v41 = vadd.f32 %v7268_v39, %v7202_v28 }
0x55e8   : > { %v12655_v42 = vadd.f32 %v7269_v41, %v12615_v53  ;;  %v10831_v53 = vld [vmem:[#allocation5 + $0x430] ss:$8 sps:$4 sm:$0xff]  }
0x55e9   : > { %7446 = vmatpush1.bf16.msra.mxu0 %v10831_v53  ;;  %v10841_v41 = vld [vmem:[#allocation5 + $0x450] ss:$8 sps:$4 sm:$0xff]  }
0x55ea   : > { %7276 = vst.msk [vmem:[#allocation2 + $0x208] sm:$0xff] %vm418_vm0, %v12655_v42  ;;  %v10462_v43 = vpack.i.bf16 %v12655_v42, %v12647_v37  ;;  %7447 = vmatprep.subr.bf16.mxu0 %v10836_v2 }
0x55ec   : > { %10463 = vrot.lane.b32.xlu1 %v10462_v43, %s11146_s26  ;;  %v9436_v43 = vld [vmem:[%s12984_s4 + $0x22] ss:$0 sm:$0xff] }
0x55ed   : > { %v7278_v49 = vld [vmem:[#allocation2 + $0x200] sm:$0xff]  ;;  %7448 = vmatpush1.bf16.msra.mxu0 %v10834_v62 }
0x55ee   : > { %10154 = vmatprep.subr.bf16.mxu0 %v11143_v0 }
0x565e   : > { %v10464_v45 = vpop.permute.xlu1 %10463 }
0x565f   : > { %v10466_v46 = vunpack.i.h.bf16 %v10464_v45  ;;  %v10465_v48 = vunpack.i.l.bf16 %v10464_v45 }
0x5661   : > { %v7287_v50 = vsel %vm418_vm0, %v12662_v44, %v10465_v48  ;;  %v7288_v47 = vsel %vm418_vm0, %v7278_v49, %v10466_v46 }
0x5662   : > { %v7289_v51 = vpack.c.bf16 %v7288_v47, %v7287_v50  ;;  %v10844_v47 = vld [vmem:[#allocation5 + $0x440] ss:$8 sps:$4 sm:$0xff]  }
0x5664   : > { %10151 = vmatmul.mubr.msk.bf16.vlgmr.msra.gmra.mxu1 %vm567_vm2, %v7289_v51  ;;  %v10846_v51 = vld [vmem:[#allocation5 + $0x444] ss:$8 sps:$4 sm:$0xff]  }
0x5665   : > { %7670 = vmatprep.mubr.bf16.mxu1 %v11144_v1 }
0x5724   : > { %v7368_v56 = vpop.f32.mrf.mxu1 }
0x5725   : > { %v7369_v57 = vadd.f32 %v9423_v55, %v7368_v56 }
0x5726   : > { %v10152_v58 = vpop.f32.mrf.mxu1 }
0x5727   : > { %11041 = vtanh.f32 %v7369_v57 }
0x5728   : > { %v7371_v59 = vpop.f32.mrf.mxu1 }
0x5729   : > { %v7372_v60 = vadd.f32 %v9423_v55, %v7371_v59 }
0x572a   : > { %v10153_v61 = vpop.f32.mrf.mxu1 }
0x572b   : > { %11043 = vtanh.f32 %v7372_v60 }
0x5734   : > { %v11042_v3 = vpop.eup %11041 }
0x5735   : > { %v7377_v4 = vmul.f32 0.5, %v11042_v3 }
0x5737   : > { %v7379_v63 = vadd.f32 0.5, %v7377_v4  ;;  %v10848_v4 = vld [vmem:[#allocation3 + $0x470] sm:$0xff]  }
0x5738   : > { %v11044_v6 = vpop.eup %11043 }
0x5739   : > { %7383 = vrot.lane.b32.xlu0 %v7379_v63, %s11147_s29  ;;  %v7378_v7 = vmul.f32 0.5, %v11044_v6  ;;  %v10849_v63 = vld [vmem:[#allocation3 + $0x468] sm:$0xff]  }
0x573b   : > { %v7380_v8 = vadd.f32 0.5, %v7378_v7 }
0x573d   : > { %7385 = vrot.lane.b32.xlu1 %v7380_v8, %s11147_s29 }
0x57ab   : > { %v7384_v5 = vpop.permute.xlu0 %7383 }
0x57ac   : > { %v7389_v10 = vmul.f32 %v11042_v3, %v7384_v5  ;;  %v10847_v3 = vld [vmem:[#allocation3 + $0x478] sm:$0xff]  }
0x57af   : > { %v7386_v9 = vpop.permute.xlu1 %7385 }
0x57b0   : > { %v7390_v11 = vmul.f32 %v11044_v6, %v7386_v9  ;;  %v9442_v6 = vld [vmem:[%s12986_s6 + $0x44] sm:$0x3]  ;;  %v10850_v9 = vld [vmem:[#allocation3 + $0x460] sm:$0xff]  }
0x57b1   : > { %v7608_v7 = vrot.slane %v9442_v6, %v11382_v36  ;;  %v7612_v8 = vrot.slane %v9442_v6, %v11341_v52 }
0x57b2   : > { %v7391_v12 = vpack.c.bf16 %v7390_v11, %v7389_v10 }
0x57b4   : > { %9434 = vmatmul.mubr.msk.bf16.vlgmr.msra.gmra.mxu0 %vm418_vm0, %v7391_v12 }
0x57b5   : > { %10162 = vmatprep.mubr.msk.bf16.mxu0 %vm11145_vm1, %v11143_v0  ;;  %10155 = vmatpush3.bf16.msra.mxu0 %v10837_v13 }
0x57b6   : > { %10156 = vmatprep.subr.bf16.mxu0 %v11143_v0 }
0x57b9   : > { %10157 = vmatpush3.bf16.msra.mxu0 %v10838_v14 }
0x57ba   : > { %10158 = vmatprep.subr.bf16.mxu0 %v11143_v0 }
0x57bd   : > { %10159 = vmatpush3.bf16.msra.mxu0 %v10839_v15 }
0x57be   : > { %10160 = vmatprep.subr.bf16.mxu0 %v11143_v0 }
0x57c1   : > { %10161 = vmatpush3.bf16.msra.mxu0 %v10840_v20 }
0x5874   : > { %v7467_v19 = vpop.f32.mrf.mxu0 }
0x5875   : > { %v7468_v21 = vadd.f32 %v7467_v19, %v7403_v17 }
0x5876   : > { %v7469_v22 = vpop.f32.mrf.mxu0 }
0x5877   : > { %v12687_v23 = vadd.f32 %v7468_v21, %v12644_v33  ;;  %v7470_v25 = vadd.f32 %v7469_v22, %v7407_v18  ;;  %v7482_v33 = vld [vmem:[#allocation2 + $0x1f0] sm:$0xff]  ;;  %v7687_v22 = vld [vmem:[#allocation2 + $0x1e0] sm:$0xff] }
0x5878   : > { %v7471_v26 = vpop.f32.mrf.mxu0 }
0x5879   : > { %v12690_v27 = vadd.f32 %v7470_v25, %v12647_v37  ;;  %v7472_v24 = vadd.f32 %v7471_v26, %v7403_v17 }
0x587a   : > { %v7473_v28 = vpop.f32.mrf.mxu0 }
0x587b   : > { %7480 = vst.msk [vmem:[#allocation2 + $0x200] sm:$0xff] %vm418_vm0, %v12690_v27  ;;  %v12695_v29 = vadd.f32 %v7472_v24, %v12652_v40  ;;  %v7474_v30 = vadd.f32 %v7473_v28, %v7407_v18 }
0x587d   : > { %v12698_v31 = vadd.f32 %v7474_v30, %v12655_v42  ;;  %v10843_v42 = vld [vmem:[#allocation5 + $0x454] ss:$8 sps:$4 sm:$0xff]   ;;  %v10851_v30 = vld [vmem:[#allocation5 + $0x470] ss:$8 sps:$4 sm:$0xff]  }
0x587e   : > { %7650 = vmatprep.subr.bf16.mxu1 %v10843_v42 }
0x587f   : > { %7481 = vst.msk [vmem:[#allocation2 + $0x208] sm:$0xff] %vm418_vm0, %v12698_v31  ;;  %v10467_v32 = vpack.i.bf16 %v12698_v31, %v12690_v27  ;;  %7651 = vmatpush1.bf16.msra.mxu1 %v10841_v41  ;;  %v10856_v41 = vld [vmem:[#allocation5 + $0x464] ss:$8 sps:$4 sm:$0xff]  }
0x5880   : > { %7652 = vmatprep.subr.bf16.mxu1 %v10846_v51 }
0x5881   : > { %10468 = vrot.lane.b32.xlu0 %v10467_v32, %s11146_s26  ;;  %v9449_v32 = vld [vmem:[%s12984_s4 + $0x23] ss:$0 sm:$0xff] }
0x5883   : > { %7653 = vmatpush1.bf16.msra.mxu1 %v10844_v47 }
0x5884   : > { %10166 = vmatprep.subr.bf16.mxu1 %v11143_v0 }
0x58f3   : > { %v10469_v34 = vpop.permute.xlu0 %10468 }
0x58f4   : > { %v10471_v35 = vunpack.i.h.bf16 %v10469_v34  ;;  %v10470_v37 = vunpack.i.l.bf16 %v10469_v34 }
0x58f6   : > { %v7493_v38 = vsel %vm418_vm0, %v12662_v44, %v10471_v35  ;;  %v7492_v39 = vsel %vm418_vm0, %v7482_v33, %v10470_v37 }
0x58f7   : > { %v7494_v40 = vpack.c.bf16 %v7493_v38, %v7492_v39 }
0x58f9   : > { %10163 = vmatmul.mubr.msk.bf16.vlgmr.msra.gmra.mxu0 %vm567_vm2, %v7494_v40  ;;  %v10854_v40 = vld [vmem:[#allocation5 + $0x460] ss:$8 sps:$4 sm:$0xff]  }
0x58fa   : > { %7875 = vmatprep.mubr.bf16.mxu0 %v11144_v1 }
0x59b9   : > { %v7573_v45 = vpop.f32.mrf.mxu0 }
0x59ba   : > { %v7574_v46 = vadd.f32 %v9436_v43, %v7573_v45 }
0x59bb   : > { %v10164_v48 = vpop.f32.mrf.mxu0 }
0x59bc   : > { %11045 = vtanh.f32 %v7574_v46 }
0x59bd   : > { %v7576_v44 = vpop.f32.mrf.mxu0 }
0x59be   : > { %v7577_v49 = vadd.f32 %v9436_v43, %v7576_v44 }
0x59bf   : > { %v10165_v50 = vpop.f32.mrf.mxu0 }
0x59c0   : > { %11047 = vtanh.f32 %v7577_v49 }
0x59c9   : > { %v11046_v53 = vpop.eup %11045 }
0x59ca   : > { %v7582_v54 = vmul.f32 0.5, %v11046_v53 }
0x59cc   : > { %v7584_v55 = vadd.f32 0.5, %v7582_v54  ;;  %v10857_v54 = vld [vmem:[#allocation3 + $0x498] sm:$0xff]  }
0x59cd   : > { %v11048_v56 = vpop.eup %11047 }
0x59ce   : > { %7588 = vrot.lane.b32.xlu1 %v7584_v55, %s11147_s29  ;;  %v7583_v57 = vmul.f32 0.5, %v11048_v56  ;;  %v10858_v55 = vld [vmem:[#allocation3 + $0x490] sm:$0xff]  }
0x59d0   : > { %v7585_v58 = vadd.f32 0.5, %v7583_v57  ;;  %v9455_v57 = vld [vmem:[%s12986_s6 + $0x46] sm:$0x3] }
0x59d2   : > { %7590 = vrot.lane.b32.xlu0 %v7585_v58, %s11147_s29  ;;  %v7813_v58 = vrot.slane %v9455_v57, %v11382_v36 }
0x5a40   : > { %v7589_v59 = vpop.permute.xlu1 %7588 }
0x5a41   : > { %v7594_v61 = vmul.f32 %v11046_v53, %v7589_v59  ;;  %v7817_v59 = vrot.slane %v9455_v57, %v11341_v52 }
0x5a44   : > { %v7591_v60 = vpop.permute.xlu0 %7590 }
0x5a45   : > { %v7595_v62 = vmul.f32 %v11048_v56, %v7591_v60  ;;  %v10859_v56 = vld [vmem:[#allocation3 + $0x488] sm:$0xff]  }
0x5a47   : > { %v7596_v2 = vpack.c.bf16 %v7595_v62, %v7594_v61  ;;  %v10860_v61 = vld [vmem:[#allocation3 + $0x480] sm:$0xff]  }
0x5a49   : > { %9447 = vmatmul.mubr.msk.bf16.vlgmr.msra.gmra.mxu1 %vm418_vm0, %v7596_v2 }
0x5a4a   : > { %10174 = vmatprep.mubr.msk.bf16.mxu1 %vm11145_vm1, %v11143_v0  ;;  %10167 = vmatpush3.bf16.msra.mxu1 %v10847_v3 }
0x5a4b   : > { %10168 = vmatprep.subr.bf16.mxu1 %v11143_v0 }
0x5a4e   : > { %10169 = vmatpush3.bf16.msra.mxu1 %v10848_v4 }
0x5a4f   : > { %10170 = vmatprep.subr.bf16.mxu1 %v11143_v0 }
0x5a52   : > { %10171 = vmatpush3.bf16.msra.mxu1 %v10849_v63 }
0x5a53   : > { %10172 = vmatprep.subr.bf16.mxu1 %v11143_v0 }
0x5a56   : > { %10173 = vmatpush3.bf16.msra.mxu1 %v10850_v9 }
0x5b09   : > { %v7672_v5 = vpop.f32.mrf.mxu1 }
0x5b0a   : > { %v7673_v10 = vadd.f32 %v7672_v5, %v7608_v7 }
0x5b0b   : > { %v7674_v11 = vpop.f32.mrf.mxu1 }
0x5b0c   : > { %v12728_v12 = vadd.f32 %v7673_v10, %v12687_v23  ;;  %v7675_v13 = vadd.f32 %v7674_v11, %v7612_v8  ;;  %v7688_v23 = vld [vmem:[#allocation2 + $0x1e8] sm:$0xff] }
0x5b0d   : > { %v7676_v14 = vpop.f32.mrf.mxu1 }
0x5b0e   : > { %v12731_v15 = vadd.f32 %v7675_v13, %v12690_v27  ;;  %v7677_v16 = vadd.f32 %v7676_v14, %v7608_v7  ;;  %v7893_v13 = vld [vmem:[#allocation2 + $0x1c8] sm:$0xff] }
0x5b0f   : > { %v7678_v17 = vpop.f32.mrf.mxu1 }
0x5b10   : > { %7685 = vst.msk [vmem:[#allocation2 + $0x200] sm:$0xff] %vm418_vm0, %v12731_v15  ;;  %v12736_v18 = vadd.f32 %v7677_v16, %v12695_v29  ;;  %v7679_v19 = vadd.f32 %v7678_v17, %v7612_v8 }
0x5b12   : > { %v12739_v20 = vadd.f32 %v7679_v19, %v12698_v31  ;;  %v10853_v31 = vld [vmem:[#allocation5 + $0x474] ss:$8 sps:$4 sm:$0xff]  }
0x5b13   : > { %7855 = vmatprep.subr.bf16.mxu0 %v10853_v31 }
0x5b14   : > { %7686 = vst.msk [vmem:[#allocation2 + $0x208] sm:$0xff] %vm418_vm0, %v12739_v20  ;;  %v10472_v21 = vpack.i.bf16 %v12739_v20, %v12731_v15  ;;  %7856 = vmatpush1.bf16.msra.mxu0 %v10851_v30  ;;  %v10866_v30 = vld [vmem:[#allocation5 + $0x484] ss:$8 sps:$4 sm:$0xff]  }
0x5b15   : > { %7857 = vmatprep.subr.bf16.mxu0 %v10856_v41 }
0x5b16   : > { %10473 = vrot.lane.b32.xlu1 %v10472_v21, %s11146_s26  ;;  %v10863_v21 = vld [vmem:[#allocation5 + $0x494] ss:$8 sps:$4 sm:$0xff]  }
0x5b17   : > { %8060 = vmatprep.subr.bf16.mxu1 %v10863_v21 }
0x5b18   : > { %7858 = vmatpush1.bf16.msra.mxu0 %v10854_v40 }
0x5b19   : > { %10178 = vmatprep.subr.bf16.mxu0 %v11143_v0 }
0x5b88   : > { %v10474_v25 = vpop.permute.xlu1 %10473 }
0x5b89   : > { %v10476_v26 = vunpack.i.h.bf16 %v10474_v25  ;;  %v10475_v27 = vunpack.i.l.bf16 %v10474_v25 }
0x5b8b   : > { %v7698_v24 = vsel %vm418_vm0, %v7688_v23, %v10476_v26  ;;  %v7697_v28 = vsel %vm418_vm0, %v7687_v22, %v10475_v27  ;;  %v9462_v22 = vld [vmem:[%s12984_s4 + $0x24] ss:$0 sm:$0xff] }
0x5b8c   : > { %v7699_v29 = vpack.c.bf16 %v7698_v24, %v7697_v28 }
0x5b8e   : > { %10175 = vmatmul.mubr.msk.bf16.vlgmr.msra.gmra.mxu1 %vm567_vm2, %v7699_v29  ;;  %v10864_v29 = vld [vmem:[#allocation5 + $0x480] ss:$8 sps:$4 sm:$0xff]  }
0x5b8f   : > { %8080 = vmatprep.mubr.bf16.mxu1 %v11144_v1 }
0x5c4e   : > { %v7778_v33 = vpop.f32.mrf.mxu1 }
0x5c4f   : > { %v7779_v34 = vadd.f32 %v9449_v32, %v7778_v33 }
0x5c50   : > { %v10176_v35 = vpop.f32.mrf.mxu1 }
0x5c51   : > { %11049 = vtanh.f32 %v7779_v34 }
0x5c52   : > { %v7781_v37 = vpop.f32.mrf.mxu1 }
0x5c53   : > { %v7782_v38 = vadd.f32 %v9449_v32, %v7781_v37 }
0x5c54   : > { %v10177_v39 = vpop.f32.mrf.mxu1 }
0x5c55   : > { %11051 = vtanh.f32 %v7782_v38 }
0x5c5e   : > { %v11050_v42 = vpop.eup %11049 }
0x5c5f   : > { %v7787_v43 = vmul.f32 0.5, %v11050_v42 }
0x5c61   : > { %v7789_v45 = vadd.f32 0.5, %v7787_v43  ;;  %v10867_v43 = vld [vmem:[#allocation3 + $0x4b8] sm:$0xff]  }
0x5c62   : > { %v11052_v46 = vpop.eup %11051 }
0x5c63   : > { %7793 = vrot.lane.b32.xlu0 %v7789_v45, %s11147_s29  ;;  %v7788_v48 = vmul.f32 0.5, %v11052_v46  ;;  %v10868_v45 = vld [vmem:[#allocation3 + $0x4b0] sm:$0xff]  }
0x5c65   : > { %v7790_v44 = vadd.f32 0.5, %v7788_v48  ;;  %v9468_v48 = vld [vmem:[%s12986_s6 + $0x48] sm:$0x3] }
0x5c67   : > { %7795 = vrot.lane.b32.xlu1 %v7790_v44, %s11147_s29  ;;  %v8018_v44 = vrot.slane %v9468_v48, %v11382_v36 }
0x5cd5   : > { %v7794_v49 = vpop.permute.xlu0 %7793 }
0x5cd6   : > { %v7799_v47 = vmul.f32 %v11050_v42, %v7794_v49  ;;  %v8022_v49 = vrot.slane %v9468_v48, %v11341_v52 }
0x5cd9   : > { %v7796_v50 = vpop.permute.xlu1 %7795 }
0x5cda   : > { %v7800_v51 = vmul.f32 %v11052_v46, %v7796_v50  ;;  %v10869_v46 = vld [vmem:[#allocation3 + $0x4a8] sm:$0xff]  }
0x5cdc   : > { %v7801_v53 = vpack.c.bf16 %v7800_v51, %v7799_v47  ;;  %v10870_v47 = vld [vmem:[#allocation3 + $0x4a0] sm:$0xff]  }
0x5cde   : > { %9460 = vmatmul.mubr.msk.bf16.vlgmr.msra.gmra.mxu0 %vm418_vm0, %v7801_v53 }
0x5cdf   : > { %10186 = vmatprep.mubr.msk.bf16.mxu0 %vm11145_vm1, %v11143_v0  ;;  %10179 = vmatpush3.bf16.msra.mxu0 %v10857_v54 }
0x5ce0   : > { %10180 = vmatprep.subr.bf16.mxu0 %v11143_v0 }
0x5ce3   : > { %10181 = vmatpush3.bf16.msra.mxu0 %v10858_v55 }
0x5ce4   : > { %10182 = vmatprep.subr.bf16.mxu0 %v11143_v0 }
0x5ce7   : > { %10183 = vmatpush3.bf16.msra.mxu0 %v10859_v56 }
0x5ce8   : > { %10184 = vmatprep.subr.bf16.mxu0 %v11143_v0 }
0x5ceb   : > { %10185 = vmatpush3.bf16.msra.mxu0 %v10860_v61 }
0x5d9e   : > { %v7877_v60 = vpop.f32.mrf.mxu0 }
0x5d9f   : > { %v7878_v62 = vadd.f32 %v7877_v60, %v7813_v58 }
0x5da0   : > { %v7879_v2 = vpop.f32.mrf.mxu0 }
0x5da1   : > { %v12768_v3 = vadd.f32 %v7878_v62, %v12728_v12  ;;  %v7880_v4 = vadd.f32 %v7879_v2, %v7817_v59  ;;  %v7892_v12 = vld [vmem:[#allocation2 + $0x1c0] sm:$0xff] }
0x5da2   : > { %v7881_v63 = vpop.f32.mrf.mxu0 }
0x5da3   : > { %v12771_v6 = vadd.f32 %v7880_v4, %v12731_v15  ;;  %v7882_v7 = vadd.f32 %v7881_v63, %v7813_v58  ;;  %v8098_v4 = vld [vmem:[#allocation2 + $0x188] sm:$0xff] }
0x5da4   : > { %v7883_v8 = vpop.f32.mrf.mxu0 }
0x5da5   : > { %7890 = vst.msk [vmem:[#allocation2 + $0x200] sm:$0xff] %vm418_vm0, %v12771_v6  ;;  %v12776_v5 = vadd.f32 %v7882_v7, %v12736_v18  ;;  %v7884_v9 = vadd.f32 %v7883_v8, %v7817_v59 }
0x5da7   : > { %v12779_v10 = vadd.f32 %v7884_v9, %v12739_v20  ;;  %v10861_v20 = vld [vmem:[#allocation5 + $0x490] ss:$8 sps:$4 sm:$0xff]  }
0x5da8   : > { %8061 = vmatpush1.bf16.msra.mxu1 %v10861_v20  ;;  %v10876_v20 = vld [vmem:[#allocation5 + $0x4a4] ss:$8 sps:$4 sm:$0xff]  }
0x5da9   : > { %7891 = vst.msk [vmem:[#allocation2 + $0x208] sm:$0xff] %vm418_vm0, %v12779_v10  ;;  %v10477_v11 = vpack.i.bf16 %v12779_v10, %v12771_v6  ;;  %8062 = vmatprep.subr.bf16.mxu1 %v10866_v30 }
0x5dab   : > { %10478 = vrot.lane.b32.xlu0 %v10477_v11, %s11146_s26  ;;  %v10873_v11 = vld [vmem:[#allocation5 + $0x4b4] ss:$8 sps:$4 sm:$0xff]  }
0x5dac   : > { %8063 = vmatpush1.bf16.msra.mxu1 %v10864_v29  ;;  %8265 = vmatprep.subr.bf16.mxu0 %v10873_v11 }
0x5dad   : > { %10190 = vmatprep.subr.bf16.mxu1 %v11143_v0 }
0x5e1d   : > { %v10479_v14 = vpop.permute.xlu0 %10478 }
0x5e1e   : > { %v10481_v15 = vunpack.i.h.bf16 %v10479_v14  ;;  %v10480_v16 = vunpack.i.l.bf16 %v10479_v14 }
0x5e20   : > { %v7903_v17 = vsel %vm418_vm0, %v7893_v13, %v10481_v15  ;;  %v7902_v18 = vsel %vm418_vm0, %v7892_v12, %v10480_v16  ;;  %v9475_v12 = vld [vmem:[%s12984_s4 + $0x25] ss:$0 sm:$0xff] }
0x5e21   : > { %v7904_v19 = vpack.c.bf16 %v7903_v17, %v7902_v18 }
0x5e23   : > { %10187 = vmatmul.mubr.msk.bf16.vlgmr.msra.gmra.mxu0 %vm567_vm2, %v7904_v19  ;;  %v10874_v19 = vld [vmem:[#allocation5 + $0x4a0] ss:$8 sps:$4 sm:$0xff]  }
0x5e24   : > { %8285 = vmatprep.mubr.bf16.mxu0 %v11144_v1 }
0x5ee3   : > { %v7983_v23 = vpop.f32.mrf.mxu0 }
0x5ee4   : > { %v7984_v25 = vadd.f32 %v9462_v22, %v7983_v23 }
0x5ee5   : > { %v10188_v26 = vpop.f32.mrf.mxu0 }
0x5ee6   : > { %11053 = vtanh.f32 %v7984_v25 }
0x5ee7   : > { %v7986_v27 = vpop.f32.mrf.mxu0 }
0x5ee8   : > { %v7987_v24 = vadd.f32 %v9462_v22, %v7986_v27 }
0x5ee9   : > { %v10189_v28 = vpop.f32.mrf.mxu0 }
0x5eea   : > { %11055 = vtanh.f32 %v7987_v24 }
0x5ef3   : > { %v11054_v31 = vpop.eup %11053 }
0x5ef4   : > { %v7992_v32 = vmul.f32 0.5, %v11054_v31 }
0x5ef6   : > { %v7994_v33 = vadd.f32 0.5, %v7992_v32  ;;  %v10877_v32 = vld [vmem:[#allocation3 + $0x4d8] sm:$0xff]  }
0x5ef7   : > { %v11056_v34 = vpop.eup %11055 }
0x5ef8   : > { %7998 = vrot.lane.b32.xlu1 %v7994_v33, %s11147_s29  ;;  %v7993_v35 = vmul.f32 0.5, %v11056_v34  ;;  %v10878_v33 = vld [vmem:[#allocation3 + $0x4d0] sm:$0xff]  }
0x5efa   : > { %v7995_v37 = vadd.f32 0.5, %v7993_v35  ;;  %v9481_v35 = vld [vmem:[%s12986_s6 + $0x4a] sm:$0x3] }
0x5efc   : > { %8000 = vrot.lane.b32.xlu0 %v7995_v37, %s11147_s29  ;;  %v8223_v37 = vrot.slane %v9481_v35, %v11382_v36 }
0x5f6a   : > { %v7999_v38 = vpop.permute.xlu1 %7998 }
0x5f6b   : > { %v8004_v40 = vmul.f32 %v11054_v31, %v7999_v38  ;;  %v8227_v38 = vrot.slane %v9481_v35, %v11341_v52 }
0x5f6e   : > { %v8001_v39 = vpop.permute.xlu0 %8000 }
0x5f6f   : > { %v8005_v41 = vmul.f32 %v11056_v34, %v8001_v39  ;;  %v10879_v34 = vld [vmem:[#allocation3 + $0x4c8] sm:$0xff]  }
0x5f71   : > { %v8006_v42 = vpack.c.bf16 %v8005_v41, %v8004_v40  ;;  %v10880_v40 = vld [vmem:[#allocation3 + $0x4c0] sm:$0xff]  }
0x5f73   : > { %9473 = vmatmul.mubr.msk.bf16.vlgmr.msra.gmra.mxu1 %vm418_vm0, %v8006_v42 }
0x5f74   : > { %10198 = vmatprep.mubr.msk.bf16.mxu1 %vm11145_vm1, %v11143_v0  ;;  %10191 = vmatpush3.bf16.msra.mxu1 %v10867_v43 }
0x5f75   : > { %10192 = vmatprep.subr.bf16.mxu1 %v11143_v0 }
0x5f78   : > { %10193 = vmatpush3.bf16.msra.mxu1 %v10868_v45 }
0x5f79   : > { %10194 = vmatprep.subr.bf16.mxu1 %v11143_v0 }
0x5f7c   : > { %10195 = vmatpush3.bf16.msra.mxu1 %v10869_v46 }
0x5f7d   : > { %10196 = vmatprep.subr.bf16.mxu1 %v11143_v0 }
0x5f80   : > { %10197 = vmatpush3.bf16.msra.mxu1 %v10870_v47 }
0x6033   : > { %v8082_v50 = vpop.f32.mrf.mxu1 }
0x6034   : > { %v8083_v51 = vadd.f32 %v8082_v50, %v8018_v44 }
0x6035   : > { %v8084_v53 = vpop.f32.mrf.mxu1 }
0x6036   : > { %v12808_v54 = vadd.f32 %v8083_v51, %v12768_v3  ;;  %v8085_v55 = vadd.f32 %v8084_v53, %v8022_v49  ;;  %v8097_v3 = vld [vmem:[#allocation2 + $0x180] sm:$0xff] }
0x6037   : > { %v8086_v56 = vpop.f32.mrf.mxu1 }
0x6038   : > { %v12811_v57 = vadd.f32 %v8085_v55, %v12771_v6  ;;  %v8087_v58 = vadd.f32 %v8086_v56, %v8018_v44  ;;  %v8303_v55 = vld [vmem:[#allocation2 + $0x108] sm:$0xff] }
0x6039   : > { %v8088_v59 = vpop.f32.mrf.mxu1 }
0x603a   : > { %8095 = vst.msk [vmem:[#allocation2 + $0x200] sm:$0xff] %vm418_vm0, %v12811_v57  ;;  %v12816_v60 = vadd.f32 %v8087_v58, %v12776_v5  ;;  %v8089_v61 = vadd.f32 %v8088_v59, %v8022_v49 }
0x603c   : > { %v12819_v62 = vadd.f32 %v8089_v61, %v12779_v10  ;;  %v10871_v10 = vld [vmem:[#allocation5 + $0x4b0] ss:$8 sps:$4 sm:$0xff]  }
0x603d   : > { %8266 = vmatpush1.bf16.msra.mxu0 %v10871_v10  ;;  %v10886_v10 = vld [vmem:[#allocation5 + $0x4c4] ss:$8 sps:$4 sm:$0xff]  }
0x603e   : > { %8096 = vst.msk [vmem:[#allocation2 + $0x208] sm:$0xff] %vm418_vm0, %v12819_v62  ;;  %v10482_v2 = vpack.i.bf16 %v12819_v62, %v12811_v57  ;;  %8267 = vmatprep.subr.bf16.mxu0 %v10876_v20 }
0x6040   : > { %10483 = vrot.lane.b32.xlu1 %v10482_v2, %s11146_s26  ;;  %v10883_v2 = vld [vmem:[#allocation5 + $0x4d4] ss:$8 sps:$4 sm:$0xff]  }
0x6041   : > { %8268 = vmatpush1.bf16.msra.mxu0 %v10874_v19  ;;  %8470 = vmatprep.subr.bf16.mxu1 %v10883_v2 }
0x6042   : > { %10202 = vmatprep.subr.bf16.mxu0 %v11143_v0 }
0x60b2   : > { %v10484_v63 = vpop.permute.xlu1 %10483 }
0x60b3   : > { %v10486_v6 = vunpack.i.h.bf16 %v10484_v63  ;;  %v10485_v7 = vunpack.i.l.bf16 %v10484_v63 }
0x60b5   : > { %v8108_v8 = vsel %vm418_vm0, %v8098_v4, %v10486_v6  ;;  %v8107_v5 = vsel %vm418_vm0, %v8097_v3, %v10485_v7  ;;  %v9488_v3 = vld [vmem:[%s12984_s4 + $0x26] ss:$0 sm:$0xff] }
0x60b6   : > { %v8109_v9 = vpack.c.bf16 %v8108_v8, %v8107_v5 }
0x60b8   : > { %10199 = vmatmul.mubr.msk.bf16.vlgmr.msra.gmra.mxu1 %vm567_vm2, %v8109_v9  ;;  %v10884_v9 = vld [vmem:[#allocation5 + $0x4c0] ss:$8 sps:$4 sm:$0xff]  }
0x60b9   : > { %8490 = vmatprep.mubr.bf16.mxu1 %v11144_v1 }
0x6178   : > { %v8188_v13 = vpop.f32.mrf.mxu1 }
0x6179   : > { %v8189_v14 = vadd.f32 %v9475_v12, %v8188_v13 }
0x617a   : > { %v10200_v15 = vpop.f32.mrf.mxu1 }
0x617b   : > { %11057 = vtanh.f32 %v8189_v14 }
0x617c   : > { %v8191_v16 = vpop.f32.mrf.mxu1 }
0x617d   : > { %v8192_v17 = vadd.f32 %v9475_v12, %v8191_v16 }
0x617e   : > { %v10201_v18 = vpop.f32.mrf.mxu1 }
0x617f   : > { %11059 = vtanh.f32 %v8192_v17 }
0x6188   : > { %v11058_v21 = vpop.eup %11057 }
0x6189   : > { %v8197_v22 = vmul.f32 0.5, %v11058_v21 }
0x618b   : > { %v8199_v23 = vadd.f32 0.5, %v8197_v22  ;;  %v10888_v22 = vld [vmem:[#allocation3 + $0x4f0] sm:$0xff]  }
0x618c   : > { %v11060_v25 = vpop.eup %11059 }
0x618d   : > { %8203 = vrot.lane.b32.xlu0 %v8199_v23, %s11147_s29  ;;  %v8198_v26 = vmul.f32 0.5, %v11060_v25  ;;  %v10889_v23 = vld [vmem:[#allocation3 + $0x4e8] sm:$0xff]  }
0x618f   : > { %v8200_v27 = vadd.f32 0.5, %v8198_v26 }
0x6191   : > { %8205 = vrot.lane.b32.xlu1 %v8200_v27, %s11147_s29 }
0x61ff   : > { %v8204_v24 = vpop.permute.xlu0 %8203 }
0x6200   : > { %v8209_v29 = vmul.f32 %v11058_v21, %v8204_v24  ;;  %v10887_v21 = vld [vmem:[#allocation3 + $0x4f8] sm:$0xff]  }
0x6203   : > { %v8206_v28 = vpop.permute.xlu1 %8205 }
0x6204   : > { %v8210_v30 = vmul.f32 %v11060_v25, %v8206_v28  ;;  %v9494_v25 = vld [vmem:[%s12986_s6 + $0x4c] sm:$0x3]  ;;  %v10890_v28 = vld [vmem:[#allocation3 + $0x4e0] sm:$0xff]  }
0x6205   : > { %v8428_v26 = vrot.slane %v9494_v25, %v11382_v36  ;;  %v8432_v27 = vrot.slane %v9494_v25, %v11341_v52 }
0x6206   : > { %v8211_v31 = vpack.c.bf16 %v8210_v30, %v8209_v29 }
0x6208   : > { %9486 = vmatmul.mubr.msk.bf16.vlgmr.msra.gmra.mxu0 %vm418_vm0, %v8211_v31 }
0x6209   : > { %10210 = vmatprep.mubr.msk.bf16.mxu0 %vm11145_vm1, %v11143_v0  ;;  %10203 = vmatpush3.bf16.msra.mxu0 %v10877_v32 }
0x620a   : > { %10204 = vmatprep.subr.bf16.mxu0 %v11143_v0 }
0x620d   : > { %10205 = vmatpush3.bf16.msra.mxu0 %v10878_v33 }
0x620e   : > { %10206 = vmatprep.subr.bf16.mxu0 %v11143_v0 }
0x6211   : > { %10207 = vmatpush3.bf16.msra.mxu0 %v10879_v34 }
0x6212   : > { %10208 = vmatprep.subr.bf16.mxu0 %v11143_v0 }
0x6215   : > { %10209 = vmatpush3.bf16.msra.mxu0 %v10880_v40 }
0x62c8   : > { %v8287_v39 = vpop.f32.mrf.mxu0 }
0x62c9   : > { %v8288_v41 = vadd.f32 %v8287_v39, %v8223_v37 }
0x62ca   : > { %v8289_v42 = vpop.f32.mrf.mxu0 }
0x62cb   : > { %v12848_v43 = vadd.f32 %v8288_v41, %v12808_v54  ;;  %v8290_v45 = vadd.f32 %v8289_v42, %v8227_v38  ;;  %v8302_v54 = vld [vmem:[#allocation2 + $0x100] sm:$0xff]  ;;  %v8508_v42 = vld [vmem:[#allocation2 + $0x8] sm:$0xff] }
0x62cc   : > { %v8291_v46 = vpop.f32.mrf.mxu0  ;;  %v8507_v41 = vld [vmem:[#allocation2] sm:$0xff] }
0x62cd   : > { %v12851_v48 = vadd.f32 %v8290_v45, %v12811_v57  ;;  %v8292_v44 = vadd.f32 %v8291_v46, %v8223_v37 }
0x62ce   : > { %v8293_v49 = vpop.f32.mrf.mxu0 }
0x62cf   : > { %8300 = vst.msk [vmem:[#allocation2 + $0x200] sm:$0xff] %vm418_vm0, %v12851_v48  ;;  %v12856_v50 = vadd.f32 %v8292_v44, %v12816_v60  ;;  %v8294_v47 = vadd.f32 %v8293_v49, %v8227_v38 }
0x62d1   : > { %v12859_v51 = vadd.f32 %v8294_v47, %v12819_v62  ;;  %v10881_v62 = vld [vmem:[#allocation5 + $0x4d0] ss:$8 sps:$4 sm:$0xff]   ;;  %v10893_v47 = vld [vmem:[#allocation5 + $0x4f4] ss:$8 sps:$4 sm:$0xff]  }
0x62d2   : > { %8471 = vmatpush1.bf16.msra.mxu1 %v10881_v62  ;;  %8670 = vmatprep.subr.bf16.mxu0 %v10893_v47 }
0x62d3   : > { %8301 = vst.msk [vmem:[#allocation2 + $0x208] sm:$0xff] %vm418_vm0, %v12859_v51  ;;  %v10487_v53 = vpack.i.bf16 %v12859_v51, %v12851_v48  ;;  %8472 = vmatprep.subr.bf16.mxu1 %v10886_v10 }
0x62d5   : > { %10488 = vrot.lane.b32.xlu0 %v10487_v53, %s11146_s26 }
0x62d6   : > { %8473 = vmatpush1.bf16.msra.mxu1 %v10884_v9  ;;  %v10897_v9 = vld [vmem:[%s12987_s7 + $0x38] sm:$0xff]  }
0x62d7   : > { %10214 = vmatprep.subr.bf16.mxu1 %v11143_v0 }
0x6347   : > { %v10489_v56 = vpop.permute.xlu0 %10488 }
0x6348   : > { %v10491_v57 = vunpack.i.h.bf16 %v10489_v56  ;;  %v10490_v58 = vunpack.i.l.bf16 %v10489_v56 }
0x634a   : > { %v8313_v59 = vsel %vm418_vm0, %v8303_v55, %v10491_v57  ;;  %v8312_v60 = vsel %vm418_vm0, %v8302_v54, %v10490_v58 }
0x634b   : > { %v8314_v61 = vpack.c.bf16 %v8313_v59, %v8312_v60  ;;  %v10894_v59 = vld [vmem:[#allocation5 + $0x4e0] ss:$8 sps:$4 sm:$0xff]   ;;  %v10896_v60 = vld [vmem:[#allocation5 + $0x4e4] ss:$8 sps:$4 sm:$0xff]  }
0x634d   : > { %10211 = vmatmul.mubr.msk.bf16.vlgmr.msra.gmra.mxu0 %vm567_vm2, %v8314_v61 }
0x634e   : > { %8690 = vmatprep.mubr.bf16.mxu0 %v11144_v1 }
0x640d   : > { %v8393_v4 = vpop.f32.mrf.mxu0 }
0x640e   : > { %v8394_v63 = vadd.f32 %v9488_v3, %v8393_v4 }
0x640f   : > { %v10212_v6 = vpop.f32.mrf.mxu0 }
0x6410   : > { %11061 = vtanh.f32 %v8394_v63 }
0x6411   : > { %v8396_v7 = vpop.f32.mrf.mxu0 }
0x6412   : > { %v8397_v8 = vadd.f32 %v9488_v3, %v8396_v7 }
0x6413   : > { %v10213_v5 = vpop.f32.mrf.mxu0 }
0x6414   : > { %11063 = vtanh.f32 %v8397_v8 }
0x641d   : > { %v11062_v1 = vpop.eup %11061 }
0x641e   : > { %v8402_v11 = vmul.f32 0.5, %v11062_v1 }
0x6420   : > { %v8404_v12 = vadd.f32 0.5, %v8402_v11  ;;  %v10899_v11 = vld [vmem:[%s12987_s7 + $0x28] sm:$0xff]  }
0x6421   : > { %v11064_v13 = vpop.eup %11063 }
0x6422   : > { %8408 = vrot.lane.b32.xlu1 %v8404_v12, %s11147_s29  ;;  %v8403_v14 = vmul.f32 0.5, %v11064_v13  ;;  %v10900_v12 = vld [vmem:[%s12987_s7 + $0x20] sm:$0xff]  }
0x6424   : > { %v8405_v15 = vadd.f32 0.5, %v8403_v14  ;;  %v10902_v14 = vld [vmem:[%s12987_s7 + $0x10] sm:$0xff]  }
0x6426   : > { %8410 = vrot.lane.b32.xlu0 %v8405_v15, %s11147_s29  ;;  %v10903_v15 = vld [vmem:[%s12987_s7 + $0x8] sm:$0xff]  }
0x6494   : > { %v8409_v16 = vpop.permute.xlu1 %8408 }
0x6495   : > { %v8414_v18 = vmul.f32 %v11062_v1, %v8409_v16  ;;  %v10898_v1 = vld [vmem:[%s12987_s7 + $0x30] sm:$0xff]   ;;  %v10904_v16 = vld [vmem:[%s12987_s7] sm:$0xff]  }
0x6498   : > { %v8411_v17 = vpop.permute.xlu0 %8410 }
0x6499   : > { %v8415_v19 = vmul.f32 %v11064_v13, %v8411_v17  ;;  %v10901_v13 = vld [vmem:[%s12987_s7 + $0x18] sm:$0xff]  }
0x649a   : > { %v10905_v17 = vld [vmem:[%s12989_s9 + $0x18] sm:$0xff]  }
0x649b   : > { %v8416_v20 = vpack.c.bf16 %v8415_v19, %v8414_v18  ;;  %v9507_v18 = vld [vmem:[%s12986_s6 + $0x4e] sm:$0x3] }
0x649c   : > { %v8633_v19 = vrot.slane %v9507_v18, %v11382_v36  ;;  %v10907_v36 = vld [vmem:[%s12989_s9 + $0x8] sm:$0xff]  }
0x649d   : > { %9499 = vmatmul.mubr.msk.bf16.vlgmr.msra.gmra.mxu1 %vm418_vm0, %v8416_v20 }
0x649e   : > { %10222 = vmatprep.mubr.msk.bf16.mxu1 %vm11145_vm1, %v11143_v0  ;;  %10215 = vmatpush3.bf16.msra.mxu1 %v10887_v21 }
0x649f   : > { %10216 = vmatprep.subr.bf16.mxu1 %v11143_v0 }
0x64a2   : > { %10217 = vmatpush3.bf16.msra.mxu1 %v10888_v22 }
0x64a3   : > { %10218 = vmatprep.subr.bf16.mxu1 %v11143_v0 }
0x64a6   : > { %10219 = vmatpush3.bf16.msra.mxu1 %v10889_v23 }
0x64a7   : > { %10220 = vmatprep.subr.bf16.mxu1 %v11143_v0 }
0x64aa   : > { %10221 = vmatpush3.bf16.msra.mxu1 %v10890_v28 }
0x64ab   : > { %10246 = vmatprep.subr.bf16.mxu1 %v11143_v0 }
0x655d   : > { %v8492_v24 = vpop.f32.mrf.mxu1 }
0x655e   : > { %v8493_v29 = vadd.f32 %v8492_v24, %v8428_v26 }
0x655f   : > { %v8494_v30 = vpop.f32.mrf.mxu1 }
0x6560   : > { %v12888_v31 = vadd.f32 %v8493_v29, %v12848_v43  ;;  %v8495_v32 = vadd.f32 %v8494_v30, %v8432_v27  ;;  %v10906_v29 = vld [vmem:[%s12989_s9 + $0x10] sm:$0xff]   ;;  %v10908_v30 = vld [vmem:[%s12989_s9] sm:$0xff]  }
0x6561   : > { %v8496_v33 = vpop.f32.mrf.mxu1 }
0x6562   : > { %v8503_v34 = vadd.f32 %v8495_v32, %v12851_v48  ;;  %v8497_v35 = vadd.f32 %v8496_v33, %v8428_v26 }
0x6563   : > { %v8498_v37 = vpop.f32.mrf.mxu1 }
0x6564   : > { %8505 = vst.msk [vmem:[#allocation2 + $0x200] sm:$0xff] %vm418_vm0, %v8503_v34  ;;  %v12894_v52 = vadd.f32 %v8497_v35, %v12856_v50  ;;  %v8499_v38 = vadd.f32 %v8498_v37, %v8432_v27  ;;  %v10891_v50 = vld [vmem:[#allocation5 + $0x4f0] ss:$8 sps:$4 sm:$0xff]  }
0x6565   : > { %8671 = vmatpush1.bf16.msra.mxu0 %v10891_v50 }
0x6566   : > { %v8504_v39 = vadd.f32 %v8499_v38, %v12859_v51  ;;  %v9501_v51 = vld [vmem:[%s12984_s4 + $0x27] ss:$0 sm:$0xff]  ;;  %8672 = vmatprep.subr.bf16.mxu0 %v10896_v60 }
0x6568   : > { %8506 = vst.msk [vmem:[#allocation2 + $0x208] sm:$0xff] %vm418_vm0, %v8504_v39  ;;  %v10492_v40 = vpack.i.bf16 %v8504_v39, %v8503_v34 }
0x6569   : > { %8673 = vmatpush1.bf16.msra.mxu0 %v10894_v59 }
0x656a   : > { %10493 = vrot.lane.b32.xlu1 %v10492_v40, %s11146_s26  ;;  %10226 = vmatprep.subr.bf16.mxu0 %v11143_v0 }
0x65dc   : > { %v10494_v43 = vpop.permute.xlu1 %10493 }
0x65dd   : > { %v10496_v45 = vunpack.i.h.bf16 %v10494_v43  ;;  %v10495_v46 = vunpack.i.l.bf16 %v10494_v43 }
0x65df   : > { %v8518_v48 = vsel %vm418_vm0, %v8508_v42, %v10496_v45  ;;  %v8517_v44 = vsel %vm418_vm0, %v8507_v41, %v10495_v46 }
0x65e0   : > { %v8519_v49 = vpack.c.bf16 %v8518_v48, %v8517_v44 }
0x65e2   : > { %10223 = vmatmul.mubr.msk.bf16.vlgmr.msra.gmra.mxu1 %vm567_vm2, %v8519_v49 }
0x65e3   : > { %10254 = vmatprep.mubr.msk.bf16.mxu1 %vm11145_vm1, %v11143_v0  ;;  %10247 = vmatpush3.bf16.msra.mxu1 %v10905_v17 }
0x65e4   : > { %10248 = vmatprep.subr.bf16.mxu1 %v11143_v0 }
0x65e7   : > { %10249 = vmatpush3.bf16.msra.mxu1 %v10906_v29 }
0x65e8   : > { %10250 = vmatprep.subr.bf16.mxu1 %v11143_v0 }
0x65eb   : > { %10251 = vmatpush3.bf16.msra.mxu1 %v10907_v36 }
0x65ec   : > { %10252 = vmatprep.subr.bf16.mxu1 %v11143_v0 }
0x65ef   : > { %10253 = vmatpush3.bf16.msra.mxu1 %v10908_v30 }
0x66a2   : > { %v8598_v53 = vpop.f32.mrf.mxu1 }
0x66a3   : > { %v8599_v54 = vadd.f32 %v9501_v51, %v8598_v53 }
0x66a4   : > { %v10224_v55 = vpop.f32.mrf.mxu1 }
0x66a5   : > { %11065 = vtanh.f32 %v8599_v54 }
0x66a6   : > { %v8601_v56 = vpop.f32.mrf.mxu1 }
0x66a7   : > { %v8602_v57 = vadd.f32 %v9501_v51, %v8601_v56 }
0x66a8   : > { %v10225_v58 = vpop.f32.mrf.mxu1 }
0x66a9   : > { %11067 = vtanh.f32 %v8602_v57 }
0x66b2   : > { %v11066_v61 = vpop.eup %11065 }
0x66b3   : > { %v8607_v62 = vmul.f32 0.5, %v11066_v61 }
0x66b5   : > { %v8609_v2 = vadd.f32 0.5, %v8607_v62 }
0x66b6   : > { %v11068_v3 = vpop.eup %11067 }
0x66b7   : > { %8613 = vrot.lane.b32.xlu0 %v8609_v2, %s11147_s29  ;;  %v8608_v4 = vmul.f32 0.5, %v11068_v3 }
0x66b9   : > { %v8610_v63 = vadd.f32 0.5, %v8608_v4 }
0x66bb   : > { %8615 = vrot.lane.b32.xlu1 %v8610_v63, %s11147_s29 }
0x6729   : > { %v8614_v6 = vpop.permute.xlu0 %8613 }
0x672a   : > { %v8619_v8 = vmul.f32 %v11066_v61, %v8614_v6 }
0x672d   : > { %v8616_v7 = vpop.permute.xlu1 %8615 }
0x672e   : > { %v8620_v5 = vmul.f32 %v11068_v3, %v8616_v7 }
0x6730   : > { %v8621_v10 = vpack.c.bf16 %v8620_v5, %v8619_v8 }
0x6732   : > { %9512 = vmatmul.mubr.msk.bf16.vlgmr.msra.gmra.mxu0 %vm418_vm0, %v8621_v10 }
0x6733   : > { %10227 = vmatpush3.bf16.msra.mxu0 %v10897_v9  ;;  %10242 = vmatprep.mubr.msk.bf16.mxu0 %vm11145_vm1, %v11143_v0 }
0x6734   : > { %10228 = vmatprep.subr.bf16.mxu0 %v11143_v0 }
0x6737   : > { %10229 = vmatpush3.bf16.msra.mxu0 %v10898_v1 }
0x6738   : > { %10230 = vmatprep.subr.bf16.mxu0 %v11143_v0 }
0x673b   : > { %10231 = vmatpush3.bf16.msra.mxu0 %v10899_v11 }
0x673c   : > { %10232 = vmatprep.subr.bf16.mxu0 %v11143_v0 }
0x673f   : > { %10233 = vmatpush3.bf16.msra.mxu0 %v10900_v12 }
0x6740   : > { %10234 = vmatprep.subr.bf16.mxu0 %v11143_v0 }
0x6743   : > { %10235 = vmatpush3.bf16.msra.mxu0 %v10901_v13 }
0x6744   : > { %10236 = vmatprep.subr.bf16.mxu0 %v11143_v0 }
0x6747   : > { %10237 = vmatpush3.bf16.msra.mxu0 %v10902_v14 }
0x6748   : > { %10238 = vmatprep.subr.bf16.mxu0 %v11143_v0 }
0x674b   : > { %10239 = vmatpush3.bf16.msra.mxu0 %v10903_v15 }
0x674c   : > { %10240 = vmatprep.subr.bf16.mxu0 %v11143_v0  ;;  %v9522_v0 = vld [vmem:[%s12990_s10] ss:$0 sm:$0xff] }
0x674f   : > { %10241 = vmatpush3.bf16.msra.mxu0 %v10904_v16 }
0x67f2   : > { %v8692_v20 = vpop.f32.mrf.mxu0 }
0x67f3   : > { %v8693_v22 = vadd.f32 %v8692_v20, %v8633_v19 }
0x67f4   : > { %v8694_v21 = vpop.f32.mrf.mxu0 }
0x67f5   : > { %v8699_v27 = vadd.f32 %v8693_v22, %v12888_v31  ;;  %v9513_v31 = vld [vmem:[%s12988_s8] ss:$0 sm:$0xff] }
0x67f6   : > { %v8695_v23 = vpop.f32.mrf.mxu0 }
0x67f7   : > { %v8696_v25 = vadd.f32 %v8695_v23, %v8633_v19 }
0x67f8   : > { %v8697_v26 = vpop.f32.mrf.mxu0 }
0x67f9   : > { %v8700_v24 = vadd.f32 %v8696_v25, %v12894_v52 }
0x67fb   : > { %v8701_v28 = vpack.c.bf16 %v8700_v24, %v8699_v27 }
0x67fd   : > { %10243 = vmatmul.mubr.bf16.vlgmr.msra.gmra.mxu0 %v8701_v28 }
0x68bd   : > { %v8807_v32 = vpop.f32.mrf.mxu0 }
0x68be   : > { %v8808_v34 = vadd.f32 %v9513_v31, %v8807_v32 }
0x68bf   : > { %v10244_v33 = vpop.f32.mrf.mxu0 }
0x68c0   : > { %v8814_v38 = vmax.f32 %v8808_v34, 0.0 }
0x68c1   : > { %v8810_v35 = vpop.f32.mrf.mxu0 }
0x68c2   : > { %v8811_v37 = vadd.f32 %v9513_v31, %v8810_v35 }
0x68c3   : > { %v10245_v52 = vpop.f32.mrf.mxu0 }
0x68c4   : > { %v8815_v39 = vmax.f32 %v8811_v37, 0.0 }
0x68c6   : > { %v8816_v40 = vpack.c.bf16 %v8815_v39, %v8814_v38 }
0x68c8   : > { %10255 = vmatmul.mubr.msk.bf16.vlgmr.msra.gmra.mxu1 %vm567_vm2, %v8816_v40 }
0x6988   : > { %v8893_v41 = vpop.f32.mrf.mxu1 }
0x6989   : > { %v8894_v42 = vadd.f32 %v9522_v0, %v8893_v41 }
0x698a   : > { %v10256_v43 = vpop.f32.mrf.mxu1 }
0x698b   : > { %8901 = vst.msk [vmem:[%s416_s12] sm:$0xff] %vm8900_vm3, %v8894_v42 }
0x698c   : > { %v8896_v45 = vpop.f32.mrf.mxu1 }
0x698d   : > { %v8897_v46 = vadd.f32 %v9522_v0, %v8896_v45 }
0x698e   : > { %v10257_v48 = vpop.f32.mrf.mxu1 }
0x698f   : > { %8902 = vst.msk [vmem:[%s416_s12 + $0x8] sm:$0xff] %vm8900_vm3, %v8897_v46 }
0x6990 PF: > { %s23_s17 = sadd.s32 1, %s11135_s17  }
0x6991   : > { %p20_p2 = scmp.ge.s32.totalorder %s23_s17, 4  }
0x6993   :  { %22 = sbr.rel (!%p20_p2) target bundleno = 2 (0x2), region = 259 }
0x6998   :  { %8924 = vsyncpa [#allocation4], 1 }
0x6999   :  { %8926 = vsyncpa [#allocation4 + $0x1], 1 }
0x699a   :  { %8927 = vsyncpa [#allocation6], 1 }

</bundles_post_ra>
